<compile_context>
chip_gen: v7x
topology: tpu7x:2x2x1
jax: 0.10.0
libtpu: 0.0.40
codegen_flags: <defaults>
</compile_context>

<pallas_src>
import jax
import jax.numpy as jnp
from jax.experimental import pallas as pl
from jax.experimental.pallas import tpu as pltpu


def _testnet_kernel(x_ref,
                    w1_ref, b1_ref,
                    w2_ref, b2_ref,
                    w3_ref, b3_ref,
                    w4_ref, b4_ref,
                    alpha_ref,
                    w5_ref, b5_ref,
                    out_ref):
    """Fused 5-layer MLP (ReLU x3, PReLU, Sigmoid); one batch tile per grid step."""

    def dense(h, w_ref, b_ref):
        # bf16 operands on the MXU, f32 accumulation, f32 bias add.
        hb = h if h.dtype == jnp.bfloat16 else h.astype(jnp.bfloat16)
        return jnp.dot(hb, w_ref[...], preferred_element_type=jnp.float32) + b_ref[...]

    x = x_ref[...]                                    # already bf16
    h = jnp.maximum(dense(x, w1_ref, b1_ref), 0.0)    # fc1 + ReLU (dropout1 = identity)
    h = jnp.maximum(dense(h, w2_ref, b2_ref), 0.0)    # fc2 + ReLU (dropout2 = identity)
    h = jnp.maximum(dense(h, w3_ref, b3_ref), 0.0)    # fc3 + ReLU (dropout3 = identity)

    a4 = dense(h, w4_ref, b4_ref)                     # fc4 (lane-padded 64 -> 128)
    alpha = alpha_ref[0, 0]                           # PReLU(1) shared scalar from SMEM
    h4 = jnp.where(a4 > 0.0, a4, alpha * a4)

    a5 = dense(h4, w5_ref, b5_ref)                    # out (lane-padded 1 -> 128)
    out_ref[...] = jax.nn.sigmoid(a5).astype(out_ref.dtype)   # bf16 lane-dense writeback


def _vmem_capacity_bytes():
    """Physical VMEM per TensorCore; conservative (v7x) default if query unavailable."""
    try:
        return int(pltpu.get_tpu_info().vmem_capacity_bytes)
    except Exception:  # hardware-query fallback only; picks the conservative config
        return 64 * 1024 * 1024


def _auto_batch_tile(batch, vmem_cap_bytes):
    """Multiple of 256, >= ~4 grid steps when the batch allows, VMEM-capped per chip."""
    max_tile = 2048 if vmem_cap_bytes >= 96 * 1024 * 1024 else 1024   # v5e/v6e vs v7x
    target = max(256, -(-batch // 4))          # aim for >=4 grid steps (2 TCs on v7x)
    tile = max(256, (target // 256) * 256)     # keep a multiple of 256
    return min(max_tile, tile)


def _single_buffer_supported():
    """Feature check for pl.Buffered + BlockSpec(pipeline_mode=...) (no compile needed)."""
    if not hasattr(pl, "Buffered"):
        return False
    try:
        pl.BlockSpec((8, 128), lambda i: (0, 0), pipeline_mode=pl.Buffered(1))
    except TypeError:
        return False
    return True


def testnet_forward(x, params, *, batch_tile=None):
    """x: (B, n_input) float32.  params: dict of f32 weights (in,out), biases (1,out), alpha (1,1)."""
    B, n_in = x.shape
    vmem_cap = _vmem_capacity_bytes()
    if batch_tile is None:
        batch_tile = _auto_batch_tile(B, vmem_cap)
    assert batch_tile % 16 == 0, "batch_tile must be a multiple of 16 (bf16 sublane tiling)"

    n_tiles = max(1, -(-B // batch_tile))
    Bp = n_tiles * batch_tile
    if Bp != B:
        x = jnp.pad(x, ((0, Bp - B), (0, 0)))         # zero rows, sliced off below
    x = x.astype(jnp.bfloat16)                         # bf16 x: half DMA/VMEM, no in-kernel cast

    w1, b1 = params["w1"], params["b1"]
    w2, b2 = params["w2"], params["b2"]
    w3, b3 = params["w3"], params["b3"]
    w4, b4 = params["w4"], params["b4"]
    w5, b5 = params["w5"], params["b5"]
    alpha = params["alpha"].reshape(1, 1).astype(jnp.float32)

    # Zero-pad fc4/fc5 output lanes to 128: full MXU columns + lane-dense output block.
    # (Deliberately NOT padded to 256: fc4/fc5 are <2% of FLOPs; 128 keeps stores dense.)
    PAD_N = 128
    h4_dim = w4.shape[1]       # 64
    n_out = w5.shape[1]        # 1
    assert h4_dim <= PAD_N and n_out <= PAD_N
    w4p = jnp.zeros((w4.shape[0], PAD_N), w4.dtype).at[:, :h4_dim].set(w4)
    b4p = jnp.zeros((1, PAD_N), b4.dtype).at[:, :h4_dim].set(b4)
    w5p = jnp.zeros((PAD_N, PAD_N), w5.dtype).at[:h4_dim, :n_out].set(w5)
    b5p = jnp.zeros((1, PAD_N), b5.dtype).at[:, :n_out].set(b5)

    # bf16 weights: half the HBM/VMEM footprint, native MXU rate; biases stay f32.
    w1b, w2b, w3b, w4b, w5b = (w.astype(jnp.bfloat16) for w in (w1, w2, w3, w4p, w5p))

    operands = (x, w1b, b1, w2b, b2, w3b, b3, w4b, b4p, alpha, w5b, b5p)

    flops = 2 * Bp * sum(int(w.shape[0]) * int(w.shape[1])
                         for w in (w1b, w2b, w3b, w4b, w5b))
    bytes_accessed = int(
        x.size * x.dtype.itemsize
        + sum(int(a.size) * a.dtype.itemsize
              for a in (w1b, b1, w2b, b2, w3b, b3, w4b, b4p, alpha, w5b, b5p))
        + Bp * PAD_N * 2)                               # bf16 padded output writeback
    cost = pl.CostEstimate(flops=flops, transcendentals=Bp * PAD_N,
                           bytes_accessed=bytes_accessed)

    # v7x (<=64 MiB physical VMEM per TC): keep scoped limit <= 48 MiB; v5e/v6e: 64 MiB.
    vmem_limit = 64 * 1024 * 1024 if vmem_cap >= 96 * 1024 * 1024 else 48 * 1024 * 1024

    def build(single_buffer_weights):
        def rep(arr):
            nd = arr.ndim
            if single_buffer_weights:
                # Replicated operand: block index never changes -> single VMEM buffer.
                return pl.BlockSpec(arr.shape, lambda i: (0,) * nd,
                                    pipeline_mode=pl.Buffered(1))
            return pl.BlockSpec(arr.shape, lambda i: (0,) * nd)

        in_specs = [
            pl.BlockSpec((batch_tile, n_in), lambda i: (i, 0)),   # x tile (bf16)
            rep(w1b), rep(b1),
            rep(w2b), rep(b2),
            rep(w3b), rep(b3),
            rep(w4b), rep(b4p),
            pl.BlockSpec(memory_space=pltpu.MemorySpace.SMEM),    # PReLU alpha (scalar)
            rep(w5b), rep(b5p),
        ]
        return pl.pallas_call(
            _testnet_kernel,
            out_shape=jax.ShapeDtypeStruct((Bp, PAD_N), jnp.bfloat16),
            grid_spec=pltpu.PrefetchScalarGridSpec(
                num_scalar_prefetch=0,
                grid=(Bp // batch_tile,),
                in_specs=in_specs,
                out_specs=pl.BlockSpec((batch_tile, PAD_N), lambda i: (i, 0)),
            ),
            compiler_params=pltpu.CompilerParams(
                dimension_semantics=("parallel",),
                vmem_limit_bytes=vmem_limit,
            ),
            cost_estimate=cost,
        )

    if _single_buffer_supported():
        try:
            out = build(True)(*operands)
        except pltpu.LoweringException:
            # buffer_count=1 rejected by this Mosaic build -> default double-buffering.
            out = build(False)(*operands)
    else:
        out = build(False)(*operands)

    return out[:B, :n_out].astype(jnp.float32)


def init_params(n_input, key):
    """Deterministic init matching the PyTorch layer shapes (weights stored as (in, out))."""
    dims = [(n_input, 512), (512, 1024), (1024, 512), (512, 64), (64, 1)]
    params = {}
    for idx, (fan_in, fan_out) in enumerate(dims, start=1):
        key, kw, kb = jax.random.split(key, 3)
        bound = float(fan_in) ** -0.5
        params[f"w{idx}"] = jax.random.uniform(kw, (fan_in, fan_out), jnp.float32, -bound, bound)
        params[f"b{idx}"] = jax.random.uniform(kb, (1, fan_out), jnp.float32, -bound, bound)
    # PReLU(1) default init in PyTorch: 0.25
    params["alpha"] = jnp.full((1, 1), 0.25, dtype=jnp.float32)
    return params


def testnet_reference(x, p, *, bf16_weights=False):
    """Pure-JAX reference. bf16_weights=True mirrors the kernel matmul numerics."""
    def dense(h, w, b):
        if bf16_weights:
            return jnp.dot(h.astype(jnp.bfloat16), w.astype(jnp.bfloat16),
                           preferred_element_type=jnp.float32) + b
        return jnp.dot(h, w, preferred_element_type=jnp.float32) + b

    h = jnp.maximum(dense(x, p["w1"], p["b1"]), 0.0)
    h = jnp.maximum(dense(h, p["w2"], p["b2"]), 0.0)
    h = jnp.maximum(dense(h, p["w3"], p["b3"]), 0.0)
    a4 = dense(h, p["w4"], p["b4"])
    h4 = jnp.where(a4 > 0.0, a4, p["alpha"][0, 0] * a4)
    return jax.nn.sigmoid(dense(h4, p["w5"], p["b5"]))


if __name__ == "__main__":
    n_input = 32
    batch = 8

    key = jax.random.PRNGKey(0)
    kx, kp = jax.random.split(key)
    x = jax.random.normal(kx, (batch, n_input), dtype=jnp.float32)
    params = init_params(n_input, kp)

    y = jax.block_until_ready(testnet_forward(x, params))
    assert y.shape == (batch, 1)

    # Mirror of the kernel matmul numerics (bf16 operands, f32 accumulation);
    # the kernel additionally rounds the sigmoid output to bf16, hence 1e-2.
    y_bf16 = testnet_reference(x, params, bf16_weights=True)
    # Original (PyTorch-equivalent) pure-f32 math.
    y_f32 = testnet_reference(x, params, bf16_weights=False)

    assert jnp.allclose(y, y_bf16, atol=1e-2, rtol=1e-2), "mismatch vs bf16 reference"
    assert jnp.allclose(y, y_f32, atol=3e-2, rtol=3e-2), "mismatch vs f32 reference"

    print("KERNEL_OK")
</pallas_src>

<mosaic_0001>
module attributes {stable_mosaic.version = 11 : i64} {
  func.func @_testnet_kernel(%arg0: i32, %arg1: memref<256x32xbf16, #tpu.memory_space<vmem>>, %arg2: memref<32x512xbf16, #tpu.memory_space<vmem>>, %arg3: memref<1x512xf32, #tpu.memory_space<vmem>>, %arg4: memref<512x1024xbf16, #tpu.memory_space<vmem>>, %arg5: memref<1x1024xf32, #tpu.memory_space<vmem>>, %arg6: memref<1024x512xbf16, #tpu.memory_space<vmem>>, %arg7: memref<1x512xf32, #tpu.memory_space<vmem>>, %arg8: memref<512x128xbf16, #tpu.memory_space<vmem>>, %arg9: memref<1x128xf32, #tpu.memory_space<vmem>>, %arg10: memref<1x1xf32, #tpu.memory_space<smem>>, %arg11: memref<128x128xbf16, #tpu.memory_space<vmem>>, %arg12: memref<1x128xf32, #tpu.memory_space<vmem>>, %arg13: memref<256x128xbf16, #tpu.memory_space<vmem>>) attributes {dimension_semantics = [#tpu.dimension_semantics<parallel>], iteration_bounds = array<i64: 1>, scalar_prefetch = 0 : i64, scratch_operands = 0 : i64, tpu.core_type = #tpu.core_type<tc>, window_params = [{transform_indices = @transform_0, window_bounds = array<i64: 256, 32>}, {pipeline_mode = #tpu.pipeline_mode<synchronous>, transform_indices = @transform_1, window_bounds = array<i64: 32, 512>}, {pipeline_mode = #tpu.pipeline_mode<synchronous>, transform_indices = @transform_2, window_bounds = array<i64: 1, 512>}, {pipeline_mode = #tpu.pipeline_mode<synchronous>, transform_indices = @transform_3, window_bounds = array<i64: 512, 1024>}, {pipeline_mode = #tpu.pipeline_mode<synchronous>, transform_indices = @transform_4, window_bounds = array<i64: 1, 1024>}, {pipeline_mode = #tpu.pipeline_mode<synchronous>, transform_indices = @transform_5, window_bounds = array<i64: 1024, 512>}, {pipeline_mode = #tpu.pipeline_mode<synchronous>, transform_indices = @transform_6, window_bounds = array<i64: 1, 512>}, {pipeline_mode = #tpu.pipeline_mode<synchronous>, transform_indices = @transform_7, window_bounds = array<i64: 512, 128>}, {pipeline_mode = #tpu.pipeline_mode<synchronous>, transform_indices = @transform_8, window_bounds = array<i64: 1, 128>}, {transform_indices = @transform_9, window_bounds = array<i64: 1, 1>}, {pipeline_mode = #tpu.pipeline_mode<synchronous>, transform_indices = @transform_10, window_bounds = array<i64: 128, 128>}, {pipeline_mode = #tpu.pipeline_mode<synchronous>, transform_indices = @transform_11, window_bounds = array<i64: 1, 128>}, {transform_indices = @transform_12, window_bounds = array<i64: 256, 128>}]} {
    %c0 = arith.constant 0 : index
    %c0_0 = arith.constant 0 : index
    %0 = vector.load %arg1[%c0, %c0_0] : memref<256x32xbf16, #tpu.memory_space<vmem>>, vector<256x32xbf16>
    %c0_1 = arith.constant 0 : index
    %c0_2 = arith.constant 0 : index
    %1 = vector.load %arg2[%c0_1, %c0_2] : memref<32x512xbf16, #tpu.memory_space<vmem>>, vector<32x512xbf16>
    %cst = arith.constant dense<0.000000e+00> : vector<256x512xf32>
    %2 = tpu.matmul %0, %1, %cst {dimension_numbers = #tpu.dot_dimension_numbers<[1], [0], [0], [1], [0, 0, 1, 1], [], []>} : vector<256x32xbf16>, vector<32x512xbf16>, vector<256x512xf32> -> vector<256x512xf32>
    %c0_3 = arith.constant 0 : index
    %c0_4 = arith.constant 0 : index
    %3 = vector.load %arg3[%c0_3, %c0_4] : memref<1x512xf32, #tpu.memory_space<vmem>>, vector<1x512xf32>
    %4 = vector.broadcast %3 : vector<1x512xf32> to vector<256x512xf32>
    %5 = arith.addf %2, %4 : vector<256x512xf32>
    %cst_5 = arith.constant 0.000000e+00 : f32
    %6 = vector.broadcast %cst_5 : f32 to vector<256x512xf32>
    %7 = arith.maximumf %5, %6 : vector<256x512xf32>
    %8 = arith.truncf %7 : vector<256x512xf32> to vector<256x512xbf16>
    %c0_6 = arith.constant 0 : index
    %c0_7 = arith.constant 0 : index
    %9 = vector.load %arg4[%c0_6, %c0_7] : memref<512x1024xbf16, #tpu.memory_space<vmem>>, vector<512x1024xbf16>
    %cst_8 = arith.constant dense<0.000000e+00> : vector<256x1024xf32>
    %10 = tpu.matmul %8, %9, %cst_8 {dimension_numbers = #tpu.dot_dimension_numbers<[1], [0], [0], [1], [0, 0, 1, 1], [], []>} : vector<256x512xbf16>, vector<512x1024xbf16>, vector<256x1024xf32> -> vector<256x1024xf32>
    %c0_9 = arith.constant 0 : index
    %c0_10 = arith.constant 0 : index
    %11 = vector.load %arg5[%c0_9, %c0_10] : memref<1x1024xf32, #tpu.memory_space<vmem>>, vector<1x1024xf32>
    %12 = vector.broadcast %11 : vector<1x1024xf32> to vector<256x1024xf32>
    %13 = arith.addf %10, %12 : vector<256x1024xf32>
    %cst_11 = arith.constant 0.000000e+00 : f32
    %14 = vector.broadcast %cst_11 : f32 to vector<256x1024xf32>
    %15 = arith.maximumf %13, %14 : vector<256x1024xf32>
    %16 = arith.truncf %15 : vector<256x1024xf32> to vector<256x1024xbf16>
    %c0_12 = arith.constant 0 : index
    %c0_13 = arith.constant 0 : index
    %17 = vector.load %arg6[%c0_12, %c0_13] : memref<1024x512xbf16, #tpu.memory_space<vmem>>, vector<1024x512xbf16>
    %cst_14 = arith.constant dense<0.000000e+00> : vector<256x512xf32>
    %18 = tpu.matmul %16, %17, %cst_14 {dimension_numbers = #tpu.dot_dimension_numbers<[1], [0], [0], [1], [0, 0, 1, 1], [], []>} : vector<256x1024xbf16>, vector<1024x512xbf16>, vector<256x512xf32> -> vector<256x512xf32>
    %c0_15 = arith.constant 0 : index
    %c0_16 = arith.constant 0 : index
    %19 = vector.load %arg7[%c0_15, %c0_16] : memref<1x512xf32, #tpu.memory_space<vmem>>, vector<1x512xf32>
    %20 = vector.broadcast %19 : vector<1x512xf32> to vector<256x512xf32>
    %21 = arith.addf %18, %20 : vector<256x512xf32>
    %cst_17 = arith.constant 0.000000e+00 : f32
    %22 = vector.broadcast %cst_17 : f32 to vector<256x512xf32>
    %23 = arith.maximumf %21, %22 : vector<256x512xf32>
    %24 = arith.truncf %23 : vector<256x512xf32> to vector<256x512xbf16>
    %c0_18 = arith.constant 0 : index
    %c0_19 = arith.constant 0 : index
    %25 = vector.load %arg8[%c0_18, %c0_19] : memref<512x128xbf16, #tpu.memory_space<vmem>>, vector<512x128xbf16>
    %cst_20 = arith.constant dense<0.000000e+00> : vector<256x128xf32>
    %26 = tpu.matmul %24, %25, %cst_20 {dimension_numbers = #tpu.dot_dimension_numbers<[1], [0], [0], [1], [0, 0, 1, 1], [], []>} : vector<256x512xbf16>, vector<512x128xbf16>, vector<256x128xf32> -> vector<256x128xf32>
    %c0_21 = arith.constant 0 : index
    %c0_22 = arith.constant 0 : index
    %27 = vector.load %arg9[%c0_21, %c0_22] : memref<1x128xf32, #tpu.memory_space<vmem>>, vector<1x128xf32>
    %28 = vector.broadcast %27 : vector<1x128xf32> to vector<256x128xf32>
    %29 = arith.addf %26, %28 : vector<256x128xf32>
    %c0_23 = arith.constant 0 : index
    %c0_24 = arith.constant 0 : index
    %30 = memref.load %arg10[%c0_23, %c0_24] : memref<1x1xf32, #tpu.memory_space<smem>>
    %cst_25 = arith.constant 0.000000e+00 : f32
    %31 = vector.broadcast %cst_25 : f32 to vector<256x128xf32>
    %32 = arith.cmpf ogt, %29, %31 : vector<256x128xf32>
    %33 = vector.broadcast %30 : f32 to vector<256x128xf32>
    %34 = arith.mulf %33, %29 : vector<256x128xf32>
    %35 = arith.select %32, %29, %34 : vector<256x128xi1>, vector<256x128xf32>
    %36 = arith.truncf %35 : vector<256x128xf32> to vector<256x128xbf16>
    %c0_26 = arith.constant 0 : index
    %c0_27 = arith.constant 0 : index
    %37 = vector.load %arg11[%c0_26, %c0_27] : memref<128x128xbf16, #tpu.memory_space<vmem>>, vector<128x128xbf16>
    %cst_28 = arith.constant dense<0.000000e+00> : vector<256x128xf32>
    %38 = tpu.matmul %36, %37, %cst_28 {dimension_numbers = #tpu.dot_dimension_numbers<[1], [0], [0], [1], [0, 0, 1, 1], [], []>} : vector<256x128xbf16>, vector<128x128xbf16>, vector<256x128xf32> -> vector<256x128xf32>
    %c0_29 = arith.constant 0 : index
    %c0_30 = arith.constant 0 : index
    %39 = vector.load %arg12[%c0_29, %c0_30] : memref<1x128xf32, #tpu.memory_space<vmem>>, vector<1x128xf32>
    %40 = vector.broadcast %39 : vector<1x128xf32> to vector<256x128xf32>
    %41 = arith.addf %38, %40 : vector<256x128xf32>
    %42 = arith.negf %41 : vector<256x128xf32>
    %43 = math.exp %42 : vector<256x128xf32>
    %cst_31 = arith.constant 1.000000e+00 : f32
    %44 = vector.broadcast %cst_31 : f32 to vector<256x128xf32>
    %45 = arith.addf %44, %43 : vector<256x128xf32>
    %46 = arith.divf %44, %45 : vector<256x128xf32>
    %47 = arith.truncf %46 : vector<256x128xf32> to vector<256x128xbf16>
    %c0_32 = arith.constant 0 : index
    %c0_33 = arith.constant 0 : index
    %48 = vector.load %arg13[%c0_32, %c0_33] : memref<256x128xbf16, #tpu.memory_space<vmem>>, vector<256x128xbf16>
    tpu.vector_store %arg13[%c0_32, %c0_33], %47 {strides = array<i32>} : memref<256x128xbf16, #tpu.memory_space<vmem>>, vector<256x128xbf16>,
    return
  }
  func.func @transform_0(%arg0: i32) -> (i32, i32) {
    %c0_i32 = arith.constant 0 : i32
    %c0_i32_0 = arith.constant 0 : i32
    return %arg0, %c0_i32 : i32, i32
  }
  func.func @transform_1(%arg0: i32) -> (i32, i32) {
    %c0_i32 = arith.constant 0 : i32
    %c0_i32_0 = arith.constant 0 : i32
    %c0_i32_1 = arith.constant 0 : i32
    return %c0_i32, %c0_i32_0 : i32, i32
  }
  func.func @transform_2(%arg0: i32) -> (i32, i32) {
    %c0_i32 = arith.constant 0 : i32
    %c0_i32_0 = arith.constant 0 : i32
    %c0_i32_1 = arith.constant 0 : i32
    return %c0_i32, %c0_i32_0 : i32, i32
  }
  func.func @transform_3(%arg0: i32) -> (i32, i32) {
    %c0_i32 = arith.constant 0 : i32
    %c0_i32_0 = arith.constant 0 : i32
    %c0_i32_1 = arith.constant 0 : i32
    return %c0_i32, %c0_i32_0 : i32, i32
  }
  func.func @transform_4(%arg0: i32) -> (i32, i32) {
    %c0_i32 = arith.constant 0 : i32
    %c0_i32_0 = arith.constant 0 : i32
    %c0_i32_1 = arith.constant 0 : i32
    return %c0_i32, %c0_i32_0 : i32, i32
  }
  func.func @transform_5(%arg0: i32) -> (i32, i32) {
    %c0_i32 = arith.constant 0 : i32
    %c0_i32_0 = arith.constant 0 : i32
    %c0_i32_1 = arith.constant 0 : i32
    return %c0_i32, %c0_i32_0 : i32, i32
  }
  func.func @transform_6(%arg0: i32) -> (i32, i32) {
    %c0_i32 = arith.constant 0 : i32
    %c0_i32_0 = arith.constant 0 : i32
    %c0_i32_1 = arith.constant 0 : i32
    return %c0_i32, %c0_i32_0 : i32, i32
  }
  func.func @transform_7(%arg0: i32) -> (i32, i32) {
    %c0_i32 = arith.constant 0 : i32
    %c0_i32_0 = arith.constant 0 : i32
    %c0_i32_1 = arith.constant 0 : i32
    return %c0_i32, %c0_i32_0 : i32, i32
  }
  func.func @transform_8(%arg0: i32) -> (i32, i32) {
    %c0_i32 = arith.constant 0 : i32
    %c0_i32_0 = arith.constant 0 : i32
    %c0_i32_1 = arith.constant 0 : i32
    return %c0_i32, %c0_i32_0 : i32, i32
  }
  func.func @transform_9(%arg0: i32) -> (i32, i32) {
    %c0_i32 = arith.constant 0 : i32
    %c0_i32_0 = arith.constant 0 : i32
    %c0_i32_1 = arith.constant 0 : i32
    return %c0_i32, %c0_i32_0 : i32, i32
  }
  func.func @transform_10(%arg0: i32) -> (i32, i32) {
    %c0_i32 = arith.constant 0 : i32
    %c0_i32_0 = arith.constant 0 : i32
    %c0_i32_1 = arith.constant 0 : i32
    return %c0_i32, %c0_i32_0 : i32, i32
  }
  func.func @transform_11(%arg0: i32) -> (i32, i32) {
    %c0_i32 = arith.constant 0 : i32
    %c0_i32_0 = arith.constant 0 : i32
    %c0_i32_1 = arith.constant 0 : i32
    return %c0_i32, %c0_i32_0 : i32, i32
  }
  func.func @transform_12(%arg0: i32) -> (i32, i32) {
    %c0_i32 = arith.constant 0 : i32
    %c0_i32_0 = arith.constant 0 : i32
    return %arg0, %c0_i32 : i32, i32
  }
}

</mosaic_0001>

<bundles_post_ra>
// kernel: tpu_custom_call.1
= control target key start
LH: loop header
LB: loop body
LE: loop exit
PB: predicated region body
PF: predicated region fallthrough
CT: control target
= control target key end

     0   :  { %18 = vsyncpa [#allocation4], 0  ;;  %s14056_s0 = inlined_call_operand.vmem [shape: bf16[256,32], index: 0, kind: input, shape index: {}]   ;;  %s14057_s1 = inlined_call_operand.vmem [shape: bf16[32,512], index: 1, kind: input, shape index: {}]   ;;  %s14058_s2 = inlined_call_operand.vmem [shape: f32[1,512], index: 2, kind: input, shape index: {}]   ;;  %s14059_s3 = inlined_call_operand.hbm [shape: bf16[512,1024], index: 3, kind: input, shape index: {}]   ;;  %s14060_s4 = inlined_call_operand.vmem [shape: f32[1,1024], index: 4, kind: input, shape index: {}]   ;;  %s14061_s5 = inlined_call_operand.hbm [shape: bf16[1024,512], index: 5, kind: input, shape index: {}]   ;;  %s14062_s6 = inlined_call_operand.vmem [shape: f32[1,512], index: 6, kind: input, shape index: {}]   ;;  %s14063_s7 = inlined_call_operand.hbm [shape: bf16[512,128], index: 7, kind: input, shape index: {}]   ;;  %s14064_s8 = inlined_call_operand.vmem [shape: f32[1,128], index: 8, kind: input, shape index: {}]   ;;  %s14065_s9 = inlined_call_operand.<no memory space> [shape: f32[1,1], index: 9, kind: input, shape index: {}]   ;;  %s14066_s10 = inlined_call_operand.vmem [shape: bf16[128,128], index: 10, kind: input, shape index: {}]   ;;  %s14067_s11 = inlined_call_operand.vmem [shape: f32[1,128], index: 11, kind: input, shape index: {}]   ;;  %s14068_s12 = inlined_call_operand.hbm [shape: bf16[256,128], index: 12, kind: output, shape index: {}]  }
   0x1   :  { %19 = vsyncpa [#allocation7], 0 }
   0x2   :  { %20 = vsyncpa [#allocation5], 0  ;;  %s11810_s21 = smov [#allocation6]   ;;  %s11716_s25 = scalar_lea.hbm %s14061_s5, 32768 }
   0x3   :  { %s46_s22 = sshll.u32 %s11810_s21, 4  ;;  %p11717_p0 = scmp.ne.s32.totalorder %s14061_s5, %s11716_s25  ;;  %s47_s22 = int_to_ptr.vmem [resolvable:$true] %s46_s22 }
   0x4   :  { %p11720_p1 = scmp.lt.u32.totalorder %s11716_s25, %s14061_s5 }
   0x6   :  { %p11722_p2 = pnand %p11720_p1, %p11717_p0 }
   0x8   :  { %11725 = shalt.err (!%p11722_p2)
}
   0x9   :  { %s11726_s30 = scalar_lea.vmem %s47_s22, 32768  ;;  %p11731_p4 = scmp.lt.s32.totalorder %s47_s22, %s47_s22 }
   0xa   :  { %p11727_p3 = scmp.ne.s32.totalorder %s47_s22, %s11726_s30  ;;  %p11732_p5 = scmp.lt.s32.totalorder %s11726_s30, %s11726_s30 }
   0xc   :  { %p11733_p6 = por %p11732_p5, %p11731_p4 }
   0xe   :  { %p11734_p7 = pnand %p11733_p6, %p11727_p3 }
  0x10   :  { %11737 = shalt.err (!%p11734_p7)
}
  0x11   :  { %s11811_s13 = smov 256   ;;  %s11812_s14 = smov 16  }
  0x12   :  { %52 = dma.hbm_to_vmem [thread:$0]  %s14061_s5, 32768, %s47_s22, [#allocation7], %s11811_s13, %s11811_s13, %s11812_s14  }
  0x13   :  { %s11813_s17 = smov [#allocation3]   ;;  %s11738_s21 = scalar_lea.hbm %s14059_s3, 32768 }
  0x14   :  { %s32_s18 = sshll.u32 %s11813_s17, 4  ;;  %p11739_p8 = scmp.ne.s32.totalorder %s14059_s3, %s11738_s21  ;;  %s33_s18 = int_to_ptr.vmem [resolvable:$true] %s32_s18 }
  0x15   :  { %p11742_p9 = scmp.lt.u32.totalorder %s11738_s21, %s14059_s3 }
  0x17   :  { %p11744_p10 = pnand %p11742_p9, %p11739_p8 }
  0x19   :  { %11747 = shalt.err (!%p11744_p10)
}
  0x1a   :  { %s11748_s27 = scalar_lea.vmem %s33_s18, 32768  ;;  %p11753_p12 = scmp.lt.s32.totalorder %s33_s18, %s33_s18 }
  0x1b   :  { %p11749_p11 = scmp.ne.s32.totalorder %s33_s18, %s11748_s27  ;;  %p11754_p13 = scmp.lt.s32.totalorder %s11748_s27, %s11748_s27 }
  0x1d   :  { %p11755_p0 = por %p11754_p13, %p11753_p12 }
  0x1f   :  { %p11756_p1 = pnand %p11755_p0, %p11749_p11 }
  0x21   :  { %11759 = shalt.err (!%p11756_p1)
}
  0x22   :  { %s11814_s5 = smov 512   ;;  %s11815_s22 = smov 32  }
  0x23   :  { %38 = dma.hbm_to_vmem [thread:$0]  %s14059_s3, 32768, %s33_s18, [#allocation4], %s11814_s5, %s11814_s5, %s11815_s22  }
  0x24   :  { %s11816_s30 = smov [#allocation8]   ;;  %s11760_s16 = scalar_lea.hbm %s14063_s7, 4096 }
  0x25   :  { %s60_s13 = sshll.u32 %s11816_s30, 4  ;;  %p11761_p2 = scmp.ne.s32.totalorder %s14063_s7, %s11760_s16  ;;  %s61_s13 = int_to_ptr.vmem [resolvable:$true] %s60_s13 }
  0x26   :  { %p11764_p3 = scmp.lt.u32.totalorder %s11760_s16, %s14063_s7 }
  0x28   :  { %p11766_p4 = pnand %p11764_p3, %p11761_p2 }
  0x2a   :  { %11769 = shalt.err (!%p11766_p4)
}
  0x2b   :  { %s11770_s23 = scalar_lea.vmem %s61_s13, 4096  ;;  %p11775_p6 = scmp.lt.s32.totalorder %s61_s13, %s61_s13 }
  0x2c   :  { %p11771_p5 = scmp.ne.s32.totalorder %s61_s13, %s11770_s23  ;;  %p11776_p7 = scmp.lt.s32.totalorder %s11770_s23, %s11770_s23 }
  0x2e   :  { %p11777_p8 = por %p11776_p7, %p11775_p6 }
  0x30   :  { %p11778_p9 = pnand %p11777_p8, %p11771_p5 }
  0x32   :  { %11781 = shalt.err (!%p11778_p9)
}
  0x33   :  { %s11817_s3 = smov 64   ;;  %s11818_s18 = smov 4  }
  0x34   :  { %66 = dma.hbm_to_vmem [thread:$0]  %s14063_s7, 4096, %s61_s13, [#allocation7], %s11817_s3, %s11817_s3, %s11818_s18  }
  0x35   :  { %11804 = dma.done.wait [#allocation4], 32768  }
  0x36   :  { %11805 = vsyncadd [#allocation4], 4294934528 }
  0x37   :  { %11806 = dma.done.wait [#allocation7], 36864  }
  0x38   :  { %11807 = vsyncadd [#allocation7], 4294930432  ;;  %v11819_v0 = vmov 0   ;;  %v11131_v1 = vld [vmem:[%s14057_s1 + $0x4] ss:$16 sps:$4 sm:$0xff]   ;;  %vm267_vm0 = vcmask 261120  }
  0x39   :  { %348 = vmatprep.mubr.bf16.mxu0 %v11819_v0  ;;  %468 = vmatprep.mubr.bf16.mxu1 %v11819_v0  ;;  %v11133_v2 = vld [vmem:[%s14057_s1] ss:$16 sps:$4 sm:$0xff]   ;;  %v11134_v3 = vld [vmem:[%s14057_s1 + $0x24] ss:$16 sps:$4 sm:$0xff]   ;;  %v11146_v7 = vld [vmem:[%s14057_s1 + $0x8] ss:$16 sps:$4 sm:$0xff]  }
  0x3a   :  { %316 = vmatprep.subr.bf16.mxu0 %v11131_v1  ;;  %10092 = vmatprep.subr.bf16.mxu1 %v11131_v1  ;;  %v11136_v4 = vld [vmem:[%s14057_s1 + $0x20] ss:$16 sps:$4 sm:$0xff]   ;;  %v11148_v8 = vld [vmem:[%s14057_s1 + $0xc] ss:$16 sps:$4 sm:$0xff]   ;;  %v11153_v11 = vld [vmem:[%s14057_s1 + $0x28] ss:$16 sps:$4 sm:$0xff]  }
  0x3b   :  { %317 = vmatpush1.bf16.msra.mxu0 %v11133_v2  ;;  %10094 = vmatpush1.bf16.msra.mxu1 %v11133_v2  ;;  %v11942_v5 = vld [vmem:[%s14056_s0] sm:$0xff]   ;;  %v11960_v9 = vld [vmem:[%s14056_s0 + $0x8] sm:$0xff]   ;;  %v11983_v15 = vld [vmem:[%s14056_s0 + $0x10] sm:$0xff]  }
  0x3c   :  { %318 = vmatprep.subr.bf16.mxu0 %v11134_v3  ;;  %10093 = vmatprep.subr.bf16.mxu1 %v11134_v3  ;;  %v11145_v6 = vld [vmem:[%s14056_s0 + $0x60] sm:$0xff]   ;;  %v11150_v10 = vld [vmem:[%s14056_s0 + $0x68] sm:$0xff]   ;;  %v11152_v19 = vld [vmem:[%s14056_s0 + $0x70] sm:$0xff]  }
  0x3d   :  { %v11155_v12 = vld [vmem:[%s14057_s1 + $0x2c] ss:$16 sps:$4 sm:$0xff]   ;;  %v894_v17 = vld [vmem:[#allocation3] sm:$0xff] }
  0x3e   :  { %v11976_v13 = vld [vmem:[#allocation3 + $0x8] sm:$0xff]  ;;  %v898_v18 = vld [vmem:[#allocation3 + $0x20] sm:$0xff]  ;;  %v11998_v29 = vld [vmem:[%s14056_s0 + $0x18] sm:$0xff]  }
  0x3f   :  { %319 = vmatpush1.bf16.msra.mxu0 %v11136_v4  ;;  %10095 = vmatpush1.bf16.msra.mxu1 %v11136_v4  ;;  %v11978_v14 = vld [vmem:[#allocation3 + $0x28] sm:$0xff]  ;;  %v9051_v20 = vcombine.low %v894_v17, %v898_v18  ;;  %v9052_v21 = vcombine.high %v894_v17, %v898_v18  ;;  %v902_v22 = vld [vmem:[#allocation3 + $0x40] sm:$0xff]  ;;  %v11157_v33 = vld [vmem:[%s14056_s0 + $0x78] sm:$0xff]  }
  0x40   :  { %509 = vmatprep.subr.bf16.mxu1 %v11148_v8  ;;  %v9054_v16 = vcombine.high %v11976_v13, %v11978_v14  ;;  %v906_v23 = vld [vmem:[#allocation3 + $0x60] sm:$0xff]  ;;  %v903_v42 = vld [vmem:[#allocation3 + $0x48] sm:$0xff]  ;;  %v9053_v48 = vcombine.low %v11976_v13, %v11978_v14 }
  0x41   :  { %v9060_v24 = vcombine.high %v902_v22, %v906_v23  ;;  %v910_v25 = vld [vmem:[#allocation3 + $0x80] sm:$0xff]  ;;  %2472 = vmatprep.subr.bf16.mxu0 %v9052_v21  ;;  %v9059_v27 = vcombine.low %v902_v22, %v906_v23  ;;  %v907_v43 = vld [vmem:[#allocation3 + $0x68] sm:$0xff] }
  0x42   :  { %9019 = vmatmul.mubr.msk.bf16.vlgmr.msra.gmra.mrb[0].mxu0 %vm267_vm0, %v11942_v5  ;;  %9031 = vmatmul.mubr.msk.bf16.vlgmr.msra.gmra.mrb[0].mxu1 %vm267_vm0, %v11145_v6  ;;  %v914_v26 = vld [vmem:[#allocation3 + $0xa0] sm:$0xff]  ;;  %v911_v49 = vld [vmem:[#allocation3 + $0x88] sm:$0xff]  ;;  %v9062_v51 = vcombine.high %v903_v42, %v907_v43  ;;  %v9061_v57 = vcombine.low %v903_v42, %v907_v43  ;;  %v12033_v6 = vld [vmem:[%s14056_s0 + $0x30] sm:$0xff]  }
  0x43   :  { %358 = vmatprep.mubr.bf16.mxu0 %v11819_v0  ;;  %478 = vmatprep.mubr.bf16.mxu1 %v11819_v0  ;;  %v9068_v28 = vcombine.high %v910_v25, %v914_v26  ;;  %v918_v30 = vld [vmem:[#allocation3 + $0xc0] sm:$0xff]  ;;  %v9067_v32 = vcombine.low %v910_v25, %v914_v26  ;;  %v915_v50 = vld [vmem:[#allocation3 + $0xa8] sm:$0xff] }
  0x44   :  { %510 = vmatpush1.bf16.msra.mxu1 %v11146_v7  ;;  %2473 = vmatpush1.bf16.msra.mxu0 %v9051_v20  ;;  %v922_v31 = vld [vmem:[#allocation3 + $0xe0] sm:$0xff]  ;;  %v12022_v52 = vld [vmem:[%s14056_s0 + $0x28] sm:$0xff]   ;;  %v9070_v60 = vcombine.high %v911_v49, %v915_v50  ;;  %v9069_v2 = vcombine.low %v911_v49, %v915_v50 }
  0x45   :  { %511 = vmatprep.subr.bf16.mxu1 %v11155_v12  ;;  %2474 = vmatprep.subr.bf16.mxu0 %v9060_v24  ;;  %v9076_v34 = vcombine.high %v918_v30, %v922_v31  ;;  %v926_v35 = vld [vmem:[#allocation3 + $0x100] sm:$0xff]  ;;  %v9075_v37 = vcombine.low %v918_v30, %v922_v31  ;;  %v919_v58 = vld [vmem:[#allocation3 + $0xc8] sm:$0xff]  ;;  %v12044_v24 = vld [vmem:[%s14056_s0 + $0x38] sm:$0xff]  }
  0x46   :  { %v930_v36 = vld [vmem:[#allocation3 + $0x120] sm:$0xff]  ;;  %v923_v59 = vld [vmem:[#allocation3 + $0xe8] sm:$0xff] }
  0x47   :  { %v9084_v38 = vcombine.high %v926_v35, %v930_v36  ;;  %v12011_v39 = vld [vmem:[%s14056_s0 + $0x20] sm:$0xff]   ;;  %v9083_v44 = vcombine.low %v926_v35, %v930_v36  ;;  %v927_v3 = vld [vmem:[#allocation3 + $0x108] sm:$0xff]  ;;  %v9077_v12 = vcombine.low %v919_v58, %v923_v59 }
  0x48   :  { %512 = vmatpush1.bf16.msra.mxu1 %v11153_v11  ;;  %2475 = vmatpush1.bf16.msra.mxu0 %v9059_v27  ;;  %v934_v40 = vld [vmem:[#allocation3 + $0x140] sm:$0xff]  ;;  %v931_v4 = vld [vmem:[#allocation3 + $0x128] sm:$0xff] }
  0x49   :  { %2858 = vmatprep.subr.bf16.mxu1 %v9054_v16  ;;  %2476 = vmatprep.subr.bf16.mxu0 %v9068_v28  ;;  %v938_v41 = vld [vmem:[#allocation3 + $0x160] sm:$0xff]  ;;  %v935_v13 = vld [vmem:[#allocation3 + $0x148] sm:$0xff]  ;;  %v9086_v16 = vcombine.high %v927_v3, %v931_v4 }
  0x4a   :  { %9020 = vmatmul.mubr.msk.bf16.gmra.mrb[4].mxu0 %vm267_vm0, %v11960_v9  ;;  %9032 = vmatmul.mubr.msk.bf16.gmra.mrb[4].mxu1 %vm267_vm0, %v11150_v10  ;;  %v9092_v45 = vcombine.high %v934_v40, %v938_v41  ;;  %v942_v46 = vld [vmem:[#allocation3 + $0x180] sm:$0xff]  ;;  %v9091_v53 = vcombine.low %v934_v40, %v938_v41  ;;  %v939_v14 = vld [vmem:[#allocation3 + $0x168] sm:$0xff] }
  0x4b   :  { %368 = vmatprep.mubr.bf16.mxu0 %v11819_v0  ;;  %488 = vmatprep.mubr.bf16.mxu1 %v11819_v0  ;;  %v946_v47 = vld [vmem:[#allocation3 + $0x1a0] sm:$0xff]  ;;  %v943_v21 = vld [vmem:[#allocation3 + $0x188] sm:$0xff]  ;;  %v9094_v23 = vcombine.high %v935_v13, %v939_v14  ;;  %v9093_v30 = vcombine.low %v935_v13, %v939_v14 }
  0x4c   :  { %2477 = vmatpush1.bf16.msra.mxu0 %v9067_v32  ;;  %v950_v54 = vld [vmem:[#allocation3 + $0x1c0] sm:$0xff]  ;;  %v9100_v56 = vcombine.high %v942_v46, %v946_v47  ;;  %v9099_v61 = vcombine.low %v942_v46, %v946_v47  ;;  %v947_v22 = vld [vmem:[#allocation3 + $0x1a8] sm:$0xff] }
  0x4d   :  { %2478 = vmatprep.subr.bf16.mxu0 %v9076_v34  ;;  %v954_v55 = vld [vmem:[#allocation3 + $0x1e0] sm:$0xff]  ;;  %v951_v31 = vld [vmem:[#allocation3 + $0x1c8] sm:$0xff] }
  0x4e   :  { %v958_v62 = vld [vmem:[#allocation3 + $0x200] sm:$0xff]  ;;  %v9108_v1 = vcombine.high %v950_v54, %v954_v55  ;;  %v9107_v7 = vcombine.low %v950_v54, %v954_v55  ;;  %v955_v32 = vld [vmem:[#allocation3 + $0x1e8] sm:$0xff] }
  0x4f   :  { %v962_v63 = vld [vmem:[#allocation3 + $0x220] sm:$0xff]  ;;  %v963_v40 = vld [vmem:[#allocation3 + $0x228] sm:$0xff]  ;;  %v9110_v41 = vcombine.high %v951_v31, %v955_v32  ;;  %v9109_v47 = vcombine.low %v951_v31, %v955_v32 }
  0x50   :  { %2479 = vmatpush1.bf16.msra.mxu0 %v9075_v37  ;;  %v966_v8 = vld [vmem:[#allocation3 + $0x240] sm:$0xff]  ;;  %v9116_v11 = vcombine.high %v958_v62, %v962_v63  ;;  %v9115_v17 = vcombine.low %v958_v62, %v962_v63  ;;  %v971_v49 = vld [vmem:[#allocation3 + $0x268] sm:$0xff] }
  0x51   :  { %2480 = vmatprep.subr.bf16.mxu0 %v9084_v38  ;;  %v970_v10 = vld [vmem:[#allocation3 + $0x260] sm:$0xff]  ;;  %v959_v38 = vld [vmem:[#allocation3 + $0x208] sm:$0xff] }
  0x52   :  { %9021 = vmatmul.mubr.msk.bf16.gmra.mrb[8].mxu0 %vm267_vm0, %v11983_v15  ;;  %9033 = vmatmul.mubr.msk.bf16.gmra.mrb[8].mxu1 %vm267_vm0, %v11152_v19  ;;  %v974_v18 = vld [vmem:[#allocation3 + $0x280] sm:$0xff]  ;;  %v9124_v20 = vcombine.high %v966_v8, %v970_v10  ;;  %v9123_v25 = vcombine.low %v966_v8, %v970_v10  ;;  %v9118_v50 = vcombine.high %v959_v38, %v963_v40  ;;  %v983_v63 = vld [vmem:[#allocation3 + $0x2c8] sm:$0xff]  ;;  %v11156_v8 = vld [vmem:[%s14056_s0 + $0x50] sm:$0xff]  }
  0x53   :  { %378 = vmatprep.mubr.bf16.mxu0 %v11819_v0  ;;  %498 = vmatprep.mubr.bf16.mxu1 %v11819_v0  ;;  %v978_v19 = vld [vmem:[#allocation3 + $0x2a0] sm:$0xff] }
  0x54   :  { %2481 = vmatpush1.bf16.msra.mxu0 %v9083_v44  ;;  %v982_v26 = vld [vmem:[#allocation3 + $0x2c0] sm:$0xff]  ;;  %v9132_v28 = vcombine.high %v974_v18, %v978_v19  ;;  %v9131_v34 = vcombine.low %v974_v18, %v978_v19 }
  0x55   :  { %2482 = vmatprep.subr.bf16.mxu0 %v9092_v45  ;;  %v986_v27 = vld [vmem:[#allocation3 + $0x2e0] sm:$0xff] }
  0x56   :  { %v990_v35 = vld [vmem:[#allocation3 + $0x300] sm:$0xff]  ;;  %v9140_v37 = vcombine.high %v982_v26, %v986_v27  ;;  %v9139_v43 = vcombine.low %v982_v26, %v986_v27  ;;  %v1019_v26 = vld [vmem:[#allocation3 + $0x3e8] sm:$0xff] }
  0x57   :  { %v994_v36 = vld [vmem:[#allocation3 + $0x320] sm:$0xff] }
  0x58   :  { %2483 = vmatpush1.bf16.msra.mxu0 %v9091_v53  ;;  %v12055_v42 = vld [vmem:[%s14056_s0 + $0x40] sm:$0xff]   ;;  %v9148_v46 = vcombine.high %v990_v35, %v994_v36 }
  0x59   :  { %2484 = vmatprep.subr.bf16.mxu0 %v9100_v56  ;;  %v998_v44 = vld [vmem:[#allocation3 + $0x340] sm:$0xff]  ;;  %v975_v56 = vld [vmem:[#allocation3 + $0x288] sm:$0xff] }
  0x5a   :  { %9022 = vmatmul.mubr.msk.bf16.gmra.mrb[12].mxu0 %vm267_vm0, %v11998_v29  ;;  %9034 = vmatmul.mubr.msk.bf16.gmra.mrb[12].mxu1 %vm267_vm0, %v11157_v33  ;;  %v9102_v33 = vcombine.high %v943_v21, %v947_v22  ;;  %v1002_v45 = vld [vmem:[#allocation3 + $0x360] sm:$0xff] }
  0x5b   :  { %388 = vmatprep.mubr.bf16.mxu0 %v11819_v0  ;;  %541 = vmatprep.mubr.bf16.mxu1 %v11819_v0  ;;  %v1006_v53 = vld [vmem:[#allocation3 + $0x380] sm:$0xff]  ;;  %v9156_v55 = vcombine.high %v998_v44, %v1002_v45 }
  0x5c   :  { %2485 = vmatpush1.bf16.msra.mxu0 %v9099_v61  ;;  %v1010_v54 = vld [vmem:[#allocation3 + $0x3a0] sm:$0xff] }
  0x5d   :  { %2486 = vmatprep.subr.bf16.mxu0 %v9108_v1  ;;  %v9164_v61 = vcombine.high %v1006_v53, %v1010_v54  ;;  %v987_v1 = vld [vmem:[#allocation3 + $0x2e8] sm:$0xff]  ;;  %v12094_v31 = vld [vmem:[#allocation3 + $0x420] sm:$0xff] }
  0x5e   :  { %v9141_v10 = vcombine.low %v983_v63, %v987_v1 }
  0x60   :  { %2487 = vmatpush1.bf16.msra.mxu0 %v9107_v7  ;;  %v9142_v7 = vcombine.high %v983_v63, %v987_v1  ;;  %v12167_v63 = vld [vmem:[#allocation3 + $0x460] sm:$0xff] }
  0x61   :  { %2488 = vmatprep.subr.bf16.mxu0 %v9116_v11  ;;  %v999_v11 = vld [vmem:[#allocation3 + $0x348] sm:$0xff] }
  0x62   :  { %9023 = vmatmul.mubr.msk.bf16.gmra.mrb[16].mxu0 %vm267_vm0, %v12011_v39  ;;  %9035 = vmatmul.mubr.msk.bf16.vlgmr.msra.gmra.mrb[16].mxu1 %vm267_vm0, %v11942_v5  ;;  %v9078_v5 = vcombine.high %v919_v58, %v923_v59  ;;  %v12066_v59 = vld [vmem:[%s14056_s0 + $0x48] sm:$0xff]  }
  0x63   :  { %398 = vmatprep.mubr.bf16.mxu0 %v11819_v0  ;;  %2859 = vmatpush1.bf16.msra.mxu1 %v9053_v48  ;;  %v967_v48 = vld [vmem:[#allocation3 + $0x248] sm:$0xff] }
  0x64   :  { %551 = vmatprep.mubr.bf16.mxu1 %v11819_v0  ;;  %2860 = vmatprep.subr.bf16.mxu1 %v9062_v51  ;;  %v9147_v51 = vcombine.low %v990_v35, %v994_v36  ;;  %v9126_v58 = vcombine.high %v967_v48, %v971_v49  ;;  %v9125_v62 = vcombine.low %v967_v48, %v971_v49 }
  0x65   :  { %2489 = vmatpush1.bf16.msra.mxu0 %v9115_v17  ;;  %v1011_v17 = vld [vmem:[#allocation3 + $0x3a8] sm:$0xff] }
  0x66   :  { %2490 = vmatprep.subr.bf16.mxu0 %v9124_v20 }
  0x67   :  { %2861 = vmatpush1.bf16.msra.mxu1 %v9061_v57  ;;  %v979_v57 = vld [vmem:[#allocation3 + $0x2a8] sm:$0xff] }
  0x68   :  { %2862 = vmatprep.subr.bf16.mxu1 %v9070_v60  ;;  %v9155_v60 = vcombine.low %v998_v44, %v1002_v45  ;;  %v12145_v44 = vld [vmem:[%s14058_s2] sm:$0xf] }
  0x69   :  { %2491 = vmatpush1.bf16.msra.mxu0 %v9123_v25 }
  0x6a   :  { %9024 = vmatmul.mubr.msk.bf16.gmra.mrb[20].mxu0 %vm267_vm0, %v12022_v52  ;;  %9036 = vmatmul.mubr.msk.bf16.gmra.mrb[20].mxu1 %vm267_vm0, %v11960_v9  ;;  %v9085_v9 = vcombine.low %v927_v3, %v931_v4  ;;  %v9163_v3 = vcombine.low %v1006_v53, %v1010_v54  ;;  %v9133_v4 = vcombine.low %v975_v56, %v979_v57 }
  0x6b   :  { %408 = vmatprep.mubr.bf16.mxu0 %v11819_v0  ;;  %561 = vmatprep.mubr.bf16.mxu1 %v11819_v0 }
  0x6c   :  { %2863 = vmatpush1.bf16.msra.mxu1 %v9069_v2  ;;  %2492 = vmatprep.subr.bf16.mxu0 %v9132_v28  ;;  %v9134_v2 = vcombine.high %v975_v56, %v979_v57  ;;  %v12162_v56 = vld [vmem:[#allocation3 + $0x440] sm:$0xff] }
  0x6d   :  { %2864 = vmatprep.subr.bf16.mxu1 %v9078_v5  ;;  %2493 = vmatpush1.bf16.msra.mxu0 %v9131_v34  ;;  %v991_v5 = vld [vmem:[#allocation3 + $0x308] sm:$0xff] }
  0x6e   :  { %2494 = vmatprep.subr.bf16.mxu0 %v9140_v37  ;;  %v12104_v34 = vld [vmem:[#allocation3 + $0x428] sm:$0xff]  ;;  %v11711_v37 = vld [vmem:[%s14056_s0 + $0x60] sm:$0xff]  }
  0x70   :  { %2865 = vmatpush1.bf16.msra.mxu1 %v9077_v12  ;;  %v1003_v12 = vld [vmem:[#allocation3 + $0x368] sm:$0xff] }
  0x71   :  { %2866 = vmatprep.subr.bf16.mxu1 %v9086_v16  ;;  %2495 = vmatpush1.bf16.msra.mxu0 %v9139_v43  ;;  %v1007_v16 = vld [vmem:[#allocation3 + $0x388] sm:$0xff]  ;;  %v9158_v18 = vcombine.high %v999_v11, %v1003_v12  ;;  %v9157_v19 = vcombine.low %v999_v11, %v1003_v12 }
  0x72   :  { %9025 = vmatmul.mubr.msk.bf16.gmra.mrb[24].mxu0 %vm267_vm0, %v12033_v6  ;;  %9037 = vmatmul.mubr.msk.bf16.gmra.mrb[24].mxu1 %vm267_vm0, %v11983_v15  ;;  %v9101_v15 = vcombine.low %v943_v21, %v947_v22  ;;  %v9166_v20 = vcombine.high %v1007_v16, %v1011_v17  ;;  %v1018_v21 = vld [vmem:[#allocation3 + $0x3e0] sm:$0xff]  ;;  %v1015_v22 = vld [vmem:[#allocation3 + $0x3c8] sm:$0xff] }
  0x73   :  { %418 = vmatprep.mubr.bf16.mxu0 %v11819_v0  ;;  %571 = vmatprep.mubr.bf16.mxu1 %v11819_v0  ;;  %v9174_v28 = vcombine.high %v1015_v22, %v1019_v26 }
  0x74   :  { %2867 = vmatpush1.bf16.msra.mxu1 %v9085_v9  ;;  %2496 = vmatprep.subr.bf16.mxu0 %v9148_v46  ;;  %v1014_v9 = vld [vmem:[#allocation3 + $0x3c0] sm:$0xff] }
  0x75   :  { %2868 = vmatprep.subr.bf16.mxu1 %v9094_v23  ;;  %2497 = vmatpush1.bf16.msra.mxu0 %v9147_v51  ;;  %v9165_v23 = vcombine.low %v1007_v16, %v1011_v17  ;;  %v9172_v25 = vcombine.high %v1014_v9, %v1018_v21  ;;  %v9171_v27 = vcombine.low %v1014_v9, %v1018_v21 }
  0x76   :  { %2498 = vmatprep.subr.bf16.mxu0 %v9156_v55 }
  0x78   :  { %2869 = vmatpush1.bf16.msra.mxu1 %v9093_v30  ;;  %v12092_v30 = vld [vmem:[#allocation3 + $0x400] sm:$0xff] }
  0x79   :  { %2870 = vmatprep.subr.bf16.mxu1 %v9102_v33  ;;  %2499 = vmatpush1.bf16.msra.mxu0 %v9155_v60  ;;  %v9179_v32 = vcombine.low %v12092_v30, %v12094_v31  ;;  %v12102_v33 = vld [vmem:[#allocation3 + $0x408] sm:$0xff] }
  0x7a   :  { %9026 = vmatmul.mubr.msk.bf16.gmra.mrb[28].mxu0 %vm267_vm0, %v12044_v24  ;;  %9038 = vmatmul.mubr.msk.bf16.gmra.mrb[28].mxu1 %vm267_vm0, %v11998_v29  ;;  %v9117_v29 = vcombine.low %v959_v38, %v963_v40  ;;  %v9181_v35 = vcombine.low %v12102_v33, %v12104_v34  ;;  %v9182_v36 = vcombine.high %v12102_v33, %v12104_v34  ;;  %v11713_v38 = vld [vmem:[%s14056_s0 + $0x70] sm:$0xff]   ;;  %v11714_v40 = vld [vmem:[%s14056_s0 + $0x78] sm:$0xff]  }
  0x7b   :  { %428 = vmatprep.mubr.bf16.mxu0 %v11819_v0  ;;  %581 = vmatprep.mubr.bf16.mxu1 %v11819_v0  ;;  %v12230_v33 = vld [vmem:[#allocation3 + $0x38] sm:$0xff] }
  0x7c   :  { %2871 = vmatpush1.bf16.msra.mxu1 %v9101_v15  ;;  %2500 = vmatprep.subr.bf16.mxu0 %v9164_v61  ;;  %v11712_v15 = vld [vmem:[%s14056_s0 + $0x68] sm:$0xff]  }
  0x7d   :  { %2872 = vmatprep.subr.bf16.mxu1 %v9110_v41  ;;  %2501 = vmatpush1.bf16.msra.mxu0 %v9163_v3  ;;  %v127_v41 = vlaneseq  ;;  %v12170_v3 = vld [vmem:[#allocation3 + $0x30] sm:$0xff] }
  0x7e   :  { %2502 = vmatprep.subr.bf16.mxu0 %v9172_v25  ;;  %v12195_v25 = vld [vmem:[#allocation3 + $0x488] sm:$0xff] }
  0x80   :  { %2873 = vmatpush1.bf16.msra.mxu1 %v9109_v47 }
  0x81   :  { %2874 = vmatprep.subr.bf16.mxu1 %v9118_v50  ;;  %2503 = vmatpush1.bf16.msra.mxu0 %v9171_v27 }
  0x82   :  { %9027 = vmatmul.mubr.msk.bf16.gmra.mrb[32].mxu0 %vm267_vm0, %v12055_v42  ;;  %9039 = vmatmul.mubr.msk.bf16.gmra.mrb[32].mxu1 %vm267_vm0, %v12011_v39  ;;  %v995_v39 = vld [vmem:[#allocation3 + $0x328] sm:$0xff] }
  0x83   :  { %438 = vmatprep.mubr.bf16.mxu0 %v11819_v0  ;;  %591 = vmatprep.mubr.bf16.mxu1 %v11819_v0  ;;  %v9150_v13 = vcombine.high %v991_v5, %v995_v39  ;;  %v9149_v14 = vcombine.low %v991_v5, %v995_v39  ;;  %v12172_v5 = vld [vmem:[#allocation3 + $0x448] sm:$0xff] }
  0x84   :  { %2875 = vmatpush1.bf16.msra.mxu1 %v9117_v29  ;;  %v12174_v39 = vld [vmem:[#allocation3 + $0x468] sm:$0xff] }
  0x85   :  { %2876 = vmatprep.subr.bf16.mxu1 %v9126_v58 }
  0x88   :  { %2877 = vmatpush1.bf16.msra.mxu1 %v9125_v62 }
  0x89   :  { %2878 = vmatprep.subr.bf16.mxu1 %v9134_v2 }
  0x8a   :  { %9028 = vmatmul.mubr.msk.bf16.gmra.mrb[36].mxu0 %vm267_vm0, %v12066_v59  ;;  %9040 = vmatmul.mubr.msk.bf16.gmra.mrb[36].mxu1 %vm267_vm0, %v12022_v52  ;;  %v11158_v52 = vld [vmem:[%s14056_s0 + $0x58] sm:$0xff]  }
  0x8b   :  { %448 = vmatprep.mubr.bf16.mxu0 %v11819_v0  ;;  %601 = vmatprep.mubr.bf16.mxu1 %v11819_v0 }
  0x8c   :  { %2879 = vmatpush1.bf16.msra.mxu1 %v9133_v4 }
  0x8d   :  { %2880 = vmatprep.subr.bf16.mxu1 %v9142_v7 }
  0x90   :  { %2881 = vmatpush1.bf16.msra.mxu1 %v9141_v10 }
  0x91   :  { %2882 = vmatprep.subr.bf16.mxu1 %v9150_v13 }
  0x92   :  { %9029 = vmatmul.mubr.msk.bf16.gmra.mrb[40].mxu0 %vm267_vm0, %v11156_v8  ;;  %9041 = vmatmul.mubr.msk.bf16.gmra.mrb[40].mxu1 %vm267_vm0, %v12033_v6  ;;  %v9173_v6 = vcombine.low %v1015_v22, %v1019_v26  ;;  %v9188_v22 = vcombine.high %v12162_v56, %v12167_v63  ;;  %v12197_v26 = vld [vmem:[#allocation3 + $0x4a8] sm:$0xff] }
  0x93   :  { %458 = vmatprep.mubr.bf16.mxu0 %v11819_v0  ;;  %611 = vmatprep.mubr.bf16.mxu1 %v11819_v0 }
  0x94   :  { %2883 = vmatpush1.bf16.msra.mxu1 %v9149_v14 }
  0x95   :  { %2884 = vmatprep.subr.bf16.mxu1 %v9158_v18  ;;  %v9187_v18 = vcombine.low %v12162_v56, %v12167_v63  ;;  %v12234_v56 = vld [vmem:[#allocation3 + $0x4e8] sm:$0xff] }
  0x98   :  { %2885 = vmatpush1.bf16.msra.mxu1 %v9157_v19  ;;  %v12188_v19 = vld [vmem:[#allocation3 + $0x4a0] sm:$0xff] }
  0x99   :  { %2886 = vmatprep.subr.bf16.mxu1 %v9166_v20 }
  0x9a   :  { %9030 = vmatmul.mubr.msk.bf16.gmra.mrb[44].mxu0 %vm267_vm0, %v11158_v52  ;;  %9042 = vmatmul.mubr.msk.bf16.gmra.mrb[44].mxu1 %vm267_vm0, %v12044_v24  ;;  %v9180_v24 = vcombine.high %v12092_v30, %v12094_v31 }
  0x9b   :  { %621 = vmatprep.mubr.bf16.mxu1 %v11819_v0 }
  0x9c   :  { %2887 = vmatpush1.bf16.msra.mxu1 %v9165_v23  ;;  %2665 = vmatprep.subr.bf16.mxu0 %v9180_v24  ;;  %v9190_v23 = vcombine.high %v12172_v5, %v12174_v39  ;;  %v9189_v24 = vcombine.low %v12172_v5, %v12174_v39  ;;  %v9197_v39 = vcombine.low %v12195_v25, %v12197_v26 }
  0x9d   :  { %2888 = vmatprep.subr.bf16.mxu1 %v9174_v28 }
  0xa0   :  { %2889 = vmatpush1.bf16.msra.mxu1 %v9173_v6 }
  0xa1   :  { %3051 = vmatprep.subr.bf16.mxu1 %v9182_v36 }
  0xa2   :  { %9043 = vmatmul.mubr.msk.bf16.gmra.mrb[48].mxu1 %vm267_vm0, %v12055_v42  ;;  %v12137_v42 = vshrl.u32 %v127_v41, 7 }
  0xa3   :  { %631 = vmatprep.mubr.bf16.mxu1 %v11819_v0 }
  0xa4   :  { %14200 = vst [vmem:[#allocation13_spill] sm:$0xff] %v12137_v42  ;;  %v12140_v43 = vsub.s32 0, %v12137_v42  ;;  %v12148_v45 = vsub.s32 1, %v12137_v42 }
  0xa6   :  { %14201 = vst [vmem:[#allocation14_spill] sm:$0xff] %v12140_v43  ;;  %14202 = vst [vmem:[#allocation15_spill] sm:$0xff] %v12148_v45  ;;  %v12156_v46 = vrot.slane %v12145_v44, %v12148_v45 }
  0xaa   :  { %9044 = vmatmul.mubr.msk.bf16.gmra.mrb[52].mxu1 %vm267_vm0, %v12066_v59  ;;  %v12165_v59 = vld [vmem:[#allocation3 + $0x10] sm:$0xff] }
  0xab   :  { %641 = vmatprep.mubr.bf16.mxu1 %v11819_v0 }
  0xb2   :  { %9045 = vmatmul.mubr.msk.bf16.gmra.mrb[56].mxu1 %vm267_vm0, %v11156_v8 }
  0xb3   :  { %651 = vmatprep.mubr.bf16.mxu1 %v11819_v0 }
  0xba   :  { %9046 = vmatmul.mubr.msk.bf16.gmra.mrb[60].mxu1 %vm267_vm0, %v11158_v52  ;;  %v12186_v52 = vld [vmem:[#allocation3 + $0x480] sm:$0xff] }
  0xbb   :  { %661 = vmatprep.mubr.bf16.mxu1 %v11819_v0  ;;  %v9195_v63 = vcombine.low %v12186_v52, %v12188_v19 }
  0xc2   :  { %9047 = vmatmul.mubr.msk.bf16.gmra.mrb[64].mxu1 %vm267_vm0, %v11711_v37 }
  0xc3   :  { %671 = vmatprep.mubr.bf16.mxu1 %v11819_v0 }
  0xca   :  { %9048 = vmatmul.mubr.msk.bf16.gmra.mrb[68].mxu1 %vm267_vm0, %v11712_v15 }
  0xcb   :  { %681 = vmatprep.mubr.bf16.mxu1 %v11819_v0 }
  0xd2   :  { %9049 = vmatmul.mubr.msk.bf16.gmra.mrb[72].mxu1 %vm267_vm0, %v11713_v38  ;;  %v9196_v38 = vcombine.high %v12186_v52, %v12188_v19 }
  0xd3   :  { %691 = vmatprep.mubr.bf16.mxu1 %v11819_v0  ;;  %v12152_v0 = vrot.slane %v12145_v44, %v12140_v43  ;;  %v1143_v43 = vld [vmem:[#allocation3 + $0x7c8] sm:$0xff] }
  0xda   :  { %9050 = vmatmul.mubr.msk.bf16.gmra.mrb[76].mxu1 %vm267_vm0, %v11714_v40 }
 0x115   :  { %v350_v47 = vpop.f32.mrb[0].mxu0  ;;  %v470_v55 = vpop.f32.mrb[0].mxu1 }
 0x116   :  { %v351_v48 = vadd.f32 %v350_v47, %v12152_v0  ;;  %v352_v49 = vpop.f32.mrb[1].mxu0  ;;  %v472_v57 = vpop.f32.mrb[1].mxu1  ;;  %v471_v58 = vadd.f32 %v470_v55, %v12152_v0 }
 0x117   :  { %v353_v50 = vadd.f32 %v352_v49, %v12156_v46  ;;  %v354_v51 = vpop.f32.mrb[2].mxu0  ;;  %v474_v1 = vpop.f32.mrb[2].mxu1  ;;  %v473_v2 = vadd.f32 %v472_v57, %v12156_v46  ;;  %v12222_v49 = vld [vmem:[#allocation3 + $0x4c0] sm:$0xff] }
 0x118   :  { %v355_v53 = vadd.f32 %v354_v51, %v12152_v0  ;;  %v356_v54 = vpop.f32.mrb[3].mxu0  ;;  %v702_v60 = vmax.f32 %v351_v48, 0.0  ;;  %v476_v7 = vpop.f32.mrb[3].mxu1  ;;  %v475_v8 = vadd.f32 %v474_v1, %v12152_v0  ;;  %v798_v10 = vmax.f32 %v471_v58, 0.0 }
 0x119   :  { %v357_v29 = vadd.f32 %v356_v54, %v12156_v46  ;;  %v703_v61 = vmax.f32 %v353_v50, 0.0  ;;  %v477_v13 = vadd.f32 %v476_v7, %v12156_v46  ;;  %v799_v14 = vmax.f32 %v473_v2, 0.0  ;;  %v12224_v50 = vld [vmem:[#allocation3 + $0x4e0] sm:$0xff] }
 0x11a   :  { %v706_v62 = vmax.f32 %v355_v53, 0.0  ;;  %v802_v20 = vmax.f32 %v475_v8, 0.0  ;;  %v9198_v48 = vcombine.high %v12195_v25, %v12197_v26  ;;  %v9203_v7 = vcombine.low %v12222_v49, %v12224_v50  ;;  %v12250_v8 = vld [vmem:[#allocation3 + $0x500] sm:$0xff] }
 0x11b   :  { %v707_v4 = vmax.f32 %v357_v29, 0.0  ;;  %v803_v27 = vmax.f32 %v477_v13, 0.0 }
 0x11c   :  { %v12179_v12 = vpack.c.bf16 %v706_v62, %v702_v60  ;;  %v12204_v36 = vpack.c.bf16 %v802_v20, %v798_v10  ;;  %v12252_v10 = vld [vmem:[#allocation3 + $0x520] sm:$0xff] }
 0x11d   :  { %v12182_v16 = vpack.c.bf16 %v707_v4, %v703_v61  ;;  %v360_v17 = vpop.f32.mrb[4].mxu0  ;;  %v480_v40 = vpop.f32.mrb[4].mxu1  ;;  %v12211_v41 = vpack.c.bf16 %v803_v27, %v799_v14 }
 0x11e   :  { %v361_v9 = vadd.f32 %v360_v17, %v12152_v0  ;;  %v362_v21 = vpop.f32.mrb[5].mxu0  ;;  %14203 = vst [vmem:[#allocation16_spill] sm:$0xff] %v12204_v36  ;;  %v482_v51 = vpop.f32.mrb[5].mxu1  ;;  %v481_v53 = vadd.f32 %v480_v40, %v12152_v0 }
 0x11f   :  { %v363_v28 = vadd.f32 %v362_v21, %v12156_v46  ;;  %v364_v6 = vpop.f32.mrb[6].mxu0  ;;  %2504 = vmatprep.mubr.bf16.mxu0 %v12182_v16  ;;  %2890 = vmatprep.mubr.bf16.mxu1 %v12182_v16  ;;  %14204 = vst [vmem:[#allocation17_spill] sm:$0xff] %v12211_v41  ;;  %v484_v30 = vpop.f32.mrb[6].mxu1  ;;  %v483_v31 = vadd.f32 %v482_v51, %v12156_v46  ;;  %v12285_v51 = vld [vmem:[#allocation3 + $0x560] sm:$0xff] }
 0x120   :  { %v365_v37 = vadd.f32 %v364_v6, %v12152_v0  ;;  %v366_v15 = vpop.f32.mrb[7].mxu0  ;;  %2505 = vmatmul.mubr.bf16.vlgmr.msra.gmra.mrb[48].mxu0 %v12179_v12  ;;  %2891 = vmatmul.mubr.bf16.vlgmr.msra.gmra.mrb[80].mxu1 %v12179_v12  ;;  %v710_v54 = vmax.f32 %v361_v9, 0.0  ;;  %v486_v57 = vpop.f32.mrb[7].mxu1  ;;  %v485_v58 = vadd.f32 %v484_v30, %v12152_v0  ;;  %v806_v60 = vmax.f32 %v481_v53, 0.0  ;;  %v12288_v30 = vld [vmem:[#allocation3 + $0x548] sm:$0xff] }
 0x121   :  { %v367_v47 = vadd.f32 %v366_v15, %v12156_v46  ;;  %2666 = vmatpush1.bf16.msra.mxu0 %v9179_v32  ;;  %3052 = vmatpush1.bf16.msra.mxu1 %v9181_v35  ;;  %v711_v55 = vmax.f32 %v363_v28, 0.0  ;;  %v12228_v32 = vld [vmem:[#allocation3 + $0x18] sm:$0xff]  ;;  %v12232_v35 = vld [vmem:[#allocation3 + $0x4c8] sm:$0xff]  ;;  %v487_v1 = vadd.f32 %v486_v57, %v12156_v46  ;;  %v807_v2 = vmax.f32 %v483_v31, 0.0 }
 0x122   :  { %v714_v29 = vmax.f32 %v365_v37, 0.0  ;;  %2667 = vmatprep.subr.bf16.mxu0 %v9188_v22  ;;  %3053 = vmatprep.subr.bf16.mxu1 %v9190_v23  ;;  %v810_v13 = vmax.f32 %v485_v58, 0.0  ;;  %v9206_v52 = vcombine.high %v12232_v35, %v12234_v56  ;;  %v9205_v21 = vcombine.low %v12232_v35, %v12234_v56  ;;  %v12264_v22 = vld [vmem:[#allocation3 + $0x508] sm:$0xff] }
 0x123   :  { %v715_v34 = vmax.f32 %v367_v47, 0.0  ;;  %v811_v19 = vmax.f32 %v487_v1, 0.0  ;;  %v12266_v23 = vld [vmem:[#allocation3 + $0x528] sm:$0xff]  ;;  %v9211_v28 = vcombine.low %v12250_v8, %v12252_v10  ;;  %v9212_v15 = vcombine.high %v12250_v8, %v12252_v10 }
 0x124   :  { %v12239_v62 = vpack.c.bf16 %v714_v29, %v710_v54  ;;  %v12268_v25 = vpack.c.bf16 %v810_v13, %v806_v60  ;;  %v12290_v31 = vld [vmem:[#allocation3 + $0x568] sm:$0xff]  ;;  %v9213_v58 = vcombine.low %v12264_v22, %v12266_v23  ;;  %v12297_v60 = vld [vmem:[#allocation3 + $0x580] sm:$0xff] }
 0x125   :  { %v12244_v4 = vpack.c.bf16 %v715_v34, %v711_v55  ;;  %v370_v5 = vpop.f32.mrb[8].mxu0  ;;  %2668 = vmatpush1.bf16.msra.mxu0 %v9187_v18  ;;  %3054 = vmatpush1.bf16.msra.mxu1 %v9189_v24  ;;  %v9204_v18 = vcombine.high %v12222_v49, %v12224_v50  ;;  %v490_v6 = vpop.f32.mrb[8].mxu1  ;;  %v12275_v24 = vpack.c.bf16 %v811_v19, %v807_v2  ;;  %v12283_v50 = vld [vmem:[#allocation3 + $0x540] sm:$0xff]  ;;  %v12315_v19 = vld [vmem:[#allocation3 + $0x5a8] sm:$0xff] }
 0x126   :  { %v371_v14 = vadd.f32 %v370_v5, %v12152_v0  ;;  %v372_v17 = vpop.f32.mrb[9].mxu0  ;;  %2669 = vmatprep.subr.bf16.mxu0 %v9196_v38  ;;  %3055 = vmatprep.subr.bf16.mxu1 %v9198_v48  ;;  %14205 = vst [vmem:[#allocation18_spill] sm:$0xff] %v12268_v25  ;;  %v492_v38 = vpop.f32.mrb[9].mxu1  ;;  %v491_v40 = vadd.f32 %v490_v6, %v12152_v0 }
 0x127   :  { %v373_v20 = vadd.f32 %v372_v17, %v12156_v46  ;;  %v374_v9 = vpop.f32.mrb[10].mxu0  ;;  %2514 = vmatprep.mubr.bf16.mxu0 %v12244_v4  ;;  %2900 = vmatprep.mubr.bf16.mxu1 %v12244_v4  ;;  %14206 = vst [vmem:[#allocation19_spill] sm:$0xff] %v12275_v24  ;;  %v9214_v49 = vcombine.high %v12264_v22, %v12266_v23  ;;  %v494_v53 = vpop.f32.mrb[10].mxu1 }
 0x128   :  { %v375_v26 = vadd.f32 %v374_v9, %v12152_v0  ;;  %v376_v27 = vpop.f32.mrb[11].mxu0  ;;  %2515 = vmatmul.mubr.bf16.gmra.mrb[52].mxu0 %v12239_v62  ;;  %2901 = vmatmul.mubr.bf16.gmra.mrb[84].mxu1 %v12239_v62  ;;  %v718_v47 = vmax.f32 %v371_v14, 0.0  ;;  %v493_v54 = vadd.f32 %v492_v38, %v12156_v46  ;;  %v496_v34 = vpop.f32.mrb[11].mxu1  ;;  %v495_v35 = vadd.f32 %v494_v53, %v12152_v0  ;;  %v12338_v53 = vld [vmem:[#allocation3 + $0x5c0] sm:$0xff] }
 0x129   :  { %v377_v37 = vadd.f32 %v376_v27, %v12156_v46  ;;  %2670 = vmatpush1.bf16.msra.mxu0 %v9195_v63  ;;  %3056 = vmatpush1.bf16.msra.mxu1 %v9197_v39  ;;  %v719_v55 = vmax.f32 %v373_v20, 0.0  ;;  %v814_v56 = vmax.f32 %v491_v40, 0.0  ;;  %v12299_v63 = vld [vmem:[#allocation3 + $0x5a0] sm:$0xff]  ;;  %v497_v1 = vadd.f32 %v496_v34, %v12156_v46  ;;  %v12346_v34 = vld [vmem:[#allocation3 + $0x5c8] sm:$0xff] }
 0x12a   :  { %v722_v48 = vmax.f32 %v375_v26, 0.0  ;;  %2671 = vmatprep.subr.bf16.mxu0 %v9204_v18  ;;  %3057 = vmatprep.subr.bf16.mxu1 %v9206_v52  ;;  %v815_v2 = vmax.f32 %v493_v54, 0.0  ;;  %v9219_v8 = vcombine.low %v12283_v50, %v12285_v51  ;;  %v9220_v10 = vcombine.high %v12283_v50, %v12285_v51  ;;  %v12340_v54 = vld [vmem:[#allocation3 + $0x5e0] sm:$0xff] }
 0x12b   :  { %v723_v29 = vmax.f32 %v377_v37, 0.0  ;;  %v818_v13 = vmax.f32 %v495_v35, 0.0  ;;  %v9221_v18 = vcombine.low %v12288_v30, %v12290_v31  ;;  %v9222_v52 = vcombine.high %v12288_v30, %v12290_v31  ;;  %v12348_v35 = vld [vmem:[#allocation3 + $0x5e8] sm:$0xff] }
 0x12c   :  { %v12293_v57 = vpack.c.bf16 %v722_v48, %v718_v47  ;;  %v819_v20 = vmax.f32 %v497_v1, 0.0  ;;  %v9227_v22 = vcombine.low %v12297_v60, %v12299_v63  ;;  %v9228_v6 = vcombine.high %v12297_v60, %v12299_v63 }
 0x12d   :  { %v12302_v5 = vpack.c.bf16 %v723_v29, %v719_v55  ;;  %v380_v39 = vpop.f32.mrb[12].mxu0  ;;  %2672 = vmatpush1.bf16.msra.mxu0 %v9203_v7  ;;  %3058 = vmatpush1.bf16.msra.mxu1 %v9205_v21  ;;  %v12313_v7 = vld [vmem:[#allocation3 + $0x588] sm:$0xff]  ;;  %v12322_v23 = vpack.c.bf16 %v818_v13, %v814_v56  ;;  %v500_v37 = vpop.f32.mrb[12].mxu1  ;;  %v12335_v48 = vsub.s32 2, %v12137_v42 }
 0x12e   :  { %v381_v14 = vadd.f32 %v380_v39, %v12152_v0  ;;  %v382_v17 = vpop.f32.mrb[13].mxu0  ;;  %2673 = vmatprep.subr.bf16.mxu0 %v9212_v15  ;;  %3059 = vmatprep.subr.bf16.mxu1 %v9214_v49  ;;  %v12329_v15 = vpack.c.bf16 %v819_v20, %v815_v2  ;;  %v9230_v40 = vcombine.high %v12313_v7, %v12315_v19  ;;  %v502_v47 = vpop.f32.mrb[13].mxu1 }
 0x12f   :  { %v383_v9 = vadd.f32 %v382_v17, %v12156_v46  ;;  %v384_v21 = vpop.f32.mrb[14].mxu0  ;;  %2524 = vmatprep.mubr.bf16.mxu0 %v12302_v5  ;;  %2910 = vmatprep.mubr.bf16.mxu1 %v12302_v5  ;;  %14207 = vst [vmem:[#allocation20_spill] sm:$0xff] %v12322_v23  ;;  %14209 = vst [vmem:[#allocation22_spill] sm:$0xff] %v12335_v48  ;;  %v501_v49 = vadd.f32 %v500_v37, %v12152_v0  ;;  %v504_v55 = vpop.f32.mrb[14].mxu1 }
 0x130   :  { %v385_v26 = vadd.f32 %v384_v21, %v12152_v0  ;;  %v386_v27 = vpop.f32.mrb[15].mxu0  ;;  %2525 = vmatmul.mubr.bf16.gmra.mrb[56].mxu0 %v12293_v57  ;;  %2911 = vmatmul.mubr.bf16.gmra.mrb[88].mxu1 %v12293_v57  ;;  %14208 = vst [vmem:[#allocation21_spill] sm:$0xff] %v12329_v15  ;;  %v726_v50 = vmax.f32 %v381_v14, 0.0  ;;  %v503_v29 = vadd.f32 %v502_v47, %v12156_v46  ;;  %v506_v56 = vpop.f32.mrb[15].mxu1  ;;  %v12382_v47 = vld [vmem:[#allocation3 + $0x628] sm:$0xff] }
 0x131   :  { %v387_v38 = vadd.f32 %v386_v27, %v12156_v46  ;;  %2674 = vmatpush1.bf16.msra.mxu0 %v9211_v28  ;;  %3060 = vmatpush1.bf16.msra.mxu1 %v9213_v58  ;;  %v12343_v28 = vsub.s32 3, %v12137_v42  ;;  %v727_v30 = vmax.f32 %v383_v9, 0.0  ;;  %v505_v58 = vadd.f32 %v504_v55, %v12152_v0 }
 0x132   :  { %v730_v51 = vmax.f32 %v385_v26, 0.0  ;;  %2675 = vmatprep.subr.bf16.mxu0 %v9220_v10  ;;  %3061 = vmatprep.subr.bf16.mxu1 %v9222_v52  ;;  %v822_v1 = vmax.f32 %v501_v49, 0.0  ;;  %v9229_v39 = vcombine.low %v12313_v7, %v12315_v19  ;;  %v507_v10 = vadd.f32 %v506_v56, %v12156_v46  ;;  %v12367_v19 = vld [vmem:[#allocation3 + $0x600] sm:$0xff] }
 0x133   :  { %14210 = vst [vmem:[#allocation23_spill] sm:$0xff] %v12343_v28  ;;  %v731_v31 = vmax.f32 %v387_v38, 0.0  ;;  %v823_v13 = vmax.f32 %v503_v29, 0.0  ;;  %v9236_v52 = vcombine.high %v12338_v53, %v12340_v54  ;;  %v12362_v20 = vrot.slane %v12145_v44, %v12335_v48 }
 0x134   :  { %v12351_v2 = vpack.c.bf16 %v730_v51, %v726_v50  ;;  %v826_v9 = vmax.f32 %v505_v58, 0.0  ;;  %v9238_v7 = vcombine.high %v12346_v34, %v12348_v35  ;;  %v827_v27 = vmax.f32 %v507_v10, 0.0  ;;  %v12407_v10 = vld [vmem:[#allocation3 + $0x648] sm:$0xff] }
 0x135   :  { %v12356_v14 = vpack.c.bf16 %v731_v31, %v727_v30  ;;  %v390_v17 = vpop.f32.mrb[16].mxu0  ;;  %2676 = vmatpush1.bf16.msra.mxu0 %v9219_v8  ;;  %3062 = vmatpush1.bf16.msra.mxu1 %v9221_v18  ;;  %v12369_v8 = vld [vmem:[#allocation3 + $0x620] sm:$0xff]  ;;  %v12373_v18 = vrot.slane %v12145_v44, %v12343_v28  ;;  %v9237_v51 = vcombine.low %v12346_v34, %v12348_v35  ;;  %v543_v55 = vpop.f32.mrb[16].mxu1 }
 0x136   :  { %14211 = vst [vmem:[#allocation24_spill] sm:$0xff] %v12351_v2  ;;  %v391_v21 = vadd.f32 %v390_v17, %v12152_v0  ;;  %v392_v26 = vpop.f32.mrb[17].mxu0  ;;  %2677 = vmatprep.subr.bf16.mxu0 %v9228_v6  ;;  %3063 = vmatprep.subr.bf16.mxu1 %v9230_v40  ;;  %v9235_v6 = vcombine.low %v12338_v53, %v12340_v54  ;;  %v12380_v40 = vld [vmem:[#allocation3 + $0x608] sm:$0xff]  ;;  %v545_v31 = vpop.f32.mrb[17].mxu1  ;;  %v12402_v35 = vld [vmem:[#allocation3 + $0x640] sm:$0xff] }
 0x137   :  { %v393_v37 = vadd.f32 %v392_v26, %v12156_v46  ;;  %v394_v38 = vpop.f32.mrb[18].mxu0  ;;  %2534 = vmatprep.mubr.bf16.mxu0 %v12356_v14  ;;  %2920 = vmatprep.mubr.bf16.mxu1 %v12356_v14  ;;  %v12384_v49 = vpack.c.bf16 %v826_v9, %v822_v1  ;;  %v12391_v29 = vpack.c.bf16 %v827_v27, %v823_v13  ;;  %v12404_v1 = vld [vmem:[#allocation3 + $0x660] sm:$0xff]  ;;  %v547_v63 = vpop.f32.mrb[18].mxu1  ;;  %v12409_v13 = vld [vmem:[#allocation3 + $0x668] sm:$0xff] }
 0x138   :  { %v395_v44 = vadd.f32 %v394_v38, %v12152_v0  ;;  %v396_v50 = vpop.f32.mrb[19].mxu0  ;;  %2535 = vmatmul.mubr.bf16.gmra.mrb[60].mxu0 %v12351_v2  ;;  %2921 = vmatmul.mubr.bf16.gmra.mrb[92].mxu1 %v12351_v2  ;;  %v9244_v54 = vcombine.high %v12367_v19, %v12369_v8  ;;  %v544_v30 = vadd.f32 %v543_v55, %v12362_v20  ;;  %v734_v56 = vmax.f32 %v391_v21, 0.0  ;;  %v549_v9 = vpop.f32.mrb[19].mxu1 }
 0x139   :  { %14212 = vst [vmem:[#allocation25_spill] sm:$0xff] %v12384_v49  ;;  %14213 = vst [vmem:[#allocation26_spill] sm:$0xff] %v12391_v29  ;;  %v397_v53 = vadd.f32 %v396_v50, %v12156_v46  ;;  %2678 = vmatpush1.bf16.msra.mxu0 %v9227_v22  ;;  %3064 = vmatpush1.bf16.msra.mxu1 %v9229_v39  ;;  %v9246_v34 = vcombine.high %v12380_v40, %v12382_v47  ;;  %v735_v22 = vmax.f32 %v393_v37, 0.0 }
 0x13a   :  { %v738_v58 = vmax.f32 %v395_v44, 0.0  ;;  %2679 = vmatprep.subr.bf16.mxu0 %v9236_v52  ;;  %3065 = vmatprep.subr.bf16.mxu1 %v9238_v7  ;;  %v546_v60 = vadd.f32 %v545_v31, %v12373_v18  ;;  %v704_v17 = vmax.f32 %v544_v30, 0.0  ;;  %v548_v52 = vadd.f32 %v547_v63, %v12362_v20 }
 0x13b   :  { %v739_v39 = vmax.f32 %v397_v53, 0.0  ;;  %v550_v7 = vadd.f32 %v549_v9, %v12373_v18  ;;  %v9243_v37 = vcombine.low %v12367_v19, %v12369_v8  ;;  %v9245_v44 = vcombine.low %v12380_v40, %v12382_v47 }
 0x13c   :  { %v12412_v21 = vpack.c.bf16 %v738_v58, %v734_v56  ;;  %v705_v26 = vmax.f32 %v546_v60, 0.0  ;;  %v708_v50 = vmax.f32 %v548_v52, 0.0  ;;  %v9252_v30 = vcombine.high %v12402_v35, %v12404_v1  ;;  %v12437_v56 = vld [vmem:[#allocation3 + $0x6a8] sm:$0xff] }
 0x13d   :  { %v12415_v27 = vpack.c.bf16 %v739_v39, %v735_v22  ;;  %v400_v38 = vpop.f32.mrb[20].mxu0  ;;  %2680 = vmatpush1.bf16.msra.mxu0 %v9235_v6  ;;  %3066 = vmatpush1.bf16.msra.mxu1 %v9237_v51  ;;  %v9254_v31 = vcombine.high %v12407_v10, %v12409_v13  ;;  %v12426_v6 = vld [vmem:[#allocation3 + $0x680] sm:$0xff]  ;;  %v709_v19 = vmax.f32 %v550_v7, 0.0  ;;  %v9251_v47 = vcombine.low %v12402_v35, %v12404_v1  ;;  %v553_v39 = vpop.f32.mrb[20].mxu1 }
 0x13e   :  { %14214 = vst [vmem:[#allocation27_spill] sm:$0xff] %v12412_v21  ;;  %v401_v55 = vadd.f32 %v400_v38, %v12152_v0  ;;  %v402_v53 = vpop.f32.mrb[21].mxu0  ;;  %2681 = vmatprep.subr.bf16.mxu0 %v9244_v54  ;;  %3067 = vmatprep.subr.bf16.mxu1 %v9246_v34  ;;  %v12428_v51 = vld [vmem:[#allocation3 + $0x6a0] sm:$0xff]  ;;  %v12435_v54 = vld [vmem:[#allocation3 + $0x688] sm:$0xff]  ;;  %v12439_v58 = vpack.c.bf16 %v708_v50, %v704_v17  ;;  %v555_v52 = vpop.f32.mrb[21].mxu1 }
 0x13f   :  { %14215 = vst [vmem:[#allocation28_spill] sm:$0xff] %v12415_v27  ;;  %v403_v8 = vadd.f32 %v402_v53, %v12156_v46  ;;  %v404_v40 = vpop.f32.mrb[22].mxu0  ;;  %2544 = vmatprep.mubr.bf16.mxu0 %v12415_v27  ;;  %2930 = vmatprep.mubr.bf16.mxu1 %v12415_v27  ;;  %v9253_v63 = vcombine.low %v12407_v10, %v12409_v13  ;;  %v12454_v13 = vld [vmem:[#allocation3 + $0x6c0] sm:$0xff]  ;;  %v12459_v53 = vld [vmem:[#allocation3 + $0x6c8] sm:$0xff] }
 0x140   :  { %14216 = vst [vmem:[#allocation29_spill] sm:$0xff] %v12439_v58  ;;  %v405_v34 = vadd.f32 %v404_v40, %v12152_v0  ;;  %v406_v60 = vpop.f32.mrb[23].mxu0  ;;  %2545 = vmatmul.mubr.bf16.gmra.mrb[64].mxu0 %v12412_v21  ;;  %2931 = vmatmul.mubr.bf16.gmra.mrb[96].mxu1 %v12412_v21  ;;  %v12446_v22 = vpack.c.bf16 %v709_v19, %v705_v26  ;;  %v742_v9 = vmax.f32 %v401_v55, 0.0  ;;  %v12456_v26 = vld [vmem:[#allocation3 + $0x6e0] sm:$0xff]  ;;  %v12461_v19 = vld [vmem:[#allocation3 + $0x6e8] sm:$0xff]  ;;  %v928_v21 = vld [vmem:[#allocation3 + $0x110] sm:$0xff] }
 0x141   :  { %v407_v35 = vadd.f32 %v406_v60, %v12156_v46  ;;  %2682 = vmatpush1.bf16.msra.mxu0 %v9243_v37  ;;  %3068 = vmatpush1.bf16.msra.mxu1 %v9245_v44  ;;  %v9260_v1 = vcombine.high %v12426_v6, %v12428_v51  ;;  %v554_v17 = vadd.f32 %v553_v39, %v12362_v20  ;;  %v557_v37 = vpop.f32.mrb[22].mxu1  ;;  %v743_v44 = vmax.f32 %v403_v8, 0.0 }
 0x142   :  { %14217 = vst [vmem:[#allocation30_spill] sm:$0xff] %v12446_v22  ;;  %v746_v7 = vmax.f32 %v405_v34, 0.0  ;;  %2683 = vmatprep.subr.bf16.mxu0 %v9252_v30  ;;  %3069 = vmatprep.subr.bf16.mxu1 %v9254_v31  ;;  %v9262_v10 = vcombine.high %v12435_v54, %v12437_v56  ;;  %v556_v38 = vadd.f32 %v555_v52, %v12373_v18  ;;  %v559_v31 = vpop.f32.mrb[23].mxu1 }
 0x143   :  { %v747_v50 = vmax.f32 %v407_v35, 0.0  ;;  %v712_v55 = vmax.f32 %v554_v17, 0.0  ;;  %v558_v30 = vadd.f32 %v557_v37, %v12362_v20  ;;  %v560_v60 = vadd.f32 %v559_v31, %v12373_v18 }
 0x144   :  { %v12464_v40 = vpack.c.bf16 %v746_v7, %v742_v9  ;;  %v713_v34 = vmax.f32 %v556_v38, 0.0  ;;  %v9259_v8 = vcombine.low %v12426_v6, %v12428_v51  ;;  %v9261_v35 = vcombine.low %v12435_v54, %v12437_v56  ;;  %v12480_v38 = vld [vmem:[#allocation3 + $0x720] sm:$0xff]  ;;  %v12489_v56 = vld [vmem:[#allocation3 + $0x708] sm:$0xff] }
 0x145   :  { %v12467_v39 = vpack.c.bf16 %v747_v50, %v743_v44  ;;  %v410_v61 = vpop.f32.mrb[24].mxu0  ;;  %2684 = vmatpush1.bf16.msra.mxu0 %v9251_v47  ;;  %3070 = vmatpush1.bf16.msra.mxu1 %v9253_v63  ;;  %v716_v17 = vmax.f32 %v558_v30, 0.0  ;;  %v9268_v9 = vcombine.high %v12454_v13, %v12456_v26  ;;  %v9270_v7 = vcombine.high %v12459_v53, %v12461_v19  ;;  %v12478_v63 = vld [vmem:[#allocation3 + $0x700] sm:$0xff]  ;;  %v563_v31 = vpop.f32.mrb[24].mxu1 }
 0x146   :  { %14218 = vst [vmem:[#allocation31_spill] sm:$0xff] %v12464_v40  ;;  %v411_v52 = vadd.f32 %v410_v61, %v12152_v0  ;;  %v412_v37 = vpop.f32.mrb[25].mxu0  ;;  %2685 = vmatprep.subr.bf16.mxu0 %v9260_v1  ;;  %3071 = vmatprep.subr.bf16.mxu1 %v9262_v10  ;;  %v717_v47 = vmax.f32 %v560_v60, 0.0  ;;  %v9267_v61 = vcombine.low %v12454_v13, %v12456_v26  ;;  %v12491_v1 = vld [vmem:[#allocation3 + $0x728] sm:$0xff]  ;;  %v565_v60 = vpop.f32.mrb[25].mxu1 }
 0x147   :  { %14219 = vst [vmem:[#allocation32_spill] sm:$0xff] %v12467_v39  ;;  %v413_v6 = vadd.f32 %v412_v37, %v12156_v46  ;;  %v414_v51 = vpop.f32.mrb[26].mxu0  ;;  %2554 = vmatprep.mubr.bf16.mxu0 %v12467_v39  ;;  %2940 = vmatprep.mubr.bf16.mxu1 %v12467_v39  ;;  %v12487_v54 = vpack.c.bf16 %v716_v17, %v712_v55 }
 0x148   :  { %v415_v10 = vadd.f32 %v414_v51, %v12152_v0  ;;  %v416_v44 = vpop.f32.mrb[27].mxu0  ;;  %2555 = vmatmul.mubr.bf16.gmra.mrb[68].mxu0 %v12464_v40  ;;  %2941 = vmatmul.mubr.bf16.gmra.mrb[100].mxu1 %v12464_v40  ;;  %v9269_v50 = vcombine.low %v12459_v53, %v12461_v19  ;;  %v12498_v30 = vpack.c.bf16 %v717_v47, %v713_v34  ;;  %v750_v17 = vmax.f32 %v411_v52, 0.0  ;;  %v567_v34 = vpop.f32.mrb[26].mxu1  ;;  %v12507_v47 = vld [vmem:[#allocation3 + $0x740] sm:$0xff]  ;;  %v12512_v52 = vld [vmem:[#allocation3 + $0x748] sm:$0xff]  ;;  %v12741_v40 = vld [vmem:[#allocation3 + $0x418] sm:$0xff] }
 0x149   :  { %14220 = vst [vmem:[#allocation33_spill] sm:$0xff] %v12487_v54  ;;  %v417_v13 = vadd.f32 %v416_v44, %v12156_v46  ;;  %2686 = vmatpush1.bf16.msra.mxu0 %v9259_v8  ;;  %3072 = vmatpush1.bf16.msra.mxu1 %v9261_v35  ;;  %v9276_v26 = vcombine.high %v12478_v63, %v12480_v38  ;;  %v12509_v8 = vld [vmem:[#allocation3 + $0x760] sm:$0xff]  ;;  %v751_v35 = vmax.f32 %v413_v6, 0.0  ;;  %v569_v11 = vpop.f32.mrb[27].mxu1 }
 0x14a   :  { %14221 = vst [vmem:[#allocation34_spill] sm:$0xff] %v12498_v30  ;;  %v564_v55 = vadd.f32 %v563_v31, %v12362_v20  ;;  %v754_v37 = vmax.f32 %v415_v10, 0.0  ;;  %2687 = vmatprep.subr.bf16.mxu0 %v9268_v9  ;;  %3073 = vmatprep.subr.bf16.mxu1 %v9270_v7  ;;  %v9278_v53 = vcombine.high %v12489_v56, %v12491_v1  ;;  %v12514_v9 = vld [vmem:[#allocation3 + $0x768] sm:$0xff] }
 0x14b   :  { %v566_v19 = vadd.f32 %v565_v60, %v12373_v18  ;;  %v755_v51 = vmax.f32 %v417_v13, 0.0  ;;  %v568_v31 = vadd.f32 %v567_v34, %v12362_v20  ;;  %v570_v60 = vadd.f32 %v569_v11, %v12373_v18 }
 0x14c   :  { %v720_v44 = vmax.f32 %v564_v55, 0.0  ;;  %v12516_v7 = vpack.c.bf16 %v754_v37, %v750_v17  ;;  %v9275_v6 = vcombine.low %v12478_v63, %v12480_v38  ;;  %v9277_v13 = vcombine.low %v12489_v56, %v12491_v1  ;;  %v12532_v37 = vld [vmem:[#allocation3 + $0x7a0] sm:$0xff]  ;;  %v12541_v1 = vld [vmem:[#allocation3 + $0x788] sm:$0xff] }
 0x14d   :  { %v721_v10 = vmax.f32 %v566_v19, 0.0  ;;  %v12519_v42 = vpack.c.bf16 %v755_v51, %v751_v35  ;;  %v420_v28 = vpop.f32.mrb[28].mxu0  ;;  %2688 = vmatpush1.bf16.msra.mxu0 %v9267_v61  ;;  %3074 = vmatpush1.bf16.msra.mxu1 %v9269_v50  ;;  %v724_v55 = vmax.f32 %v568_v31, 0.0  ;;  %v725_v17 = vmax.f32 %v570_v60, 0.0  ;;  %v12530_v50 = vld [vmem:[#allocation3 + $0x780] sm:$0xff]  ;;  %v573_v51 = vpop.f32.mrb[28].mxu1 }
 0x14e   :  { %14222 = vst [vmem:[#allocation35_spill] sm:$0xff] %v12516_v7  ;;  %v421_v34 = vadd.f32 %v420_v28, %v12152_v0  ;;  %v422_v45 = vpop.f32.mrb[29].mxu0  ;;  %2689 = vmatprep.subr.bf16.mxu0 %v9276_v26  ;;  %3075 = vmatprep.subr.bf16.mxu1 %v9278_v53  ;;  %v9284_v11 = vcombine.high %v12507_v47, %v12509_v8  ;;  %v12543_v26 = vld [vmem:[#allocation3 + $0x7a8] sm:$0xff] }
 0x14f   :  { %14223 = vst [vmem:[#allocation36_spill] sm:$0xff] %v12519_v42  ;;  %v9286_v61 = vcombine.high %v12512_v52, %v12514_v9  ;;  %v423_v63 = vadd.f32 %v422_v45, %v12156_v46  ;;  %v424_v38 = vpop.f32.mrb[30].mxu0  ;;  %2564 = vmatprep.mubr.bf16.mxu0 %v12519_v42  ;;  %2950 = vmatprep.mubr.bf16.mxu1 %v12519_v42 }
 0x150   :  { %v12537_v28 = vpack.c.bf16 %v724_v55, %v720_v44  ;;  %v9283_v56 = vcombine.low %v12507_v47, %v12509_v8  ;;  %v425_v53 = vadd.f32 %v424_v38, %v12152_v0  ;;  %v426_v19 = vpop.f32.mrb[31].mxu0  ;;  %2565 = vmatmul.mubr.bf16.gmra.mrb[72].mxu0 %v12516_v7  ;;  %2951 = vmatmul.mubr.bf16.gmra.mrb[104].mxu1 %v12516_v7  ;;  %v575_v8 = vpop.f32.mrb[29].mxu1  ;;  %v758_v60 = vmax.f32 %v421_v34, 0.0  ;;  %v1147_v34 = vld [vmem:[#allocation3 + $0x7e8] sm:$0xff] }
 0x151   :  { %v12548_v45 = vpack.c.bf16 %v725_v17, %v721_v10  ;;  %v9285_v35 = vcombine.low %v12512_v52, %v12514_v9  ;;  %v427_v44 = vadd.f32 %v426_v19, %v12156_v46  ;;  %2690 = vmatpush1.bf16.msra.mxu0 %v9275_v6  ;;  %3076 = vmatpush1.bf16.msra.mxu1 %v9277_v13  ;;  %v577_v17 = vpop.f32.mrb[30].mxu1  ;;  %v12559_v9 = vld [vmem:[#allocation3 + $0x7c0] sm:$0xff]  ;;  %v759_v13 = vmax.f32 %v423_v63, 0.0 }
 0x152   :  { %14224 = vst [vmem:[#allocation37_spill] sm:$0xff] %v12537_v28  ;;  %v574_v47 = vadd.f32 %v573_v51, %v12362_v20  ;;  %v9292_v31 = vcombine.high %v12530_v50, %v12532_v37  ;;  %v762_v55 = vmax.f32 %v425_v53, 0.0  ;;  %2691 = vmatprep.subr.bf16.mxu0 %v9284_v11  ;;  %3077 = vmatprep.subr.bf16.mxu1 %v9286_v61  ;;  %v1146_v6 = vld [vmem:[#allocation3 + $0x7e0] sm:$0xff]  ;;  %v579_v48 = vpop.f32.mrb[31].mxu1 }
 0x153   :  { %14225 = vst [vmem:[#allocation38_spill] sm:$0xff] %v12548_v45  ;;  %v576_v10 = vadd.f32 %v575_v8, %v12373_v18  ;;  %v9294_v52 = vcombine.high %v12541_v1, %v12543_v26  ;;  %v763_v38 = vmax.f32 %v427_v44, 0.0  ;;  %v578_v51 = vadd.f32 %v577_v17, %v12362_v20 }
 0x154   :  { %v728_v19 = vmax.f32 %v574_v47, 0.0  ;;  %v12562_v53 = vpack.c.bf16 %v762_v55, %v758_v60  ;;  %v580_v61 = vadd.f32 %v579_v48, %v12373_v18  ;;  %v9291_v63 = vcombine.low %v12530_v50, %v12532_v37 }
 0x155   :  { %v729_v11 = vmax.f32 %v576_v10, 0.0  ;;  %v12565_v8 = vpack.c.bf16 %v763_v38, %v759_v13  ;;  %v430_v7 = vpop.f32.mrb[32].mxu0  ;;  %2692 = vmatpush1.bf16.msra.mxu0 %v9283_v56  ;;  %3078 = vmatpush1.bf16.msra.mxu1 %v9285_v35  ;;  %v732_v42 = vmax.f32 %v578_v51, 0.0  ;;  %v9293_v44 = vcombine.low %v12541_v1, %v12543_v26  ;;  %v583_v35 = vpop.f32.mrb[32].mxu1 }
 0x156   :  { %14226 = vst [vmem:[#allocation39_spill] sm:$0xff] %v12562_v53  ;;  %v431_v47 = vadd.f32 %v430_v7, %v12152_v0  ;;  %v432_v17 = vpop.f32.mrb[33].mxu0  ;;  %v733_v60 = vmax.f32 %v580_v61, 0.0  ;;  %2693 = vmatprep.subr.bf16.mxu0 %v9292_v31  ;;  %3079 = vmatprep.subr.bf16.mxu1 %v9294_v52  ;;  %v9300_v48 = vcombine.high %v12559_v9, %v1146_v6 }
 0x157   :  { %14227 = vst [vmem:[#allocation40_spill] sm:$0xff] %v12565_v8  ;;  %v9302_v55 = vcombine.high %v1143_v43, %v1147_v34  ;;  %v433_v10 = vadd.f32 %v432_v17, %v12156_v46  ;;  %v434_v56 = vpop.f32.mrb[34].mxu0  ;;  %2574 = vmatprep.mubr.bf16.mxu0 %v12565_v8  ;;  %2960 = vmatprep.mubr.bf16.mxu1 %v12565_v8 }
 0x158   :  { %v12576_v50 = vpack.c.bf16 %v732_v42, %v728_v19  ;;  %v9299_v37 = vcombine.low %v12559_v9, %v1146_v6  ;;  %v435_v7 = vadd.f32 %v434_v56, %v12152_v0  ;;  %v436_v1 = vpop.f32.mrb[35].mxu0  ;;  %2575 = vmatmul.mubr.bf16.gmra.mrb[76].mxu0 %v12562_v53  ;;  %2961 = vmatmul.mubr.bf16.gmra.mrb[108].mxu1 %v12562_v53  ;;  %v585_v42 = vpop.f32.mrb[33].mxu1  ;;  %v766_v6 = vmax.f32 %v431_v47, 0.0 }
 0x159   :  { %v12582_v26 = vpack.c.bf16 %v733_v60, %v729_v11  ;;  %v9301_v31 = vcombine.low %v1143_v43, %v1147_v34  ;;  %v437_v52 = vadd.f32 %v436_v1, %v12156_v46  ;;  %2694 = vmatpush1.bf16.msra.mxu0 %v9291_v63  ;;  %v584_v13 = vadd.f32 %v583_v35, %v12362_v20  ;;  %v587_v51 = vpop.f32.mrb[34].mxu1 }
 0x15a   :  { %3080 = vmatpush1.bf16.msra.mxu1 %v9293_v44  ;;  %v9056_v9 = vcombine.high %v12165_v59, %v12170_v3  ;;  %v770_v38 = vmax.f32 %v435_v7, 0.0  ;;  %v586_v19 = vadd.f32 %v585_v42, %v12373_v18  ;;  %2695 = vmatprep.subr.bf16.mxu0 %v9300_v48  ;;  %v9058_v43 = vcombine.high %v12228_v32, %v12230_v33  ;;  %v589_v44 = vpop.f32.mrb[35].mxu1 }
 0x15b   :  { %14228 = vst [vmem:[#allocation41_spill] sm:$0xff] %v12582_v26  ;;  %3081 = vmatprep.subr.bf16.mxu1 %v9302_v55  ;;  %v767_v34 = vmax.f32 %v433_v10, 0.0  ;;  %v771_v11 = vmax.f32 %v437_v52, 0.0  ;;  %v736_v61 = vmax.f32 %v584_v13, 0.0  ;;  %v588_v63 = vadd.f32 %v587_v51, %v12362_v20 }
 0x15c   :  { %v12592_v17 = vpack.c.bf16 %v770_v38, %v766_v6  ;;  %v737_v60 = vmax.f32 %v586_v19, 0.0  ;;  %v590_v47 = vadd.f32 %v589_v44, %v12373_v18 }
 0x15d   :  { %v12595_v56 = vpack.c.bf16 %v771_v11, %v767_v34  ;;  %v440_v7 = vpop.f32.mrb[36].mxu0  ;;  %v740_v1 = vmax.f32 %v588_v63, 0.0  ;;  %2696 = vmatpush1.bf16.msra.mxu0 %v9299_v37 }
 0x15e   :  { %14229 = vst [vmem:[#allocation42_spill] sm:$0xff] %v12592_v17  ;;  %3082 = vmatpush1.bf16.msra.mxu1 %v9301_v31  ;;  %v441_v48 = vadd.f32 %v440_v7, %v12152_v0  ;;  %v442_v55 = vpop.f32.mrb[37].mxu0  ;;  %v741_v10 = vmax.f32 %v590_v47, 0.0  ;;  %3244 = vmatprep.subr.bf16.mxu0 %v9056_v9  ;;  %v593_v31 = vpop.f32.mrb[36].mxu1 }
 0x15f   :  { %14230 = vst [vmem:[#allocation43_spill] sm:$0xff] %v12595_v56  ;;  %3630 = vmatprep.subr.bf16.mxu1 %v9058_v43  ;;  %v443_v35 = vadd.f32 %v442_v55, %v12156_v46  ;;  %v444_v52 = vpop.f32.mrb[38].mxu0  ;;  %2584 = vmatprep.mubr.bf16.mxu0 %v12595_v56  ;;  %v12601_v13 = vpack.c.bf16 %v740_v1, %v736_v61  ;;  %v595_v19 = vpop.f32.mrb[37].mxu1 }
 0x160   :  { %2970 = vmatprep.mubr.bf16.mxu1 %v12595_v56  ;;  %v445_v42 = vadd.f32 %v444_v52, %v12152_v0  ;;  %v446_v6 = vpop.f32.mrb[39].mxu0  ;;  %2585 = vmatmul.mubr.bf16.gmra.mrb[80].mxu0 %v12592_v17  ;;  %v12606_v37 = vpack.c.bf16 %v741_v10, %v737_v60  ;;  %v594_v38 = vadd.f32 %v593_v31, %v12362_v20  ;;  %v774_v51 = vmax.f32 %v441_v48, 0.0  ;;  %v597_v11 = vpop.f32.mrb[38].mxu1  ;;  %v916_v56 = vld [vmem:[#allocation3 + $0xb0] sm:$0xff] }
 0x161   :  { %2971 = vmatmul.mubr.bf16.gmra.mrb[112].mxu1 %v12592_v17  ;;  %v447_v9 = vadd.f32 %v446_v6, %v12156_v46  ;;  %v596_v34 = vadd.f32 %v595_v19, %v12373_v18  ;;  %v775_v61 = vmax.f32 %v443_v35, 0.0  ;;  %v598_v47 = vadd.f32 %v597_v11, %v12362_v20  ;;  %v599_v7 = vpop.f32.mrb[39].mxu1 }
 0x162   :  { %v778_v43 = vmax.f32 %v445_v42, 0.0  ;;  %v744_v44 = vmax.f32 %v594_v38, 0.0  ;;  %v600_v55 = vadd.f32 %v599_v7, %v12373_v18 }
 0x163   :  { %v779_v63 = vmax.f32 %v447_v9, 0.0  ;;  %v745_v60 = vmax.f32 %v596_v34, 0.0  ;;  %v748_v6 = vmax.f32 %v598_v47, 0.0 }
 0x164   :  { %v12612_v1 = vpack.c.bf16 %v778_v43, %v774_v51  ;;  %v749_v31 = vmax.f32 %v600_v55, 0.0 }
 0x165   :  { %v12615_v10 = vpack.c.bf16 %v779_v63, %v775_v61  ;;  %v450_v52 = vpop.f32.mrb[40].mxu0  ;;  %v12621_v38 = vpack.c.bf16 %v748_v6, %v744_v44  ;;  %v603_v34 = vpop.f32.mrb[40].mxu1 }
 0x166   :  { %14231 = vst [vmem:[#allocation44_spill] sm:$0xff] %v12612_v1  ;;  %v451_v48 = vadd.f32 %v450_v52, %v12152_v0  ;;  %v452_v42 = vpop.f32.mrb[41].mxu0  ;;  %v12626_v43 = vpack.c.bf16 %v749_v31, %v745_v60  ;;  %v604_v61 = vadd.f32 %v603_v34, %v12362_v20  ;;  %v605_v63 = vpop.f32.mrb[41].mxu1 }
 0x167   :  { %14232 = vst [vmem:[#allocation45_spill] sm:$0xff] %v12615_v10  ;;  %v453_v35 = vadd.f32 %v452_v42, %v12156_v46  ;;  %v454_v9 = vpop.f32.mrb[42].mxu0  ;;  %2594 = vmatprep.mubr.bf16.mxu0 %v12615_v10  ;;  %2980 = vmatprep.mubr.bf16.mxu1 %v12615_v10  ;;  %v606_v44 = vadd.f32 %v605_v63, %v12373_v18  ;;  %v607_v55 = vpop.f32.mrb[42].mxu1 }
 0x168   :  { %v455_v19 = vadd.f32 %v454_v9, %v12152_v0  ;;  %v456_v51 = vpop.f32.mrb[43].mxu0  ;;  %2595 = vmatmul.mubr.bf16.gmra.mrb[84].mxu0 %v12612_v1  ;;  %v782_v47 = vmax.f32 %v451_v48, 0.0  ;;  %v752_v42 = vmax.f32 %v604_v61, 0.0  ;;  %v608_v9 = vadd.f32 %v607_v55, %v12362_v20  ;;  %v609_v10 = vpop.f32.mrb[43].mxu1 }
 0x169   :  { %2981 = vmatmul.mubr.bf16.gmra.mrb[116].mxu1 %v12612_v1  ;;  %v457_v11 = vadd.f32 %v456_v51, %v12156_v46  ;;  %v783_v52 = vmax.f32 %v453_v35, 0.0  ;;  %v753_v60 = vmax.f32 %v606_v44, 0.0  ;;  %v610_v31 = vadd.f32 %v609_v10, %v12373_v18 }
 0x16a   :  { %v786_v7 = vmax.f32 %v455_v19, 0.0  ;;  %v756_v17 = vmax.f32 %v608_v9, 0.0 }
 0x16b   :  { %v787_v6 = vmax.f32 %v457_v11, 0.0  ;;  %v757_v63 = vmax.f32 %v610_v31, 0.0 }
 0x16c   :  { %v12632_v1 = vpack.c.bf16 %v786_v7, %v782_v47  ;;  %v12641_v61 = vpack.c.bf16 %v756_v17, %v752_v42 }
 0x16d   :  { %v12635_v51 = vpack.c.bf16 %v787_v6, %v783_v52  ;;  %v460_v34 = vpop.f32.mrb[44].mxu0  ;;  %v12646_v7 = vpack.c.bf16 %v757_v63, %v753_v60  ;;  %v613_v44 = vpop.f32.mrb[44].mxu1 }
 0x16e   :  { %14233 = vst [vmem:[#allocation46_spill] sm:$0xff] %v12632_v1  ;;  %v461_v48 = vadd.f32 %v460_v34, %v12152_v0  ;;  %v462_v19 = vpop.f32.mrb[45].mxu0  ;;  %v614_v52 = vadd.f32 %v613_v44, %v12362_v20  ;;  %v615_v6 = vpop.f32.mrb[45].mxu1 }
 0x16f   :  { %14234 = vst [vmem:[#allocation47_spill] sm:$0xff] %v12635_v51  ;;  %v463_v35 = vadd.f32 %v462_v19, %v12156_v46  ;;  %v464_v11 = vpop.f32.mrb[46].mxu0  ;;  %2604 = vmatprep.mubr.bf16.mxu0 %v12635_v51  ;;  %2990 = vmatprep.mubr.bf16.mxu1 %v12635_v51  ;;  %v616_v17 = vadd.f32 %v615_v6, %v12373_v18  ;;  %v617_v42 = vpop.f32.mrb[46].mxu1 }
 0x170   :  { %v465_v47 = vadd.f32 %v464_v11, %v12152_v0  ;;  %v466_v10 = vpop.f32.mrb[47].mxu0  ;;  %2605 = vmatmul.mubr.bf16.gmra.mrb[88].mxu0 %v12632_v1  ;;  %v790_v9 = vmax.f32 %v461_v48, 0.0  ;;  %v760_v19 = vmax.f32 %v614_v52, 0.0  ;;  %v618_v11 = vadd.f32 %v617_v42, %v12362_v20  ;;  %v619_v51 = vpop.f32.mrb[47].mxu1 }
 0x171   :  { %2991 = vmatmul.mubr.bf16.gmra.mrb[120].mxu1 %v12632_v1  ;;  %v467_v55 = vadd.f32 %v466_v10, %v12156_v46  ;;  %v791_v34 = vmax.f32 %v463_v35, 0.0  ;;  %v761_v60 = vmax.f32 %v616_v17, 0.0  ;;  %v620_v63 = vadd.f32 %v619_v51, %v12373_v18 }
 0x172   :  { %v794_v31 = vmax.f32 %v465_v47, 0.0  ;;  %v764_v10 = vmax.f32 %v618_v11, 0.0 }
 0x173   :  { %v795_v0 = vmax.f32 %v467_v55, 0.0  ;;  %v765_v44 = vmax.f32 %v620_v63, 0.0 }
 0x174   :  { %v12652_v1 = vpack.c.bf16 %v794_v31, %v790_v9  ;;  %v12659_v48 = vpack.c.bf16 %v764_v10, %v760_v19 }
 0x175   :  { %v12655_v46 = vpack.c.bf16 %v795_v0, %v791_v34  ;;  %v12663_v35 = vpack.c.bf16 %v765_v44, %v761_v60  ;;  %v623_v47 = vpop.f32.mrb[48].mxu1 }
 0x176   :  { %14235 = vst [vmem:[#allocation48_spill] sm:$0xff] %v12652_v1  ;;  %v624_v51 = vadd.f32 %v623_v47, %v12362_v20  ;;  %v625_v55 = vpop.f32.mrb[49].mxu1 }
 0x177   :  { %14236 = vst [vmem:[#allocation49_spill] sm:$0xff] %v12655_v46  ;;  %2614 = vmatprep.mubr.bf16.mxu0 %v12655_v46  ;;  %3000 = vmatprep.mubr.bf16.mxu1 %v12655_v46  ;;  %v626_v52 = vadd.f32 %v625_v55, %v12373_v18  ;;  %v627_v6 = vpop.f32.mrb[50].mxu1  ;;  %v912_v46 = vld [vmem:[#allocation3 + $0x90] sm:$0xff] }
 0x178   :  { %2615 = vmatmul.mubr.bf16.gmra.mrb[92].mxu0 %v12652_v1  ;;  %v768_v9 = vmax.f32 %v624_v51, 0.0  ;;  %v628_v31 = vadd.f32 %v627_v6, %v12362_v20  ;;  %v629_v17 = vpop.f32.mrb[51].mxu1 }
 0x179   :  { %3001 = vmatmul.mubr.bf16.gmra.mrb[124].mxu1 %v12652_v1  ;;  %2624 = vmatprep.mubr.bf16.mxu0 %v12211_v41  ;;  %v769_v42 = vmax.f32 %v626_v52, 0.0  ;;  %v630_v34 = vadd.f32 %v629_v17, %v12373_v18 }
 0x17a   :  { %3010 = vmatprep.mubr.bf16.mxu1 %v12211_v41  ;;  %v772_v0 = vmax.f32 %v628_v31, 0.0 }
 0x17b   :  { %v773_v19 = vmax.f32 %v630_v34, 0.0 }
 0x17c   :  { %v12671_v11 = vpack.c.bf16 %v772_v0, %v768_v9 }
 0x17d   :  { %v12675_v60 = vpack.c.bf16 %v773_v19, %v769_v42  ;;  %v633_v63 = vpop.f32.mrb[52].mxu1 }
 0x17e   :  { %v634_v10 = vadd.f32 %v633_v63, %v12362_v20  ;;  %v635_v44 = vpop.f32.mrb[53].mxu1 }
 0x17f   :  { %v636_v47 = vadd.f32 %v635_v44, %v12373_v18  ;;  %v637_v51 = vpop.f32.mrb[54].mxu1 }
 0x180   :  { %2625 = vmatmul.mubr.bf16.gmra.mrb[96].mxu0 %v12204_v36  ;;  %v776_v55 = vmax.f32 %v634_v10, 0.0  ;;  %v638_v52 = vadd.f32 %v637_v51, %v12362_v20  ;;  %v639_v6 = vpop.f32.mrb[55].mxu1 }
 0x181   :  { %3011 = vmatmul.mubr.bf16.gmra.mrb[128].mxu1 %v12204_v36  ;;  %2634 = vmatprep.mubr.bf16.mxu0 %v12275_v24  ;;  %v777_v9 = vmax.f32 %v636_v47, 0.0  ;;  %v640_v31 = vadd.f32 %v639_v6, %v12373_v18 }
 0x182   :  { %3020 = vmatprep.mubr.bf16.mxu1 %v12275_v24  ;;  %v780_v17 = vmax.f32 %v638_v52, 0.0 }
 0x183   :  { %v781_v42 = vmax.f32 %v640_v31, 0.0 }
 0x184   :  { %v12683_v34 = vpack.c.bf16 %v780_v17, %v776_v55 }
 0x185   :  { %v12687_v0 = vpack.c.bf16 %v781_v42, %v777_v9  ;;  %v643_v19 = vpop.f32.mrb[56].mxu1 }
 0x186   :  { %v644_v63 = vadd.f32 %v643_v19, %v12362_v20  ;;  %v645_v10 = vpop.f32.mrb[57].mxu1 }
 0x187   :  { %v646_v44 = vadd.f32 %v645_v10, %v12373_v18  ;;  %v647_v47 = vpop.f32.mrb[58].mxu1 }
 0x188   :  { %2635 = vmatmul.mubr.bf16.gmra.mrb[100].mxu0 %v12268_v25  ;;  %v784_v51 = vmax.f32 %v644_v63, 0.0  ;;  %v648_v55 = vadd.f32 %v647_v47, %v12362_v20  ;;  %v649_v52 = vpop.f32.mrb[59].mxu1 }
 0x189   :  { %3021 = vmatmul.mubr.bf16.gmra.mrb[132].mxu1 %v12268_v25  ;;  %2644 = vmatprep.mubr.bf16.mxu0 %v12329_v15  ;;  %v785_v6 = vmax.f32 %v646_v44, 0.0  ;;  %v650_v31 = vadd.f32 %v649_v52, %v12373_v18  ;;  %v909_v25 = vld [vmem:[#allocation3 + $0x78] sm:$0xff] }
 0x18a   :  { %3030 = vmatprep.mubr.bf16.mxu1 %v12329_v15  ;;  %v788_v9 = vmax.f32 %v648_v55, 0.0 }
 0x18b   :  { %v789_v17 = vmax.f32 %v650_v31, 0.0 }
 0x18c   :  { %v12695_v42 = vpack.c.bf16 %v788_v9, %v784_v51 }
 0x18d   :  { %v12699_v19 = vpack.c.bf16 %v789_v17, %v785_v6  ;;  %v653_v15 = vpop.f32.mrb[60].mxu1 }
 0x18e   :  { %v654_v63 = vadd.f32 %v653_v15, %v12362_v20  ;;  %v655_v10 = vpop.f32.mrb[61].mxu1 }
 0x18f   :  { %v656_v44 = vadd.f32 %v655_v10, %v12373_v18  ;;  %v657_v47 = vpop.f32.mrb[62].mxu1 }
 0x190   :  { %2645 = vmatmul.mubr.bf16.gmra.mrb[104].mxu0 %v12322_v23  ;;  %v792_v55 = vmax.f32 %v654_v63, 0.0  ;;  %v658_v51 = vadd.f32 %v657_v47, %v12362_v20  ;;  %v659_v52 = vpop.f32.mrb[63].mxu1 }
 0x191   :  { %3031 = vmatmul.mubr.bf16.gmra.mrb[136].mxu1 %v12322_v23  ;;  %2654 = vmatprep.mubr.bf16.mxu0 %v12391_v29  ;;  %v793_v31 = vmax.f32 %v656_v44, 0.0  ;;  %v660_v9 = vadd.f32 %v659_v52, %v12373_v18  ;;  %v12716_v44 = vld [vmem:[#allocation3 + $0x410] sm:$0xff] }
 0x192   :  { %3040 = vmatprep.mubr.bf16.mxu1 %v12391_v29  ;;  %v796_v6 = vmax.f32 %v658_v51, 0.0  ;;  %v12719_v51 = vld [vmem:[#allocation3 + $0x430] sm:$0xff] }
 0x193   :  { %v797_v17 = vmax.f32 %v660_v9, 0.0  ;;  %v904_v52 = vld [vmem:[#allocation3 + $0x50] sm:$0xff] }
 0x194   :  { %v12707_v23 = vpack.c.bf16 %v796_v6, %v792_v55 }
 0x195   :  { %v12711_v15 = vpack.c.bf16 %v797_v17, %v793_v31  ;;  %v663_v29 = vpop.f32.mrb[64].mxu1 }
 0x196   :  { %v664_v63 = vadd.f32 %v663_v29, %v12362_v20  ;;  %v665_v10 = vpop.f32.mrb[65].mxu1 }
 0x197   :  { %v666_v47 = vadd.f32 %v665_v10, %v12373_v18  ;;  %v667_v55 = vpop.f32.mrb[66].mxu1 }
 0x198   :  { %2655 = vmatmul.mubr.bf16.gmra.mrb[108].mxu0 %v12384_v49  ;;  %v800_v9 = vmax.f32 %v664_v63, 0.0  ;;  %v668_v31 = vadd.f32 %v667_v55, %v12362_v20  ;;  %v669_v6 = vpop.f32.mrb[67].mxu1  ;;  %v913_v63 = vld [vmem:[#allocation3 + $0x98] sm:$0xff] }
 0x199   :  { %3041 = vmatmul.mubr.bf16.gmra.mrb[140].mxu1 %v12384_v49  ;;  %2697 = vmatprep.mubr.bf16.mxu0 %v12446_v22  ;;  %v908_v49 = vld [vmem:[#allocation3 + $0x70] sm:$0xff]  ;;  %v801_v29 = vmax.f32 %v666_v47, 0.0  ;;  %v670_v24 = vadd.f32 %v669_v6, %v12373_v18  ;;  %v917_v55 = vld [vmem:[#allocation3 + $0xb8] sm:$0xff]  ;;  %v14237_v47 = vcombine.low %v12165_v59, %v12170_v3 }
 0x19a   :  { %3083 = vmatprep.mubr.bf16.mxu1 %v12446_v22  ;;  %v905_v22 = vld [vmem:[#allocation3 + $0x58] sm:$0xff]  ;;  %v804_v36 = vmax.f32 %v668_v31, 0.0  ;;  %v9064_v10 = vcombine.high %v904_v52, %v908_v49  ;;  %v9074_v3 = vcombine.high %v913_v63, %v917_v55 }
 0x19b   :  { %v805_v41 = vmax.f32 %v670_v24, 0.0  ;;  %v9066_v1 = vcombine.high %v905_v22, %v909_v25  ;;  %v9063_v24 = vcombine.low %v904_v52, %v908_v49  ;;  %v9065_v6 = vcombine.low %v905_v22, %v909_v25  ;;  %v12743_v59 = vld [vmem:[#allocation3 + $0x438] sm:$0xff]  ;;  %v920_v49 = vld [vmem:[#allocation3 + $0xd0] sm:$0xff] }
 0x19c   :  { %v12725_v53 = vpack.c.bf16 %v804_v36, %v800_v9  ;;  %v14238_v9 = vcombine.low %v12228_v32, %v12230_v33  ;;  %v924_v33 = vld [vmem:[#allocation3 + $0xf0] sm:$0xff]  ;;  %v921_v25 = vld [vmem:[#allocation3 + $0xd8] sm:$0xff] }
 0x19d   :  { %v12729_v17 = vpack.c.bf16 %v805_v41, %v801_v29  ;;  %v673_v8 = vpop.f32.mrb[68].mxu1  ;;  %v9072_v41 = vcombine.high %v912_v46, %v916_v56  ;;  %v925_v22 = vld [vmem:[#allocation3 + $0xf8] sm:$0xff] }
 0x19e   :  { %v674_v31 = vadd.f32 %v673_v8, %v12362_v20  ;;  %v675_v36 = vpop.f32.mrb[69].mxu1  ;;  %v929_v32 = vld [vmem:[#allocation3 + $0x118] sm:$0xff] }
 0x19f   :  { %v676_v29 = vadd.f32 %v675_v36, %v12373_v18 }
 0x1a0   :  { %2698 = vmatmul.mubr.bf16.vlgmr.msra.gmra.mrb[48].mxu0 %v12439_v58  ;;  %v808_v8 = vmax.f32 %v674_v31, 0.0  ;;  %v9080_v31 = vcombine.high %v920_v49, %v924_v33 }
 0x1a1   :  { %3084 = vmatmul.mubr.bf16.vlgmr.msra.gmra.mrb[80].mxu1 %v12439_v58  ;;  %3245 = vmatpush1.bf16.msra.mxu0 %v14237_v47  ;;  %v677_v58 = vpop.f32.mrb[70].mxu1  ;;  %v809_v36 = vmax.f32 %v676_v29, 0.0  ;;  %v932_v29 = vld [vmem:[#allocation3 + $0x130] sm:$0xff] }
 0x1a2   :  { %2707 = vmatprep.mubr.bf16.mxu0 %v12498_v30  ;;  %3093 = vmatprep.mubr.bf16.mxu1 %v12498_v30  ;;  %v678_v52 = vadd.f32 %v677_v58, %v12362_v20  ;;  %v679_v47 = vpop.f32.mrb[71].mxu1  ;;  %v9082_v58 = vcombine.high %v921_v25, %v925_v22 }
 0x1a3   :  { %3631 = vmatpush1.bf16.msra.mxu1 %v14238_v9  ;;  %3246 = vmatprep.subr.bf16.mxu0 %v9064_v10  ;;  %v680_v9 = vadd.f32 %v679_v47, %v12373_v18  ;;  %v9071_v10 = vcombine.low %v912_v46, %v916_v56  ;;  %v933_v47 = vld [vmem:[#allocation3 + $0x138] sm:$0xff] }
 0x1a4   :  { %3632 = vmatprep.subr.bf16.mxu1 %v9066_v1  ;;  %v812_v30 = vmax.f32 %v678_v52, 0.0  ;;  %v9073_v1 = vcombine.low %v913_v63, %v917_v55  ;;  %v9081_v63 = vcombine.low %v921_v25, %v925_v22  ;;  %v9089_v25 = vcombine.low %v929_v32, %v933_v47 }
 0x1a5   :  { %3247 = vmatpush1.bf16.msra.mxu0 %v9063_v24  ;;  %v813_v39 = vmax.f32 %v680_v9, 0.0 }
 0x1a6   :  { %3248 = vmatprep.subr.bf16.mxu0 %v9072_v41  ;;  %v12749_v27 = vpack.c.bf16 %v812_v30, %v808_v8  ;;  %v9079_v30 = vcombine.low %v920_v49, %v924_v33  ;;  %v936_v8 = vld [vmem:[#allocation3 + $0x150] sm:$0xff]  ;;  %v9087_v33 = vcombine.low %v928_v21, %v932_v29 }
 0x1a7   :  { %3633 = vmatpush1.bf16.msra.mxu1 %v9065_v6  ;;  %v12753_v24 = vpack.c.bf16 %v813_v39, %v809_v36  ;;  %v683_v6 = vpop.f32.mrb[72].mxu1  ;;  %v9090_v39 = vcombine.high %v929_v32, %v933_v47 }
 0x1a8   :  { %3634 = vmatprep.subr.bf16.mxu1 %v9074_v3  ;;  %2708 = vmatmul.mubr.bf16.gmra.mrb[52].mxu0 %v12487_v54  ;;  %v684_v56 = vadd.f32 %v683_v6, %v12362_v20  ;;  %v685_v46 = vpop.f32.mrb[73].mxu1  ;;  %v9088_v3 = vcombine.high %v928_v21, %v932_v29  ;;  %v941_v6 = vld [vmem:[#allocation3 + $0x178] sm:$0xff] }
 0x1a9   :  { %3094 = vmatmul.mubr.bf16.gmra.mrb[84].mxu1 %v12487_v54  ;;  %2717 = vmatprep.mubr.bf16.mxu0 %v12548_v45  ;;  %v686_v55 = vadd.f32 %v685_v46, %v12373_v18  ;;  %v687_v41 = vpop.f32.mrb[74].mxu1  ;;  %v937_v54 = vld [vmem:[#allocation3 + $0x158] sm:$0xff]  ;;  %v948_v46 = vld [vmem:[#allocation3 + $0x1b0] sm:$0xff] }
 0x1aa   :  { %3103 = vmatprep.mubr.bf16.mxu1 %v12548_v45  ;;  %3249 = vmatpush1.bf16.msra.mxu0 %v9071_v10  ;;  %v816_v52 = vmax.f32 %v684_v56, 0.0  ;;  %v688_v36 = vadd.f32 %v687_v41, %v12362_v20  ;;  %v689_v9 = vpop.f32.mrb[75].mxu1  ;;  %v940_v45 = vld [vmem:[#allocation3 + $0x170] sm:$0xff]  ;;  %v949_v41 = vld [vmem:[#allocation3 + $0x1b8] sm:$0xff]  ;;  %v9097_v47 = vcombine.low %v937_v54, %v941_v6 }
 0x1ab   :  { %3635 = vmatpush1.bf16.msra.mxu1 %v9073_v1  ;;  %3250 = vmatprep.subr.bf16.mxu0 %v9080_v31  ;;  %v817_v2 = vmax.f32 %v686_v55, 0.0  ;;  %v690_v10 = vadd.f32 %v689_v9, %v12373_v18  ;;  %v9096_v1 = vcombine.high %v936_v8, %v940_v45  ;;  %v9098_v31 = vcombine.high %v937_v54, %v941_v6  ;;  %v945_v55 = vld [vmem:[#allocation3 + $0x198] sm:$0xff] }
 0x1ac   :  { %3636 = vmatprep.subr.bf16.mxu1 %v9082_v58  ;;  %v820_v49 = vmax.f32 %v688_v36, 0.0  ;;  %v944_v58 = vld [vmem:[#allocation3 + $0x190] sm:$0xff]  ;;  %v9095_v29 = vcombine.low %v936_v8, %v940_v45  ;;  %v9105_v8 = vcombine.low %v945_v55, %v949_v41 }
 0x1ad   :  { %v821_v22 = vmax.f32 %v690_v10, 0.0  ;;  %v9103_v54 = vcombine.low %v944_v58, %v948_v46 }
 0x1ae   :  { %3251 = vmatpush1.bf16.msra.mxu0 %v9079_v30  ;;  %v12761_v56 = vpack.c.bf16 %v820_v49, %v816_v52  ;;  %v693_v30 = vpop.f32.mrb[76].mxu1  ;;  %v952_v52 = vld [vmem:[#allocation3 + $0x1d0] sm:$0xff] }
 0x1af   :  { %3637 = vmatpush1.bf16.msra.mxu1 %v9081_v63  ;;  %3252 = vmatprep.subr.bf16.mxu0 %v9088_v3  ;;  %v12765_v36 = vpack.c.bf16 %v821_v22, %v817_v2  ;;  %v694_v21 = vadd.f32 %v693_v30, %v12362_v20  ;;  %v695_v32 = vpop.f32.mrb[77].mxu1  ;;  %v9106_v2 = vcombine.high %v945_v55, %v949_v41  ;;  %v956_v22 = vld [vmem:[#allocation3 + $0x1f0] sm:$0xff]  ;;  %v957_v30 = vld [vmem:[#allocation3 + $0x1f8] sm:$0xff] }
 0x1b0   :  { %3638 = vmatprep.subr.bf16.mxu1 %v9090_v39  ;;  %2718 = vmatmul.mubr.bf16.gmra.mrb[56].mxu0 %v12537_v28  ;;  %v696_v63 = vadd.f32 %v695_v32, %v12373_v18  ;;  %v697_v3 = vpop.f32.mrb[78].mxu1  ;;  %v9104_v39 = vcombine.high %v944_v58, %v948_v46  ;;  %v961_v32 = vld [vmem:[#allocation3 + $0x218] sm:$0xff]  ;;  %v9111_v58 = vcombine.low %v952_v52, %v956_v22 }
 0x1b1   :  { %3104 = vmatmul.mubr.bf16.gmra.mrb[88].mxu1 %v12537_v28  ;;  %2727 = vmatprep.mubr.bf16.mxu0 %v12582_v26  ;;  %v824_v9 = vmax.f32 %v694_v21, 0.0  ;;  %v698_v10 = vadd.f32 %v697_v3, %v12362_v20  ;;  %v699_v49 = vpop.f32.mrb[79].mxu1  ;;  %v964_v20 = vld [vmem:[#allocation3 + $0x230] sm:$0xff]  ;;  %v969_v3 = vld [vmem:[#allocation3 + $0x258] sm:$0xff] }
 0x1b2   :  { %3113 = vmatprep.mubr.bf16.mxu1 %v12582_v26  ;;  %3253 = vmatpush1.bf16.msra.mxu0 %v9087_v33  ;;  %v953_v26 = vld [vmem:[#allocation3 + $0x1d8] sm:$0xff]  ;;  %v825_v28 = vmax.f32 %v696_v63, 0.0  ;;  %v700_v33 = vadd.f32 %v699_v49, %v12373_v18  ;;  %v976_v49 = vld [vmem:[#allocation3 + $0x290] sm:$0xff] }
 0x1b3   :  { %3639 = vmatpush1.bf16.msra.mxu1 %v9089_v25  ;;  %3254 = vmatprep.subr.bf16.mxu0 %v9096_v1  ;;  %v828_v45 = vmax.f32 %v698_v10, 0.0  ;;  %v9112_v25 = vcombine.high %v952_v52, %v956_v22  ;;  %v9114_v1 = vcombine.high %v953_v26, %v957_v30  ;;  %v965_v18 = vld [vmem:[#allocation3 + $0x238] sm:$0xff]  ;;  %v9113_v46 = vcombine.low %v953_v26, %v957_v30  ;;  %v980_v26 = vld [vmem:[#allocation3 + $0x2b0] sm:$0xff] }
 0x1b4   :  { %3640 = vmatprep.subr.bf16.mxu1 %v9098_v31  ;;  %v829_v6 = vmax.f32 %v700_v33, 0.0  ;;  %v960_v31 = vld [vmem:[#allocation3 + $0x210] sm:$0xff]  ;;  %v9122_v41 = vcombine.high %v961_v32, %v965_v18  ;;  %v977_v52 = vld [vmem:[#allocation3 + $0x298] sm:$0xff] }
 0x1b5   :  { %v12773_v21 = vpack.c.bf16 %v828_v45, %v824_v9  ;;  %v9120_v55 = vcombine.high %v960_v31, %v964_v20  ;;  %v981_v22 = vld [vmem:[#allocation3 + $0x2b8] sm:$0xff]  ;;  %v9136_v45 = vcombine.high %v976_v49, %v980_v26 }
 0x1b6   :  { %3255 = vmatpush1.bf16.msra.mxu0 %v9095_v29  ;;  %v12777_v63 = vpack.c.bf16 %v829_v6, %v825_v28  ;;  %v968_v29 = vld [vmem:[#allocation3 + $0x250] sm:$0xff]  ;;  %v9119_v28 = vcombine.low %v960_v31, %v964_v20  ;;  %v9135_v31 = vcombine.low %v976_v49, %v980_v26  ;;  %v9137_v20 = vcombine.low %v977_v52, %v981_v22 }
 0x1b7   :  { %3641 = vmatpush1.bf16.msra.mxu1 %v9097_v47  ;;  %3256 = vmatprep.subr.bf16.mxu0 %v9104_v39  ;;  %v972_v47 = vld [vmem:[#allocation3 + $0x270] sm:$0xff]  ;;  %v973_v39 = vld [vmem:[#allocation3 + $0x278] sm:$0xff] }
 0x1b8   :  { %3642 = vmatprep.subr.bf16.mxu1 %v9106_v2  ;;  %2728 = vmatmul.mubr.bf16.gmra.mrb[60].mxu0 %v12576_v50  ;;  %v9121_v2 = vcombine.low %v961_v32, %v965_v18  ;;  %v9128_v9 = vcombine.high %v968_v29, %v972_v47  ;;  %v9130_v10 = vcombine.high %v969_v3, %v973_v39  ;;  %v988_v6 = vld [vmem:[#allocation3 + $0x2f0] sm:$0xff] }
 0x1b9   :  { %3114 = vmatmul.mubr.bf16.gmra.mrb[92].mxu1 %v12576_v50  ;;  %2737 = vmatprep.mubr.bf16.mxu0 %v12606_v37  ;;  %v9127_v30 = vcombine.low %v968_v29, %v972_v47  ;;  %v9129_v33 = vcombine.low %v969_v3, %v973_v39 }
 0x1ba   :  { %3123 = vmatprep.mubr.bf16.mxu1 %v12606_v37  ;;  %3257 = vmatpush1.bf16.msra.mxu0 %v9103_v54  ;;  %v9138_v54 = vcombine.high %v977_v52, %v981_v22 }
 0x1bb   :  { %3643 = vmatpush1.bf16.msra.mxu1 %v9105_v8  ;;  %3258 = vmatprep.subr.bf16.mxu0 %v9112_v25  ;;  %v984_v8 = vld [vmem:[#allocation3 + $0x2d0] sm:$0xff]  ;;  %v985_v25 = vld [vmem:[#allocation3 + $0x2d8] sm:$0xff] }
 0x1bc   :  { %3644 = vmatprep.subr.bf16.mxu1 %v9114_v1  ;;  %v989_v1 = vld [vmem:[#allocation3 + $0x2f8] sm:$0xff]  ;;  %v9144_v32 = vcombine.high %v984_v8, %v988_v6  ;;  %v9143_v29 = vcombine.low %v984_v8, %v988_v6 }
 0x1bd   :  { %v9146_v18 = vcombine.high %v985_v25, %v989_v1  ;;  %v9145_v47 = vcombine.low %v985_v25, %v989_v1 }
 0x1be   :  { %3259 = vmatpush1.bf16.msra.mxu0 %v9111_v58  ;;  %v992_v58 = vld [vmem:[#allocation3 + $0x310] sm:$0xff] }
 0x1bf   :  { %3645 = vmatpush1.bf16.msra.mxu1 %v9113_v46  ;;  %3260 = vmatprep.subr.bf16.mxu0 %v9120_v55  ;;  %v996_v46 = vld [vmem:[#allocation3 + $0x330] sm:$0xff]  ;;  %v993_v55 = vld [vmem:[#allocation3 + $0x318] sm:$0xff] }
 0x1c0   :  { %3646 = vmatprep.subr.bf16.mxu1 %v9122_v41  ;;  %2738 = vmatmul.mubr.bf16.gmra.mrb[64].mxu0 %v12601_v13  ;;  %v997_v41 = vld [vmem:[#allocation3 + $0x338] sm:$0xff]  ;;  %v9152_v3 = vcombine.high %v992_v58, %v996_v46  ;;  %v9151_v49 = vcombine.low %v992_v58, %v996_v46 }
 0x1c1   :  { %3124 = vmatmul.mubr.bf16.gmra.mrb[96].mxu1 %v12601_v13  ;;  %2747 = vmatprep.mubr.bf16.mxu0 %v12626_v43  ;;  %v9154_v39 = vcombine.high %v993_v55, %v997_v41  ;;  %v9153_v26 = vcombine.low %v993_v55, %v997_v41 }
 0x1c2   :  { %3133 = vmatprep.mubr.bf16.mxu1 %v12626_v43  ;;  %3261 = vmatpush1.bf16.msra.mxu0 %v9119_v28  ;;  %v1000_v28 = vld [vmem:[#allocation3 + $0x350] sm:$0xff] }
 0x1c3   :  { %3647 = vmatpush1.bf16.msra.mxu1 %v9121_v2  ;;  %3262 = vmatprep.subr.bf16.mxu0 %v9128_v9  ;;  %v1004_v2 = vld [vmem:[#allocation3 + $0x370] sm:$0xff]  ;;  %v1001_v9 = vld [vmem:[#allocation3 + $0x358] sm:$0xff] }
 0x1c4   :  { %3648 = vmatprep.subr.bf16.mxu1 %v9130_v10  ;;  %v1005_v10 = vld [vmem:[#allocation3 + $0x378] sm:$0xff]  ;;  %v9160_v52 = vcombine.high %v1000_v28, %v1004_v2  ;;  %v9159_v8 = vcombine.low %v1000_v28, %v1004_v2  ;;  %v1032_v28 = vld [vmem:[#allocation3 + $0x450] sm:$0xff] }
 0x1c5   :  { %v9162_v22 = vcombine.high %v1001_v9, %v1005_v10  ;;  %v9161_v6 = vcombine.low %v1001_v9, %v1005_v10  ;;  %v1036_v2 = vld [vmem:[#allocation3 + $0x470] sm:$0xff]  ;;  %v1033_v9 = vld [vmem:[#allocation3 + $0x458] sm:$0xff] }
 0x1c6   :  { %3263 = vmatpush1.bf16.msra.mxu0 %v9127_v30  ;;  %v1008_v30 = vld [vmem:[#allocation3 + $0x390] sm:$0xff]  ;;  %v1037_v10 = vld [vmem:[#allocation3 + $0x478] sm:$0xff] }
 0x1c7   :  { %3649 = vmatpush1.bf16.msra.mxu1 %v9129_v33  ;;  %3264 = vmatprep.subr.bf16.mxu0 %v9136_v45  ;;  %v1012_v33 = vld [vmem:[#allocation3 + $0x3b0] sm:$0xff]  ;;  %v1009_v45 = vld [vmem:[#allocation3 + $0x398] sm:$0xff] }
 0x1c8   :  { %3650 = vmatprep.subr.bf16.mxu1 %v9138_v54  ;;  %2748 = vmatmul.mubr.bf16.gmra.mrb[68].mxu0 %v12621_v38  ;;  %v1013_v54 = vld [vmem:[#allocation3 + $0x3b8] sm:$0xff]  ;;  %v9168_v25 = vcombine.high %v1008_v30, %v1012_v33  ;;  %v9167_v58 = vcombine.low %v1008_v30, %v1012_v33 }
 0x1c9   :  { %3134 = vmatmul.mubr.bf16.gmra.mrb[100].mxu1 %v12621_v38  ;;  %2757 = vmatprep.mubr.bf16.mxu0 %v12646_v7  ;;  %v9170_v1 = vcombine.high %v1009_v45, %v1013_v54  ;;  %v9169_v46 = vcombine.low %v1009_v45, %v1013_v54  ;;  %v1041_v30 = vld [vmem:[#allocation3 + $0x498] sm:$0xff]  ;;  %v14239_v45 = vcombine.low %v12716_v44, %v12719_v51 }
 0x1ca   :  { %3143 = vmatprep.mubr.bf16.mxu1 %v12646_v7  ;;  %3265 = vmatpush1.bf16.msra.mxu0 %v9135_v31  ;;  %v1016_v31 = vld [vmem:[#allocation3 + $0x3d0] sm:$0xff]  ;;  %v1045_v33 = vld [vmem:[#allocation3 + $0x4b8] sm:$0xff]  ;;  %v14240_v54 = vcombine.low %v12741_v40, %v12743_v59 }
 0x1cb   :  { %3651 = vmatpush1.bf16.msra.mxu1 %v9137_v20  ;;  %3266 = vmatprep.subr.bf16.mxu0 %v9144_v32  ;;  %v1020_v20 = vld [vmem:[#allocation3 + $0x3f0] sm:$0xff]  ;;  %v1017_v32 = vld [vmem:[#allocation3 + $0x3d8] sm:$0xff] }
 0x1cc   :  { %3652 = vmatprep.subr.bf16.mxu1 %v9146_v18  ;;  %v1021_v18 = vld [vmem:[#allocation3 + $0x3f8] sm:$0xff]  ;;  %v9176_v55 = vcombine.high %v1016_v31, %v1020_v20 }
 0x1cd   :  { %v9178_v41 = vcombine.high %v1017_v32, %v1021_v18 }
 0x1ce   :  { %3267 = vmatpush1.bf16.msra.mxu0 %v9143_v29  ;;  %v9175_v29 = vcombine.low %v1016_v31, %v1020_v20  ;;  %v1049_v31 = vld [vmem:[#allocation3 + $0x4d8] sm:$0xff] }
 0x1cf   :  { %3653 = vmatpush1.bf16.msra.mxu1 %v9145_v47  ;;  %3268 = vmatprep.subr.bf16.mxu0 %v9152_v3  ;;  %v9177_v47 = vcombine.low %v1017_v32, %v1021_v18  ;;  %v9184_v3 = vcombine.high %v12716_v44, %v12719_v51  ;;  %v1053_v20 = vld [vmem:[#allocation3 + $0x4f8] sm:$0xff]  ;;  %v9201_v51 = vcombine.low %v1041_v30, %v1045_v33  ;;  %v1056_v18 = vld [vmem:[#allocation3 + $0x510] sm:$0xff] }
 0x1d0   :  { %3654 = vmatprep.subr.bf16.mxu1 %v9154_v39  ;;  %2758 = vmatmul.mubr.bf16.gmra.mrb[72].mxu0 %v12641_v61  ;;  %v9186_v39 = vcombine.high %v12741_v40, %v12743_v59  ;;  %v9210_v32 = vcombine.high %v1049_v31, %v1053_v20  ;;  %v1060_v40 = vld [vmem:[#allocation3 + $0x530] sm:$0xff]  ;;  %v1057_v59 = vld [vmem:[#allocation3 + $0x518] sm:$0xff] }
 0x1d1   :  { %3144 = vmatmul.mubr.bf16.gmra.mrb[104].mxu1 %v12641_v61  ;;  %2767 = vmatprep.mubr.bf16.mxu0 %v12663_v35 }
 0x1d2   :  { %3153 = vmatprep.mubr.bf16.mxu1 %v12663_v35  ;;  %3269 = vmatpush1.bf16.msra.mxu0 %v9151_v49  ;;  %v9192_v49 = vcombine.high %v1032_v28, %v1036_v2 }
 0x1d3   :  { %3655 = vmatpush1.bf16.msra.mxu1 %v9153_v26  ;;  %3270 = vmatprep.subr.bf16.mxu0 %v9160_v52  ;;  %v9194_v26 = vcombine.high %v1033_v9, %v1037_v10  ;;  %v1040_v52 = vld [vmem:[#allocation3 + $0x490] sm:$0xff] }
 0x1d4   :  { %3656 = vmatprep.subr.bf16.mxu1 %v9162_v22  ;;  %v1044_v22 = vld [vmem:[#allocation3 + $0x4b0] sm:$0xff] }
 0x1d5   :  { %v9199_v44 = vcombine.low %v1040_v52, %v1044_v22 }
 0x1d6   :  { %3271 = vmatpush1.bf16.msra.mxu0 %v9159_v8  ;;  %v9193_v8 = vcombine.low %v1033_v9, %v1037_v10  ;;  %v1072_v10 = vld [vmem:[#allocation3 + $0x590] sm:$0xff] }
 0x1d7   :  { %3657 = vmatpush1.bf16.msra.mxu1 %v9161_v6  ;;  %3272 = vmatprep.subr.bf16.mxu0 %v9168_v25  ;;  %v9200_v6 = vcombine.high %v1040_v52, %v1044_v22  ;;  %v1048_v25 = vld [vmem:[#allocation3 + $0x4d0] sm:$0xff]  ;;  %v1077_v52 = vld [vmem:[#allocation3 + $0x5b8] sm:$0xff] }
 0x1d8   :  { %3658 = vmatprep.subr.bf16.mxu1 %v9170_v1  ;;  %2768 = vmatmul.mubr.bf16.gmra.mrb[76].mxu0 %v12659_v48  ;;  %v1052_v1 = vld [vmem:[#allocation3 + $0x4f0] sm:$0xff] }
 0x1d9   :  { %3154 = vmatmul.mubr.bf16.gmra.mrb[108].mxu1 %v12659_v48  ;;  %2777 = vmatprep.mubr.bf16.mxu0 %v12675_v60 }
 0x1da   :  { %3163 = vmatprep.mubr.bf16.mxu1 %v12675_v60  ;;  %3273 = vmatpush1.bf16.msra.mxu0 %v9167_v58  ;;  %v1061_v58 = vld [vmem:[#allocation3 + $0x538] sm:$0xff] }
 0x1db   :  { %3659 = vmatpush1.bf16.msra.mxu1 %v9169_v46  ;;  %3274 = vmatprep.subr.bf16.mxu0 %v9176_v55  ;;  %v9207_v46 = vcombine.low %v1048_v25, %v1052_v1  ;;  %v9209_v55 = vcombine.low %v1049_v31, %v1053_v20  ;;  %v14241_v31 = vld [vmem:[#allocation24_spill] sm:$0xff]  ;;  %v1092_v20 = vld [vmem:[#allocation3 + $0x630] sm:$0xff] }
 0x1dc   :  { %3660 = vmatprep.subr.bf16.mxu1 %v9178_v41  ;;  %v9216_v41 = vcombine.high %v1056_v18, %v1060_v40 }
 0x1de   :  { %3275 = vmatpush1.bf16.msra.mxu0 %v9175_v29  ;;  %v9218_v29 = vcombine.high %v1057_v59, %v1061_v58 }
 0x1df   :  { %3661 = vmatpush1.bf16.msra.mxu1 %v9177_v47  ;;  %3437 = vmatprep.subr.bf16.mxu0 %v9184_v3  ;;  %v1064_v47 = vld [vmem:[#allocation3 + $0x550] sm:$0xff] }
 0x1e0   :  { %3823 = vmatprep.subr.bf16.mxu1 %v9186_v39  ;;  %2778 = vmatmul.mubr.bf16.gmra.mrb[80].mxu0 %v12671_v11  ;;  %v1068_v3 = vld [vmem:[#allocation3 + $0x570] sm:$0xff]  ;;  %v1065_v39 = vld [vmem:[#allocation3 + $0x558] sm:$0xff] }
 0x1e1   :  { %3164 = vmatmul.mubr.bf16.gmra.mrb[112].mxu1 %v12671_v11  ;;  %2787 = vmatprep.mubr.bf16.mxu0 %v12687_v0  ;;  %v9224_v9 = vcombine.high %v1064_v47, %v1068_v3  ;;  %v9223_v22 = vcombine.low %v1064_v47, %v1068_v3 }
 0x1e2   :  { %3173 = vmatprep.mubr.bf16.mxu1 %v12687_v0 }
 0x1e8   :  { %2788 = vmatmul.mubr.bf16.gmra.mrb[84].mxu0 %v12683_v34 }
 0x1e9   :  { %3174 = vmatmul.mubr.bf16.gmra.mrb[116].mxu1 %v12683_v34  ;;  %2797 = vmatprep.mubr.bf16.mxu0 %v12699_v19 }
 0x1ea   :  { %3183 = vmatprep.mubr.bf16.mxu1 %v12699_v19 }
 0x1f0   :  { %2798 = vmatmul.mubr.bf16.gmra.mrb[88].mxu0 %v12695_v42 }
 0x1f1   :  { %3184 = vmatmul.mubr.bf16.gmra.mrb[120].mxu1 %v12695_v42  ;;  %2807 = vmatprep.mubr.bf16.mxu0 %v12711_v15 }
 0x1f2   :  { %3193 = vmatprep.mubr.bf16.mxu1 %v12711_v15 }
 0x1f8   :  { %2808 = vmatmul.mubr.bf16.gmra.mrb[92].mxu0 %v12707_v23 }
 0x1f9   :  { %3194 = vmatmul.mubr.bf16.gmra.mrb[124].mxu1 %v12707_v23  ;;  %2817 = vmatprep.mubr.bf16.mxu0 %v12729_v17 }
 0x1fa   :  { %3203 = vmatprep.mubr.bf16.mxu1 %v12729_v17 }
 0x200   :  { %2818 = vmatmul.mubr.bf16.gmra.mrb[96].mxu0 %v12725_v53 }
 0x201   :  { %3204 = vmatmul.mubr.bf16.gmra.mrb[128].mxu1 %v12725_v53  ;;  %2827 = vmatprep.mubr.bf16.mxu0 %v12753_v24 }
 0x202   :  { %3213 = vmatprep.mubr.bf16.mxu1 %v12753_v24 }
 0x208   :  { %2828 = vmatmul.mubr.bf16.gmra.mrb[100].mxu0 %v12749_v27 }
 0x209   :  { %3214 = vmatmul.mubr.bf16.gmra.mrb[132].mxu1 %v12749_v27  ;;  %2837 = vmatprep.mubr.bf16.mxu0 %v12765_v36 }
 0x20a   :  { %3223 = vmatprep.mubr.bf16.mxu1 %v12765_v36 }
 0x210   :  { %2838 = vmatmul.mubr.bf16.gmra.mrb[104].mxu0 %v12761_v56 }
 0x211   :  { %3224 = vmatmul.mubr.bf16.gmra.mrb[136].mxu1 %v12761_v56  ;;  %2847 = vmatprep.mubr.bf16.mxu0 %v12777_v63 }
 0x212   :  { %3233 = vmatprep.mubr.bf16.mxu1 %v12777_v63 }
 0x218   :  { %2848 = vmatmul.mubr.bf16.gmra.mrb[108].mxu0 %v12773_v21 }
 0x219   :  { %3234 = vmatmul.mubr.bf16.gmra.mrb[140].mxu1 %v12773_v21  ;;  %3276 = vmatprep.mubr.bf16.mxu0 %v12182_v16 }
 0x21a   :  { %3662 = vmatprep.mubr.bf16.mxu1 %v12182_v16  ;;  %v9191_v16 = vcombine.low %v1032_v28, %v1036_v2  ;;  %v1069_v28 = vld [vmem:[#allocation3 + $0x578] sm:$0xff]  ;;  %v9217_v2 = vcombine.low %v1057_v59, %v1061_v58  ;;  %v1096_v58 = vld [vmem:[#allocation3 + $0x650] sm:$0xff] }
 0x220   :  { %3277 = vmatmul.mubr.bf16.vlgmr.msra.gmra.mrb[112].mxu0 %v12179_v12 }
 0x221   :  { %3663 = vmatmul.mubr.bf16.vlgmr.msra.gmra.mrb[144].mxu1 %v12179_v12  ;;  %3438 = vmatpush1.bf16.msra.mxu0 %v14239_v45  ;;  %v9202_v12 = vcombine.high %v1041_v30, %v1045_v33  ;;  %v9225_v30 = vcombine.low %v1065_v39, %v1069_v28 }
 0x222   :  { %3286 = vmatprep.mubr.bf16.mxu0 %v12244_v4  ;;  %3672 = vmatprep.mubr.bf16.mxu1 %v12244_v4  ;;  %v9208_v4 = vcombine.high %v1048_v25, %v1052_v1  ;;  %v1088_v1 = vld [vmem:[#allocation3 + $0x610] sm:$0xff] }
 0x223   :  { %3824 = vmatpush1.bf16.msra.mxu1 %v14240_v54  ;;  %3439 = vmatprep.subr.bf16.mxu0 %v9192_v49  ;;  %v1076_v49 = vld [vmem:[#allocation3 + $0x5b0] sm:$0xff] }
 0x224   :  { %3825 = vmatprep.subr.bf16.mxu1 %v9194_v26  ;;  %v1073_v26 = vld [vmem:[#allocation3 + $0x598] sm:$0xff]  ;;  %v9232_v33 = vcombine.high %v1072_v10, %v1076_v49  ;;  %v1084_v54 = vld [vmem:[#allocation3 + $0x5f0] sm:$0xff] }
 0x225   :  { %3440 = vmatpush1.bf16.msra.mxu0 %v9191_v16  ;;  %v9234_v45 = vcombine.high %v1073_v26, %v1077_v52  ;;  %v1080_v16 = vld [vmem:[#allocation3 + $0x5d0] sm:$0xff] }
 0x226   :  { %3441 = vmatprep.subr.bf16.mxu0 %v9200_v6  ;;  %v1085_v6 = vld [vmem:[#allocation3 + $0x5f8] sm:$0xff]  ;;  %v9240_v25 = vcombine.high %v1080_v16, %v1084_v54 }
 0x227   :  { %3826 = vmatpush1.bf16.msra.mxu1 %v9193_v8  ;;  %v1081_v8 = vld [vmem:[#allocation3 + $0x5d8] sm:$0xff] }
 0x228   :  { %3827 = vmatprep.subr.bf16.mxu1 %v9202_v12  ;;  %3287 = vmatmul.mubr.bf16.gmra.mrb[116].mxu0 %v12239_v62  ;;  %v9233_v12 = vcombine.low %v1073_v26, %v1077_v52 }
 0x229   :  { %3673 = vmatmul.mubr.bf16.gmra.mrb[148].mxu1 %v12239_v62  ;;  %3296 = vmatprep.mubr.bf16.mxu0 %v12302_v5  ;;  %v9215_v62 = vcombine.low %v1056_v18, %v1060_v40  ;;  %v9241_v18 = vcombine.low %v1081_v8, %v1085_v6  ;;  %v9248_v40 = vcombine.high %v1088_v1, %v1092_v20 }
 0x22a   :  { %3682 = vmatprep.mubr.bf16.mxu1 %v12302_v5  ;;  %3442 = vmatpush1.bf16.msra.mxu0 %v9199_v44  ;;  %v9226_v5 = vcombine.high %v1065_v39, %v1069_v28  ;;  %v1089_v44 = vld [vmem:[#allocation3 + $0x618] sm:$0xff]  ;;  %v1104_v28 = vld [vmem:[#allocation3 + $0x690] sm:$0xff] }
 0x22b   :  { %3828 = vmatpush1.bf16.msra.mxu1 %v9201_v51  ;;  %3443 = vmatprep.subr.bf16.mxu0 %v9208_v4  ;;  %v1093_v51 = vld [vmem:[#allocation3 + $0x638] sm:$0xff] }
 0x22c   :  { %3829 = vmatprep.subr.bf16.mxu1 %v9210_v32  ;;  %v14242_v4 = vld [vmem:[#allocation28_spill] sm:$0xff]  ;;  %v9239_v32 = vcombine.low %v1080_v16, %v1084_v54  ;;  %v9250_v59 = vcombine.high %v1089_v44, %v1093_v51  ;;  %v9249_v47 = vcombine.low %v1089_v44, %v1093_v51 }
 0x22d   :  { %v1117_v16 = vld [vmem:[#allocation3 + $0x6f8] sm:$0xff] }
 0x22e   :  { %3444 = vmatpush1.bf16.msra.mxu0 %v9207_v46  ;;  %v1100_v46 = vld [vmem:[#allocation3 + $0x670] sm:$0xff] }
 0x22f   :  { %3830 = vmatpush1.bf16.msra.mxu1 %v9209_v55  ;;  %3445 = vmatprep.subr.bf16.mxu0 %v9216_v41  ;;  %v1097_v55 = vld [vmem:[#allocation3 + $0x658] sm:$0xff]  ;;  %v9256_v3 = vcombine.high %v1096_v58, %v1100_v46 }
 0x230   :  { %3831 = vmatprep.subr.bf16.mxu1 %v9218_v29  ;;  %3297 = vmatmul.mubr.bf16.gmra.mrb[120].mxu0 %v12293_v57  ;;  %v1101_v41 = vld [vmem:[#allocation3 + $0x678] sm:$0xff]  ;;  %v9247_v29 = vcombine.low %v1088_v1, %v1092_v20 }
 0x231   :  { %3683 = vmatmul.mubr.bf16.gmra.mrb[152].mxu1 %v12293_v57  ;;  %3306 = vmatprep.mubr.bf16.mxu0 %v12356_v14  ;;  %v9231_v57 = vcombine.low %v1072_v10, %v1076_v49  ;;  %v9258_v39 = vcombine.high %v1097_v55, %v1101_v41  ;;  %v14244_v10 = vld [vmem:[#allocation32_spill] sm:$0xff]  ;;  %v9255_v49 = vcombine.low %v1096_v58, %v1100_v46 }
 0x232   :  { %3692 = vmatprep.mubr.bf16.mxu1 %v12356_v14  ;;  %3446 = vmatpush1.bf16.msra.mxu0 %v9215_v62  ;;  %v9242_v14 = vcombine.high %v1081_v8, %v1085_v6  ;;  %v14243_v62 = vld [vmem:[#allocation27_spill] sm:$0xff]  ;;  %v9257_v26 = vcombine.low %v1097_v55, %v1101_v41  ;;  %v1121_v1 = vld [vmem:[#allocation3 + $0x718] sm:$0xff] }
 0x233   :  { %3832 = vmatpush1.bf16.msra.mxu1 %v9217_v2  ;;  %3447 = vmatprep.subr.bf16.mxu0 %v9224_v9  ;;  %v1108_v2 = vld [vmem:[#allocation3 + $0x6b0] sm:$0xff]  ;;  %v1105_v9 = vld [vmem:[#allocation3 + $0x698] sm:$0xff] }
 0x234   :  { %3833 = vmatprep.subr.bf16.mxu1 %v9226_v5  ;;  %v1109_v5 = vld [vmem:[#allocation3 + $0x6b8] sm:$0xff]  ;;  %v9264_v52 = vcombine.high %v1104_v28, %v1108_v2  ;;  %v9263_v54 = vcombine.low %v1104_v28, %v1108_v2 }
 0x235   :  { %v9265_v8 = vcombine.low %v1105_v9, %v1109_v5  ;;  %v14246_v20 = vld [vmem:[#allocation36_spill] sm:$0xff] }
 0x236   :  { %3448 = vmatpush1.bf16.msra.mxu0 %v9223_v22  ;;  %v9266_v22 = vcombine.high %v1105_v9, %v1109_v5  ;;  %v1133_v58 = vld [vmem:[#allocation3 + $0x778] sm:$0xff] }
 0x237   :  { %3834 = vmatpush1.bf16.msra.mxu1 %v9225_v30  ;;  %3449 = vmatprep.subr.bf16.mxu0 %v9232_v33  ;;  %v1112_v30 = vld [vmem:[#allocation3 + $0x6d0] sm:$0xff]  ;;  %v1137_v28 = vld [vmem:[#allocation3 + $0x798] sm:$0xff] }
 0x238   :  { %3835 = vmatprep.subr.bf16.mxu1 %v9234_v45  ;;  %3307 = vmatmul.mubr.bf16.gmra.mrb[124].mxu0 %v14241_v31  ;;  %v1116_v33 = vld [vmem:[#allocation3 + $0x6f0] sm:$0xff]  ;;  %v1113_v45 = vld [vmem:[#allocation3 + $0x6d8] sm:$0xff] }
 0x239   :  { %3693 = vmatmul.mubr.bf16.gmra.mrb[156].mxu1 %v14241_v31  ;;  %3316 = vmatprep.mubr.bf16.mxu0 %v14242_v4  ;;  %v9272_v6 = vcombine.high %v1112_v30, %v1116_v33  ;;  %v1125_v31 = vld [vmem:[#allocation3 + $0x738] sm:$0xff]  ;;  %v9271_v44 = vcombine.low %v1112_v30, %v1116_v33  ;;  %v9273_v51 = vcombine.low %v1113_v45, %v1117_v16 }
 0x23a   :  { %3702 = vmatprep.mubr.bf16.mxu1 %v14242_v4  ;;  %3450 = vmatpush1.bf16.msra.mxu0 %v9231_v57  ;;  %v9274_v57 = vcombine.high %v1113_v45, %v1117_v16  ;;  %v9281_v55 = vcombine.low %v1121_v1, %v1125_v31  ;;  %v14248_v2 = vld [vmem:[#allocation40_spill] sm:$0xff] }
 0x23b   :  { %3836 = vmatpush1.bf16.msra.mxu1 %v9233_v12  ;;  %3451 = vmatprep.subr.bf16.mxu0 %v9240_v25  ;;  %v1120_v12 = vld [vmem:[#allocation3 + $0x710] sm:$0xff]  ;;  %v1149_v30 = vld [vmem:[#allocation3 + $0x7f8] sm:$0xff] }
 0x23c   :  { %3837 = vmatprep.subr.bf16.mxu1 %v9242_v14  ;;  %v14245_v25 = vld [vmem:[#allocation31_spill] sm:$0xff] }
 0x23d   :  { %v1124_v14 = vld [vmem:[#allocation3 + $0x730] sm:$0xff] }
 0x23e   :  { %3452 = vmatpush1.bf16.msra.mxu0 %v9239_v32  ;;  %v9280_v4 = vcombine.high %v1120_v12, %v1124_v14  ;;  %v9282_v32 = vcombine.high %v1121_v1, %v1125_v31  ;;  %v9279_v46 = vcombine.low %v1120_v12, %v1124_v14  ;;  %v11164_v14 = vld [vmem:[#allocation6 + $0xc] ss:$16 sps:$4 sm:$0xff]   ;;  %v14252_v31 = vld [vmem:[#allocation45_spill] sm:$0xff] }
 0x23f   :  { %3838 = vmatpush1.bf16.msra.mxu1 %v9241_v18  ;;  %3453 = vmatprep.subr.bf16.mxu0 %v9248_v40  ;;  %v1128_v18 = vld [vmem:[#allocation3 + $0x750] sm:$0xff]  ;;  %v14251_v1 = vld [vmem:[#allocation42_spill] sm:$0xff] }
 0x240   :  { %3839 = vmatprep.subr.bf16.mxu1 %v9250_v59  ;;  %3317 = vmatmul.mubr.bf16.gmra.mrb[128].mxu0 %v14243_v62  ;;  %v1132_v40 = vld [vmem:[#allocation3 + $0x770] sm:$0xff]  ;;  %v1129_v59 = vld [vmem:[#allocation3 + $0x758] sm:$0xff] }
 0x241   :  { %3703 = vmatmul.mubr.bf16.gmra.mrb[160].mxu1 %v14243_v62  ;;  %3326 = vmatprep.mubr.bf16.mxu0 %v14244_v10  ;;  %v9288_v41 = vcombine.high %v1128_v18, %v1132_v40  ;;  %v1141_v62 = vld [vmem:[#allocation3 + $0x7b8] sm:$0xff]  ;;  %v9287_v9 = vcombine.low %v1128_v18, %v1132_v40  ;;  %v9289_v5 = vcombine.low %v1129_v59, %v1133_v58  ;;  %v14257_v40 = vld [vmem:[#allocation22_spill] sm:$0xff] }
 0x242   :  { %3712 = vmatprep.mubr.bf16.mxu1 %v14244_v10  ;;  %3454 = vmatpush1.bf16.msra.mxu0 %v9247_v29  ;;  %v9290_v29 = vcombine.high %v1129_v59, %v1133_v58  ;;  %v9297_v45 = vcombine.low %v1137_v28, %v1141_v62  ;;  %v14258_v58 = vld [vmem:[#allocation49_spill] sm:$0xff] }
 0x243   :  { %3840 = vmatpush1.bf16.msra.mxu1 %v9249_v47  ;;  %3455 = vmatprep.subr.bf16.mxu0 %v9256_v3  ;;  %v1136_v47 = vld [vmem:[#allocation3 + $0x790] sm:$0xff] }
 0x244   :  { %3841 = vmatprep.subr.bf16.mxu1 %v9258_v39  ;;  %v14247_v3 = vld [vmem:[#allocation35_spill] sm:$0xff] }
 0x245   :  { %v1140_v39 = vld [vmem:[#allocation3 + $0x7b0] sm:$0xff] }
 0x246   :  { %3456 = vmatpush1.bf16.msra.mxu0 %v9255_v49  ;;  %v9296_v10 = vcombine.high %v1136_v47, %v1140_v39  ;;  %v9298_v49 = vcombine.high %v1137_v28, %v1141_v62  ;;  %v9295_v33 = vcombine.low %v1136_v47, %v1140_v39 }
 0x247   :  { %3842 = vmatpush1.bf16.msra.mxu1 %v9257_v26  ;;  %3457 = vmatprep.subr.bf16.mxu0 %v9264_v52  ;;  %v1144_v26 = vld [vmem:[#allocation3 + $0x7d0] sm:$0xff] }
 0x248   :  { %3843 = vmatprep.subr.bf16.mxu1 %v9266_v22  ;;  %3327 = vmatmul.mubr.bf16.gmra.mrb[132].mxu0 %v14245_v25  ;;  %v1148_v52 = vld [vmem:[#allocation3 + $0x7f0] sm:$0xff]  ;;  %v1145_v22 = vld [vmem:[#allocation3 + $0x7d8] sm:$0xff] }
 0x249   :  { %3713 = vmatmul.mubr.bf16.gmra.mrb[164].mxu1 %v14245_v25  ;;  %3336 = vmatprep.mubr.bf16.mxu0 %v14246_v20  ;;  %v9304_v16 = vcombine.high %v1144_v26, %v1148_v52  ;;  %v9305_v12 = vcombine.low %v1145_v22, %v1149_v30  ;;  %v11161_v25 = vld [vmem:[#allocation6 + $0x4] ss:$16 sps:$4 sm:$0xff]  }
 0x24a   :  { %3722 = vmatprep.mubr.bf16.mxu1 %v14246_v20  ;;  %3458 = vmatpush1.bf16.msra.mxu0 %v9263_v54  ;;  %v9306_v54 = vcombine.high %v1145_v22, %v1149_v30  ;;  %v14253_v20 = vld [vmem:[#allocation44_spill] sm:$0xff] }
 0x24b   :  { %3844 = vmatpush1.bf16.msra.mxu1 %v9265_v8  ;;  %3459 = vmatprep.subr.bf16.mxu0 %v9272_v6  ;;  %v14249_v8 = vld [vmem:[#allocation39_spill] sm:$0xff] }
 0x24c   :  { %3845 = vmatprep.subr.bf16.mxu1 %v9274_v57  ;;  %v14250_v6 = vld [vmem:[#allocation43_spill] sm:$0xff]  ;;  %v9303_v57 = vcombine.low %v1144_v26, %v1148_v52 }
 0x24e   :  { %3460 = vmatpush1.bf16.msra.mxu0 %v9271_v44  ;;  %v14254_v44 = vld [vmem:[#allocation47_spill] sm:$0xff] }
 0x24f   :  { %3846 = vmatpush1.bf16.msra.mxu1 %v9273_v51  ;;  %3461 = vmatprep.subr.bf16.mxu0 %v9280_v4  ;;  %v1150_v51 = vld [vmem:[%s14060_s4] sm:$0xff]  ;;  %v14255_v4 = vld [vmem:[#allocation46_spill] sm:$0xff] }
 0x250   :  { %3847 = vmatprep.subr.bf16.mxu1 %v9282_v32  ;;  %3337 = vmatmul.mubr.bf16.gmra.mrb[136].mxu0 %v14247_v3  ;;  %v14256_v32 = vld [vmem:[#allocation14_spill] sm:$0xff]  ;;  %v12888_v59 = vrot.slane %v1150_v51, %v14257_v40 }
 0x251   :  { %3723 = vmatmul.mubr.bf16.gmra.mrb[168].mxu1 %v14247_v3  ;;  %3346 = vmatprep.mubr.bf16.mxu0 %v14248_v2  ;;  %v12885_v18 = vrot.slane %v1150_v51, %v14256_v32  ;;  %v14277_v32 = vld [vmem:[#allocation25_spill] sm:$0xff] }
 0x252   :  { %3732 = vmatprep.mubr.bf16.mxu1 %v14248_v2  ;;  %3462 = vmatpush1.bf16.msra.mxu0 %v9279_v46  ;;  %v14259_v46 = vld [vmem:[#allocation15_spill] sm:$0xff] }
 0x253   :  { %3848 = vmatpush1.bf16.msra.mxu1 %v9281_v55  ;;  %3463 = vmatprep.subr.bf16.mxu0 %v9288_v41  ;;  %v12893_v55 = vrot.slane %v1150_v51, %v14259_v46  ;;  %v14260_v41 = vld [vmem:[#allocation23_spill] sm:$0xff]  ;;  %v14274_v46 = vld [vmem:[#allocation26_spill] sm:$0xff] }
 0x254   :  { %3849 = vmatprep.subr.bf16.mxu1 %v9290_v29  ;;  %v12896_v29 = vrot.slane %v1150_v51, %v14260_v41 }
 0x256   :  { %3464 = vmatpush1.bf16.msra.mxu0 %v9287_v9 }
 0x257   :  { %3850 = vmatpush1.bf16.msra.mxu1 %v9289_v5  ;;  %3465 = vmatprep.subr.bf16.mxu0 %v9296_v10 }
 0x258   :  { %3851 = vmatprep.subr.bf16.mxu1 %v9298_v49  ;;  %3347 = vmatmul.mubr.bf16.gmra.mrb[140].mxu0 %v14249_v8 }
 0x259   :  { %3733 = vmatmul.mubr.bf16.gmra.mrb[172].mxu1 %v14249_v8  ;;  %3356 = vmatprep.mubr.bf16.mxu0 %v14250_v6 }
 0x25a   :  { %3742 = vmatprep.mubr.bf16.mxu1 %v14250_v6  ;;  %3466 = vmatpush1.bf16.msra.mxu0 %v9295_v33 }
 0x25b   :  { %3852 = vmatpush1.bf16.msra.mxu1 %v9297_v45  ;;  %3467 = vmatprep.subr.bf16.mxu0 %v9304_v16 }
 0x25c   :  { %3853 = vmatprep.subr.bf16.mxu1 %v9306_v54 }
 0x25e   :  { %3468 = vmatpush1.bf16.msra.mxu0 %v9303_v57  ;;  %v14261_v57 = vld [vmem:[#allocation48_spill] sm:$0xff] }
 0x25f   :  { %3854 = vmatpush1.bf16.msra.mxu1 %v9305_v12  ;;  %5958 = vmatprep.subr.bf16.mxu0 %v11161_v25 }
 0x260   :  { %6730 = vmatprep.subr.bf16.mxu1 %v11164_v14  ;;  %3357 = vmatmul.mubr.bf16.gmra.mrb[144].mxu0 %v14251_v1 }
 0x261   :  { %3743 = vmatmul.mubr.bf16.gmra.mrb[176].mxu1 %v14251_v1  ;;  %3366 = vmatprep.mubr.bf16.mxu0 %v14252_v31 }
 0x262   :  { %3752 = vmatprep.mubr.bf16.mxu1 %v14252_v31  ;;  %v14262_v31 = vld [vmem:[#allocation17_spill] sm:$0xff] }
 0x268   :  { %3367 = vmatmul.mubr.bf16.gmra.mrb[148].mxu0 %v14253_v20 }
 0x269   :  { %3753 = vmatmul.mubr.bf16.gmra.mrb[180].mxu1 %v14253_v20  ;;  %3376 = vmatprep.mubr.bf16.mxu0 %v14254_v44 }
 0x26a   :  { %3762 = vmatprep.mubr.bf16.mxu1 %v14254_v44 }
 0x270   :  { %3377 = vmatmul.mubr.bf16.gmra.mrb[152].mxu0 %v14255_v4 }
 0x271   :  { %3763 = vmatmul.mubr.bf16.gmra.mrb[184].mxu1 %v14255_v4  ;;  %3386 = vmatprep.mubr.bf16.mxu0 %v14258_v58 }
 0x272   :  { %3772 = vmatprep.mubr.bf16.mxu1 %v14258_v58 }
 0x273   :  { %v2699_v47 = vpop.f32.mrb[48].mxu0 }
 0x274   :  { %v3085_v3 = vpop.f32.mrb[80].mxu1  ;;  %v10096_v39 = vadd.f32 %v2699_v47, %v12885_v18  ;;  %v2701_v62 = vpop.f32.mrb[49].mxu0 }
 0x275   :  { %v10160_v28 = vadd.f32 %v3085_v3, %v12888_v59  ;;  %v3087_v2 = vpop.f32.mrb[81].mxu1  ;;  %v10097_v9 = vadd.f32 %v2701_v62, %v12893_v55  ;;  %v2703_v10 = vpop.f32.mrb[50].mxu0 }
 0x276   :  { %v10161_v5 = vadd.f32 %v3087_v2, %v12896_v29  ;;  %v3089_v49 = vpop.f32.mrb[82].mxu1  ;;  %v10098_v26 = vadd.f32 %v2703_v10, %v12885_v18  ;;  %v2705_v22 = vpop.f32.mrb[51].mxu0  ;;  %v4016_v16 = vmax.f32 %v10096_v39, 0.0 }
 0x277   :  { %v10162_v52 = vadd.f32 %v3089_v49, %v12888_v59  ;;  %v3091_v30 = vpop.f32.mrb[83].mxu1  ;;  %v10099_v33 = vadd.f32 %v2705_v22, %v12893_v55  ;;  %v4018_v54 = vmax.f32 %v10160_v28, 0.0  ;;  %v4017_v12 = vmax.f32 %v10097_v9, 0.0 }
 0x278   :  { %v10163_v45 = vadd.f32 %v3091_v30, %v12896_v29  ;;  %v4024_v8 = vmax.f32 %v10098_v26, 0.0  ;;  %3387 = vmatmul.mubr.bf16.gmra.mrb[156].mxu0 %v14261_v57  ;;  %v4019_v25 = vmax.f32 %v10161_v5, 0.0 }
 0x279   :  { %v4026_v6 = vmax.f32 %v10162_v52, 0.0  ;;  %3773 = vmatmul.mubr.bf16.gmra.mrb[188].mxu1 %v14261_v57  ;;  %v4025_v14 = vmax.f32 %v10099_v33, 0.0  ;;  %3396 = vmatprep.mubr.bf16.mxu0 %v14262_v31 }
 0x27a   :  { %v4027_v1 = vmax.f32 %v10163_v45, 0.0  ;;  %3782 = vmatprep.mubr.bf16.mxu1 %v14262_v31  ;;  %v12910_v20 = vpack.c.bf16 %v4024_v8, %v4016_v16 }
 0x27b   :  { %v12912_v44 = vpack.c.bf16 %v4026_v6, %v4018_v54  ;;  %v2709_v4 = vpop.f32.mrb[52].mxu0  ;;  %v12916_v47 = vpack.c.bf16 %v4025_v14, %v4017_v12  ;;  %v14265_v6 = vld [vmem:[#allocation16_spill] sm:$0xff] }
 0x27c   :  { %v12914_v51 = vpack.c.bf16 %v4027_v1, %v4019_v25  ;;  %v3095_v58 = vpop.f32.mrb[84].mxu1  ;;  %v10100_v3 = vadd.f32 %v2709_v4, %v12885_v18  ;;  %v2711_v28 = vpop.f32.mrb[53].mxu0  ;;  %v14266_v1 = vld [vmem:[#allocation19_spill] sm:$0xff] }
 0x27d   :  { %14263 = vst [vmem:[#allocation24_spill] sm:$0xff] %v12912_v44  ;;  %v10164_v39 = vadd.f32 %v3095_v58, %v12888_v59  ;;  %v3097_v62 = vpop.f32.mrb[85].mxu1  ;;  %v10101_v2 = vadd.f32 %v2711_v28, %v12893_v55  ;;  %v2713_v5 = vpop.f32.mrb[54].mxu0  ;;  %v14283_v44 = vld [vmem:[#allocation34_spill] sm:$0xff] }
 0x27e   :  { %14264 = vst [vmem:[#allocation28_spill] sm:$0xff] %v12914_v51  ;;  %v10165_v9 = vadd.f32 %v3097_v62, %v12896_v29  ;;  %v3099_v10 = vpop.f32.mrb[86].mxu1  ;;  %v10102_v49 = vadd.f32 %v2713_v5, %v12885_v18  ;;  %v2715_v52 = vpop.f32.mrb[55].mxu0  ;;  %v4032_v45 = vmax.f32 %v10100_v3, 0.0 }
 0x27f   :  { %v10166_v26 = vadd.f32 %v3099_v10, %v12888_v59  ;;  %v3101_v22 = vpop.f32.mrb[87].mxu1  ;;  %v10103_v30 = vadd.f32 %v2715_v52, %v12893_v55  ;;  %v4034_v16 = vmax.f32 %v10164_v39, 0.0  ;;  %v4033_v57 = vmax.f32 %v10101_v2, 0.0 }
 0x280   :  { %v10167_v33 = vadd.f32 %v3101_v22, %v12896_v29  ;;  %v4040_v54 = vmax.f32 %v10102_v49, 0.0  ;;  %3397 = vmatmul.mubr.bf16.gmra.mrb[160].mxu0 %v14265_v6  ;;  %v4035_v12 = vmax.f32 %v10165_v9, 0.0 }
 0x281   :  { %v4042_v8 = vmax.f32 %v10166_v26, 0.0  ;;  %3783 = vmatmul.mubr.bf16.gmra.mrb[192].mxu1 %v14265_v6  ;;  %v4041_v25 = vmax.f32 %v10103_v30, 0.0  ;;  %3406 = vmatprep.mubr.bf16.mxu0 %v14266_v1 }
 0x282   :  { %v4043_v14 = vmax.f32 %v10167_v33, 0.0  ;;  %3792 = vmatprep.mubr.bf16.mxu1 %v14266_v1  ;;  %v12932_v4 = vpack.c.bf16 %v4040_v54, %v4032_v45 }
 0x283   :  { %v12930_v31 = vpack.c.bf16 %v4042_v8, %v4034_v16  ;;  %v2719_v3 = vpop.f32.mrb[56].mxu0  ;;  %v12936_v28 = vpack.c.bf16 %v4041_v25, %v4033_v57  ;;  %v14269_v25 = vld [vmem:[#allocation18_spill] sm:$0xff] }
 0x284   :  { %v12934_v58 = vpack.c.bf16 %v4043_v14, %v4035_v12  ;;  %v3105_v39 = vpop.f32.mrb[88].mxu1  ;;  %v10104_v62 = vadd.f32 %v2719_v3, %v12885_v18  ;;  %v2721_v9 = vpop.f32.mrb[57].mxu0 }
 0x285   :  { %14267 = vst [vmem:[#allocation27_spill] sm:$0xff] %v12930_v31  ;;  %v10168_v2 = vadd.f32 %v3105_v39, %v12888_v59  ;;  %v3107_v5 = vpop.f32.mrb[89].mxu1  ;;  %v10105_v10 = vadd.f32 %v2721_v9, %v12893_v55  ;;  %v2723_v26 = vpop.f32.mrb[58].mxu0  ;;  %v14270_v9 = vld [vmem:[#allocation21_spill] sm:$0xff] }
 0x286   :  { %14268 = vst [vmem:[#allocation32_spill] sm:$0xff] %v12934_v58  ;;  %v10169_v49 = vadd.f32 %v3107_v5, %v12896_v29  ;;  %v3109_v52 = vpop.f32.mrb[90].mxu1  ;;  %v10106_v22 = vadd.f32 %v2723_v26, %v12885_v18  ;;  %v2725_v33 = vpop.f32.mrb[59].mxu0  ;;  %v4048_v8 = vmax.f32 %v10104_v62, 0.0 }
 0x287   :  { %v10170_v30 = vadd.f32 %v3109_v52, %v12888_v59  ;;  %v3111_v45 = vpop.f32.mrb[91].mxu1  ;;  %v10107_v16 = vadd.f32 %v2725_v33, %v12893_v55  ;;  %v4050_v6 = vmax.f32 %v10168_v2, 0.0  ;;  %v4049_v14 = vmax.f32 %v10105_v10, 0.0 }
 0x288   :  { %v10171_v54 = vadd.f32 %v3111_v45, %v12896_v29  ;;  %v4056_v57 = vmax.f32 %v10106_v22, 0.0  ;;  %3407 = vmatmul.mubr.bf16.gmra.mrb[164].mxu0 %v14269_v25  ;;  %v4051_v1 = vmax.f32 %v10169_v49, 0.0 }
 0x289   :  { %v4058_v12 = vmax.f32 %v10170_v30, 0.0  ;;  %3793 = vmatmul.mubr.bf16.gmra.mrb[196].mxu1 %v14269_v25  ;;  %v4057_v3 = vmax.f32 %v10107_v16, 0.0  ;;  %3416 = vmatprep.mubr.bf16.mxu0 %v14270_v9 }
 0x28a   :  { %v4059_v39 = vmax.f32 %v10171_v54, 0.0  ;;  %3802 = vmatprep.mubr.bf16.mxu1 %v14270_v9  ;;  %v12952_v26 = vpack.c.bf16 %v4056_v57, %v4048_v8 }
 0x28b   :  { %v12950_v5 = vpack.c.bf16 %v4058_v12, %v4050_v6  ;;  %v2729_v2 = vpop.f32.mrb[60].mxu0  ;;  %v12956_v22 = vpack.c.bf16 %v4057_v3, %v4049_v14 }
 0x28c   :  { %v12954_v62 = vpack.c.bf16 %v4059_v39, %v4051_v1  ;;  %v3115_v52 = vpop.f32.mrb[92].mxu1  ;;  %v10108_v30 = vadd.f32 %v2729_v2, %v12885_v18  ;;  %v2731_v49 = vpop.f32.mrb[61].mxu0 }
 0x28d   :  { %14271 = vst [vmem:[#allocation31_spill] sm:$0xff] %v12950_v5  ;;  %v10172_v10 = vadd.f32 %v3115_v52, %v12888_v59  ;;  %v3117_v33 = vpop.f32.mrb[93].mxu1  ;;  %v10109_v45 = vadd.f32 %v2731_v49, %v12893_v55  ;;  %v2733_v54 = vpop.f32.mrb[62].mxu0  ;;  %v14273_v52 = vld [vmem:[#allocation20_spill] sm:$0xff] }
 0x28e   :  { %14272 = vst [vmem:[#allocation36_spill] sm:$0xff] %v12954_v62  ;;  %v10173_v16 = vadd.f32 %v3117_v33, %v12896_v29  ;;  %v3119_v6 = vpop.f32.mrb[94].mxu1  ;;  %v10110_v8 = vadd.f32 %v2733_v54, %v12885_v18  ;;  %v2735_v12 = vpop.f32.mrb[63].mxu0  ;;  %v4064_v3 = vmax.f32 %v10108_v30, 0.0  ;;  %v14282_v62 = vld [vmem:[#allocation29_spill] sm:$0xff] }
 0x28f   :  { %v10174_v57 = vadd.f32 %v3119_v6, %v12888_v59  ;;  %v3121_v25 = vpop.f32.mrb[95].mxu1  ;;  %v10111_v14 = vadd.f32 %v2735_v12, %v12893_v55  ;;  %v4066_v39 = vmax.f32 %v10172_v10, 0.0  ;;  %v4065_v49 = vmax.f32 %v10109_v45, 0.0 }
 0x290   :  { %v10175_v1 = vadd.f32 %v3121_v25, %v12896_v29  ;;  %v4072_v9 = vmax.f32 %v10110_v8, 0.0  ;;  %3417 = vmatmul.mubr.bf16.gmra.mrb[168].mxu0 %v14273_v52  ;;  %v4067_v33 = vmax.f32 %v10173_v16, 0.0 }
 0x291   :  { %v4074_v2 = vmax.f32 %v10174_v57, 0.0  ;;  %3803 = vmatmul.mubr.bf16.gmra.mrb[200].mxu1 %v14273_v52  ;;  %v4073_v41 = vmax.f32 %v10111_v14, 0.0  ;;  %3426 = vmatprep.mubr.bf16.mxu0 %v14274_v46 }
 0x292   :  { %v4075_v54 = vmax.f32 %v10175_v1, 0.0  ;;  %3812 = vmatprep.mubr.bf16.mxu1 %v14274_v46  ;;  %v12972_v12 = vpack.c.bf16 %v4072_v9, %v4064_v3 }
 0x293   :  { %v12970_v6 = vpack.c.bf16 %v4074_v2, %v4066_v39  ;;  %v2739_v10 = vpop.f32.mrb[64].mxu0  ;;  %v12976_v57 = vpack.c.bf16 %v4073_v41, %v4065_v49 }
 0x294   :  { %v12974_v30 = vpack.c.bf16 %v4075_v54, %v4067_v33  ;;  %v3125_v8 = vpop.f32.mrb[96].mxu1  ;;  %v10112_v25 = vadd.f32 %v2739_v10, %v12885_v18  ;;  %v2741_v16 = vpop.f32.mrb[65].mxu0 }
 0x295   :  { %14275 = vst [vmem:[#allocation35_spill] sm:$0xff] %v12970_v6  ;;  %v10176_v45 = vadd.f32 %v3125_v8, %v12888_v59  ;;  %v3127_v14 = vpop.f32.mrb[97].mxu1  ;;  %v10113_v1 = vadd.f32 %v2741_v16, %v12893_v55  ;;  %v2743_v39 = vpop.f32.mrb[66].mxu0 }
 0x296   :  { %14276 = vst [vmem:[#allocation40_spill] sm:$0xff] %v12974_v30  ;;  %v10177_v46 = vadd.f32 %v3127_v14, %v12896_v29  ;;  %v3129_v2 = vpop.f32.mrb[98].mxu1  ;;  %v10114_v3 = vadd.f32 %v2743_v39, %v12885_v18  ;;  %v2745_v52 = vpop.f32.mrb[67].mxu0  ;;  %v4080_v54 = vmax.f32 %v10112_v25, 0.0  ;;  %v14278_v30 = vld [vmem:[#allocation30_spill] sm:$0xff] }
 0x297   :  { %v10178_v9 = vadd.f32 %v3129_v2, %v12888_v59  ;;  %v3131_v33 = vpop.f32.mrb[99].mxu1  ;;  %v10115_v41 = vadd.f32 %v2745_v52, %v12893_v55  ;;  %v4082_v10 = vmax.f32 %v10176_v45, 0.0  ;;  %v4081_v16 = vmax.f32 %v10113_v1, 0.0 }
 0x298   :  { %v10179_v49 = vadd.f32 %v3131_v33, %v12896_v29  ;;  %v4088_v8 = vmax.f32 %v10114_v3, 0.0  ;;  %3427 = vmatmul.mubr.bf16.gmra.mrb[172].mxu0 %v14277_v32  ;;  %v4083_v14 = vmax.f32 %v10177_v46, 0.0 }
 0x299   :  { %v4090_v40 = vmax.f32 %v10178_v9, 0.0  ;;  %3813 = vmatmul.mubr.bf16.gmra.mrb[204].mxu1 %v14277_v32  ;;  %v4089_v6 = vmax.f32 %v10115_v41, 0.0  ;;  %3469 = vmatprep.mubr.bf16.mxu0 %v14278_v30 }
 0x29a   :  { %v4091_v39 = vmax.f32 %v10179_v49, 0.0  ;;  %3855 = vmatprep.mubr.bf16.mxu1 %v14278_v30  ;;  %v12992_v52 = vpack.c.bf16 %v4088_v8, %v4080_v54  ;;  %v11159_v54 = vld [vmem:[#allocation6] ss:$16 sps:$4 sm:$0xff]  }
 0x29b   :  { %v12990_v2 = vpack.c.bf16 %v4090_v40, %v4082_v10  ;;  %v2749_v45 = vpop.f32.mrb[68].mxu0  ;;  %v12996_v9 = vpack.c.bf16 %v4089_v6, %v4081_v16  ;;  %v11162_v16 = vld [vmem:[#allocation6 + $0x8] ss:$16 sps:$4 sm:$0xff]  }
 0x29c   :  { %14280 = vst [vmem:[#allocation43_spill] sm:$0xff] %v12992_v52  ;;  %v12994_v25 = vpack.c.bf16 %v4091_v39, %v4083_v14  ;;  %v3135_v3 = vpop.f32.mrb[100].mxu1  ;;  %v10116_v32 = vadd.f32 %v2749_v45, %v12885_v18  ;;  %v2751_v46 = vpop.f32.mrb[69].mxu0  ;;  %v14295_v52 = vld [vmem:[#allocation41_spill] sm:$0xff] }
 0x29d   :  { %14279 = vst [vmem:[#allocation39_spill] sm:$0xff] %v12990_v2  ;;  %v10180_v1 = vadd.f32 %v3135_v3, %v12888_v59  ;;  %v3137_v33 = vpop.f32.mrb[101].mxu1  ;;  %v10117_v41 = vadd.f32 %v2751_v46, %v12893_v55  ;;  %v2753_v40 = vpop.f32.mrb[70].mxu0  ;;  %v11167_v3 = vld [vmem:[#allocation6 + $0x24] ss:$16 sps:$4 sm:$0xff]  }
 0x29e   :  { %14281 = vst [vmem:[#allocation42_spill] sm:$0xff] %v12994_v25  ;;  %v10181_v30 = vadd.f32 %v3137_v33, %v12896_v29  ;;  %v3139_v49 = vpop.f32.mrb[102].mxu1  ;;  %v10118_v10 = vadd.f32 %v2753_v40, %v12885_v18  ;;  %v2755_v14 = vpop.f32.mrb[71].mxu0  ;;  %v11170_v2 = vld [vmem:[#allocation6 + $0x2c] ss:$16 sps:$4 sm:$0xff]   ;;  %v4096_v25 = vmax.f32 %v10116_v32, 0.0 }
 0x29f   :  { %v10182_v8 = vadd.f32 %v3139_v49, %v12888_v59  ;;  %v3141_v6 = vpop.f32.mrb[103].mxu1  ;;  %v10119_v39 = vadd.f32 %v2755_v14, %v12893_v55  ;;  %v4098_v46 = vmax.f32 %v10180_v1, 0.0  ;;  %v4097_v40 = vmax.f32 %v10117_v41, 0.0  ;;  %v11165_v14 = vld [vmem:[#allocation6 + $0x20] ss:$16 sps:$4 sm:$0xff]  }
 0x2a0   :  { %v10183_v45 = vadd.f32 %v3141_v6, %v12896_v29  ;;  %v4104_v5 = vmax.f32 %v10118_v10, 0.0  ;;  %3470 = vmatmul.mubr.bf16.vlgmr.msra.gmra.mrb[112].mxu0 %v14282_v62  ;;  %v4099_v31 = vmax.f32 %v10181_v30, 0.0  ;;  %v11168_v32 = vld [vmem:[#allocation6 + $0x28] ss:$16 sps:$4 sm:$0xff]   ;;  %v11173_v1 = vld [vmem:[#allocation6 + $0x44] ss:$16 sps:$4 sm:$0xff]  }
 0x2a1   :  { %v4106_v33 = vmax.f32 %v10182_v8, 0.0  ;;  %3856 = vmatmul.mubr.bf16.vlgmr.msra.gmra.mrb[144].mxu1 %v14282_v62  ;;  %v4105_v49 = vmax.f32 %v10119_v39, 0.0  ;;  %5959 = vmatpush1.bf16.msra.mxu0 %v11159_v54  ;;  %v11176_v30 = vld [vmem:[#allocation6 + $0x4c] ss:$16 sps:$4 sm:$0xff]  }
 0x2a2   :  { %v4107_v58 = vmax.f32 %v10183_v45, 0.0  ;;  %3479 = vmatprep.mubr.bf16.mxu0 %v14283_v44  ;;  %3865 = vmatprep.mubr.bf16.mxu1 %v14283_v44  ;;  %v13012_v10 = vpack.c.bf16 %v4104_v5, %v4096_v25 }
 0x2a3   :  { %v13009_v51 = vpack.c.bf16 %v4106_v33, %v4098_v46  ;;  %6731 = vmatpush1.bf16.msra.mxu1 %v11162_v16  ;;  %v2759_v62 = vpop.f32.mrb[72].mxu0  ;;  %5960 = vmatprep.subr.bf16.mxu0 %v11167_v3  ;;  %v13016_v54 = vpack.c.bf16 %v4105_v49, %v4097_v40  ;;  %v11171_v33 = vld [vmem:[#allocation6 + $0x40] ss:$16 sps:$4 sm:$0xff]   ;;  %v11174_v40 = vld [vmem:[#allocation6 + $0x48] ss:$16 sps:$4 sm:$0xff]  }
 0x2a4   :  { %14285 = vst [vmem:[#allocation44_spill] sm:$0xff] %v13012_v10  ;;  %v13014_v8 = vpack.c.bf16 %v4107_v58, %v4099_v31  ;;  %v3145_v41 = vpop.f32.mrb[104].mxu1  ;;  %6732 = vmatprep.subr.bf16.mxu1 %v11170_v2  ;;  %v10120_v6 = vadd.f32 %v2759_v62, %v12885_v18  ;;  %v2761_v45 = vpop.f32.mrb[73].mxu0 }
 0x2a5   :  { %14284 = vst [vmem:[#allocation45_spill] sm:$0xff] %v13009_v51  ;;  %14287 = vst [vmem:[#allocation46_spill] sm:$0xff] %v13016_v54  ;;  %v10184_v39 = vadd.f32 %v3145_v41, %v12888_v59  ;;  %v3147_v44 = vpop.f32.mrb[105].mxu1  ;;  %v10121_v16 = vadd.f32 %v2761_v45, %v12893_v55  ;;  %v2763_v25 = vpop.f32.mrb[74].mxu0  ;;  %5961 = vmatpush1.bf16.msra.mxu0 %v11165_v14  ;;  %v11179_v41 = vld [vmem:[#allocation6 + $0x64] ss:$16 sps:$4 sm:$0xff]  }
 0x2a6   :  { %14286 = vst [vmem:[#allocation47_spill] sm:$0xff] %v13014_v8  ;;  %v10185_v5 = vadd.f32 %v3147_v44, %v12896_v29  ;;  %v3149_v31 = vpop.f32.mrb[106].mxu1  ;;  %v10122_v58 = vadd.f32 %v2763_v25, %v12885_v18  ;;  %v2765_v3 = vpop.f32.mrb[75].mxu0  ;;  %5962 = vmatprep.subr.bf16.mxu0 %v11173_v1  ;;  %v11182_v45 = vld [vmem:[#allocation6 + $0x6c] ss:$16 sps:$4 sm:$0xff]   ;;  %v4112_v44 = vmax.f32 %v10120_v6, 0.0 }
 0x2a7   :  { %v10186_v2 = vadd.f32 %v3149_v31, %v12888_v59  ;;  %v3151_v46 = vpop.f32.mrb[107].mxu1  ;;  %6733 = vmatpush1.bf16.msra.mxu1 %v11168_v32  ;;  %v10123_v49 = vadd.f32 %v2765_v3, %v12893_v55  ;;  %v4114_v51 = vmax.f32 %v10184_v39, 0.0  ;;  %v14288_v25 = vld [vmem:[#allocation33_spill] sm:$0xff]  ;;  %v4113_v31 = vmax.f32 %v10121_v16, 0.0  ;;  %v14289_v54 = vld [vmem:[#allocation38_spill] sm:$0xff] }
 0x2a8   :  { %v10187_v62 = vadd.f32 %v3151_v46, %v12896_v29  ;;  %6734 = vmatprep.subr.bf16.mxu1 %v11176_v30  ;;  %v4120_v14 = vmax.f32 %v10122_v58, 0.0  ;;  %3480 = vmatmul.mubr.bf16.gmra.mrb[116].mxu0 %v14288_v25  ;;  %v4115_v32 = vmax.f32 %v10185_v5, 0.0  ;;  %v11177_v30 = vld [vmem:[#allocation6 + $0x60] ss:$16 sps:$4 sm:$0xff]   ;;  %v11180_v6 = vld [vmem:[#allocation6 + $0x68] ss:$16 sps:$4 sm:$0xff]  }
 0x2a9   :  { %v4122_v8 = vmax.f32 %v10186_v2, 0.0  ;;  %3866 = vmatmul.mubr.bf16.gmra.mrb[148].mxu1 %v14288_v25  ;;  %v4121_v10 = vmax.f32 %v10123_v49, 0.0  ;;  %3489 = vmatprep.mubr.bf16.mxu0 %v14289_v54  ;;  %v11185_v16 = vld [vmem:[#allocation6 + $0x84] ss:$16 sps:$4 sm:$0xff]   ;;  %v11188_v5 = vld [vmem:[#allocation6 + $0x8c] ss:$16 sps:$4 sm:$0xff]  }
 0x2aa   :  { %v4123_v1 = vmax.f32 %v10187_v62, 0.0  ;;  %3875 = vmatprep.mubr.bf16.mxu1 %v14289_v54  ;;  %5963 = vmatpush1.bf16.msra.mxu0 %v11171_v33  ;;  %v13032_v39 = vpack.c.bf16 %v4120_v14, %v4112_v44 }
 0x2ab   :  { %v13030_v3 = vpack.c.bf16 %v4122_v8, %v4114_v51  ;;  %6735 = vmatpush1.bf16.msra.mxu1 %v11174_v40  ;;  %v2769_v2 = vpop.f32.mrb[76].mxu0  ;;  %5964 = vmatprep.subr.bf16.mxu0 %v11179_v41  ;;  %v13036_v49 = vpack.c.bf16 %v4121_v10, %v4113_v31  ;;  %v11183_v10 = vld [vmem:[#allocation6 + $0x80] ss:$16 sps:$4 sm:$0xff]   ;;  %v11186_v31 = vld [vmem:[#allocation6 + $0x88] ss:$16 sps:$4 sm:$0xff]  }
 0x2ac   :  { %14291 = vst [vmem:[#allocation48_spill] sm:$0xff] %v13032_v39  ;;  %v13034_v58 = vpack.c.bf16 %v4123_v1, %v4115_v32  ;;  %v3155_v46 = vpop.f32.mrb[108].mxu1  ;;  %6736 = vmatprep.subr.bf16.mxu1 %v11182_v45  ;;  %v10124_v54 = vadd.f32 %v2769_v2, %v12885_v18  ;;  %v2771_v8 = vpop.f32.mrb[77].mxu0  ;;  %v14294_v39 = vld [vmem:[#allocation37_spill] sm:$0xff] }
 0x2ad   :  { %14290 = vst [vmem:[#allocation49_spill] sm:$0xff] %v13030_v3  ;;  %14293 = vst [vmem:[#allocation16_spill] sm:$0xff] %v13036_v49  ;;  %v10188_v51 = vadd.f32 %v3155_v46, %v12888_v59  ;;  %v3157_v33 = vpop.f32.mrb[109].mxu1  ;;  %v10125_v40 = vadd.f32 %v2771_v8, %v12893_v55  ;;  %v2773_v44 = vpop.f32.mrb[78].mxu0  ;;  %v11191_v46 = vld [vmem:[#allocation6 + $0xa4] ss:$16 sps:$4 sm:$0xff]  }
 0x2ae   :  { %14292 = vst [vmem:[#allocation17_spill] sm:$0xff] %v13034_v58  ;;  %v10189_v62 = vadd.f32 %v3157_v33, %v12896_v29  ;;  %v3159_v14 = vpop.f32.mrb[110].mxu1  ;;  %v10126_v25 = vadd.f32 %v2773_v44, %v12885_v18  ;;  %v2775_v45 = vpop.f32.mrb[79].mxu0  ;;  %5965 = vmatpush1.bf16.msra.mxu0 %v11177_v30  ;;  %v11194_v8 = vld [vmem:[#allocation6 + $0xac] ss:$16 sps:$4 sm:$0xff]   ;;  %v4128_v33 = vmax.f32 %v10124_v54, 0.0 }
 0x2af   :  { %v10190_v41 = vadd.f32 %v3159_v14, %v12888_v59  ;;  %v3161_v32 = vpop.f32.mrb[111].mxu1  ;;  %6737 = vmatpush1.bf16.msra.mxu1 %v11180_v6  ;;  %v10127_v1 = vadd.f32 %v2775_v45, %v12893_v55  ;;  %5966 = vmatprep.subr.bf16.mxu0 %v11185_v16  ;;  %v4130_v3 = vmax.f32 %v10188_v51, 0.0  ;;  %v4129_v30 = vmax.f32 %v10125_v40, 0.0  ;;  %v11192_v54 = vld [vmem:[#allocation6 + $0xa8] ss:$16 sps:$4 sm:$0xff]  }
 0x2b0   :  { %v10191_v2 = vadd.f32 %v3161_v32, %v12896_v29  ;;  %6738 = vmatprep.subr.bf16.mxu1 %v11188_v5  ;;  %v4136_v58 = vmax.f32 %v10126_v25, 0.0  ;;  %3490 = vmatmul.mubr.bf16.gmra.mrb[120].mxu0 %v14294_v39  ;;  %v4131_v6 = vmax.f32 %v10189_v62, 0.0  ;;  %v11189_v5 = vld [vmem:[#allocation6 + $0xa0] ss:$16 sps:$4 sm:$0xff]   ;;  %v11197_v40 = vld [vmem:[#allocation6 + $0xc4] ss:$16 sps:$4 sm:$0xff]  }
 0x2b1   :  { %v4138_v44 = vmax.f32 %v10190_v41, 0.0  ;;  %3876 = vmatmul.mubr.bf16.gmra.mrb[152].mxu1 %v14294_v39  ;;  %v4137_v14 = vmax.f32 %v10127_v1, 0.0  ;;  %3499 = vmatprep.mubr.bf16.mxu0 %v14295_v52  ;;  %v11200_v62 = vld [vmem:[#allocation6 + $0xcc] ss:$16 sps:$4 sm:$0xff]  }
 0x2b2   :  { %v4139_v49 = vmax.f32 %v10191_v2, 0.0  ;;  %3885 = vmatprep.mubr.bf16.mxu1 %v14295_v52  ;;  %5967 = vmatpush1.bf16.msra.mxu0 %v11183_v10  ;;  %v13052_v51 = vpack.c.bf16 %v4136_v58, %v4128_v33 }
 0x2b3   :  { %v13050_v16 = vpack.c.bf16 %v4138_v44, %v4130_v3  ;;  %6739 = vmatpush1.bf16.msra.mxu1 %v11186_v31  ;;  %v2779_v41 = vpop.f32.mrb[80].mxu0  ;;  %5968 = vmatprep.subr.bf16.mxu0 %v11191_v46  ;;  %v13056_v45 = vpack.c.bf16 %v4137_v14, %v4129_v30  ;;  %v11195_v44 = vld [vmem:[#allocation6 + $0xc0] ss:$16 sps:$4 sm:$0xff]   ;;  %v11198_v30 = vld [vmem:[#allocation6 + $0xc8] ss:$16 sps:$4 sm:$0xff]  }
 0x2b4   :  { %v13054_v25 = vpack.c.bf16 %v4139_v49, %v4131_v6  ;;  %v3165_v39 = vpop.f32.mrb[112].mxu1  ;;  %6740 = vmatprep.subr.bf16.mxu1 %v11194_v8  ;;  %v10128_v52 = vadd.f32 %v2779_v41, %v12885_v18  ;;  %v2781_v32 = vpop.f32.mrb[81].mxu0  ;;  %v11203_v41 = vld [vmem:[#allocation6 + $0xe4] ss:$16 sps:$4 sm:$0xff]  }
 0x2b5   :  { %14296 = vst [vmem:[#allocation19_spill] sm:$0xff] %v13050_v16  ;;  %v10192_v3 = vadd.f32 %v3165_v39, %v12888_v59  ;;  %v3167_v10 = vpop.f32.mrb[113].mxu1  ;;  %v10129_v31 = vadd.f32 %v2781_v32, %v12893_v55  ;;  %v2783_v49 = vpop.f32.mrb[82].mxu0  ;;  %v11206_v39 = vld [vmem:[#allocation6 + $0xec] ss:$16 sps:$4 sm:$0xff]  }
 0x2b6   :  { %14297 = vst [vmem:[#allocation18_spill] sm:$0xff] %v13054_v25  ;;  %v10193_v58 = vadd.f32 %v3167_v10, %v12896_v29  ;;  %v3169_v1 = vpop.f32.mrb[114].mxu1  ;;  %v10130_v2 = vadd.f32 %v2783_v49, %v12885_v18  ;;  %v2785_v8 = vpop.f32.mrb[83].mxu0  ;;  %5969 = vmatpush1.bf16.msra.mxu0 %v11189_v5  ;;  %v4144_v32 = vmax.f32 %v10128_v52, 0.0  ;;  %v11201_v52 = vld [vmem:[#allocation6 + $0xe0] ss:$16 sps:$4 sm:$0xff]  }
 0x2b7   :  { %v10194_v46 = vadd.f32 %v3169_v1, %v12888_v59  ;;  %v3171_v33 = vpop.f32.mrb[115].mxu1  ;;  %6741 = vmatpush1.bf16.msra.mxu1 %v11192_v54  ;;  %v10131_v6 = vadd.f32 %v2785_v8, %v12893_v55  ;;  %5970 = vmatprep.subr.bf16.mxu0 %v11197_v40  ;;  %v4146_v10 = vmax.f32 %v10192_v3, 0.0  ;;  %v4145_v5 = vmax.f32 %v10129_v31, 0.0  ;;  %v11204_v3 = vld [vmem:[#allocation6 + $0xe8] ss:$16 sps:$4 sm:$0xff]  }
 0x2b8   :  { %v10195_v14 = vadd.f32 %v3171_v33, %v12896_v29  ;;  %6742 = vmatprep.subr.bf16.mxu1 %v11200_v62  ;;  %v4152_v16 = vmax.f32 %v10130_v2, 0.0  ;;  %3500 = vmatmul.mubr.bf16.gmra.mrb[124].mxu0 %v12576_v50  ;;  %v4147_v54 = vmax.f32 %v10193_v58, 0.0  ;;  %v11209_v58 = vld [vmem:[#allocation6 + $0x104] ss:$16 sps:$4 sm:$0xff]   ;;  %v11212_v8 = vld [vmem:[#allocation6 + $0x10c] ss:$16 sps:$4 sm:$0xff]  }
 0x2b9   :  { %v4154_v49 = vmax.f32 %v10194_v46, 0.0  ;;  %3886 = vmatmul.mubr.bf16.gmra.mrb[156].mxu1 %v12576_v50  ;;  %v4153_v1 = vmax.f32 %v10131_v6, 0.0  ;;  %3509 = vmatprep.mubr.bf16.mxu0 %v12606_v37 }
 0x2ba   :  { %v4155_v25 = vmax.f32 %v10195_v14, 0.0  ;;  %3895 = vmatprep.mubr.bf16.mxu1 %v12606_v37  ;;  %v13070_v40 = vpack.c.bf16 %v4152_v16, %v4144_v32  ;;  %5971 = vmatpush1.bf16.msra.mxu0 %v11195_v44 }
 0x2bb   :  { %v13072_v62 = vpack.c.bf16 %v4154_v49, %v4146_v10  ;;  %6743 = vmatpush1.bf16.msra.mxu1 %v11198_v30  ;;  %v13074_v2 = vpack.c.bf16 %v4153_v1, %v4145_v5  ;;  %v2789_v50 = vpop.f32.mrb[84].mxu0  ;;  %5972 = vmatprep.subr.bf16.mxu0 %v11203_v41  ;;  %v11207_v49 = vld [vmem:[#allocation6 + $0x100] ss:$16 sps:$4 sm:$0xff]   ;;  %v11210_v5 = vld [vmem:[#allocation6 + $0x108] ss:$16 sps:$4 sm:$0xff]  }
 0x2bc   :  { %v13076_v46 = vpack.c.bf16 %v4155_v25, %v4147_v54  ;;  %v3175_v31 = vpop.f32.mrb[116].mxu1  ;;  %6744 = vmatprep.subr.bf16.mxu1 %v11206_v39  ;;  %v10132_v37 = vadd.f32 %v2789_v50, %v12885_v18  ;;  %v2791_v33 = vpop.f32.mrb[85].mxu0  ;;  %v11215_v50 = vld [vmem:[#allocation6 + $0x124] ss:$16 sps:$4 sm:$0xff]  }
 0x2bd   :  { %14298 = vst [vmem:[#allocation21_spill] sm:$0xff] %v13072_v62  ;;  %v10196_v16 = vadd.f32 %v3175_v31, %v12888_v59  ;;  %v3177_v6 = vpop.f32.mrb[117].mxu1  ;;  %v10133_v44 = vadd.f32 %v2791_v33, %v12893_v55  ;;  %v2793_v14 = vpop.f32.mrb[86].mxu0  ;;  %v11218_v31 = vld [vmem:[#allocation6 + $0x12c] ss:$16 sps:$4 sm:$0xff]  }
 0x2be   :  { %14299 = vst [vmem:[#allocation20_spill] sm:$0xff] %v13076_v46  ;;  %v10197_v30 = vadd.f32 %v3177_v6, %v12896_v29  ;;  %v3179_v32 = vpop.f32.mrb[118].mxu1  ;;  %v10134_v25 = vadd.f32 %v2793_v14, %v12885_v18  ;;  %v2795_v41 = vpop.f32.mrb[87].mxu0  ;;  %5973 = vmatpush1.bf16.msra.mxu0 %v11201_v52  ;;  %v4160_v33 = vmax.f32 %v10132_v37, 0.0  ;;  %v11213_v37 = vld [vmem:[#allocation6 + $0x120] ss:$16 sps:$4 sm:$0xff]  }
 0x2bf   :  { %v10198_v10 = vadd.f32 %v3179_v32, %v12888_v59  ;;  %v3181_v39 = vpop.f32.mrb[119].mxu1  ;;  %6745 = vmatpush1.bf16.msra.mxu1 %v11204_v3  ;;  %v10135_v54 = vadd.f32 %v2795_v41, %v12893_v55  ;;  %5974 = vmatprep.subr.bf16.mxu0 %v11209_v58  ;;  %v4162_v6 = vmax.f32 %v10196_v16, 0.0  ;;  %v4161_v52 = vmax.f32 %v10133_v44, 0.0  ;;  %v11216_v16 = vld [vmem:[#allocation6 + $0x128] ss:$16 sps:$4 sm:$0xff]  }
 0x2c0   :  { %v10199_v1 = vadd.f32 %v3181_v39, %v12896_v29  ;;  %6746 = vmatprep.subr.bf16.mxu1 %v11212_v8  ;;  %v4168_v62 = vmax.f32 %v10134_v25, 0.0  ;;  %3510 = vmatmul.mubr.bf16.gmra.mrb[128].mxu0 %v12601_v13  ;;  %v4163_v3 = vmax.f32 %v10197_v30, 0.0  ;;  %v11221_v30 = vld [vmem:[#allocation6 + $0x144] ss:$16 sps:$4 sm:$0xff]   ;;  %v11224_v41 = vld [vmem:[#allocation6 + $0x14c] ss:$16 sps:$4 sm:$0xff]  }
 0x2c1   :  { %v4170_v14 = vmax.f32 %v10198_v10, 0.0  ;;  %3896 = vmatmul.mubr.bf16.gmra.mrb[160].mxu1 %v12601_v13  ;;  %v4169_v32 = vmax.f32 %v10135_v54, 0.0  ;;  %3519 = vmatprep.mubr.bf16.mxu0 %v12626_v43 }
 0x2c2   :  { %v4171_v46 = vmax.f32 %v10199_v1, 0.0  ;;  %3905 = vmatprep.mubr.bf16.mxu1 %v12626_v43  ;;  %v13090_v58 = vpack.c.bf16 %v4168_v62, %v4160_v33  ;;  %5975 = vmatpush1.bf16.msra.mxu0 %v11207_v49 }
 0x2c3   :  { %v13092_v8 = vpack.c.bf16 %v4170_v14, %v4162_v6  ;;  %6747 = vmatpush1.bf16.msra.mxu1 %v11210_v5  ;;  %v13094_v25 = vpack.c.bf16 %v4169_v32, %v4161_v52  ;;  %v2799_v13 = vpop.f32.mrb[88].mxu0  ;;  %5976 = vmatprep.subr.bf16.mxu0 %v11215_v50  ;;  %v11219_v14 = vld [vmem:[#allocation6 + $0x140] ss:$16 sps:$4 sm:$0xff]   ;;  %v11222_v52 = vld [vmem:[#allocation6 + $0x148] ss:$16 sps:$4 sm:$0xff]  }
 0x2c4   :  { %v13096_v10 = vpack.c.bf16 %v4171_v46, %v4163_v3  ;;  %v3185_v44 = vpop.f32.mrb[120].mxu1  ;;  %6748 = vmatprep.subr.bf16.mxu1 %v11218_v31  ;;  %v10136_v43 = vadd.f32 %v2799_v13, %v12885_v18  ;;  %v2801_v39 = vpop.f32.mrb[89].mxu0  ;;  %v11227_v13 = vld [vmem:[#allocation6 + $0x164] ss:$16 sps:$4 sm:$0xff]  }
 0x2c5   :  { %14300 = vst [vmem:[#allocation26_spill] sm:$0xff] %v13092_v8  ;;  %v10200_v62 = vadd.f32 %v3185_v44, %v12888_v59  ;;  %v3187_v54 = vpop.f32.mrb[121].mxu1  ;;  %v10137_v49 = vadd.f32 %v2801_v39, %v12893_v55  ;;  %v2803_v1 = vpop.f32.mrb[90].mxu0  ;;  %v11230_v44 = vld [vmem:[#allocation6 + $0x16c] ss:$16 sps:$4 sm:$0xff]  }
 0x2c6   :  { %14301 = vst [vmem:[#allocation25_spill] sm:$0xff] %v13096_v10  ;;  %v10201_v5 = vadd.f32 %v3187_v54, %v12896_v29  ;;  %v3189_v33 = vpop.f32.mrb[122].mxu1  ;;  %v10138_v46 = vadd.f32 %v2803_v1, %v12885_v18  ;;  %v2805_v50 = vpop.f32.mrb[91].mxu0  ;;  %5977 = vmatpush1.bf16.msra.mxu0 %v11213_v37  ;;  %v4176_v39 = vmax.f32 %v10136_v43, 0.0  ;;  %v11225_v43 = vld [vmem:[#allocation6 + $0x160] ss:$16 sps:$4 sm:$0xff]  }
 0x2c7   :  { %v10202_v6 = vadd.f32 %v3189_v33, %v12888_v59  ;;  %v3191_v31 = vpop.f32.mrb[123].mxu1  ;;  %6749 = vmatpush1.bf16.msra.mxu1 %v11216_v16  ;;  %v10139_v3 = vadd.f32 %v2805_v50, %v12893_v55  ;;  %5978 = vmatprep.subr.bf16.mxu0 %v11221_v30  ;;  %v4178_v54 = vmax.f32 %v10200_v62, 0.0  ;;  %v4177_v37 = vmax.f32 %v10137_v49, 0.0  ;;  %v11228_v62 = vld [vmem:[#allocation6 + $0x168] ss:$16 sps:$4 sm:$0xff]  }
 0x2c8   :  { %v10203_v32 = vadd.f32 %v3191_v31, %v12896_v29  ;;  %6750 = vmatprep.subr.bf16.mxu1 %v11224_v41  ;;  %v4184_v8 = vmax.f32 %v10138_v46, 0.0  ;;  %3520 = vmatmul.mubr.bf16.gmra.mrb[132].mxu0 %v12621_v38  ;;  %v4179_v16 = vmax.f32 %v10201_v5, 0.0  ;;  %v11233_v5 = vld [vmem:[#allocation6 + $0x184] ss:$16 sps:$4 sm:$0xff]   ;;  %v11236_v50 = vld [vmem:[#allocation6 + $0x18c] ss:$16 sps:$4 sm:$0xff]  }
 0x2c9   :  { %v4186_v1 = vmax.f32 %v10202_v6, 0.0  ;;  %3906 = vmatmul.mubr.bf16.gmra.mrb[164].mxu1 %v12621_v38  ;;  %v4185_v33 = vmax.f32 %v10139_v3, 0.0  ;;  %3529 = vmatprep.mubr.bf16.mxu0 %v12646_v7 }
 0x2ca   :  { %v4187_v10 = vmax.f32 %v10203_v32, 0.0  ;;  %3915 = vmatprep.mubr.bf16.mxu1 %v12646_v7  ;;  %v13110_v30 = vpack.c.bf16 %v4184_v8, %v4176_v39  ;;  %5979 = vmatpush1.bf16.msra.mxu0 %v11219_v14 }
 0x2cb   :  { %v13112_v41 = vpack.c.bf16 %v4186_v1, %v4178_v54  ;;  %6751 = vmatpush1.bf16.msra.mxu1 %v11222_v52  ;;  %v13114_v46 = vpack.c.bf16 %v4185_v33, %v4177_v37  ;;  %v2809_v38 = vpop.f32.mrb[92].mxu0  ;;  %5980 = vmatprep.subr.bf16.mxu0 %v11227_v13  ;;  %v11231_v1 = vld [vmem:[#allocation6 + $0x180] ss:$16 sps:$4 sm:$0xff]   ;;  %v11234_v37 = vld [vmem:[#allocation6 + $0x188] ss:$16 sps:$4 sm:$0xff]  }
 0x2cc   :  { %v13116_v6 = vpack.c.bf16 %v4187_v10, %v4179_v16  ;;  %v3195_v49 = vpop.f32.mrb[124].mxu1  ;;  %6752 = vmatprep.subr.bf16.mxu1 %v11230_v44  ;;  %v10140_v7 = vadd.f32 %v2809_v38, %v12885_v18  ;;  %v2811_v31 = vpop.f32.mrb[93].mxu0  ;;  %v11239_v38 = vld [vmem:[#allocation6 + $0x1a4] ss:$16 sps:$4 sm:$0xff]  }
 0x2cd   :  { %14302 = vst [vmem:[#allocation30_spill] sm:$0xff] %v13112_v41  ;;  %v10204_v8 = vadd.f32 %v3195_v49, %v12888_v59  ;;  %v3197_v3 = vpop.f32.mrb[125].mxu1  ;;  %v10141_v14 = vadd.f32 %v2811_v31, %v12893_v55  ;;  %v2813_v32 = vpop.f32.mrb[94].mxu0  ;;  %v11242_v49 = vld [vmem:[#allocation6 + $0x1ac] ss:$16 sps:$4 sm:$0xff]  }
 0x2ce   :  { %14303 = vst [vmem:[#allocation29_spill] sm:$0xff] %v13116_v6  ;;  %v10205_v52 = vadd.f32 %v3197_v3, %v12896_v29  ;;  %v3199_v39 = vpop.f32.mrb[126].mxu1  ;;  %v10142_v10 = vadd.f32 %v2813_v32, %v12885_v18  ;;  %v2815_v13 = vpop.f32.mrb[95].mxu0  ;;  %5981 = vmatpush1.bf16.msra.mxu0 %v11225_v43  ;;  %v4192_v31 = vmax.f32 %v10140_v7, 0.0  ;;  %v11237_v7 = vld [vmem:[#allocation6 + $0x1a0] ss:$16 sps:$4 sm:$0xff]  }
 0x2cf   :  { %v10206_v54 = vadd.f32 %v3199_v39, %v12888_v59  ;;  %v3201_v44 = vpop.f32.mrb[127].mxu1  ;;  %6753 = vmatpush1.bf16.msra.mxu1 %v11228_v62  ;;  %v10143_v16 = vadd.f32 %v2815_v13, %v12893_v55  ;;  %5982 = vmatprep.subr.bf16.mxu0 %v11233_v5  ;;  %v4194_v3 = vmax.f32 %v10204_v8, 0.0  ;;  %v4193_v43 = vmax.f32 %v10141_v14, 0.0  ;;  %v11240_v8 = vld [vmem:[#allocation6 + $0x1a8] ss:$16 sps:$4 sm:$0xff]  }
 0x2d0   :  { %v10207_v33 = vadd.f32 %v3201_v44, %v12896_v29  ;;  %6754 = vmatprep.subr.bf16.mxu1 %v11236_v50  ;;  %v4200_v41 = vmax.f32 %v10142_v10, 0.0  ;;  %3530 = vmatmul.mubr.bf16.gmra.mrb[136].mxu0 %v12641_v61  ;;  %v4195_v62 = vmax.f32 %v10205_v52, 0.0  ;;  %v11245_v52 = vld [vmem:[#allocation6 + $0x1c4] ss:$16 sps:$4 sm:$0xff]   ;;  %v11248_v13 = vld [vmem:[#allocation6 + $0x1cc] ss:$16 sps:$4 sm:$0xff]  }
 0x2d1   :  { %v4202_v32 = vmax.f32 %v10206_v54, 0.0  ;;  %3916 = vmatmul.mubr.bf16.gmra.mrb[168].mxu1 %v12641_v61  ;;  %v4201_v39 = vmax.f32 %v10143_v16, 0.0  ;;  %3539 = vmatprep.mubr.bf16.mxu0 %v12663_v35 }
 0x2d2   :  { %v4203_v6 = vmax.f32 %v10207_v33, 0.0  ;;  %3925 = vmatprep.mubr.bf16.mxu1 %v12663_v35  ;;  %v13130_v5 = vpack.c.bf16 %v4200_v41, %v4192_v31  ;;  %5983 = vmatpush1.bf16.msra.mxu0 %v11231_v1 }
 0x2d3   :  { %v13132_v50 = vpack.c.bf16 %v4202_v32, %v4194_v3  ;;  %6755 = vmatpush1.bf16.msra.mxu1 %v11234_v37  ;;  %v13134_v10 = vpack.c.bf16 %v4201_v39, %v4193_v43  ;;  %v2819_v61 = vpop.f32.mrb[96].mxu0  ;;  %5984 = vmatprep.subr.bf16.mxu0 %v11239_v38  ;;  %v11243_v32 = vld [vmem:[#allocation6 + $0x1c0] ss:$16 sps:$4 sm:$0xff]   ;;  %v11246_v43 = vld [vmem:[#allocation6 + $0x1c8] ss:$16 sps:$4 sm:$0xff]  }
 0x2d4   :  { %v13136_v54 = vpack.c.bf16 %v4203_v6, %v4195_v62  ;;  %v3205_v14 = vpop.f32.mrb[128].mxu1  ;;  %6756 = vmatprep.subr.bf16.mxu1 %v11242_v49  ;;  %v10144_v35 = vadd.f32 %v2819_v61, %v12885_v18  ;;  %v2821_v44 = vpop.f32.mrb[97].mxu0  ;;  %v11251_v61 = vld [vmem:[#allocation6 + $0x1e4] ss:$16 sps:$4 sm:$0xff]  }
 0x2d5   :  { %14304 = vst [vmem:[#allocation34_spill] sm:$0xff] %v13132_v50  ;;  %v10208_v41 = vadd.f32 %v3205_v14, %v12888_v59  ;;  %v3207_v16 = vpop.f32.mrb[129].mxu1  ;;  %v10145_v1 = vadd.f32 %v2821_v44, %v12893_v55  ;;  %v2823_v33 = vpop.f32.mrb[98].mxu0  ;;  %v11254_v14 = vld [vmem:[#allocation6 + $0x1ec] ss:$16 sps:$4 sm:$0xff]  }
 0x2d6   :  { %14305 = vst [vmem:[#allocation33_spill] sm:$0xff] %v13136_v54  ;;  %v10209_v37 = vadd.f32 %v3207_v16, %v12896_v29  ;;  %v3209_v31 = vpop.f32.mrb[130].mxu1  ;;  %v10146_v6 = vadd.f32 %v2823_v33, %v12885_v18  ;;  %v2825_v38 = vpop.f32.mrb[99].mxu0  ;;  %5985 = vmatpush1.bf16.msra.mxu0 %v11237_v7  ;;  %v4208_v44 = vmax.f32 %v10144_v35, 0.0  ;;  %v11249_v35 = vld [vmem:[#allocation6 + $0x1e0] ss:$16 sps:$4 sm:$0xff]  }
 0x2d7   :  { %v10210_v3 = vadd.f32 %v3209_v31, %v12888_v59  ;;  %v3211_v49 = vpop.f32.mrb[131].mxu1  ;;  %6757 = vmatpush1.bf16.msra.mxu1 %v11240_v8  ;;  %v10147_v62 = vadd.f32 %v2825_v38, %v12893_v55  ;;  %5986 = vmatprep.subr.bf16.mxu0 %v11245_v52  ;;  %v4210_v16 = vmax.f32 %v10208_v41, 0.0  ;;  %v4209_v7 = vmax.f32 %v10145_v1, 0.0  ;;  %v11252_v41 = vld [vmem:[#allocation6 + $0x1e8] ss:$16 sps:$4 sm:$0xff]  }
 0x2d8   :  { %v10211_v39 = vadd.f32 %v3211_v49, %v12896_v29  ;;  %6758 = vmatprep.subr.bf16.mxu1 %v11248_v13  ;;  %v4216_v50 = vmax.f32 %v10146_v6, 0.0  ;;  %3540 = vmatmul.mubr.bf16.gmra.mrb[140].mxu0 %v12659_v48  ;;  %v4211_v8 = vmax.f32 %v10209_v37, 0.0  ;;  %v11257_v37 = vld [vmem:[#allocation6 + $0x204] ss:$16 sps:$4 sm:$0xff]   ;;  %v11260_v38 = vld [vmem:[#allocation6 + $0x20c] ss:$16 sps:$4 sm:$0xff]  }
 0x2d9   :  { %v4218_v33 = vmax.f32 %v10210_v3, 0.0  ;;  %3926 = vmatmul.mubr.bf16.gmra.mrb[172].mxu1 %v12659_v48  ;;  %v4217_v31 = vmax.f32 %v10147_v62, 0.0  ;;  %3549 = vmatprep.mubr.bf16.mxu0 %v12675_v60 }
 0x2da   :  { %v4219_v54 = vmax.f32 %v10211_v39, 0.0  ;;  %3935 = vmatprep.mubr.bf16.mxu1 %v12675_v60  ;;  %v13150_v52 = vpack.c.bf16 %v4216_v50, %v4208_v44  ;;  %5987 = vmatpush1.bf16.msra.mxu0 %v11243_v32 }
 0x2db   :  { %v13152_v13 = vpack.c.bf16 %v4218_v33, %v4210_v16  ;;  %6759 = vmatpush1.bf16.msra.mxu1 %v11246_v43  ;;  %v13154_v6 = vpack.c.bf16 %v4217_v31, %v4209_v7  ;;  %v2829_v48 = vpop.f32.mrb[100].mxu0  ;;  %5988 = vmatprep.subr.bf16.mxu0 %v11251_v61 }
 0x2dc   :  { %v13156_v3 = vpack.c.bf16 %v4219_v54, %v4211_v8  ;;  %v3215_v1 = vpop.f32.mrb[132].mxu1  ;;  %6760 = vmatprep.subr.bf16.mxu1 %v11254_v14  ;;  %v10148_v60 = vadd.f32 %v2829_v48, %v12885_v18  ;;  %v2831_v49 = vpop.f32.mrb[101].mxu0 }
 0x2dd   :  { %v10212_v50 = vadd.f32 %v3215_v1, %v12888_v59  ;;  %v3217_v62 = vpop.f32.mrb[133].mxu1  ;;  %v10149_v32 = vadd.f32 %v2831_v49, %v12893_v55  ;;  %v2833_v39 = vpop.f32.mrb[102].mxu0 }
 0x2de   :  { %v10213_v43 = vadd.f32 %v3217_v62, %v12896_v29  ;;  %v3219_v44 = vpop.f32.mrb[134].mxu1  ;;  %v10150_v54 = vadd.f32 %v2833_v39, %v12885_v18  ;;  %v2835_v61 = vpop.f32.mrb[103].mxu0  ;;  %5989 = vmatpush1.bf16.msra.mxu0 %v11249_v35  ;;  %v4224_v8 = vmax.f32 %v10148_v60, 0.0 }
 0x2df   :  { %v10214_v16 = vadd.f32 %v3219_v44, %v12888_v59  ;;  %v3221_v14 = vpop.f32.mrb[135].mxu1  ;;  %6761 = vmatpush1.bf16.msra.mxu1 %v11252_v41  ;;  %v10151_v33 = vadd.f32 %v2835_v61, %v12893_v55  ;;  %6151 = vmatprep.subr.bf16.mxu0 %v11257_v37  ;;  %v4226_v31 = vmax.f32 %v10212_v50, 0.0  ;;  %v4225_v49 = vmax.f32 %v10149_v32, 0.0 }
 0x2e0   :  { %v10215_v7 = vadd.f32 %v3221_v14, %v12896_v29  ;;  %6923 = vmatprep.subr.bf16.mxu1 %v11260_v38  ;;  %v4232_v48 = vmax.f32 %v10150_v54, 0.0  ;;  %3550 = vmatmul.mubr.bf16.gmra.mrb[144].mxu0 %v12671_v11  ;;  %v4227_v62 = vmax.f32 %v10213_v43, 0.0 }
 0x2e1   :  { %v4234_v1 = vmax.f32 %v10214_v16, 0.0  ;;  %3936 = vmatmul.mubr.bf16.gmra.mrb[176].mxu1 %v12671_v11  ;;  %v4233_v39 = vmax.f32 %v10151_v33, 0.0  ;;  %3559 = vmatprep.mubr.bf16.mxu0 %v12687_v0 }
 0x2e2   :  { %v4235_v44 = vmax.f32 %v10215_v7, 0.0  ;;  %3945 = vmatprep.mubr.bf16.mxu1 %v12687_v0  ;;  %v13170_v35 = vpack.c.bf16 %v4232_v48, %v4224_v8 }
 0x2e3   :  { %v13172_v41 = vpack.c.bf16 %v4234_v1, %v4226_v31  ;;  %v13174_v37 = vpack.c.bf16 %v4233_v39, %v4225_v49  ;;  %v2839_v60 = vpop.f32.mrb[104].mxu0 }
 0x2e4   :  { %v13176_v38 = vpack.c.bf16 %v4235_v44, %v4227_v62  ;;  %v3225_v50 = vpop.f32.mrb[136].mxu1  ;;  %v10152_v11 = vadd.f32 %v2839_v60, %v12885_v18  ;;  %v2841_v43 = vpop.f32.mrb[105].mxu0 }
 0x2e5   :  { %v10216_v32 = vadd.f32 %v3225_v50, %v12888_v59  ;;  %v3227_v54 = vpop.f32.mrb[137].mxu1  ;;  %v10153_v16 = vadd.f32 %v2841_v43, %v12893_v55  ;;  %v2843_v61 = vpop.f32.mrb[106].mxu0 }
 0x2e6   :  { %v10217_v0 = vadd.f32 %v3227_v54, %v12896_v29  ;;  %v3229_v14 = vpop.f32.mrb[138].mxu1  ;;  %v10154_v33 = vadd.f32 %v2843_v61, %v12885_v18  ;;  %v2845_v8 = vpop.f32.mrb[107].mxu0  ;;  %v4240_v49 = vmax.f32 %v10152_v11, 0.0 }
 0x2e7   :  { %v10218_v7 = vadd.f32 %v3229_v14, %v12888_v59  ;;  %v3231_v31 = vpop.f32.mrb[139].mxu1  ;;  %v10155_v48 = vadd.f32 %v2845_v8, %v12893_v55  ;;  %v4242_v62 = vmax.f32 %v10216_v32, 0.0  ;;  %v4241_v60 = vmax.f32 %v10153_v16, 0.0 }
 0x2e8   :  { %v10219_v1 = vadd.f32 %v3231_v31, %v12896_v29  ;;  %v4248_v39 = vmax.f32 %v10154_v33, 0.0  ;;  %3560 = vmatmul.mubr.bf16.gmra.mrb[148].mxu0 %v12683_v34  ;;  %v4243_v50 = vmax.f32 %v10217_v0, 0.0 }
 0x2e9   :  { %v4250_v44 = vmax.f32 %v10218_v7, 0.0  ;;  %3946 = vmatmul.mubr.bf16.gmra.mrb[180].mxu1 %v12683_v34  ;;  %v4249_v43 = vmax.f32 %v10155_v48, 0.0  ;;  %3569 = vmatprep.mubr.bf16.mxu0 %v12699_v19 }
 0x2ea   :  { %v4251_v54 = vmax.f32 %v10219_v1, 0.0  ;;  %3955 = vmatprep.mubr.bf16.mxu1 %v12699_v19  ;;  %v13190_v61 = vpack.c.bf16 %v4248_v39, %v4240_v49 }
 0x2eb   :  { %v13192_v14 = vpack.c.bf16 %v4250_v44, %v4242_v62  ;;  %v13194_v11 = vpack.c.bf16 %v4249_v43, %v4241_v60  ;;  %v2849_v33 = vpop.f32.mrb[108].mxu0 }
 0x2ec   :  { %v13196_v32 = vpack.c.bf16 %v4251_v54, %v4243_v50  ;;  %v3235_v7 = vpop.f32.mrb[140].mxu1  ;;  %v10156_v34 = vadd.f32 %v2849_v33, %v12885_v18  ;;  %v2851_v0 = vpop.f32.mrb[109].mxu0 }
 0x2ed   :  { %14306 = vst [vmem:[#allocation38_spill] sm:$0xff] %v13192_v14  ;;  %v10220_v16 = vadd.f32 %v3235_v7, %v12888_v59  ;;  %v3237_v8 = vpop.f32.mrb[141].mxu1  ;;  %v10157_v31 = vadd.f32 %v2851_v0, %v12893_v55  ;;  %v2853_v48 = vpop.f32.mrb[110].mxu0 }
 0x2ee   :  { %v10221_v19 = vadd.f32 %v3237_v8, %v12896_v29  ;;  %v3239_v1 = vpop.f32.mrb[142].mxu1  ;;  %v10158_v49 = vadd.f32 %v2853_v48, %v12885_v18  ;;  %v2855_v39 = vpop.f32.mrb[111].mxu0  ;;  %v4256_v43 = vmax.f32 %v10156_v34, 0.0  ;;  %v11287_v48 = vld [vmem:[#allocation6 + $0x2a4] ss:$16 sps:$4 sm:$0xff]  }
 0x2ef   :  { %v10222_v62 = vadd.f32 %v3239_v1, %v12888_v59  ;;  %v3241_v44 = vpop.f32.mrb[143].mxu1  ;;  %v10159_v60 = vadd.f32 %v2855_v39, %v12893_v55  ;;  %v4258_v54 = vmax.f32 %v10220_v16, 0.0  ;;  %v4257_v0 = vmax.f32 %v10157_v31, 0.0  ;;  %v11284_v16 = vld [vmem:[#allocation6 + $0x28c] ss:$16 sps:$4 sm:$0xff]  }
 0x2f0   :  { %v10223_v50 = vadd.f32 %v3241_v44, %v12896_v29  ;;  %v4264_v33 = vmax.f32 %v10158_v49, 0.0  ;;  %3570 = vmatmul.mubr.bf16.gmra.mrb[152].mxu0 %v12695_v42  ;;  %v4259_v8 = vmax.f32 %v10221_v19, 0.0  ;;  %v11279_v31 = vld [vmem:[#allocation6 + $0x280] ss:$16 sps:$4 sm:$0xff]   ;;  %v11282_v19 = vld [vmem:[#allocation6 + $0x288] ss:$16 sps:$4 sm:$0xff]  }
 0x2f1   :  { %v4266_v7 = vmax.f32 %v10222_v62, 0.0  ;;  %3956 = vmatmul.mubr.bf16.gmra.mrb[184].mxu1 %v12695_v42  ;;  %v4265_v14 = vmax.f32 %v10159_v60, 0.0  ;;  %3579 = vmatprep.mubr.bf16.mxu0 %v12711_v15  ;;  %v11266_v42 = vld [vmem:[#allocation6 + $0x22c] ss:$16 sps:$4 sm:$0xff]   ;;  %v11288_v1 = vld [vmem:[#allocation6 + $0x2a8] ss:$16 sps:$4 sm:$0xff]  }
 0x2f2   :  { %v4267_v18 = vmax.f32 %v10223_v50, 0.0  ;;  %3965 = vmatprep.mubr.bf16.mxu1 %v12711_v15  ;;  %v13210_v59 = vpack.c.bf16 %v4264_v33, %v4256_v43  ;;  %v11261_v15 = vld [vmem:[#allocation6 + $0x220] ss:$16 sps:$4 sm:$0xff]   ;;  %v11293_v49 = vld [vmem:[#allocation6 + $0x2c4] ss:$16 sps:$4 sm:$0xff]  }
 0x2f3   :  { %v13212_v55 = vpack.c.bf16 %v4266_v7, %v4258_v54  ;;  %v13214_v29 = vpack.c.bf16 %v4265_v14, %v4257_v0  ;;  %v11281_v14 = vld [vmem:[#allocation6 + $0x284] ss:$16 sps:$4 sm:$0xff]   ;;  %v11296_v62 = vld [vmem:[#allocation6 + $0x2cc] ss:$16 sps:$4 sm:$0xff]   ;;  %v11291_v39 = vld [vmem:[#allocation6 + $0x2c0] ss:$16 sps:$4 sm:$0xff]  }
 0x2f4   :  { %v13216_v34 = vpack.c.bf16 %v4267_v18, %v4259_v8  ;;  %v11294_v44 = vld [vmem:[#allocation6 + $0x2c8] ss:$16 sps:$4 sm:$0xff]   ;;  %v11299_v60 = vld [vmem:[#allocation6 + $0x2e4] ss:$16 sps:$4 sm:$0xff]   ;;  %v11308_v54 = vld [vmem:[#allocation6 + $0x30c] ss:$16 sps:$4 sm:$0xff]  }
 0x2f5   :  { %v11300_v50 = vld [vmem:[#allocation6 + $0x2e8] ss:$16 sps:$4 sm:$0xff]   ;;  %v11305_v43 = vld [vmem:[#allocation6 + $0x304] ss:$16 sps:$4 sm:$0xff]   ;;  %v11303_v33 = vld [vmem:[#allocation6 + $0x300] ss:$16 sps:$4 sm:$0xff]  }
 0x2f6   :  { %v11306_v7 = vld [vmem:[#allocation6 + $0x308] ss:$16 sps:$4 sm:$0xff]   ;;  %v11311_v0 = vld [vmem:[#allocation6 + $0x324] ss:$16 sps:$4 sm:$0xff]   ;;  %v11309_v18 = vld [vmem:[#allocation6 + $0x320] ss:$16 sps:$4 sm:$0xff]  }
 0x2f7   :  { %v14307_v8 = vld [vmem:[#allocation43_spill] sm:$0xff] }
 0x2f8   :  { %3580 = vmatmul.mubr.bf16.gmra.mrb[156].mxu0 %v12707_v23 }
 0x2f9   :  { %3966 = vmatmul.mubr.bf16.gmra.mrb[188].mxu1 %v12707_v23  ;;  %3589 = vmatprep.mubr.bf16.mxu0 %v12729_v17  ;;  %v11255_v23 = vld [vmem:[#allocation6 + $0x200] ss:$16 sps:$4 sm:$0xff]  }
 0x2fa   :  { %3975 = vmatprep.mubr.bf16.mxu1 %v12729_v17  ;;  %v11264_v17 = vld [vmem:[#allocation6 + $0x228] ss:$16 sps:$4 sm:$0xff]  }
 0x300   :  { %3590 = vmatmul.mubr.bf16.gmra.mrb[160].mxu0 %v12725_v53 }
 0x301   :  { %3976 = vmatmul.mubr.bf16.gmra.mrb[192].mxu1 %v12725_v53  ;;  %3599 = vmatprep.mubr.bf16.mxu0 %v12753_v24  ;;  %v11263_v53 = vld [vmem:[#allocation6 + $0x224] ss:$16 sps:$4 sm:$0xff]  }
 0x302   :  { %3985 = vmatprep.mubr.bf16.mxu1 %v12753_v24  ;;  %v11269_v24 = vld [vmem:[#allocation6 + $0x244] ss:$16 sps:$4 sm:$0xff]  }
 0x308   :  { %3600 = vmatmul.mubr.bf16.gmra.mrb[164].mxu0 %v12749_v27 }
 0x309   :  { %3986 = vmatmul.mubr.bf16.gmra.mrb[196].mxu1 %v12749_v27  ;;  %3609 = vmatprep.mubr.bf16.mxu0 %v12765_v36  ;;  %v11258_v27 = vld [vmem:[#allocation6 + $0x208] ss:$16 sps:$4 sm:$0xff]  }
 0x30a   :  { %3995 = vmatprep.mubr.bf16.mxu1 %v12765_v36  ;;  %v11267_v36 = vld [vmem:[#allocation6 + $0x240] ss:$16 sps:$4 sm:$0xff]  }
 0x310   :  { %3610 = vmatmul.mubr.bf16.gmra.mrb[168].mxu0 %v12761_v56 }
 0x311   :  { %3996 = vmatmul.mubr.bf16.gmra.mrb[200].mxu1 %v12761_v56  ;;  %3619 = vmatprep.mubr.bf16.mxu0 %v12777_v63  ;;  %v11272_v56 = vld [vmem:[#allocation6 + $0x24c] ss:$16 sps:$4 sm:$0xff]  }
 0x312   :  { %4005 = vmatprep.mubr.bf16.mxu1 %v12777_v63  ;;  %v11275_v63 = vld [vmem:[#allocation6 + $0x264] ss:$16 sps:$4 sm:$0xff]  }
 0x318   :  { %3620 = vmatmul.mubr.bf16.gmra.mrb[172].mxu0 %v12773_v21 }
 0x319   :  { %4006 = vmatmul.mubr.bf16.gmra.mrb[204].mxu1 %v12773_v21  ;;  %5990 = vmatprep.mubr.bf16.mxu0 %v12916_v47  ;;  %v11270_v21 = vld [vmem:[#allocation6 + $0x248] ss:$16 sps:$4 sm:$0xff]  }
 0x31a   :  { %6762 = vmatprep.mubr.bf16.mxu1 %v12916_v47  ;;  %v11273_v47 = vld [vmem:[#allocation6 + $0x260] ss:$16 sps:$4 sm:$0xff]  }
 0x320   :  { %5991 = vmatmul.mubr.bf16.vlgmr.msra.gmra.mrb[176].mxu0 %v12910_v20 }
 0x321   :  { %6763 = vmatmul.mubr.bf16.vlgmr.msra.gmra.mrb[208].mxu1 %v12910_v20  ;;  %6152 = vmatpush1.bf16.msra.mxu0 %v11255_v23  ;;  %v11278_v20 = vld [vmem:[#allocation6 + $0x26c] ss:$16 sps:$4 sm:$0xff]   ;;  %v11312_v23 = vld [vmem:[#allocation6 + $0x328] ss:$16 sps:$4 sm:$0xff]  }
 0x322   :  { %6000 = vmatprep.mubr.bf16.mxu0 %v12936_v28  ;;  %6772 = vmatprep.mubr.bf16.mxu1 %v12936_v28  ;;  %v11276_v28 = vld [vmem:[#allocation6 + $0x268] ss:$16 sps:$4 sm:$0xff]  }
 0x323   :  { %6924 = vmatpush1.bf16.msra.mxu1 %v11258_v27  ;;  %6153 = vmatprep.subr.bf16.mxu0 %v11263_v53  ;;  %v11317_v27 = vld [vmem:[#allocation6 + $0x344] ss:$16 sps:$4 sm:$0xff]   ;;  %v11320_v53 = vld [vmem:[#allocation6 + $0x34c] ss:$16 sps:$4 sm:$0xff]  }
 0x324   :  { %6925 = vmatprep.subr.bf16.mxu1 %v11266_v42  ;;  %v11315_v42 = vld [vmem:[#allocation6 + $0x340] ss:$16 sps:$4 sm:$0xff]  }
 0x325   :  { %6154 = vmatpush1.bf16.msra.mxu0 %v11261_v15  ;;  %v11318_v15 = vld [vmem:[#allocation6 + $0x348] ss:$16 sps:$4 sm:$0xff]  }
 0x326   :  { %6155 = vmatprep.subr.bf16.mxu0 %v11269_v24  ;;  %v11326_v24 = vld [vmem:[#allocation6 + $0x36c] ss:$16 sps:$4 sm:$0xff]  }
 0x327   :  { %6926 = vmatpush1.bf16.msra.mxu1 %v11264_v17  ;;  %v11323_v17 = vld [vmem:[#allocation6 + $0x364] ss:$16 sps:$4 sm:$0xff]  }
 0x328   :  { %6927 = vmatprep.subr.bf16.mxu1 %v11272_v56  ;;  %6001 = vmatmul.mubr.bf16.gmra.mrb[180].mxu0 %v12932_v4  ;;  %v14309_v56 = vld [vmem:[#allocation44_spill] sm:$0xff] }
 0x329   :  { %6773 = vmatmul.mubr.bf16.gmra.mrb[212].mxu1 %v12932_v4  ;;  %6010 = vmatprep.mubr.bf16.mxu0 %v12956_v22  ;;  %v11290_v4 = vld [vmem:[#allocation6 + $0x2ac] ss:$16 sps:$4 sm:$0xff]  }
 0x32a   :  { %6782 = vmatprep.mubr.bf16.mxu1 %v12956_v22  ;;  %6156 = vmatpush1.bf16.msra.mxu0 %v11267_v36  ;;  %v11285_v22 = vld [vmem:[#allocation6 + $0x2a0] ss:$16 sps:$4 sm:$0xff]   ;;  %v14310_v36 = vld [vmem:[#allocation16_spill] sm:$0xff] }
 0x32b   :  { %6928 = vmatpush1.bf16.msra.mxu1 %v11270_v21  ;;  %6157 = vmatprep.subr.bf16.mxu0 %v11275_v63  ;;  %v11321_v21 = vld [vmem:[#allocation6 + $0x360] ss:$16 sps:$4 sm:$0xff]   ;;  %v11324_v63 = vld [vmem:[#allocation6 + $0x368] ss:$16 sps:$4 sm:$0xff]  }
 0x32c   :  { %6929 = vmatprep.subr.bf16.mxu1 %v11278_v20  ;;  %v11329_v20 = vld [vmem:[#allocation6 + $0x384] ss:$16 sps:$4 sm:$0xff]  }
 0x32e   :  { %6158 = vmatpush1.bf16.msra.mxu0 %v11273_v47  ;;  %v11332_v47 = vld [vmem:[#allocation6 + $0x38c] ss:$16 sps:$4 sm:$0xff]  }
 0x32f   :  { %6930 = vmatpush1.bf16.msra.mxu1 %v11276_v28  ;;  %6159 = vmatprep.subr.bf16.mxu0 %v11281_v14  ;;  %v11327_v28 = vld [vmem:[#allocation6 + $0x380] ss:$16 sps:$4 sm:$0xff]   ;;  %v11330_v14 = vld [vmem:[#allocation6 + $0x388] ss:$16 sps:$4 sm:$0xff]  }
 0x330   :  { %6931 = vmatprep.subr.bf16.mxu1 %v11284_v16  ;;  %6011 = vmatmul.mubr.bf16.gmra.mrb[184].mxu0 %v12952_v26  ;;  %v11335_v16 = vld [vmem:[#allocation6 + $0x3a4] ss:$16 sps:$4 sm:$0xff]  }
 0x331   :  { %6783 = vmatmul.mubr.bf16.gmra.mrb[216].mxu1 %v12952_v26  ;;  %6020 = vmatprep.mubr.bf16.mxu0 %v12976_v57  ;;  %v11302_v26 = vld [vmem:[#allocation6 + $0x2ec] ss:$16 sps:$4 sm:$0xff]  }
 0x332   :  { %6792 = vmatprep.mubr.bf16.mxu1 %v12976_v57  ;;  %6160 = vmatpush1.bf16.msra.mxu0 %v11279_v31  ;;  %v11297_v57 = vld [vmem:[#allocation6 + $0x2e0] ss:$16 sps:$4 sm:$0xff]   ;;  %v11338_v31 = vld [vmem:[#allocation6 + $0x3ac] ss:$16 sps:$4 sm:$0xff]  }
 0x333   :  { %6932 = vmatpush1.bf16.msra.mxu1 %v11282_v19  ;;  %6161 = vmatprep.subr.bf16.mxu0 %v11287_v48  ;;  %v14311_v19 = vld [vmem:[#allocation48_spill] sm:$0xff]  ;;  %v11333_v48 = vld [vmem:[#allocation6 + $0x3a0] ss:$16 sps:$4 sm:$0xff]  }
 0x334   :  { %6933 = vmatprep.subr.bf16.mxu1 %v11290_v4  ;;  %v11336_v4 = vld [vmem:[#allocation6 + $0x3a8] ss:$16 sps:$4 sm:$0xff]  }
 0x336   :  { %6162 = vmatpush1.bf16.msra.mxu0 %v11285_v22  ;;  %v11341_v22 = vld [vmem:[#allocation6 + $0x3c4] ss:$16 sps:$4 sm:$0xff]  }
 0x337   :  { %6934 = vmatpush1.bf16.msra.mxu1 %v11288_v1  ;;  %6163 = vmatprep.subr.bf16.mxu0 %v11293_v49  ;;  %v11344_v1 = vld [vmem:[#allocation6 + $0x3cc] ss:$16 sps:$4 sm:$0xff]   ;;  %v11339_v49 = vld [vmem:[#allocation6 + $0x3c0] ss:$16 sps:$4 sm:$0xff]  }
 0x338   :  { %6935 = vmatprep.subr.bf16.mxu1 %v11296_v62  ;;  %6021 = vmatmul.mubr.bf16.gmra.mrb[188].mxu0 %v12972_v12  ;;  %v11342_v62 = vld [vmem:[#allocation6 + $0x3c8] ss:$16 sps:$4 sm:$0xff]  }
 0x339   :  { %6793 = vmatmul.mubr.bf16.gmra.mrb[220].mxu1 %v12972_v12  ;;  %6030 = vmatprep.mubr.bf16.mxu0 %v12996_v9  ;;  %v11314_v12 = vld [vmem:[#allocation6 + $0x32c] ss:$16 sps:$4 sm:$0xff]  }
 0x33a   :  { %6802 = vmatprep.mubr.bf16.mxu1 %v12996_v9  ;;  %6164 = vmatpush1.bf16.msra.mxu0 %v11291_v39  ;;  %v14308_v9 = vld [vmem:[#allocation46_spill] sm:$0xff]  ;;  %v11347_v39 = vld [vmem:[#allocation6 + $0x3e4] ss:$16 sps:$4 sm:$0xff]  }
 0x33b   :  { %6936 = vmatpush1.bf16.msra.mxu1 %v11294_v44  ;;  %6165 = vmatprep.subr.bf16.mxu0 %v11299_v60  ;;  %v11350_v44 = vld [vmem:[#allocation6 + $0x3ec] ss:$16 sps:$4 sm:$0xff]   ;;  %v11348_v60 = vld [vmem:[#allocation6 + $0x3e8] ss:$16 sps:$4 sm:$0xff]  }
 0x33c   :  { %6937 = vmatprep.subr.bf16.mxu1 %v11302_v26  ;;  %v11353_v26 = vld [vmem:[#allocation6 + $0x404] ss:$16 sps:$4 sm:$0xff]  }
 0x33e   :  { %6166 = vmatpush1.bf16.msra.mxu0 %v11297_v57  ;;  %v11356_v57 = vld [vmem:[#allocation6 + $0x40c] ss:$16 sps:$4 sm:$0xff]  }
 0x33f   :  { %6938 = vmatpush1.bf16.msra.mxu1 %v11300_v50  ;;  %6167 = vmatprep.subr.bf16.mxu0 %v11305_v43 }
 0x340   :  { %6939 = vmatprep.subr.bf16.mxu1 %v11308_v54  ;;  %6031 = vmatmul.mubr.bf16.gmra.mrb[192].mxu0 %v14307_v8 }
 0x341   :  { %6803 = vmatmul.mubr.bf16.gmra.mrb[224].mxu1 %v14307_v8  ;;  %6040 = vmatprep.mubr.bf16.mxu0 %v14308_v9 }
 0x342   :  { %6812 = vmatprep.mubr.bf16.mxu1 %v14308_v9  ;;  %6168 = vmatpush1.bf16.msra.mxu0 %v11303_v33 }
 0x343   :  { %6940 = vmatpush1.bf16.msra.mxu1 %v11306_v7  ;;  %6169 = vmatprep.subr.bf16.mxu0 %v11311_v0 }
 0x344   :  { %6941 = vmatprep.subr.bf16.mxu1 %v11314_v12 }
 0x346   :  { %6170 = vmatpush1.bf16.msra.mxu0 %v11309_v18 }
 0x347   :  { %6942 = vmatpush1.bf16.msra.mxu1 %v11312_v23  ;;  %6171 = vmatprep.subr.bf16.mxu0 %v11317_v27 }
 0x348   :  { %6943 = vmatprep.subr.bf16.mxu1 %v11320_v53  ;;  %6041 = vmatmul.mubr.bf16.gmra.mrb[196].mxu0 %v14309_v56 }
 0x349   :  { %6813 = vmatmul.mubr.bf16.gmra.mrb[228].mxu1 %v14309_v56  ;;  %6050 = vmatprep.mubr.bf16.mxu0 %v14310_v36 }
 0x34a   :  { %6822 = vmatprep.mubr.bf16.mxu1 %v14310_v36  ;;  %6172 = vmatpush1.bf16.msra.mxu0 %v11315_v42 }
 0x34b   :  { %6944 = vmatpush1.bf16.msra.mxu1 %v11318_v15  ;;  %6173 = vmatprep.subr.bf16.mxu0 %v11323_v17 }
 0x34c   :  { %6945 = vmatprep.subr.bf16.mxu1 %v11326_v24 }
 0x34e   :  { %6174 = vmatpush1.bf16.msra.mxu0 %v11321_v21 }
 0x34f   :  { %6946 = vmatpush1.bf16.msra.mxu1 %v11324_v63  ;;  %6175 = vmatprep.subr.bf16.mxu0 %v11329_v20 }
 0x350   :  { %6947 = vmatprep.subr.bf16.mxu1 %v11332_v47  ;;  %6051 = vmatmul.mubr.bf16.gmra.mrb[200].mxu0 %v14311_v19 }
 0x351   :  { %6823 = vmatmul.mubr.bf16.gmra.mrb[232].mxu1 %v14311_v19  ;;  %6060 = vmatprep.mubr.bf16.mxu0 %v13056_v45 }
 0x352   :  { %6832 = vmatprep.mubr.bf16.mxu1 %v13056_v45  ;;  %6176 = vmatpush1.bf16.msra.mxu0 %v11327_v28  ;;  %v11345_v45 = vld [vmem:[#allocation6 + $0x3e0] ss:$16 sps:$4 sm:$0xff]  }
 0x353   :  { %6948 = vmatpush1.bf16.msra.mxu1 %v11330_v14  ;;  %6177 = vmatprep.subr.bf16.mxu0 %v11335_v16 }
 0x354   :  { %6949 = vmatprep.subr.bf16.mxu1 %v11338_v31 }
 0x356   :  { %6178 = vmatpush1.bf16.msra.mxu0 %v11333_v48 }
 0x357   :  { %6950 = vmatpush1.bf16.msra.mxu1 %v11336_v4  ;;  %6179 = vmatprep.subr.bf16.mxu0 %v11341_v22 }
 0x358   :  { %6951 = vmatprep.subr.bf16.mxu1 %v11344_v1  ;;  %6061 = vmatmul.mubr.bf16.gmra.mrb[204].mxu0 %v13052_v51 }
 0x359   :  { %6833 = vmatmul.mubr.bf16.gmra.mrb[236].mxu1 %v13052_v51  ;;  %6070 = vmatprep.mubr.bf16.mxu0 %v13074_v2  ;;  %v14312_v51 = vld [vmem:[#allocation13_spill] sm:$0xff] }
 0x35a   :  { %6842 = vmatprep.mubr.bf16.mxu1 %v13074_v2  ;;  %6180 = vmatpush1.bf16.msra.mxu0 %v11339_v49  ;;  %v1170_v2 = vsub.s32 4, %v14312_v51  ;;  %v1178_v50 = vsub.s32 6, %v14312_v51  ;;  %v1174_v43 = vsub.s32 5, %v14312_v51 }
 0x35b   :  { %6952 = vmatpush1.bf16.msra.mxu1 %v11342_v62  ;;  %6181 = vmatprep.subr.bf16.mxu0 %v11347_v39 }
 0x35c   :  { %6953 = vmatprep.subr.bf16.mxu1 %v11350_v44 }
 0x35e   :  { %6182 = vmatpush1.bf16.msra.mxu0 %v11345_v45 }
 0x35f   :  { %6954 = vmatpush1.bf16.msra.mxu1 %v11348_v60  ;;  %6344 = vmatprep.subr.bf16.mxu0 %v11353_v26 }
 0x360   :  { %7116 = vmatprep.subr.bf16.mxu1 %v11356_v57  ;;  %6071 = vmatmul.mubr.bf16.gmra.mrb[208].mxu0 %v13070_v40 }
 0x361   :  { %6843 = vmatmul.mubr.bf16.gmra.mrb[240].mxu1 %v13070_v40  ;;  %6080 = vmatprep.mubr.bf16.mxu0 %v13094_v25  ;;  %v1182_v40 = vsub.s32 7, %v14312_v51 }
 0x362   :  { %6852 = vmatprep.mubr.bf16.mxu1 %v13094_v25 }
 0x368   :  { %6081 = vmatmul.mubr.bf16.gmra.mrb[212].mxu0 %v13090_v58 }
 0x369   :  { %6853 = vmatmul.mubr.bf16.gmra.mrb[244].mxu1 %v13090_v58  ;;  %6090 = vmatprep.mubr.bf16.mxu0 %v13114_v46  ;;  %v11715_v58 = vld [vmem:[%s14060_s4] sm:$0xff] }
 0x36a   :  { %6862 = vmatprep.mubr.bf16.mxu1 %v13114_v46  ;;  %v13287_v25 = vrot.slane %v11715_v58, %v1170_v2  ;;  %v13289_v54 = vrot.slane %v11715_v58, %v1178_v50  ;;  %v13293_v46 = vrot.slane %v11715_v58, %v1174_v43  ;;  %v13295_v33 = vrot.slane %v11715_v58, %v1182_v40 }
 0x370   :  { %6091 = vmatmul.mubr.bf16.gmra.mrb[216].mxu0 %v13110_v30 }
 0x371   :  { %6863 = vmatmul.mubr.bf16.gmra.mrb[248].mxu1 %v13110_v30  ;;  %6100 = vmatprep.mubr.bf16.mxu0 %v13134_v10 }
 0x372   :  { %6872 = vmatprep.mubr.bf16.mxu1 %v13134_v10 }
 0x373   :  { %v3471_v7 = vpop.f32.mrb[112].mxu0 }
 0x374   :  { %v3857_v0 = vpop.f32.mrb[144].mxu1  ;;  %v10224_v30 = vadd.f32 %v3471_v7, %v13287_v25  ;;  %v3473_v8 = vpop.f32.mrb[113].mxu0 }
 0x375   :  { %v10288_v12 = vadd.f32 %v3857_v0, %v13289_v54  ;;  %v3859_v9 = vpop.f32.mrb[145].mxu1  ;;  %v10225_v18 = vadd.f32 %v3473_v8, %v13293_v46  ;;  %v3475_v27 = vpop.f32.mrb[114].mxu0 }
 0x376   :  { %v10289_v23 = vadd.f32 %v3859_v9, %v13295_v33  ;;  %v3861_v53 = vpop.f32.mrb[146].mxu1  ;;  %v10226_v10 = vadd.f32 %v3475_v27, %v13287_v25  ;;  %v3477_v15 = vpop.f32.mrb[115].mxu0  ;;  %v4020_v36 = vmax.f32 %v10224_v30, 0.0 }
 0x377   :  { %v10290_v42 = vadd.f32 %v3861_v53, %v13289_v54  ;;  %v3863_v17 = vpop.f32.mrb[147].mxu1  ;;  %v10227_v24 = vadd.f32 %v3477_v15, %v13293_v46  ;;  %v4022_v21 = vmax.f32 %v10288_v12, 0.0  ;;  %v4021_v47 = vmax.f32 %v10225_v18, 0.0 }
 0x378   :  { %v10291_v56 = vadd.f32 %v3863_v17, %v13295_v33  ;;  %v4028_v63 = vmax.f32 %v10226_v10, 0.0  ;;  %6101 = vmatmul.mubr.bf16.gmra.mrb[220].mxu0 %v13130_v5  ;;  %v4023_v28 = vmax.f32 %v10289_v23, 0.0 }
 0x379   :  { %v4030_v20 = vmax.f32 %v10290_v42, 0.0  ;;  %6873 = vmatmul.mubr.bf16.gmra.mrb[252].mxu1 %v13130_v5  ;;  %v4029_v14 = vmax.f32 %v10227_v24, 0.0  ;;  %6110 = vmatprep.mubr.bf16.mxu0 %v13154_v6 }
 0x37a   :  { %v4031_v16 = vmax.f32 %v10291_v56, 0.0  ;;  %6882 = vmatprep.mubr.bf16.mxu1 %v13154_v6  ;;  %v13309_v31 = vpack.c.bf16 %v4028_v63, %v4020_v36 }
 0x37b   :  { %v13311_v19 = vpack.c.bf16 %v4030_v20, %v4022_v21  ;;  %v13313_v48 = vpack.c.bf16 %v4029_v14, %v4021_v47  ;;  %v3481_v22 = vpop.f32.mrb[116].mxu0 }
 0x37c   :  { %v13315_v4 = vpack.c.bf16 %v4031_v16, %v4023_v28  ;;  %v3867_v1 = vpop.f32.mrb[148].mxu1  ;;  %v10228_v5 = vadd.f32 %v3481_v22, %v13287_v25  ;;  %v3483_v62 = vpop.f32.mrb[117].mxu0 }
 0x37d   :  { %v10292_v49 = vadd.f32 %v3867_v1, %v13289_v54  ;;  %v3869_v39 = vpop.f32.mrb[149].mxu1  ;;  %v10229_v44 = vadd.f32 %v3483_v62, %v13293_v46  ;;  %v3485_v45 = vpop.f32.mrb[118].mxu0 }
 0x37e   :  { %v10293_v6 = vadd.f32 %v3869_v39, %v13295_v33  ;;  %v3871_v60 = vpop.f32.mrb[150].mxu1  ;;  %v10230_v26 = vadd.f32 %v3485_v45, %v13287_v25  ;;  %v3487_v51 = vpop.f32.mrb[119].mxu0  ;;  %v4036_v40 = vmax.f32 %v10228_v5, 0.0 }
 0x37f   :  { %v10294_v57 = vadd.f32 %v3871_v60, %v13289_v54  ;;  %v3873_v2 = vpop.f32.mrb[151].mxu1  ;;  %v10231_v50 = vadd.f32 %v3487_v51, %v13293_v46  ;;  %v4038_v58 = vmax.f32 %v10292_v49, 0.0  ;;  %v4037_v30 = vmax.f32 %v10229_v44, 0.0 }
 0x380   :  { %v10295_v43 = vadd.f32 %v3873_v2, %v13295_v33  ;;  %v4044_v7 = vmax.f32 %v10230_v26, 0.0  ;;  %6111 = vmatmul.mubr.bf16.gmra.mrb[224].mxu0 %v13150_v52  ;;  %v4039_v12 = vmax.f32 %v10293_v6, 0.0 }
 0x381   :  { %v4046_v0 = vmax.f32 %v10294_v57, 0.0  ;;  %6883 = vmatmul.mubr.bf16.gmra.mrb[0].mxu1 %v13150_v52  ;;  %v4045_v8 = vmax.f32 %v10231_v50, 0.0  ;;  %6120 = vmatprep.mubr.bf16.mxu0 %v13174_v37 }
 0x382   :  { %v4047_v9 = vmax.f32 %v10295_v43, 0.0  ;;  %6892 = vmatprep.mubr.bf16.mxu1 %v13174_v37  ;;  %v13329_v18 = vpack.c.bf16 %v4044_v7, %v4036_v40 }
 0x383   :  { %v13331_v23 = vpack.c.bf16 %v4046_v0, %v4038_v58  ;;  %v13333_v27 = vpack.c.bf16 %v4045_v8, %v4037_v30  ;;  %v3491_v10 = vpop.f32.mrb[120].mxu0 }
 0x384   :  { %v13335_v53 = vpack.c.bf16 %v4047_v9, %v4039_v12  ;;  %v3877_v42 = vpop.f32.mrb[152].mxu1  ;;  %v10232_v52 = vadd.f32 %v3491_v10, %v13287_v25  ;;  %v3493_v17 = vpop.f32.mrb[121].mxu0 }
 0x385   :  { %14313 = vst [vmem:[#allocation37_spill] sm:$0xff] %v13331_v23  ;;  %v10296_v15 = vadd.f32 %v3877_v42, %v13289_v54  ;;  %v3879_v24 = vpop.f32.mrb[153].mxu1  ;;  %v10233_v56 = vadd.f32 %v3493_v17, %v13293_v46  ;;  %v3495_v36 = vpop.f32.mrb[122].mxu0  ;;  %v14350_v23 = vld [vmem:[#allocation20_spill] sm:$0xff] }
 0x386   :  { %v10297_v37 = vadd.f32 %v3879_v24, %v13295_v33  ;;  %v3881_v21 = vpop.f32.mrb[154].mxu1  ;;  %v10234_v63 = vadd.f32 %v3495_v36, %v13287_v25  ;;  %v3497_v47 = vpop.f32.mrb[123].mxu0  ;;  %v4052_v22 = vmax.f32 %v10232_v52, 0.0 }
 0x387   :  { %v10298_v20 = vadd.f32 %v3881_v21, %v13289_v54  ;;  %v3883_v28 = vpop.f32.mrb[155].mxu1  ;;  %v10235_v14 = vadd.f32 %v3497_v47, %v13293_v46  ;;  %v4054_v1 = vmax.f32 %v10296_v15, 0.0  ;;  %v4053_v62 = vmax.f32 %v10233_v56, 0.0 }
 0x388   :  { %v10299_v16 = vadd.f32 %v3883_v28, %v13295_v33  ;;  %v4060_v5 = vmax.f32 %v10234_v63, 0.0  ;;  %6121 = vmatmul.mubr.bf16.gmra.mrb[228].mxu0 %v13170_v35  ;;  %v4055_v39 = vmax.f32 %v10297_v37, 0.0 }
 0x389   :  { %v4062_v49 = vmax.f32 %v10298_v20, 0.0  ;;  %6893 = vmatmul.mubr.bf16.gmra.mrb[4].mxu1 %v13170_v35  ;;  %v4061_v44 = vmax.f32 %v10235_v14, 0.0  ;;  %6130 = vmatprep.mubr.bf16.mxu0 %v13194_v11 }
 0x38a   :  { %v4063_v6 = vmax.f32 %v10299_v16, 0.0  ;;  %6902 = vmatprep.mubr.bf16.mxu1 %v13194_v11  ;;  %v13349_v45 = vpack.c.bf16 %v4060_v5, %v4052_v22 }
 0x38b   :  { %v13351_v60 = vpack.c.bf16 %v4062_v49, %v4054_v1  ;;  %v13353_v26 = vpack.c.bf16 %v4061_v44, %v4053_v62  ;;  %v3501_v51 = vpop.f32.mrb[124].mxu0 }
 0x38c   :  { %v13355_v57 = vpack.c.bf16 %v4063_v6, %v4055_v39  ;;  %v3887_v2 = vpop.f32.mrb[156].mxu1  ;;  %v10236_v35 = vadd.f32 %v3501_v51, %v13287_v25  ;;  %v3503_v43 = vpop.f32.mrb[125].mxu0 }
 0x38d   :  { %14314 = vst [vmem:[#allocation41_spill] sm:$0xff] %v13351_v60  ;;  %v10300_v50 = vadd.f32 %v3887_v2, %v13289_v54  ;;  %v3889_v40 = vpop.f32.mrb[157].mxu1  ;;  %v10237_v58 = vadd.f32 %v3503_v43, %v13293_v46  ;;  %v3505_v7 = vpop.f32.mrb[126].mxu0  ;;  %v14346_v60 = vld [vmem:[#allocation18_spill] sm:$0xff] }
 0x38e   :  { %14315 = vst [vmem:[#allocation43_spill] sm:$0xff] %v13355_v57  ;;  %v10301_v11 = vadd.f32 %v3889_v40, %v13295_v33  ;;  %v3891_v0 = vpop.f32.mrb[158].mxu1  ;;  %v10238_v30 = vadd.f32 %v3505_v7, %v13287_v25  ;;  %v3507_v8 = vpop.f32.mrb[127].mxu0  ;;  %v4068_v52 = vmax.f32 %v10236_v35, 0.0 }
 0x38f   :  { %v10302_v12 = vadd.f32 %v3891_v0, %v13289_v54  ;;  %v3893_v9 = vpop.f32.mrb[159].mxu1  ;;  %v10239_v10 = vadd.f32 %v3507_v8, %v13293_v46  ;;  %v4070_v15 = vmax.f32 %v10300_v50, 0.0  ;;  %v4069_v56 = vmax.f32 %v10237_v58, 0.0  ;;  %v14318_v8 = vld [vmem:[#allocation28_spill] sm:$0xff] }
 0x390   :  { %v10303_v42 = vadd.f32 %v3893_v9, %v13295_v33  ;;  %v4076_v17 = vmax.f32 %v10238_v30, 0.0  ;;  %6131 = vmatmul.mubr.bf16.gmra.mrb[232].mxu0 %v13190_v61  ;;  %v4071_v37 = vmax.f32 %v10301_v11, 0.0 }
 0x391   :  { %v4078_v24 = vmax.f32 %v10302_v12, 0.0  ;;  %6903 = vmatmul.mubr.bf16.gmra.mrb[8].mxu1 %v13190_v61  ;;  %v4077_v36 = vmax.f32 %v10239_v10, 0.0  ;;  %6140 = vmatprep.mubr.bf16.mxu0 %v13214_v29 }
 0x392   :  { %v4079_v21 = vmax.f32 %v10303_v42, 0.0  ;;  %6912 = vmatprep.mubr.bf16.mxu1 %v13214_v29  ;;  %v13369_v63 = vpack.c.bf16 %v4076_v17, %v4068_v52 }
 0x393   :  { %v13371_v20 = vpack.c.bf16 %v4078_v24, %v4070_v15  ;;  %v13373_v47 = vpack.c.bf16 %v4077_v36, %v4069_v56  ;;  %v3511_v14 = vpop.f32.mrb[128].mxu0 }
 0x394   :  { %v13375_v28 = vpack.c.bf16 %v4079_v21, %v4071_v37  ;;  %v3897_v16 = vpop.f32.mrb[160].mxu1  ;;  %v10240_v61 = vadd.f32 %v3511_v14, %v13287_v25  ;;  %v3513_v1 = vpop.f32.mrb[129].mxu0 }
 0x395   :  { %14316 = vst [vmem:[#allocation46_spill] sm:$0xff] %v13371_v20  ;;  %v10304_v22 = vadd.f32 %v3897_v16, %v13289_v54  ;;  %v3899_v5 = vpop.f32.mrb[161].mxu1  ;;  %v10241_v49 = vadd.f32 %v3513_v1, %v13293_v46  ;;  %v3515_v62 = vpop.f32.mrb[130].mxu0  ;;  %v14342_v20 = vld [vmem:[#allocation17_spill] sm:$0xff] }
 0x396   :  { %14317 = vst [vmem:[#allocation44_spill] sm:$0xff] %v13375_v28  ;;  %v10305_v29 = vadd.f32 %v3899_v5, %v13295_v33  ;;  %v3901_v39 = vpop.f32.mrb[162].mxu1  ;;  %v10242_v44 = vadd.f32 %v3515_v62, %v13287_v25  ;;  %v3517_v51 = vpop.f32.mrb[131].mxu0  ;;  %v4084_v43 = vmax.f32 %v10240_v61, 0.0  ;;  %v11351_v61 = vld [vmem:[#allocation6 + $0x400] ss:$16 sps:$4 sm:$0xff]  }
 0x397   :  { %v10306_v6 = vadd.f32 %v3901_v39, %v13289_v54  ;;  %v3903_v2 = vpop.f32.mrb[163].mxu1  ;;  %v10243_v35 = vadd.f32 %v3517_v51, %v13293_v46  ;;  %v4086_v40 = vmax.f32 %v10304_v22, 0.0  ;;  %v4085_v7 = vmax.f32 %v10241_v49, 0.0 }
 0x398   :  { %v10307_v50 = vadd.f32 %v3903_v2, %v13295_v33  ;;  %v4092_v58 = vmax.f32 %v10242_v44, 0.0  ;;  %6141 = vmatmul.mubr.bf16.gmra.mrb[236].mxu0 %v13210_v59  ;;  %v4087_v0 = vmax.f32 %v10305_v29, 0.0  ;;  %v11354_v29 = vld [vmem:[#allocation6 + $0x408] ss:$16 sps:$4 sm:$0xff]   ;;  %v11359_v44 = vld [vmem:[#allocation6 + $0x424] ss:$16 sps:$4 sm:$0xff]  }
 0x399   :  { %v4094_v11 = vmax.f32 %v10306_v6, 0.0  ;;  %6913 = vmatmul.mubr.bf16.gmra.mrb[12].mxu1 %v13210_v59  ;;  %v4093_v30 = vmax.f32 %v10243_v35, 0.0  ;;  %6183 = vmatprep.mubr.bf16.mxu0 %v14318_v8  ;;  %v11362_v6 = vld [vmem:[#allocation6 + $0x42c] ss:$16 sps:$4 sm:$0xff]  }
 0x39a   :  { %v4095_v12 = vmax.f32 %v10307_v50, 0.0  ;;  %6955 = vmatprep.mubr.bf16.mxu1 %v14318_v8  ;;  %v13389_v9 = vpack.c.bf16 %v4092_v58, %v4084_v43  ;;  %v14321_v43 = vld [vmem:[#allocation24_spill] sm:$0xff] }
 0x39b   :  { %v13391_v10 = vpack.c.bf16 %v4094_v11, %v4086_v40  ;;  %v13393_v42 = vpack.c.bf16 %v4093_v30, %v4085_v7  ;;  %v3521_v15 = vpop.f32.mrb[132].mxu0  ;;  %v11357_v30 = vld [vmem:[#allocation6 + $0x420] ss:$16 sps:$4 sm:$0xff]  }
 0x39c   :  { %v13395_v52 = vpack.c.bf16 %v4095_v12, %v4087_v0  ;;  %v3907_v17 = vpop.f32.mrb[164].mxu1  ;;  %v10244_v59 = vadd.f32 %v3521_v15, %v13287_v25  ;;  %v3523_v56 = vpop.f32.mrb[133].mxu0  ;;  %v14322_v0 = vld [vmem:[#allocation32_spill] sm:$0xff] }
 0x39d   :  { %14319 = vst [vmem:[#allocation16_spill] sm:$0xff] %v13391_v10  ;;  %v10308_v24 = vadd.f32 %v3907_v17, %v13289_v54  ;;  %v3909_v37 = vpop.f32.mrb[165].mxu1  ;;  %v10245_v36 = vadd.f32 %v3523_v56, %v13293_v46  ;;  %v3525_v14 = vpop.f32.mrb[134].mxu0  ;;  %v11360_v15 = vld [vmem:[#allocation6 + $0x428] ss:$16 sps:$4 sm:$0xff]   ;;  %v14338_v10 = vld [vmem:[#allocation47_spill] sm:$0xff] }
 0x39e   :  { %14320 = vst [vmem:[#allocation48_spill] sm:$0xff] %v13395_v52  ;;  %v10309_v21 = vadd.f32 %v3909_v37, %v13295_v33  ;;  %v3911_v16 = vpop.f32.mrb[166].mxu1  ;;  %v10246_v22 = vadd.f32 %v3525_v14, %v13287_v25  ;;  %v3527_v5 = vpop.f32.mrb[135].mxu0  ;;  %v4100_v51 = vmax.f32 %v10244_v59, 0.0  ;;  %v11365_v17 = vld [vmem:[#allocation6 + $0x444] ss:$16 sps:$4 sm:$0xff]  }
 0x39f   :  { %v10310_v1 = vadd.f32 %v3911_v16, %v13289_v54  ;;  %v3913_v49 = vpop.f32.mrb[167].mxu1  ;;  %v10247_v62 = vadd.f32 %v3527_v5, %v13293_v46  ;;  %v4102_v2 = vmax.f32 %v10308_v24, 0.0  ;;  %v4101_v40 = vmax.f32 %v10245_v36, 0.0  ;;  %v11368_v36 = vld [vmem:[#allocation6 + $0x44c] ss:$16 sps:$4 sm:$0xff]  }
 0x3a0   :  { %v10311_v39 = vadd.f32 %v3913_v49, %v13295_v33  ;;  %v4108_v35 = vmax.f32 %v10246_v22, 0.0  ;;  %6184 = vmatmul.mubr.bf16.vlgmr.msra.gmra.mrb[176].mxu0 %v14321_v43  ;;  %v4103_v58 = vmax.f32 %v10309_v21, 0.0 }
 0x3a1   :  { %v4110_v50 = vmax.f32 %v10310_v1, 0.0  ;;  %6956 = vmatmul.mubr.bf16.vlgmr.msra.gmra.mrb[208].mxu1 %v14321_v43  ;;  %v4109_v11 = vmax.f32 %v10247_v62, 0.0  ;;  %6345 = vmatpush1.bf16.msra.mxu0 %v11351_v61  ;;  %v11374_v43 = vld [vmem:[#allocation6 + $0x46c] ss:$16 sps:$4 sm:$0xff]  }
 0x3a2   :  { %v4111_v7 = vmax.f32 %v10311_v39, 0.0  ;;  %6193 = vmatprep.mubr.bf16.mxu0 %v14322_v0  ;;  %v13408_v12 = vpack.c.bf16 %v4108_v35, %v4100_v51  ;;  %6965 = vmatprep.mubr.bf16.mxu1 %v14322_v0  ;;  %v11366_v51 = vld [vmem:[#allocation6 + $0x448] ss:$16 sps:$4 sm:$0xff]   ;;  %v14325_v0 = vld [vmem:[#allocation27_spill] sm:$0xff] }
 0x3a3   :  { %v13410_v8 = vpack.c.bf16 %v4110_v50, %v4102_v2  ;;  %7117 = vmatpush1.bf16.msra.mxu1 %v11354_v29  ;;  %v13413_v59 = vpack.c.bf16 %v4109_v11, %v4101_v40  ;;  %v3531_v56 = vpop.f32.mrb[136].mxu0  ;;  %6346 = vmatprep.subr.bf16.mxu0 %v11359_v44  ;;  %v11371_v50 = vld [vmem:[#allocation6 + $0x464] ss:$16 sps:$4 sm:$0xff]  }
 0x3a4   :  { %v13415_v24 = vpack.c.bf16 %v4111_v7, %v4103_v58  ;;  %v3917_v37 = vpop.f32.mrb[168].mxu1  ;;  %7118 = vmatprep.subr.bf16.mxu1 %v11362_v6  ;;  %v10248_v21 = vadd.f32 %v3531_v56, %v13287_v25  ;;  %v3533_v16 = vpop.f32.mrb[137].mxu0  ;;  %v11363_v6 = vld [vmem:[#allocation6 + $0x440] ss:$16 sps:$4 sm:$0xff]  }
 0x3a5   :  { %14323 = vst [vmem:[#allocation13_spill] sm:$0xff] %v13410_v8  ;;  %v10312_v14 = vadd.f32 %v3917_v37, %v13289_v54  ;;  %v3919_v61 = vpop.f32.mrb[169].mxu1  ;;  %v10249_v22 = vadd.f32 %v3533_v16, %v13293_v46  ;;  %v3535_v5 = vpop.f32.mrb[138].mxu0  ;;  %6347 = vmatpush1.bf16.msra.mxu0 %v11357_v30  ;;  %v14326_v37 = vld [vmem:[#allocation36_spill] sm:$0xff]  ;;  %v14334_v8 = vld [vmem:[#allocation42_spill] sm:$0xff] }
 0x3a6   :  { %14324 = vst [vmem:[#allocation28_spill] sm:$0xff] %v13415_v24  ;;  %v10313_v1 = vadd.f32 %v3919_v61, %v13295_v33  ;;  %v3921_v49 = vpop.f32.mrb[170].mxu1  ;;  %v10250_v29 = vadd.f32 %v3535_v5, %v13287_v25  ;;  %v3537_v39 = vpop.f32.mrb[139].mxu0  ;;  %6348 = vmatprep.subr.bf16.mxu0 %v11365_v17  ;;  %v4116_v40 = vmax.f32 %v10248_v21, 0.0  ;;  %v11369_v21 = vld [vmem:[#allocation6 + $0x460] ss:$16 sps:$4 sm:$0xff]  }
 0x3a7   :  { %v10314_v62 = vadd.f32 %v3921_v49, %v13289_v54  ;;  %v3923_v44 = vpop.f32.mrb[171].mxu1  ;;  %7119 = vmatpush1.bf16.msra.mxu1 %v11360_v15  ;;  %v10251_v2 = vadd.f32 %v3537_v39, %v13293_v46  ;;  %v4118_v58 = vmax.f32 %v10312_v14, 0.0  ;;  %v4117_v30 = vmax.f32 %v10249_v22, 0.0  ;;  %v11372_v14 = vld [vmem:[#allocation6 + $0x468] ss:$16 sps:$4 sm:$0xff]  }
 0x3a8   :  { %v10315_v35 = vadd.f32 %v3923_v44, %v13295_v33  ;;  %7120 = vmatprep.subr.bf16.mxu1 %v11368_v36  ;;  %v4124_v11 = vmax.f32 %v10250_v29, 0.0  ;;  %6194 = vmatmul.mubr.bf16.gmra.mrb[180].mxu0 %v14325_v0  ;;  %v4119_v15 = vmax.f32 %v10313_v1, 0.0  ;;  %v11377_v49 = vld [vmem:[#allocation6 + $0x484] ss:$16 sps:$4 sm:$0xff]   ;;  %v11380_v29 = vld [vmem:[#allocation6 + $0x48c] ss:$16 sps:$4 sm:$0xff]  }
 0x3a9   :  { %v4126_v7 = vmax.f32 %v10314_v62, 0.0  ;;  %6966 = vmatmul.mubr.bf16.gmra.mrb[212].mxu1 %v14325_v0  ;;  %v4125_v56 = vmax.f32 %v10251_v2, 0.0  ;;  %6203 = vmatprep.mubr.bf16.mxu0 %v14326_v37  ;;  %v11378_v0 = vld [vmem:[#allocation6 + $0x488] ss:$16 sps:$4 sm:$0xff]  }
 0x3aa   :  { %v4127_v17 = vmax.f32 %v10315_v35, 0.0  ;;  %6975 = vmatprep.mubr.bf16.mxu1 %v14326_v37  ;;  %v13429_v16 = vpack.c.bf16 %v4124_v11, %v4116_v40  ;;  %6349 = vmatpush1.bf16.msra.mxu0 %v11363_v6 }
 0x3ab   :  { %v13431_v36 = vpack.c.bf16 %v4126_v7, %v4118_v58  ;;  %7121 = vmatpush1.bf16.msra.mxu1 %v11366_v51  ;;  %v13433_v61 = vpack.c.bf16 %v4125_v56, %v4117_v30  ;;  %v3541_v22 = vpop.f32.mrb[140].mxu0  ;;  %6350 = vmatprep.subr.bf16.mxu0 %v11371_v50  ;;  %v11375_v7 = vld [vmem:[#allocation6 + $0x480] ss:$16 sps:$4 sm:$0xff]   ;;  %v11383_v56 = vld [vmem:[#allocation6 + $0x4a4] ss:$16 sps:$4 sm:$0xff]  }
 0x3ac   :  { %v13435_v5 = vpack.c.bf16 %v4127_v17, %v4119_v15  ;;  %v3927_v1 = vpop.f32.mrb[172].mxu1  ;;  %7122 = vmatprep.subr.bf16.mxu1 %v11374_v43  ;;  %v10252_v62 = vadd.f32 %v3541_v22, %v13287_v25  ;;  %v3543_v44 = vpop.f32.mrb[141].mxu0  ;;  %v11386_v17 = vld [vmem:[#allocation6 + $0x4ac] ss:$16 sps:$4 sm:$0xff]  }
 0x3ad   :  { %14327 = vst [vmem:[#allocation24_spill] sm:$0xff] %v13431_v36  ;;  %v10316_v39 = vadd.f32 %v3927_v1, %v13289_v54  ;;  %v3929_v2 = vpop.f32.mrb[173].mxu1  ;;  %v10253_v6 = vadd.f32 %v3543_v44, %v13293_v46  ;;  %v3545_v35 = vpop.f32.mrb[142].mxu0  ;;  %v14330_v36 = vld [vmem:[#allocation40_spill] sm:$0xff] }
 0x3ae   :  { %14328 = vst [vmem:[#allocation32_spill] sm:$0xff] %v13435_v5  ;;  %v10317_v51 = vadd.f32 %v3929_v2, %v13295_v33  ;;  %v3931_v40 = vpop.f32.mrb[174].mxu1  ;;  %v10254_v58 = vadd.f32 %v3545_v35, %v13287_v25  ;;  %v3547_v50 = vpop.f32.mrb[143].mxu0  ;;  %6351 = vmatpush1.bf16.msra.mxu0 %v11369_v21  ;;  %v4132_v37 = vmax.f32 %v10252_v62, 0.0  ;;  %v14329_v2 = vld [vmem:[#allocation31_spill] sm:$0xff] }
 0x3af   :  { %v10318_v11 = vadd.f32 %v3931_v40, %v13289_v54  ;;  %v3933_v43 = vpop.f32.mrb[175].mxu1  ;;  %7123 = vmatpush1.bf16.msra.mxu1 %v11372_v14  ;;  %v10255_v30 = vadd.f32 %v3547_v50, %v13293_v46  ;;  %6352 = vmatprep.subr.bf16.mxu0 %v11377_v49  ;;  %v4134_v22 = vmax.f32 %v10316_v39, 0.0  ;;  %v4133_v21 = vmax.f32 %v10253_v6, 0.0  ;;  %v11381_v62 = vld [vmem:[#allocation6 + $0x4a0] ss:$16 sps:$4 sm:$0xff]  }
 0x3b0   :  { %v10319_v15 = vadd.f32 %v3933_v43, %v13295_v33  ;;  %7124 = vmatprep.subr.bf16.mxu1 %v11380_v29  ;;  %v4140_v1 = vmax.f32 %v10254_v58, 0.0  ;;  %6204 = vmatmul.mubr.bf16.gmra.mrb[184].mxu0 %v14329_v2  ;;  %v4135_v14 = vmax.f32 %v10317_v51, 0.0  ;;  %v11384_v39 = vld [vmem:[#allocation6 + $0x4a8] ss:$16 sps:$4 sm:$0xff]   ;;  %v11389_v50 = vld [vmem:[#allocation6 + $0x4c4] ss:$16 sps:$4 sm:$0xff]  }
 0x3b1   :  { %v4142_v44 = vmax.f32 %v10318_v11, 0.0  ;;  %6976 = vmatmul.mubr.bf16.gmra.mrb[216].mxu1 %v14329_v2  ;;  %v4141_v35 = vmax.f32 %v10255_v30, 0.0  ;;  %6213 = vmatprep.mubr.bf16.mxu0 %v14330_v36  ;;  %v11392_v43 = vld [vmem:[#allocation6 + $0x4cc] ss:$16 sps:$4 sm:$0xff]  }
 0x3b2   :  { %v4143_v40 = vmax.f32 %v10319_v15, 0.0  ;;  %6985 = vmatprep.mubr.bf16.mxu1 %v14330_v36  ;;  %v13449_v49 = vpack.c.bf16 %v4140_v1, %v4132_v37  ;;  %6353 = vmatpush1.bf16.msra.mxu0 %v11375_v7 }
 0x3b3   :  { %v13451_v29 = vpack.c.bf16 %v4142_v44, %v4134_v22  ;;  %7125 = vmatpush1.bf16.msra.mxu1 %v11378_v0  ;;  %v13453_v58 = vpack.c.bf16 %v4141_v35, %v4133_v21  ;;  %v3551_v6 = vpop.f32.mrb[144].mxu0  ;;  %6354 = vmatprep.subr.bf16.mxu0 %v11383_v56  ;;  %v11387_v21 = vld [vmem:[#allocation6 + $0x4c0] ss:$16 sps:$4 sm:$0xff]  }
 0x3b4   :  { %v13455_v11 = vpack.c.bf16 %v4143_v40, %v4135_v14  ;;  %v3937_v51 = vpop.f32.mrb[176].mxu1  ;;  %7126 = vmatprep.subr.bf16.mxu1 %v11386_v17  ;;  %v10256_v36 = vadd.f32 %v3551_v6, %v13287_v25  ;;  %v3553_v15 = vpop.f32.mrb[145].mxu0  ;;  %v11390_v14 = vld [vmem:[#allocation6 + $0x4c8] ss:$16 sps:$4 sm:$0xff]   ;;  %v11395_v6 = vld [vmem:[#allocation6 + $0x4e4] ss:$16 sps:$4 sm:$0xff]  }
 0x3b5   :  { %14331 = vst [vmem:[#allocation27_spill] sm:$0xff] %v13451_v29  ;;  %v10320_v30 = vadd.f32 %v3937_v51, %v13289_v54  ;;  %v3939_v37 = vpop.f32.mrb[177].mxu1  ;;  %v10257_v7 = vadd.f32 %v3553_v15, %v13293_v46  ;;  %v3555_v22 = vpop.f32.mrb[146].mxu0  ;;  %v11398_v51 = vld [vmem:[#allocation6 + $0x4ec] ss:$16 sps:$4 sm:$0xff]  }
 0x3b6   :  { %14332 = vst [vmem:[#allocation36_spill] sm:$0xff] %v13455_v11  ;;  %v10321_v0 = vadd.f32 %v3939_v37, %v13295_v33  ;;  %v3941_v1 = vpop.f32.mrb[178].mxu1  ;;  %v10258_v44 = vadd.f32 %v3555_v22, %v13287_v25  ;;  %v3557_v56 = vpop.f32.mrb[147].mxu0  ;;  %6355 = vmatpush1.bf16.msra.mxu0 %v11381_v62  ;;  %v4148_v15 = vmax.f32 %v10256_v36, 0.0  ;;  %v14333_v11 = vld [vmem:[#allocation35_spill] sm:$0xff] }
 0x3b7   :  { %v10322_v2 = vadd.f32 %v3941_v1, %v13289_v54  ;;  %v3943_v17 = vpop.f32.mrb[179].mxu1  ;;  %7127 = vmatpush1.bf16.msra.mxu1 %v11384_v39  ;;  %v10259_v35 = vadd.f32 %v3557_v56, %v13293_v46  ;;  %6356 = vmatprep.subr.bf16.mxu0 %v11389_v50  ;;  %v4150_v37 = vmax.f32 %v10320_v30, 0.0  ;;  %v4149_v62 = vmax.f32 %v10257_v7, 0.0  ;;  %v11393_v36 = vld [vmem:[#allocation6 + $0x4e0] ss:$16 sps:$4 sm:$0xff]  }
 0x3b8   :  { %v10323_v40 = vadd.f32 %v3943_v17, %v13295_v33  ;;  %7128 = vmatprep.subr.bf16.mxu1 %v11392_v43  ;;  %v4156_v29 = vmax.f32 %v10258_v44, 0.0  ;;  %6214 = vmatmul.mubr.bf16.gmra.mrb[188].mxu0 %v14333_v11  ;;  %v4151_v39 = vmax.f32 %v10321_v0, 0.0  ;;  %v11396_v30 = vld [vmem:[#allocation6 + $0x4e8] ss:$16 sps:$4 sm:$0xff]   ;;  %v11401_v0 = vld [vmem:[#allocation6 + $0x504] ss:$16 sps:$4 sm:$0xff]  }
 0x3b9   :  { %v4158_v22 = vmax.f32 %v10322_v2, 0.0  ;;  %6986 = vmatmul.mubr.bf16.gmra.mrb[220].mxu1 %v14333_v11  ;;  %v4157_v1 = vmax.f32 %v10259_v35, 0.0  ;;  %6223 = vmatprep.mubr.bf16.mxu0 %v14334_v8  ;;  %v11404_v56 = vld [vmem:[#allocation6 + $0x50c] ss:$16 sps:$4 sm:$0xff]  }
 0x3ba   :  { %v4159_v5 = vmax.f32 %v10323_v40, 0.0  ;;  %6995 = vmatprep.mubr.bf16.mxu1 %v14334_v8  ;;  %v13469_v50 = vpack.c.bf16 %v4156_v29, %v4148_v15  ;;  %6357 = vmatpush1.bf16.msra.mxu0 %v11387_v21 }
 0x3bb   :  { %v13471_v43 = vpack.c.bf16 %v4158_v22, %v4150_v37  ;;  %7129 = vmatpush1.bf16.msra.mxu1 %v11390_v14  ;;  %v13473_v44 = vpack.c.bf16 %v4157_v1, %v4149_v62  ;;  %v3561_v11 = vpop.f32.mrb[148].mxu0  ;;  %6358 = vmatprep.subr.bf16.mxu0 %v11395_v6  ;;  %v11399_v22 = vld [vmem:[#allocation6 + $0x500] ss:$16 sps:$4 sm:$0xff]   ;;  %v11402_v62 = vld [vmem:[#allocation6 + $0x508] ss:$16 sps:$4 sm:$0xff]  }
 0x3bc   :  { %v13475_v2 = vpack.c.bf16 %v4159_v5, %v4151_v39  ;;  %v3947_v7 = vpop.f32.mrb[180].mxu1  ;;  %7130 = vmatprep.subr.bf16.mxu1 %v11398_v51  ;;  %v10260_v8 = vadd.f32 %v3561_v11, %v13287_v25  ;;  %v3563_v17 = vpop.f32.mrb[149].mxu0  ;;  %v11407_v11 = vld [vmem:[#allocation6 + $0x524] ss:$16 sps:$4 sm:$0xff]  }
 0x3bd   :  { %14335 = vst [vmem:[#allocation31_spill] sm:$0xff] %v13471_v43  ;;  %v10324_v29 = vadd.f32 %v3947_v7, %v13289_v54  ;;  %v3949_v35 = vpop.f32.mrb[181].mxu1  ;;  %v10261_v21 = vadd.f32 %v3563_v17, %v13293_v46  ;;  %v3565_v40 = vpop.f32.mrb[150].mxu0  ;;  %v11410_v7 = vld [vmem:[#allocation6 + $0x52c] ss:$16 sps:$4 sm:$0xff]  }
 0x3be   :  { %14336 = vst [vmem:[#allocation40_spill] sm:$0xff] %v13475_v2  ;;  %v10325_v14 = vadd.f32 %v3949_v35, %v13295_v33  ;;  %v3951_v15 = vpop.f32.mrb[182].mxu1  ;;  %v10262_v5 = vadd.f32 %v3565_v40, %v13287_v25  ;;  %v3567_v6 = vpop.f32.mrb[151].mxu0  ;;  %6359 = vmatpush1.bf16.msra.mxu0 %v11393_v36  ;;  %v4164_v17 = vmax.f32 %v10260_v8, 0.0  ;;  %v14337_v2 = vld [vmem:[#allocation39_spill] sm:$0xff] }
 0x3bf   :  { %v10326_v37 = vadd.f32 %v3951_v15, %v13289_v54  ;;  %v3953_v51 = vpop.f32.mrb[183].mxu1  ;;  %7131 = vmatpush1.bf16.msra.mxu1 %v11396_v30  ;;  %v10263_v39 = vadd.f32 %v3567_v6, %v13293_v46  ;;  %6360 = vmatprep.subr.bf16.mxu0 %v11401_v0  ;;  %v4166_v35 = vmax.f32 %v10324_v29, 0.0  ;;  %v4165_v36 = vmax.f32 %v10261_v21, 0.0  ;;  %v11405_v8 = vld [vmem:[#allocation6 + $0x520] ss:$16 sps:$4 sm:$0xff]  }
 0x3c0   :  { %v10327_v1 = vadd.f32 %v3953_v51, %v13295_v33  ;;  %7132 = vmatprep.subr.bf16.mxu1 %v11404_v56  ;;  %v4172_v43 = vmax.f32 %v10262_v5, 0.0  ;;  %6224 = vmatmul.mubr.bf16.gmra.mrb[192].mxu0 %v14337_v2  ;;  %v4167_v30 = vmax.f32 %v10325_v14, 0.0  ;;  %v11408_v29 = vld [vmem:[#allocation6 + $0x528] ss:$16 sps:$4 sm:$0xff]   ;;  %v11413_v14 = vld [vmem:[#allocation6 + $0x544] ss:$16 sps:$4 sm:$0xff]  }
 0x3c1   :  { %v4174_v40 = vmax.f32 %v10326_v37, 0.0  ;;  %6996 = vmatmul.mubr.bf16.gmra.mrb[224].mxu1 %v14337_v2  ;;  %v4173_v15 = vmax.f32 %v10263_v39, 0.0  ;;  %6233 = vmatprep.mubr.bf16.mxu0 %v14338_v10  ;;  %v11416_v6 = vld [vmem:[#allocation6 + $0x54c] ss:$16 sps:$4 sm:$0xff]  }
 0x3c2   :  { %v4175_v24 = vmax.f32 %v10327_v1, 0.0  ;;  %7005 = vmatprep.mubr.bf16.mxu1 %v14338_v10  ;;  %v13489_v0 = vpack.c.bf16 %v4172_v43, %v4164_v17  ;;  %6361 = vmatpush1.bf16.msra.mxu0 %v11399_v22 }
 0x3c3   :  { %v13491_v56 = vpack.c.bf16 %v4174_v40, %v4166_v35  ;;  %7133 = vmatpush1.bf16.msra.mxu1 %v11402_v62  ;;  %v13493_v5 = vpack.c.bf16 %v4173_v15, %v4165_v36  ;;  %v3571_v2 = vpop.f32.mrb[152].mxu0  ;;  %6362 = vmatprep.subr.bf16.mxu0 %v11407_v11  ;;  %v11411_v40 = vld [vmem:[#allocation6 + $0x540] ss:$16 sps:$4 sm:$0xff]   ;;  %v11414_v36 = vld [vmem:[#allocation6 + $0x548] ss:$16 sps:$4 sm:$0xff]  }
 0x3c4   :  { %v13495_v37 = vpack.c.bf16 %v4175_v24, %v4167_v30  ;;  %v3957_v21 = vpop.f32.mrb[184].mxu1  ;;  %7134 = vmatprep.subr.bf16.mxu1 %v11410_v7  ;;  %v10264_v10 = vadd.f32 %v3571_v2, %v13287_v25  ;;  %v3573_v51 = vpop.f32.mrb[153].mxu0  ;;  %v11419_v2 = vld [vmem:[#allocation6 + $0x564] ss:$16 sps:$4 sm:$0xff]  }
 0x3c5   :  { %14339 = vst [vmem:[#allocation35_spill] sm:$0xff] %v13491_v56  ;;  %v10328_v43 = vadd.f32 %v3957_v21, %v13289_v54  ;;  %v3959_v39 = vpop.f32.mrb[185].mxu1  ;;  %v10265_v22 = vadd.f32 %v3573_v51, %v13293_v46  ;;  %v3575_v1 = vpop.f32.mrb[154].mxu0  ;;  %v11422_v21 = vld [vmem:[#allocation6 + $0x56c] ss:$16 sps:$4 sm:$0xff]  }
 0x3c6   :  { %14340 = vst [vmem:[#allocation42_spill] sm:$0xff] %v13495_v37  ;;  %v10329_v62 = vadd.f32 %v3959_v39, %v13295_v33  ;;  %v3961_v17 = vpop.f32.mrb[186].mxu1  ;;  %v10266_v24 = vadd.f32 %v3575_v1, %v13287_v25  ;;  %v3577_v11 = vpop.f32.mrb[155].mxu0  ;;  %6363 = vmatpush1.bf16.msra.mxu0 %v11405_v8  ;;  %v4180_v51 = vmax.f32 %v10264_v10, 0.0  ;;  %v14341_v37 = vld [vmem:[#allocation45_spill] sm:$0xff] }
 0x3c7   :  { %v10330_v35 = vadd.f32 %v3961_v17, %v13289_v54  ;;  %v3963_v7 = vpop.f32.mrb[187].mxu1  ;;  %7135 = vmatpush1.bf16.msra.mxu1 %v11408_v29  ;;  %v10267_v30 = vadd.f32 %v3577_v11, %v13293_v46  ;;  %6364 = vmatprep.subr.bf16.mxu0 %v11413_v14  ;;  %v4182_v39 = vmax.f32 %v10328_v43, 0.0  ;;  %v4181_v8 = vmax.f32 %v10265_v22, 0.0  ;;  %v11417_v10 = vld [vmem:[#allocation6 + $0x560] ss:$16 sps:$4 sm:$0xff]  }
 0x3c8   :  { %v10331_v15 = vadd.f32 %v3963_v7, %v13295_v33  ;;  %7136 = vmatprep.subr.bf16.mxu1 %v11416_v6  ;;  %v4188_v56 = vmax.f32 %v10266_v24, 0.0  ;;  %6234 = vmatmul.mubr.bf16.gmra.mrb[196].mxu0 %v14341_v37  ;;  %v4183_v29 = vmax.f32 %v10329_v62, 0.0  ;;  %v11420_v43 = vld [vmem:[#allocation6 + $0x568] ss:$16 sps:$4 sm:$0xff]   ;;  %v11425_v62 = vld [vmem:[#allocation6 + $0x584] ss:$16 sps:$4 sm:$0xff]  }
 0x3c9   :  { %v4190_v1 = vmax.f32 %v10330_v35, 0.0  ;;  %7006 = vmatmul.mubr.bf16.gmra.mrb[228].mxu1 %v14341_v37  ;;  %v4189_v17 = vmax.f32 %v10267_v30, 0.0  ;;  %6243 = vmatprep.mubr.bf16.mxu0 %v14342_v20  ;;  %v11428_v11 = vld [vmem:[#allocation6 + $0x58c] ss:$16 sps:$4 sm:$0xff]  }
 0x3ca   :  { %v4191_v52 = vmax.f32 %v10331_v15, 0.0  ;;  %7015 = vmatprep.mubr.bf16.mxu1 %v14342_v20  ;;  %v13509_v14 = vpack.c.bf16 %v4188_v56, %v4180_v51  ;;  %6365 = vmatpush1.bf16.msra.mxu0 %v11411_v40 }
 0x3cb   :  { %v13511_v6 = vpack.c.bf16 %v4190_v1, %v4182_v39  ;;  %7137 = vmatpush1.bf16.msra.mxu1 %v11414_v36  ;;  %v13513_v24 = vpack.c.bf16 %v4189_v17, %v4181_v8  ;;  %v3581_v37 = vpop.f32.mrb[156].mxu0  ;;  %6366 = vmatprep.subr.bf16.mxu0 %v11419_v2  ;;  %v11423_v1 = vld [vmem:[#allocation6 + $0x580] ss:$16 sps:$4 sm:$0xff]   ;;  %v11426_v8 = vld [vmem:[#allocation6 + $0x588] ss:$16 sps:$4 sm:$0xff]  }
 0x3cc   :  { %v13515_v35 = vpack.c.bf16 %v4191_v52, %v4183_v29  ;;  %v3967_v22 = vpop.f32.mrb[188].mxu1  ;;  %7138 = vmatprep.subr.bf16.mxu1 %v11422_v21  ;;  %v10268_v20 = vadd.f32 %v3581_v37, %v13287_v25  ;;  %v3583_v7 = vpop.f32.mrb[157].mxu0  ;;  %v11431_v37 = vld [vmem:[#allocation6 + $0x5a4] ss:$16 sps:$4 sm:$0xff]  }
 0x3cd   :  { %14343 = vst [vmem:[#allocation39_spill] sm:$0xff] %v13511_v6  ;;  %v10332_v56 = vadd.f32 %v3967_v22, %v13289_v54  ;;  %v3969_v30 = vpop.f32.mrb[189].mxu1  ;;  %v10269_v40 = vadd.f32 %v3583_v7, %v13293_v46  ;;  %v3585_v15 = vpop.f32.mrb[158].mxu0  ;;  %v11434_v22 = vld [vmem:[#allocation6 + $0x5ac] ss:$16 sps:$4 sm:$0xff]  }
 0x3ce   :  { %14344 = vst [vmem:[#allocation47_spill] sm:$0xff] %v13515_v35  ;;  %v10333_v36 = vadd.f32 %v3969_v30, %v13295_v33  ;;  %v3971_v51 = vpop.f32.mrb[190].mxu1  ;;  %v10270_v52 = vadd.f32 %v3585_v15, %v13287_v25  ;;  %v3587_v2 = vpop.f32.mrb[159].mxu0  ;;  %6367 = vmatpush1.bf16.msra.mxu0 %v11417_v10  ;;  %v4196_v7 = vmax.f32 %v10268_v20, 0.0  ;;  %v14345_v35 = vld [vmem:[#allocation49_spill] sm:$0xff] }
 0x3cf   :  { %v10334_v39 = vadd.f32 %v3971_v51, %v13289_v54  ;;  %v3973_v21 = vpop.f32.mrb[191].mxu1  ;;  %7139 = vmatpush1.bf16.msra.mxu1 %v11420_v43  ;;  %v10271_v29 = vadd.f32 %v3587_v2, %v13293_v46  ;;  %6368 = vmatprep.subr.bf16.mxu0 %v11425_v62  ;;  %v4198_v30 = vmax.f32 %v10332_v56, 0.0  ;;  %v4197_v10 = vmax.f32 %v10269_v40, 0.0  ;;  %v11429_v20 = vld [vmem:[#allocation6 + $0x5a0] ss:$16 sps:$4 sm:$0xff]  }
 0x3d0   :  { %v10335_v17 = vadd.f32 %v3973_v21, %v13295_v33  ;;  %7140 = vmatprep.subr.bf16.mxu1 %v11428_v11  ;;  %v4204_v6 = vmax.f32 %v10270_v52, 0.0  ;;  %6244 = vmatmul.mubr.bf16.gmra.mrb[200].mxu0 %v14345_v35  ;;  %v4199_v43 = vmax.f32 %v10333_v36, 0.0  ;;  %v11432_v56 = vld [vmem:[#allocation6 + $0x5a8] ss:$16 sps:$4 sm:$0xff]   ;;  %v11437_v36 = vld [vmem:[#allocation6 + $0x5c4] ss:$16 sps:$4 sm:$0xff]  }
 0x3d1   :  { %v4206_v15 = vmax.f32 %v10334_v39, 0.0  ;;  %7016 = vmatmul.mubr.bf16.gmra.mrb[232].mxu1 %v14345_v35  ;;  %v4205_v51 = vmax.f32 %v10271_v29, 0.0  ;;  %6253 = vmatprep.mubr.bf16.mxu0 %v14346_v60  ;;  %v11440_v2 = vld [vmem:[#allocation6 + $0x5cc] ss:$16 sps:$4 sm:$0xff]  }
 0x3d2   :  { %v4207_v28 = vmax.f32 %v10335_v17, 0.0  ;;  %7025 = vmatprep.mubr.bf16.mxu1 %v14346_v60  ;;  %v13529_v62 = vpack.c.bf16 %v4204_v6, %v4196_v7  ;;  %6369 = vmatpush1.bf16.msra.mxu0 %v11423_v1 }
 0x3d3   :  { %v13531_v11 = vpack.c.bf16 %v4206_v15, %v4198_v30  ;;  %7141 = vmatpush1.bf16.msra.mxu1 %v11426_v8  ;;  %v13533_v52 = vpack.c.bf16 %v4205_v51, %v4197_v10  ;;  %v3591_v35 = vpop.f32.mrb[160].mxu0  ;;  %6370 = vmatprep.subr.bf16.mxu0 %v11431_v37  ;;  %v11435_v15 = vld [vmem:[#allocation6 + $0x5c0] ss:$16 sps:$4 sm:$0xff]   ;;  %v11438_v10 = vld [vmem:[#allocation6 + $0x5c8] ss:$16 sps:$4 sm:$0xff]  }
 0x3d4   :  { %v13535_v39 = vpack.c.bf16 %v4207_v28, %v4199_v43  ;;  %v3977_v40 = vpop.f32.mrb[192].mxu1  ;;  %7142 = vmatprep.subr.bf16.mxu1 %v11434_v22  ;;  %v10272_v60 = vadd.f32 %v3591_v35, %v13287_v25  ;;  %v3593_v21 = vpop.f32.mrb[161].mxu0  ;;  %v11443_v35 = vld [vmem:[#allocation6 + $0x5e4] ss:$16 sps:$4 sm:$0xff]  }
 0x3d5   :  { %14347 = vst [vmem:[#allocation45_spill] sm:$0xff] %v13531_v11  ;;  %v10336_v6 = vadd.f32 %v3977_v40, %v13289_v54  ;;  %v3979_v29 = vpop.f32.mrb[193].mxu1  ;;  %v10273_v1 = vadd.f32 %v3593_v21, %v13293_v46  ;;  %v3595_v17 = vpop.f32.mrb[162].mxu0  ;;  %v11446_v40 = vld [vmem:[#allocation6 + $0x5ec] ss:$16 sps:$4 sm:$0xff]  }
 0x3d6   :  { %14348 = vst [vmem:[#allocation17_spill] sm:$0xff] %v13535_v39  ;;  %v10337_v8 = vadd.f32 %v3979_v29, %v13295_v33  ;;  %v3981_v7 = vpop.f32.mrb[194].mxu1  ;;  %v10274_v28 = vadd.f32 %v3595_v17, %v13287_v25  ;;  %v3597_v37 = vpop.f32.mrb[163].mxu0  ;;  %6371 = vmatpush1.bf16.msra.mxu0 %v11429_v20  ;;  %v4212_v21 = vmax.f32 %v10272_v60, 0.0  ;;  %v14349_v39 = vld [vmem:[#allocation19_spill] sm:$0xff] }
 0x3d7   :  { %v10338_v30 = vadd.f32 %v3981_v7, %v13289_v54  ;;  %v3983_v22 = vpop.f32.mrb[195].mxu1  ;;  %7143 = vmatpush1.bf16.msra.mxu1 %v11432_v56  ;;  %v10275_v43 = vadd.f32 %v3597_v37, %v13293_v46  ;;  %6372 = vmatprep.subr.bf16.mxu0 %v11437_v36  ;;  %v4214_v29 = vmax.f32 %v10336_v6, 0.0  ;;  %v4213_v20 = vmax.f32 %v10273_v1, 0.0  ;;  %v11441_v60 = vld [vmem:[#allocation6 + $0x5e0] ss:$16 sps:$4 sm:$0xff]  }
 0x3d8   :  { %v10339_v51 = vadd.f32 %v3983_v22, %v13295_v33  ;;  %7144 = vmatprep.subr.bf16.mxu1 %v11440_v2  ;;  %v4220_v11 = vmax.f32 %v10274_v28, 0.0  ;;  %6254 = vmatmul.mubr.bf16.gmra.mrb[204].mxu0 %v14349_v39  ;;  %v4215_v56 = vmax.f32 %v10337_v8, 0.0  ;;  %v11444_v6 = vld [vmem:[#allocation6 + $0x5e8] ss:$16 sps:$4 sm:$0xff]   ;;  %v11449_v8 = vld [vmem:[#allocation6 + $0x604] ss:$16 sps:$4 sm:$0xff]  }
 0x3d9   :  { %v4222_v17 = vmax.f32 %v10338_v30, 0.0  ;;  %7026 = vmatmul.mubr.bf16.gmra.mrb[236].mxu1 %v14349_v39  ;;  %v4221_v7 = vmax.f32 %v10275_v43, 0.0  ;;  %6263 = vmatprep.mubr.bf16.mxu0 %v14350_v23  ;;  %v11452_v37 = vld [vmem:[#allocation6 + $0x60c] ss:$16 sps:$4 sm:$0xff]  }
 0x3da   :  { %v4223_v57 = vmax.f32 %v10339_v51, 0.0  ;;  %7035 = vmatprep.mubr.bf16.mxu1 %v14350_v23  ;;  %v13549_v36 = vpack.c.bf16 %v4220_v11, %v4212_v21  ;;  %6373 = vmatpush1.bf16.msra.mxu0 %v11435_v15 }
 0x3db   :  { %v13551_v2 = vpack.c.bf16 %v4222_v17, %v4214_v29  ;;  %7145 = vmatpush1.bf16.msra.mxu1 %v11438_v10  ;;  %v13553_v28 = vpack.c.bf16 %v4221_v7, %v4213_v20  ;;  %v3601_v39 = vpop.f32.mrb[164].mxu0  ;;  %6374 = vmatprep.subr.bf16.mxu0 %v11443_v35 }
 0x3dc   :  { %v13555_v30 = vpack.c.bf16 %v4223_v57, %v4215_v56  ;;  %v3987_v1 = vpop.f32.mrb[196].mxu1  ;;  %7146 = vmatprep.subr.bf16.mxu1 %v11446_v40  ;;  %v10276_v23 = vadd.f32 %v3601_v39, %v13287_v25  ;;  %v3603_v22 = vpop.f32.mrb[165].mxu0 }
 0x3dd   :  { %14351 = vst [vmem:[#allocation49_spill] sm:$0xff] %v13551_v2  ;;  %v10340_v11 = vadd.f32 %v3987_v1, %v13289_v54  ;;  %v3989_v43 = vpop.f32.mrb[197].mxu1  ;;  %v10277_v15 = vadd.f32 %v3603_v22, %v13293_v46  ;;  %v3605_v51 = vpop.f32.mrb[166].mxu0  ;;  %v14353_v22 = vld [vmem:[#allocation21_spill] sm:$0xff] }
 0x3de   :  { %14352 = vst [vmem:[#allocation18_spill] sm:$0xff] %v13555_v30  ;;  %v10341_v10 = vadd.f32 %v3989_v43, %v13295_v33  ;;  %v3991_v21 = vpop.f32.mrb[198].mxu1  ;;  %v10278_v57 = vadd.f32 %v3605_v51, %v13287_v25  ;;  %v3607_v35 = vpop.f32.mrb[167].mxu0  ;;  %6375 = vmatpush1.bf16.msra.mxu0 %v11441_v60  ;;  %v4228_v56 = vmax.f32 %v10276_v23, 0.0  ;;  %v14354_v60 = vld [vmem:[#allocation25_spill] sm:$0xff] }
 0x3df   :  { %v10342_v29 = vadd.f32 %v3991_v21, %v13289_v54  ;;  %v3993_v40 = vpop.f32.mrb[199].mxu1  ;;  %7147 = vmatpush1.bf16.msra.mxu1 %v11444_v6  ;;  %v10279_v17 = vadd.f32 %v3607_v35, %v13293_v46  ;;  %6537 = vmatprep.subr.bf16.mxu0 %v11449_v8  ;;  %v4230_v7 = vmax.f32 %v10340_v11, 0.0  ;;  %v4229_v43 = vmax.f32 %v10277_v15, 0.0 }
 0x3e0   :  { %v10343_v20 = vadd.f32 %v3993_v40, %v13295_v33  ;;  %7309 = vmatprep.subr.bf16.mxu1 %v11452_v37  ;;  %v4236_v39 = vmax.f32 %v10278_v57, 0.0  ;;  %6264 = vmatmul.mubr.bf16.gmra.mrb[208].mxu0 %v14353_v22  ;;  %v4231_v51 = vmax.f32 %v10341_v10, 0.0 }
 0x3e1   :  { %v4238_v1 = vmax.f32 %v10342_v29, 0.0  ;;  %7036 = vmatmul.mubr.bf16.gmra.mrb[240].mxu1 %v14353_v22  ;;  %v4237_v21 = vmax.f32 %v10279_v17, 0.0  ;;  %6273 = vmatprep.mubr.bf16.mxu0 %v14354_v60 }
 0x3e2   :  { %v4239_v2 = vmax.f32 %v10343_v20, 0.0  ;;  %7045 = vmatprep.mubr.bf16.mxu1 %v14354_v60  ;;  %v13569_v6 = vpack.c.bf16 %v4236_v39, %v4228_v56 }
 0x3e3   :  { %v13571_v8 = vpack.c.bf16 %v4238_v1, %v4230_v7  ;;  %v13573_v37 = vpack.c.bf16 %v4237_v21, %v4229_v43  ;;  %v3611_v11 = vpop.f32.mrb[168].mxu0 }
 0x3e4   :  { %v13575_v23 = vpack.c.bf16 %v4239_v2, %v4231_v51  ;;  %v3997_v57 = vpop.f32.mrb[200].mxu1  ;;  %v10280_v29 = vadd.f32 %v3611_v11, %v13287_v25  ;;  %v3613_v10 = vpop.f32.mrb[169].mxu0 }
 0x3e5   :  { %14355 = vst [vmem:[#allocation19_spill] sm:$0xff] %v13571_v8  ;;  %v10344_v15 = vadd.f32 %v3997_v57, %v13289_v54  ;;  %v3999_v35 = vpop.f32.mrb[201].mxu1  ;;  %v10281_v40 = vadd.f32 %v3613_v10, %v13293_v46  ;;  %v3615_v20 = vpop.f32.mrb[170].mxu0  ;;  %v14357_v57 = vld [vmem:[#allocation26_spill] sm:$0xff] }
 0x3e6   :  { %14356 = vst [vmem:[#allocation20_spill] sm:$0xff] %v13575_v23  ;;  %v10345_v17 = vadd.f32 %v3999_v35, %v13295_v33  ;;  %v4001_v56 = vpop.f32.mrb[202].mxu1  ;;  %v10282_v7 = vadd.f32 %v3615_v20, %v13287_v25  ;;  %v3617_v2 = vpop.f32.mrb[171].mxu0  ;;  %v4244_v51 = vmax.f32 %v10280_v29, 0.0  ;;  %v14358_v23 = vld [vmem:[#allocation29_spill] sm:$0xff] }
 0x3e7   :  { %v10346_v39 = vadd.f32 %v4001_v56, %v13289_v54  ;;  %v4003_v1 = vpop.f32.mrb[203].mxu1  ;;  %v10283_v22 = vadd.f32 %v3617_v2, %v13293_v46  ;;  %v4246_v21 = vmax.f32 %v10344_v15, 0.0  ;;  %v4245_v10 = vmax.f32 %v10281_v40, 0.0 }
 0x3e8   :  { %v10347_v43 = vadd.f32 %v4003_v1, %v13295_v33  ;;  %v4252_v60 = vmax.f32 %v10282_v7, 0.0  ;;  %6274 = vmatmul.mubr.bf16.gmra.mrb[212].mxu0 %v14357_v57  ;;  %v4247_v35 = vmax.f32 %v10345_v17, 0.0 }
 0x3e9   :  { %v4254_v11 = vmax.f32 %v10346_v39, 0.0  ;;  %7046 = vmatmul.mubr.bf16.gmra.mrb[244].mxu1 %v14357_v57  ;;  %v4253_v8 = vmax.f32 %v10283_v22, 0.0  ;;  %6283 = vmatprep.mubr.bf16.mxu0 %v14358_v23 }
 0x3ea   :  { %v4255_v20 = vmax.f32 %v10347_v43, 0.0  ;;  %7055 = vmatprep.mubr.bf16.mxu1 %v14358_v23  ;;  %v13589_v56 = vpack.c.bf16 %v4252_v60, %v4244_v51 }
 0x3eb   :  { %v13591_v2 = vpack.c.bf16 %v4254_v11, %v4246_v21  ;;  %v13593_v29 = vpack.c.bf16 %v4253_v8, %v4245_v10  ;;  %v3621_v7 = vpop.f32.mrb[172].mxu0 }
 0x3ec   :  { %v13595_v15 = vpack.c.bf16 %v4255_v20, %v4247_v35  ;;  %v4007_v39 = vpop.f32.mrb[204].mxu1  ;;  %v10284_v1 = vadd.f32 %v3621_v7, %v13287_v25  ;;  %v3623_v17 = vpop.f32.mrb[173].mxu0 }
 0x3ed   :  { %14359 = vst [vmem:[#allocation21_spill] sm:$0xff] %v13591_v2  ;;  %v10348_v40 = vadd.f32 %v4007_v39, %v13289_v54  ;;  %v4009_v22 = vpop.f32.mrb[205].mxu1  ;;  %v10285_v43 = vadd.f32 %v3623_v17, %v13293_v46  ;;  %v3625_v51 = vpop.f32.mrb[174].mxu0 }
 0x3ee   :  { %14360 = vst [vmem:[#allocation25_spill] sm:$0xff] %v13595_v15  ;;  %v10349_v23 = vadd.f32 %v4009_v22, %v13295_v33  ;;  %v4011_v60 = vpop.f32.mrb[206].mxu1  ;;  %v10286_v21 = vadd.f32 %v3625_v51, %v13287_v25  ;;  %v3627_v11 = vpop.f32.mrb[175].mxu0  ;;  %v4260_v20 = vmax.f32 %v10284_v1, 0.0  ;;  %v14361_v15 = vld [vmem:[#allocation30_spill] sm:$0xff]  ;;  %v14362_v51 = vld [vmem:[#allocation33_spill] sm:$0xff] }
 0x3ef   :  { %v10350_v8 = vadd.f32 %v4011_v60, %v13289_v54  ;;  %v4013_v57 = vpop.f32.mrb[207].mxu1  ;;  %v10287_v10 = vadd.f32 %v3627_v11, %v13293_v46  ;;  %v4262_v7 = vmax.f32 %v10348_v40, 0.0  ;;  %v4261_v17 = vmax.f32 %v10285_v43, 0.0  ;;  %v14363_v40 = vld [vmem:[#allocation34_spill] sm:$0xff]  ;;  %v11467_v43 = vld [vmem:[#allocation6 + $0x664] ss:$16 sps:$4 sm:$0xff]  }
 0x3f0   :  { %v10351_v35 = vadd.f32 %v4013_v57, %v13295_v33  ;;  %v4268_v39 = vmax.f32 %v10286_v21, 0.0  ;;  %6284 = vmatmul.mubr.bf16.gmra.mrb[216].mxu0 %v14361_v15  ;;  %v4263_v22 = vmax.f32 %v10349_v23, 0.0  ;;  %v11468_v23 = vld [vmem:[#allocation6 + $0x668] ss:$16 sps:$4 sm:$0xff]   ;;  %v11473_v60 = vld [vmem:[#allocation6 + $0x684] ss:$16 sps:$4 sm:$0xff]  }
 0x3f1   :  { %v4270_v2 = vmax.f32 %v10350_v8, 0.0  ;;  %7056 = vmatmul.mubr.bf16.gmra.mrb[248].mxu1 %v14361_v15  ;;  %v4269_v30 = vmax.f32 %v10287_v10, 0.0  ;;  %6293 = vmatprep.mubr.bf16.mxu0 %v14362_v51  ;;  %v11462_v15 = vld [vmem:[#allocation6 + $0x648] ss:$16 sps:$4 sm:$0xff]   ;;  %v11476_v21 = vld [vmem:[#allocation6 + $0x68c] ss:$16 sps:$4 sm:$0xff]  }
 0x3f2   :  { %v4271_v25 = vmax.f32 %v10351_v35, 0.0  ;;  %7065 = vmatprep.mubr.bf16.mxu1 %v14362_v51  ;;  %v13609_v54 = vpack.c.bf16 %v4268_v39, %v4260_v20  ;;  %v11471_v8 = vld [vmem:[#allocation6 + $0x680] ss:$16 sps:$4 sm:$0xff]   ;;  %v11474_v11 = vld [vmem:[#allocation6 + $0x688] ss:$16 sps:$4 sm:$0xff]  }
 0x3f3   :  { %v13611_v46 = vpack.c.bf16 %v4270_v2, %v4262_v7  ;;  %v13613_v33 = vpack.c.bf16 %v4269_v30, %v4261_v17  ;;  %v14364_v30 = vld [vmem:[#allocation38_spill] sm:$0xff]  ;;  %v11459_v2 = vld [vmem:[#allocation6 + $0x640] ss:$16 sps:$4 sm:$0xff]   ;;  %v11479_v57 = vld [vmem:[#allocation6 + $0x6a4] ss:$16 sps:$4 sm:$0xff]  }
 0x3f4   :  { %v13615_v1 = vpack.c.bf16 %v4271_v25, %v4263_v22  ;;  %v11480_v10 = vld [vmem:[#allocation6 + $0x6a8] ss:$16 sps:$4 sm:$0xff]   ;;  %v11485_v35 = vld [vmem:[#allocation6 + $0x6c4] ss:$16 sps:$4 sm:$0xff]   ;;  %v11488_v20 = vld [vmem:[#allocation6 + $0x6cc] ss:$16 sps:$4 sm:$0xff]  }
 0x3f5   :  { %v11483_v7 = vld [vmem:[#allocation6 + $0x6c0] ss:$16 sps:$4 sm:$0xff]   ;;  %v11486_v39 = vld [vmem:[#allocation6 + $0x6c8] ss:$16 sps:$4 sm:$0xff]   ;;  %v11491_v17 = vld [vmem:[#allocation6 + $0x6e4] ss:$16 sps:$4 sm:$0xff]  }
 0x3f6   :  { %v11492_v22 = vld [vmem:[#allocation6 + $0x6e8] ss:$16 sps:$4 sm:$0xff]   ;;  %v11497_v25 = vld [vmem:[#allocation6 + $0x704] ss:$16 sps:$4 sm:$0xff]   ;;  %v11500_v51 = vld [vmem:[#allocation6 + $0x70c] ss:$16 sps:$4 sm:$0xff]  }
 0x3f8   :  { %6294 = vmatmul.mubr.bf16.gmra.mrb[220].mxu0 %v14363_v40 }
 0x3f9   :  { %7066 = vmatmul.mubr.bf16.gmra.mrb[252].mxu1 %v14363_v40  ;;  %6303 = vmatprep.mubr.bf16.mxu0 %v13156_v3  ;;  %v11495_v40 = vld [vmem:[#allocation6 + $0x700] ss:$16 sps:$4 sm:$0xff]  }
 0x3fa   :  { %7075 = vmatprep.mubr.bf16.mxu1 %v13156_v3  ;;  %v11450_v3 = vld [vmem:[#allocation6 + $0x608] ss:$16 sps:$4 sm:$0xff]  }
 0x400   :  { %6304 = vmatmul.mubr.bf16.gmra.mrb[224].mxu0 %v13152_v13 }
 0x401   :  { %7076 = vmatmul.mubr.bf16.gmra.mrb[0].mxu1 %v13152_v13  ;;  %6313 = vmatprep.mubr.bf16.mxu0 %v13176_v38  ;;  %v11447_v13 = vld [vmem:[#allocation6 + $0x600] ss:$16 sps:$4 sm:$0xff]  }
 0x402   :  { %7085 = vmatprep.mubr.bf16.mxu1 %v13176_v38  ;;  %v11458_v38 = vld [vmem:[#allocation6 + $0x62c] ss:$16 sps:$4 sm:$0xff]  }
 0x408   :  { %6314 = vmatmul.mubr.bf16.gmra.mrb[228].mxu0 %v13172_v41 }
 0x409   :  { %7086 = vmatmul.mubr.bf16.gmra.mrb[4].mxu1 %v13172_v41  ;;  %6323 = vmatprep.mubr.bf16.mxu0 %v13196_v32  ;;  %v11455_v41 = vld [vmem:[#allocation6 + $0x624] ss:$16 sps:$4 sm:$0xff]  }
 0x40a   :  { %7095 = vmatprep.mubr.bf16.mxu1 %v13196_v32  ;;  %v11453_v32 = vld [vmem:[#allocation6 + $0x620] ss:$16 sps:$4 sm:$0xff]  }
 0x410   :  { %6324 = vmatmul.mubr.bf16.gmra.mrb[232].mxu0 %v14364_v30 }
 0x411   :  { %7096 = vmatmul.mubr.bf16.gmra.mrb[8].mxu1 %v14364_v30  ;;  %6333 = vmatprep.mubr.bf16.mxu0 %v13216_v34  ;;  %v11498_v30 = vld [vmem:[#allocation6 + $0x708] ss:$16 sps:$4 sm:$0xff]  }
 0x412   :  { %7105 = vmatprep.mubr.bf16.mxu1 %v13216_v34  ;;  %v11461_v34 = vld [vmem:[#allocation6 + $0x644] ss:$16 sps:$4 sm:$0xff]  }
 0x418   :  { %6334 = vmatmul.mubr.bf16.gmra.mrb[236].mxu0 %v13212_v55 }
 0x419   :  { %7106 = vmatmul.mubr.bf16.gmra.mrb[12].mxu1 %v13212_v55  ;;  %6376 = vmatprep.mubr.bf16.mxu0 %v13313_v48  ;;  %v11456_v55 = vld [vmem:[#allocation6 + $0x628] ss:$16 sps:$4 sm:$0xff]  }
 0x41a   :  { %7148 = vmatprep.mubr.bf16.mxu1 %v13313_v48  ;;  %v11464_v48 = vld [vmem:[#allocation6 + $0x64c] ss:$16 sps:$4 sm:$0xff]  }
 0x420   :  { %6377 = vmatmul.mubr.bf16.vlgmr.msra.gmra.mrb[176].mxu0 %v13309_v31 }
 0x421   :  { %7149 = vmatmul.mubr.bf16.vlgmr.msra.gmra.mrb[208].mxu1 %v13309_v31  ;;  %6538 = vmatpush1.bf16.msra.mxu0 %v11447_v13  ;;  %v11470_v31 = vld [vmem:[#allocation6 + $0x66c] ss:$16 sps:$4 sm:$0xff]   ;;  %v11503_v13 = vld [vmem:[#allocation6 + $0x724] ss:$16 sps:$4 sm:$0xff]  }
 0x422   :  { %6386 = vmatprep.mubr.bf16.mxu0 %v13333_v27  ;;  %7158 = vmatprep.mubr.bf16.mxu1 %v13333_v27  ;;  %v11465_v27 = vld [vmem:[#allocation6 + $0x660] ss:$16 sps:$4 sm:$0xff]  }
 0x423   :  { %7310 = vmatpush1.bf16.msra.mxu1 %v11450_v3  ;;  %6539 = vmatprep.subr.bf16.mxu0 %v11455_v41  ;;  %v11504_v3 = vld [vmem:[#allocation6 + $0x728] ss:$16 sps:$4 sm:$0xff]   ;;  %v11509_v41 = vld [vmem:[#allocation6 + $0x744] ss:$16 sps:$4 sm:$0xff]  }
 0x424   :  { %7311 = vmatprep.subr.bf16.mxu1 %v11458_v38  ;;  %v11512_v38 = vld [vmem:[#allocation6 + $0x74c] ss:$16 sps:$4 sm:$0xff]  }
 0x425   :  { %6540 = vmatpush1.bf16.msra.mxu0 %v11453_v32  ;;  %v11507_v32 = vld [vmem:[#allocation6 + $0x740] ss:$16 sps:$4 sm:$0xff]  }
 0x426   :  { %6541 = vmatprep.subr.bf16.mxu0 %v11461_v34  ;;  %v11515_v34 = vld [vmem:[#allocation6 + $0x764] ss:$16 sps:$4 sm:$0xff]  }
 0x427   :  { %7312 = vmatpush1.bf16.msra.mxu1 %v11456_v55  ;;  %v11510_v55 = vld [vmem:[#allocation6 + $0x748] ss:$16 sps:$4 sm:$0xff]  }
 0x428   :  { %7313 = vmatprep.subr.bf16.mxu1 %v11464_v48  ;;  %6387 = vmatmul.mubr.bf16.gmra.mrb[180].mxu0 %v13329_v18  ;;  %v11516_v48 = vld [vmem:[#allocation6 + $0x768] ss:$16 sps:$4 sm:$0xff]  }
 0x429   :  { %7159 = vmatmul.mubr.bf16.gmra.mrb[212].mxu1 %v13329_v18  ;;  %6396 = vmatprep.mubr.bf16.mxu0 %v13353_v26  ;;  %v11482_v18 = vld [vmem:[#allocation6 + $0x6ac] ss:$16 sps:$4 sm:$0xff]  }
 0x42a   :  { %7168 = vmatprep.mubr.bf16.mxu1 %v13353_v26  ;;  %6542 = vmatpush1.bf16.msra.mxu0 %v11459_v2  ;;  %v11477_v26 = vld [vmem:[#allocation6 + $0x6a0] ss:$16 sps:$4 sm:$0xff]   ;;  %v11521_v2 = vld [vmem:[#allocation6 + $0x784] ss:$16 sps:$4 sm:$0xff]  }
 0x42b   :  { %7314 = vmatpush1.bf16.msra.mxu1 %v11462_v15  ;;  %6543 = vmatprep.subr.bf16.mxu0 %v11467_v43  ;;  %v11524_v15 = vld [vmem:[#allocation6 + $0x78c] ss:$16 sps:$4 sm:$0xff]   ;;  %v11519_v43 = vld [vmem:[#allocation6 + $0x780] ss:$16 sps:$4 sm:$0xff]  }
 0x42c   :  { %7315 = vmatprep.subr.bf16.mxu1 %v11470_v31  ;;  %v11522_v31 = vld [vmem:[#allocation6 + $0x788] ss:$16 sps:$4 sm:$0xff]  }
 0x42e   :  { %6544 = vmatpush1.bf16.msra.mxu0 %v11465_v27  ;;  %v11527_v27 = vld [vmem:[#allocation6 + $0x7a4] ss:$16 sps:$4 sm:$0xff]  }
 0x42f   :  { %7316 = vmatpush1.bf16.msra.mxu1 %v11468_v23  ;;  %6545 = vmatprep.subr.bf16.mxu0 %v11473_v60  ;;  %v11528_v23 = vld [vmem:[#allocation6 + $0x7a8] ss:$16 sps:$4 sm:$0xff]   ;;  %v11533_v60 = vld [vmem:[#allocation6 + $0x7c4] ss:$16 sps:$4 sm:$0xff]  }
 0x430   :  { %7317 = vmatprep.subr.bf16.mxu1 %v11476_v21  ;;  %6397 = vmatmul.mubr.bf16.gmra.mrb[184].mxu0 %v13349_v45  ;;  %v11536_v21 = vld [vmem:[#allocation6 + $0x7cc] ss:$16 sps:$4 sm:$0xff]  }
 0x431   :  { %7169 = vmatmul.mubr.bf16.gmra.mrb[216].mxu1 %v13349_v45  ;;  %6406 = vmatprep.mubr.bf16.mxu0 %v13373_v47  ;;  %v11494_v45 = vld [vmem:[#allocation6 + $0x6ec] ss:$16 sps:$4 sm:$0xff]  }
 0x432   :  { %7178 = vmatprep.mubr.bf16.mxu1 %v13373_v47  ;;  %6546 = vmatpush1.bf16.msra.mxu0 %v11471_v8  ;;  %v11489_v47 = vld [vmem:[#allocation6 + $0x6e0] ss:$16 sps:$4 sm:$0xff]  }
 0x433   :  { %7318 = vmatpush1.bf16.msra.mxu1 %v11474_v11  ;;  %6547 = vmatprep.subr.bf16.mxu0 %v11479_v57  ;;  %v11531_v8 = vld [vmem:[#allocation6 + $0x7c0] ss:$16 sps:$4 sm:$0xff]   ;;  %v11534_v11 = vld [vmem:[#allocation6 + $0x7c8] ss:$16 sps:$4 sm:$0xff]   ;;  %v11539_v57 = vld [vmem:[#allocation6 + $0x7e4] ss:$16 sps:$4 sm:$0xff]  }
 0x434   :  { %7319 = vmatprep.subr.bf16.mxu1 %v11482_v18  ;;  %v11540_v18 = vld [vmem:[#allocation6 + $0x7e8] ss:$16 sps:$4 sm:$0xff]  }
 0x436   :  { %6548 = vmatpush1.bf16.msra.mxu0 %v11477_v26  ;;  %v11560_v26 = vld [vmem:[#allocation8 + $0x20] sm:$0xff]  }
 0x437   :  { %7320 = vmatpush1.bf16.msra.mxu1 %v11480_v10  ;;  %6549 = vmatprep.subr.bf16.mxu0 %v11485_v35  ;;  %v11562_v10 = vld [vmem:[#allocation8 + $0xa0] sm:$0xff]   ;;  %v11563_v35 = vld [vmem:[#allocation8 + $0x68] sm:$0xff]  }
 0x438   :  { %7321 = vmatprep.subr.bf16.mxu1 %v11488_v20  ;;  %6407 = vmatmul.mubr.bf16.gmra.mrb[188].mxu0 %v13369_v63  ;;  %v11565_v20 = vld [vmem:[#allocation8 + $0xe8] sm:$0xff]  }
 0x439   :  { %7179 = vmatmul.mubr.bf16.gmra.mrb[220].mxu1 %v13369_v63  ;;  %6416 = vmatprep.mubr.bf16.mxu0 %v13393_v42  ;;  %v11506_v63 = vld [vmem:[#allocation6 + $0x72c] ss:$16 sps:$4 sm:$0xff]  }
 0x43a   :  { %7188 = vmatprep.mubr.bf16.mxu1 %v13393_v42  ;;  %6550 = vmatpush1.bf16.msra.mxu0 %v11483_v7  ;;  %v11501_v42 = vld [vmem:[#allocation6 + $0x720] ss:$16 sps:$4 sm:$0xff]  }
 0x43b   :  { %7322 = vmatpush1.bf16.msra.mxu1 %v11486_v39  ;;  %6551 = vmatprep.subr.bf16.mxu0 %v11491_v17  ;;  %v14367_v7 = vld [vmem:[#allocation41_spill] sm:$0xff]  ;;  %v14368_v39 = vld [vmem:[#allocation44_spill] sm:$0xff]  ;;  %v11564_v17 = vld [vmem:[#allocation8 + $0x28] sm:$0xff]  }
 0x43c   :  { %7323 = vmatprep.subr.bf16.mxu1 %v11494_v45  ;;  %v11566_v45 = vld [vmem:[#allocation8 + $0xa8] sm:$0xff]  }
 0x43e   :  { %6552 = vmatpush1.bf16.msra.mxu0 %v11489_v47  ;;  %v11567_v47 = vld [vmem:[#allocation8 + $0x70] sm:$0xff]  }
 0x43f   :  { %7324 = vmatpush1.bf16.msra.mxu1 %v11492_v22  ;;  %6553 = vmatprep.subr.bf16.mxu0 %v11497_v25  ;;  %v11569_v22 = vld [vmem:[#allocation8 + $0xf0] sm:$0xff]  }
 0x440   :  { %7325 = vmatprep.subr.bf16.mxu1 %v11500_v51  ;;  %6417 = vmatmul.mubr.bf16.gmra.mrb[192].mxu0 %v13389_v9  ;;  %v11568_v25 = vld [vmem:[#allocation8 + $0x30] sm:$0xff]  }
 0x441   :  { %7189 = vmatmul.mubr.bf16.gmra.mrb[224].mxu1 %v13389_v9  ;;  %6426 = vmatprep.mubr.bf16.mxu0 %v13413_v59  ;;  %v11518_v9 = vld [vmem:[#allocation6 + $0x76c] ss:$16 sps:$4 sm:$0xff]   ;;  %v11570_v51 = vld [vmem:[#allocation8 + $0xb0] sm:$0xff]  }
 0x442   :  { %7198 = vmatprep.mubr.bf16.mxu1 %v13413_v59  ;;  %6554 = vmatpush1.bf16.msra.mxu0 %v11495_v40  ;;  %v11513_v59 = vld [vmem:[#allocation6 + $0x760] ss:$16 sps:$4 sm:$0xff]   ;;  %v11571_v40 = vld [vmem:[#allocation8 + $0x78] sm:$0xff]  }
 0x443   :  { %7326 = vmatpush1.bf16.msra.mxu1 %v11498_v30  ;;  %6555 = vmatprep.subr.bf16.mxu0 %v11503_v13  ;;  %v11573_v30 = vld [vmem:[#allocation8 + $0xf8] sm:$0xff]   ;;  %v14369_v13 = vld [vmem:[#allocation46_spill] sm:$0xff] }
 0x444   :  { %7327 = vmatprep.subr.bf16.mxu1 %v11506_v63  ;;  %v14370_v63 = vld [vmem:[#allocation48_spill] sm:$0xff] }
 0x446   :  { %6556 = vmatpush1.bf16.msra.mxu0 %v11501_v42  ;;  %v11572_v42 = vld [vmem:[#allocation8 + $0x38] sm:$0xff]  }
 0x447   :  { %7328 = vmatpush1.bf16.msra.mxu1 %v11504_v3  ;;  %6557 = vmatprep.subr.bf16.mxu0 %v11509_v41  ;;  %v11574_v3 = vld [vmem:[#allocation8 + $0xb8] sm:$0xff]  }
 0x448   :  { %7329 = vmatprep.subr.bf16.mxu1 %v11512_v38  ;;  %6427 = vmatmul.mubr.bf16.gmra.mrb[196].mxu0 %v13408_v12  ;;  %v14371_v41 = vld [vmem:[#allocation16_spill] sm:$0xff] }
 0x449   :  { %7199 = vmatmul.mubr.bf16.gmra.mrb[228].mxu1 %v13408_v12  ;;  %6436 = vmatprep.mubr.bf16.mxu0 %v13433_v61  ;;  %v11530_v12 = vld [vmem:[#allocation6 + $0x7ac] ss:$16 sps:$4 sm:$0xff]  }
 0x44a   :  { %7208 = vmatprep.mubr.bf16.mxu1 %v13433_v61  ;;  %6558 = vmatpush1.bf16.msra.mxu0 %v11507_v32  ;;  %v11525_v61 = vld [vmem:[#allocation6 + $0x7a0] ss:$16 sps:$4 sm:$0xff]   ;;  %v14372_v38 = vld [vmem:[#allocation28_spill] sm:$0xff] }
 0x44b   :  { %7330 = vmatpush1.bf16.msra.mxu1 %v11510_v55  ;;  %6559 = vmatprep.subr.bf16.mxu0 %v11515_v34  ;;  %v14373_v32 = vld [vmem:[#allocation13_spill] sm:$0xff]  ;;  %v14374_v55 = vld [vmem:[#allocation32_spill] sm:$0xff] }
 0x44c   :  { %7331 = vmatprep.subr.bf16.mxu1 %v11518_v9  ;;  %v14375_v34 = vld [vmem:[#allocation24_spill] sm:$0xff] }
 0x44d   :  { %v14376_v9 = vld [vmem:[#allocation36_spill] sm:$0xff] }
 0x44e   :  { %6560 = vmatpush1.bf16.msra.mxu0 %v11513_v59  ;;  %v14377_v59 = vld [vmem:[#allocation27_spill] sm:$0xff] }
 0x44f   :  { %7332 = vmatpush1.bf16.msra.mxu1 %v11516_v48  ;;  %6561 = vmatprep.subr.bf16.mxu0 %v11521_v2  ;;  %v14378_v48 = vld [vmem:[#allocation40_spill] sm:$0xff]  ;;  %v14379_v2 = vld [vmem:[#allocation31_spill] sm:$0xff] }
 0x450   :  { %7333 = vmatprep.subr.bf16.mxu1 %v11524_v15  ;;  %6437 = vmatmul.mubr.bf16.gmra.mrb[200].mxu0 %v13429_v16  ;;  %v14380_v15 = vld [vmem:[#allocation42_spill] sm:$0xff] }
 0x451   :  { %7209 = vmatmul.mubr.bf16.gmra.mrb[232].mxu1 %v13429_v16  ;;  %6446 = vmatprep.mubr.bf16.mxu0 %v13453_v58  ;;  %v11542_v16 = vld [vmem:[#allocation6 + $0x7ec] ss:$16 sps:$4 sm:$0xff]  }
 0x452   :  { %7218 = vmatprep.mubr.bf16.mxu1 %v13453_v58  ;;  %6562 = vmatpush1.bf16.msra.mxu0 %v11519_v43  ;;  %v11537_v58 = vld [vmem:[#allocation6 + $0x7e0] ss:$16 sps:$4 sm:$0xff]  }
 0x453   :  { %7334 = vmatpush1.bf16.msra.mxu1 %v11522_v31  ;;  %6563 = vmatprep.subr.bf16.mxu0 %v11527_v27  ;;  %v14381_v43 = vld [vmem:[#allocation35_spill] sm:$0xff] }
 0x454   :  { %7335 = vmatprep.subr.bf16.mxu1 %v11530_v12  ;;  %v14382_v31 = vld [vmem:[#allocation47_spill] sm:$0xff]  ;;  %v14384_v12 = vld [vmem:[#allocation17_spill] sm:$0xff] }
 0x455   :  { %v14383_v27 = vld [vmem:[#allocation39_spill] sm:$0xff] }
 0x456   :  { %6564 = vmatpush1.bf16.msra.mxu0 %v11525_v61  ;;  %v14385_v61 = vld [vmem:[#allocation45_spill] sm:$0xff] }
 0x457   :  { %7336 = vmatpush1.bf16.msra.mxu1 %v11528_v23  ;;  %6565 = vmatprep.subr.bf16.mxu0 %v11533_v60  ;;  %v14386_v23 = vld [vmem:[#allocation18_spill] sm:$0xff]  ;;  %v14387_v60 = vld [vmem:[#allocation49_spill] sm:$0xff] }
 0x458   :  { %7337 = vmatprep.subr.bf16.mxu1 %v11536_v21  ;;  %6447 = vmatmul.mubr.bf16.gmra.mrb[204].mxu0 %v13449_v49  ;;  %v14388_v21 = vld [vmem:[#allocation20_spill] sm:$0xff] }
 0x459   :  { %7219 = vmatmul.mubr.bf16.gmra.mrb[236].mxu1 %v13449_v49  ;;  %6456 = vmatprep.mubr.bf16.mxu0 %v13473_v44  ;;  %v11543_v49 = vld [vmem:[#allocation8 + $0x40] sm:$0xff]  }
 0x45a   :  { %7228 = vmatprep.mubr.bf16.mxu1 %v13473_v44  ;;  %6566 = vmatpush1.bf16.msra.mxu0 %v11531_v8  ;;  %v11544_v44 = vld [vmem:[#allocation8] sm:$0xff]   ;;  %v14389_v8 = vld [vmem:[#allocation19_spill] sm:$0xff] }
 0x45b   :  { %7338 = vmatpush1.bf16.msra.mxu1 %v11534_v11  ;;  %6567 = vmatprep.subr.bf16.mxu0 %v11539_v57  ;;  %v14390_v11 = vld [vmem:[#allocation25_spill] sm:$0xff] }
 0x45c   :  { %7339 = vmatprep.subr.bf16.mxu1 %v11542_v16  ;;  %v14391_v57 = vld [vmem:[#allocation21_spill] sm:$0xff] }
 0x45d   :  { %v4656_v16 = vld [vmem:[%s14062_s6] sm:$0xf] }
 0x45e   :  { %6568 = vmatpush1.bf16.msra.mxu0 %v11537_v58  ;;  %v14392_v58 = vld [vmem:[#allocation14_spill] sm:$0xff] }
 0x45f   :  { %7340 = vmatpush1.bf16.msra.mxu1 %v11540_v18  ;;  %9796 = vmatprep.subr.bf16.mxu0 %v11543_v49  ;;  %v13767_v18 = vrot.slane %v4656_v16, %v14392_v58  ;;  %v14393_v49 = vld [vmem:[#allocation22_spill] sm:$0xff] }
 0x460   :  { %6457 = vmatmul.mubr.bf16.gmra.mrb[208].mxu0 %v13469_v50 }
 0x461   :  { %7229 = vmatmul.mubr.bf16.gmra.mrb[240].mxu1 %v13469_v50  ;;  %6466 = vmatprep.mubr.bf16.mxu0 %v13493_v5  ;;  %v11545_v50 = vld [vmem:[#allocation8 + $0xc0] sm:$0xff]  }
 0x462   :  { %7238 = vmatprep.mubr.bf16.mxu1 %v13493_v5  ;;  %9908 = vmatprep.subr.bf16.mxu1 %v11545_v50  ;;  %v11547_v5 = vld [vmem:[#allocation8 + $0x48] sm:$0xff]   ;;  %v13770_v50 = vrot.slane %v4656_v16, %v14393_v49 }
 0x468   :  { %6467 = vmatmul.mubr.bf16.gmra.mrb[212].mxu0 %v13489_v0 }
 0x469   :  { %7239 = vmatmul.mubr.bf16.gmra.mrb[244].mxu1 %v13489_v0  ;;  %6476 = vmatprep.mubr.bf16.mxu0 %v13513_v24  ;;  %v11546_v0 = vld [vmem:[#allocation8 + $0x80] sm:$0xff]  }
 0x46a   :  { %7248 = vmatprep.mubr.bf16.mxu1 %v13513_v24  ;;  %v11548_v24 = vld [vmem:[#allocation8 + $0x8] sm:$0xff]  }
 0x470   :  { %6477 = vmatmul.mubr.bf16.gmra.mrb[216].mxu0 %v13509_v14 }
 0x471   :  { %7249 = vmatmul.mubr.bf16.gmra.mrb[248].mxu1 %v13509_v14  ;;  %6486 = vmatprep.mubr.bf16.mxu0 %v13533_v52  ;;  %v11549_v14 = vld [vmem:[#allocation8 + $0xc8] sm:$0xff]  }
 0x472   :  { %7258 = vmatprep.mubr.bf16.mxu1 %v13533_v52  ;;  %v11551_v52 = vld [vmem:[#allocation8 + $0x50] sm:$0xff]  }
 0x478   :  { %6487 = vmatmul.mubr.bf16.gmra.mrb[220].mxu0 %v13529_v62 }
 0x479   :  { %7259 = vmatmul.mubr.bf16.gmra.mrb[252].mxu1 %v13529_v62  ;;  %6496 = vmatprep.mubr.bf16.mxu0 %v13553_v28  ;;  %v11550_v62 = vld [vmem:[#allocation8 + $0x88] sm:$0xff]  }
 0x47a   :  { %7268 = vmatprep.mubr.bf16.mxu1 %v13553_v28  ;;  %v11554_v28 = vld [vmem:[#allocation8 + $0x90] sm:$0xff]  }
 0x480   :  { %6497 = vmatmul.mubr.bf16.gmra.mrb[224].mxu0 %v13549_v36 }
 0x481   :  { %7269 = vmatmul.mubr.bf16.gmra.mrb[0].mxu1 %v13549_v36  ;;  %6506 = vmatprep.mubr.bf16.mxu0 %v13573_v37  ;;  %v11552_v36 = vld [vmem:[#allocation8 + $0x10] sm:$0xff]  }
 0x482   :  { %7278 = vmatprep.mubr.bf16.mxu1 %v13573_v37  ;;  %v14365_v37 = vld [vmem:[#allocation37_spill] sm:$0xff] }
 0x488   :  { %6507 = vmatmul.mubr.bf16.gmra.mrb[228].mxu0 %v13569_v6 }
 0x489   :  { %7279 = vmatmul.mubr.bf16.gmra.mrb[4].mxu1 %v13569_v6  ;;  %6516 = vmatprep.mubr.bf16.mxu0 %v13593_v29  ;;  %v11555_v6 = vld [vmem:[#allocation8 + $0x58] sm:$0xff]  }
 0x48a   :  { %7288 = vmatprep.mubr.bf16.mxu1 %v13593_v29  ;;  %v11558_v29 = vld [vmem:[#allocation8 + $0x98] sm:$0xff]  }
 0x490   :  { %6517 = vmatmul.mubr.bf16.gmra.mrb[232].mxu0 %v13589_v56 }
 0x491   :  { %7289 = vmatmul.mubr.bf16.gmra.mrb[8].mxu1 %v13589_v56  ;;  %6526 = vmatprep.mubr.bf16.mxu0 %v13613_v33  ;;  %v11556_v56 = vld [vmem:[#allocation8 + $0x18] sm:$0xff]  }
 0x492   :  { %7298 = vmatprep.mubr.bf16.mxu1 %v13613_v33  ;;  %v11561_v33 = vld [vmem:[#allocation8 + $0xe0] sm:$0xff]  }
 0x498   :  { %6527 = vmatmul.mubr.bf16.gmra.mrb[236].mxu0 %v13609_v54 }
 0x499   :  { %7299 = vmatmul.mubr.bf16.gmra.mrb[12].mxu1 %v13609_v54  ;;  %6569 = vmatprep.mubr.bf16.mxu0 %v13315_v4  ;;  %v11559_v54 = vld [vmem:[#allocation8 + $0x60] sm:$0xff]  }
 0x49a   :  { %7341 = vmatprep.mubr.bf16.mxu1 %v13315_v4  ;;  %v11553_v4 = vld [vmem:[#allocation8 + $0xd0] sm:$0xff]  }
 0x4a0   :  { %6570 = vmatmul.mubr.bf16.vlgmr.msra.gmra.mrb[176].mxu0 %v13311_v19 }
 0x4a1   :  { %7342 = vmatmul.mubr.bf16.vlgmr.msra.gmra.mrb[208].mxu1 %v13311_v19  ;;  %6579 = vmatprep.mubr.bf16.mxu0 %v13335_v53  ;;  %v11557_v19 = vld [vmem:[#allocation8 + $0xd8] sm:$0xff]  }
 0x4a2   :  { %7351 = vmatprep.mubr.bf16.mxu1 %v13335_v53  ;;  %9797 = vmatpush3.bf16.msra.mxu0 %v11544_v44  ;;  %v14366_v53 = vld [vmem:[#allocation43_spill] sm:$0xff] }
 0x4a3   :  { %9909 = vmatpush3.bf16.msra.mxu1 %v11546_v0  ;;  %9798 = vmatprep.subr.bf16.mxu0 %v11547_v5  ;;  %v14394_v44 = vld [vmem:[#allocation15_spill] sm:$0xff] }
 0x4a4   :  { %9910 = vmatprep.subr.bf16.mxu1 %v11549_v14  ;;  %v13773_v0 = vrot.slane %v4656_v16, %v14394_v44  ;;  %v14395_v5 = vld [vmem:[#allocation23_spill] sm:$0xff] }
 0x4a5   :  { %v13776_v14 = vrot.slane %v4656_v16, %v14395_v5 }
 0x4a6   :  { %9799 = vmatpush3.bf16.msra.mxu0 %v11548_v24 }
 0x4a7   :  { %9911 = vmatpush3.bf16.msra.mxu1 %v11550_v62  ;;  %9800 = vmatprep.subr.bf16.mxu0 %v11551_v52 }
 0x4a8   :  { %9912 = vmatprep.subr.bf16.mxu1 %v11553_v4  ;;  %6580 = vmatmul.mubr.bf16.gmra.mrb[180].mxu0 %v14365_v37 }
 0x4a9   :  { %7352 = vmatmul.mubr.bf16.gmra.mrb[212].mxu1 %v14365_v37  ;;  %6589 = vmatprep.mubr.bf16.mxu0 %v14366_v53 }
 0x4aa   :  { %7361 = vmatprep.mubr.bf16.mxu1 %v14366_v53  ;;  %9801 = vmatpush3.bf16.msra.mxu0 %v11552_v36 }
 0x4ab   :  { %9913 = vmatpush3.bf16.msra.mxu1 %v11554_v28  ;;  %9802 = vmatprep.subr.bf16.mxu0 %v11555_v6 }
 0x4ac   :  { %9914 = vmatprep.subr.bf16.mxu1 %v11557_v19 }
 0x4ae   :  { %9803 = vmatpush3.bf16.msra.mxu0 %v11556_v56 }
 0x4af   :  { %9915 = vmatpush3.bf16.msra.mxu1 %v11558_v29  ;;  %9804 = vmatprep.subr.bf16.mxu0 %v11559_v54  ;;  %v11575_v54 = vld [vmem:[%s14066_s10] sm:$0xff]  }
 0x4b0   :  { %9916 = vmatprep.subr.bf16.mxu1 %v11561_v33  ;;  %6590 = vmatmul.mubr.bf16.gmra.mrb[184].mxu0 %v14367_v7 }
 0x4b1   :  { %7362 = vmatmul.mubr.bf16.gmra.mrb[216].mxu1 %v14367_v7  ;;  %6599 = vmatprep.mubr.bf16.mxu0 %v14368_v39 }
 0x4b2   :  { %7371 = vmatprep.mubr.bf16.mxu1 %v14368_v39  ;;  %9805 = vmatpush3.bf16.msra.mxu0 %v11560_v26 }
 0x4b3   :  { %9917 = vmatpush3.bf16.msra.mxu1 %v11562_v10  ;;  %9806 = vmatprep.subr.bf16.mxu0 %v11563_v35 }
 0x4b4   :  { %9918 = vmatprep.subr.bf16.mxu1 %v11565_v20 }
 0x4b6   :  { %9807 = vmatpush3.bf16.msra.mxu0 %v11564_v17 }
 0x4b7   :  { %9919 = vmatpush3.bf16.msra.mxu1 %v11566_v45  ;;  %9808 = vmatprep.subr.bf16.mxu0 %v11567_v47 }
 0x4b8   :  { %9920 = vmatprep.subr.bf16.mxu1 %v11569_v22  ;;  %6600 = vmatmul.mubr.bf16.gmra.mrb[188].mxu0 %v14369_v13 }
 0x4b9   :  { %7372 = vmatmul.mubr.bf16.gmra.mrb[220].mxu1 %v14369_v13  ;;  %6609 = vmatprep.mubr.bf16.mxu0 %v14370_v63 }
 0x4ba   :  { %7381 = vmatprep.mubr.bf16.mxu1 %v14370_v63  ;;  %9809 = vmatpush3.bf16.msra.mxu0 %v11568_v25 }
 0x4bb   :  { %9921 = vmatpush3.bf16.msra.mxu1 %v11570_v51  ;;  %9810 = vmatprep.subr.bf16.mxu0 %v11571_v40 }
 0x4bc   :  { %9922 = vmatprep.subr.bf16.mxu1 %v11573_v30 }
 0x4be   :  { %9811 = vmatpush3.bf16.msra.mxu0 %v11572_v42 }
 0x4bf   :  { %9923 = vmatpush3.bf16.msra.mxu1 %v11574_v3  ;;  %10044 = vmatprep.subr.bf16.mxu0 %v11575_v54 }
 0x4c0   :  { %6610 = vmatmul.mubr.bf16.gmra.mrb[192].mxu0 %v14371_v41 }
 0x4c1   :  { %7382 = vmatmul.mubr.bf16.gmra.mrb[224].mxu1 %v14371_v41  ;;  %6619 = vmatprep.mubr.bf16.mxu0 %v14372_v38 }
 0x4c2   :  { %7391 = vmatprep.mubr.bf16.mxu1 %v14372_v38  ;;  %v11576_v38 = vld [vmem:[%s14066_s10 + $0x8] sm:$0xff]  }
 0x4c8   :  { %6620 = vmatmul.mubr.bf16.gmra.mrb[196].mxu0 %v14373_v32 }
 0x4c9   :  { %7392 = vmatmul.mubr.bf16.gmra.mrb[228].mxu1 %v14373_v32  ;;  %6629 = vmatprep.mubr.bf16.mxu0 %v14374_v55 }
 0x4ca   :  { %7401 = vmatprep.mubr.bf16.mxu1 %v14374_v55 }
 0x4d0   :  { %6630 = vmatmul.mubr.bf16.gmra.mrb[200].mxu0 %v14375_v34 }
 0x4d1   :  { %7402 = vmatmul.mubr.bf16.gmra.mrb[232].mxu1 %v14375_v34  ;;  %6639 = vmatprep.mubr.bf16.mxu0 %v14376_v9 }
 0x4d2   :  { %7411 = vmatprep.mubr.bf16.mxu1 %v14376_v9 }
 0x4d8   :  { %6640 = vmatmul.mubr.bf16.gmra.mrb[204].mxu0 %v14377_v59 }
 0x4d9   :  { %7412 = vmatmul.mubr.bf16.gmra.mrb[236].mxu1 %v14377_v59  ;;  %6649 = vmatprep.mubr.bf16.mxu0 %v14378_v48 }
 0x4da   :  { %7421 = vmatprep.mubr.bf16.mxu1 %v14378_v48 }
 0x4e0   :  { %6650 = vmatmul.mubr.bf16.gmra.mrb[208].mxu0 %v14379_v2 }
 0x4e1   :  { %7422 = vmatmul.mubr.bf16.gmra.mrb[240].mxu1 %v14379_v2  ;;  %6659 = vmatprep.mubr.bf16.mxu0 %v14380_v15 }
 0x4e2   :  { %7431 = vmatprep.mubr.bf16.mxu1 %v14380_v15 }
 0x4e8   :  { %6660 = vmatmul.mubr.bf16.gmra.mrb[212].mxu0 %v14381_v43 }
 0x4e9   :  { %7432 = vmatmul.mubr.bf16.gmra.mrb[244].mxu1 %v14381_v43  ;;  %6669 = vmatprep.mubr.bf16.mxu0 %v14382_v31 }
 0x4ea   :  { %7441 = vmatprep.mubr.bf16.mxu1 %v14382_v31 }
 0x4f0   :  { %6670 = vmatmul.mubr.bf16.gmra.mrb[216].mxu0 %v14383_v27 }
 0x4f1   :  { %7442 = vmatmul.mubr.bf16.gmra.mrb[248].mxu1 %v14383_v27  ;;  %6679 = vmatprep.mubr.bf16.mxu0 %v14384_v12 }
 0x4f2   :  { %7451 = vmatprep.mubr.bf16.mxu1 %v14384_v12 }
 0x4f8   :  { %6680 = vmatmul.mubr.bf16.gmra.mrb[220].mxu0 %v14385_v61 }
 0x4f9   :  { %7452 = vmatmul.mubr.bf16.gmra.mrb[252].mxu1 %v14385_v61  ;;  %6689 = vmatprep.mubr.bf16.mxu0 %v14386_v23 }
 0x4fa   :  { %7461 = vmatprep.mubr.bf16.mxu1 %v14386_v23 }
 0x500   :  { %6690 = vmatmul.mubr.bf16.gmra.mrb[224].mxu0 %v14387_v60 }
 0x501   :  { %7462 = vmatmul.mubr.bf16.gmra.mrb[0].mxu1 %v14387_v60  ;;  %6699 = vmatprep.mubr.bf16.mxu0 %v14388_v21  ;;  %v11577_v60 = vld [vmem:[%s14066_s10 + $0x10] sm:$0xff]  }
 0x502   :  { %7471 = vmatprep.mubr.bf16.mxu1 %v14388_v21 }
 0x508   :  { %6700 = vmatmul.mubr.bf16.gmra.mrb[228].mxu0 %v14389_v8 }
 0x509   :  { %7472 = vmatmul.mubr.bf16.gmra.mrb[4].mxu1 %v14389_v8  ;;  %6709 = vmatprep.mubr.bf16.mxu0 %v14390_v11 }
 0x50a   :  { %7481 = vmatprep.mubr.bf16.mxu1 %v14390_v11 }
 0x510   :  { %6710 = vmatmul.mubr.bf16.gmra.mrb[232].mxu0 %v14391_v57 }
 0x511   :  { %7482 = vmatmul.mubr.bf16.gmra.mrb[8].mxu1 %v14391_v57  ;;  %6719 = vmatprep.mubr.bf16.mxu0 %v13615_v1 }
 0x512   :  { %7491 = vmatprep.mubr.bf16.mxu1 %v13615_v1 }
 0x518   :  { %6720 = vmatmul.mubr.bf16.gmra.mrb[236].mxu0 %v13611_v46 }
 0x519   :  { %7492 = vmatmul.mubr.bf16.gmra.mrb[12].mxu1 %v13611_v46 }
 0x573   :  { %v6571_v1 = vpop.f32.mrb[176].mxu0 }
 0x574   :  { %v7343_v24 = vpop.f32.mrb[208].mxu1  ;;  %v10352_v46 = vadd.f32 %v6571_v1, %v13767_v18  ;;  %v6573_v52 = vpop.f32.mrb[177].mxu0 }
 0x575   :  { %v10416_v62 = vadd.f32 %v7343_v24, %v13770_v50  ;;  %v7345_v4 = vpop.f32.mrb[209].mxu1  ;;  %v10353_v36 = vadd.f32 %v6573_v52, %v13773_v0  ;;  %v6575_v6 = vpop.f32.mrb[178].mxu0 }
 0x576   :  { %v10417_v28 = vadd.f32 %v7345_v4, %v13776_v14  ;;  %v7347_v19 = vpop.f32.mrb[210].mxu1  ;;  %v10354_v37 = vadd.f32 %v6575_v6, %v13767_v18  ;;  %v6577_v56 = vpop.f32.mrb[179].mxu0  ;;  %v7502_v10 = vmax.f32 %v10352_v46, 0.0  ;;  %v11578_v4 = vld [vmem:[%s14066_s10 + $0x18] sm:$0xff]  }
 0x577   :  { %v10418_v53 = vadd.f32 %v7347_v19, %v13770_v50  ;;  %v7349_v29 = vpop.f32.mrb[211].mxu1  ;;  %v10355_v33 = vadd.f32 %v6577_v56, %v13773_v0  ;;  %v7504_v35 = vmax.f32 %v10416_v62, 0.0  ;;  %v7503_v39 = vmax.f32 %v10353_v36, 0.0 }
 0x578   :  { %v10419_v26 = vadd.f32 %v7349_v29, %v13776_v14  ;;  %v7506_v20 = vmax.f32 %v10354_v37, 0.0  ;;  %v7505_v17 = vmax.f32 %v10417_v28, 0.0 }
 0x579   :  { %v7508_v7 = vmax.f32 %v10418_v53, 0.0  ;;  %v7507_v45 = vmax.f32 %v10355_v33, 0.0 }
 0x57a   :  { %v7509_v47 = vmax.f32 %v10419_v26, 0.0  ;;  %v7630_v22 = vpack.c.bf16 %v7506_v20, %v7502_v10 }
 0x57b   :  { %v7632_v25 = vpack.c.bf16 %v7508_v7, %v7504_v35  ;;  %v7631_v51 = vpack.c.bf16 %v7507_v45, %v7503_v39  ;;  %v6581_v30 = vpop.f32.mrb[180].mxu0 }
 0x57c   :  { %v7633_v40 = vpack.c.bf16 %v7509_v47, %v7505_v17  ;;  %v7353_v13 = vpop.f32.mrb[212].mxu1  ;;  %v10356_v63 = vadd.f32 %v6581_v30, %v13767_v18  ;;  %v6583_v3 = vpop.f32.mrb[181].mxu0 }
 0x57d   :  { %v10420_v42 = vadd.f32 %v7353_v13, %v13770_v50  ;;  %v7355_v41 = vpop.f32.mrb[213].mxu1  ;;  %v10357_v32 = vadd.f32 %v6583_v3, %v13773_v0  ;;  %v6585_v34 = vpop.f32.mrb[182].mxu0  ;;  %7989 = vmatprep.mubr.bf16.mxu0 %v7631_v51 }
 0x57e   :  { %v10421_v55 = vadd.f32 %v7355_v41, %v13776_v14  ;;  %v7357_v9 = vpop.f32.mrb[214].mxu1  ;;  %8150 = vmatprep.mubr.bf16.mxu1 %v7633_v40  ;;  %v10358_v59 = vadd.f32 %v6585_v34, %v13767_v18  ;;  %v6587_v2 = vpop.f32.mrb[183].mxu0  ;;  %7990 = vmatmul.mubr.bf16.vlgmr.msra.gmra.mrb[240].mxu0 %v7630_v22  ;;  %v7510_v27 = vmax.f32 %v10356_v63, 0.0 }
 0x57f   :  { %v10422_v48 = vadd.f32 %v7357_v9, %v13770_v50  ;;  %v7359_v15 = vpop.f32.mrb[215].mxu1  ;;  %8151 = vmatmul.mubr.bf16.vlgmr.msra.gmra.mrb[16].mxu1 %v7632_v25  ;;  %v10359_v43 = vadd.f32 %v6587_v2, %v13773_v0  ;;  %10045 = vmatpush3.bf16.msra.mxu0 %v11575_v54  ;;  %v7512_v12 = vmax.f32 %v10420_v42, 0.0  ;;  %v7511_v21 = vmax.f32 %v10357_v32, 0.0 }
 0x580   :  { %v10423_v31 = vadd.f32 %v7359_v15, %v13776_v14  ;;  %v7514_v61 = vmax.f32 %v10358_v59, 0.0  ;;  %10046 = vmatprep.subr.bf16.mxu0 %v11576_v38  ;;  %v7513_v8 = vmax.f32 %v10421_v55, 0.0 }
 0x581   :  { %v7516_v23 = vmax.f32 %v10422_v48, 0.0  ;;  %v7515_v11 = vmax.f32 %v10359_v43, 0.0 }
 0x582   :  { %v7517_v57 = vmax.f32 %v10423_v31, 0.0  ;;  %v7634_v16 = vpack.c.bf16 %v7514_v61, %v7510_v27 }
 0x583   :  { %v7636_v58 = vpack.c.bf16 %v7516_v23, %v7512_v12  ;;  %v7635_v49 = vpack.c.bf16 %v7515_v11, %v7511_v21  ;;  %v6591_v5 = vpop.f32.mrb[184].mxu0  ;;  %10047 = vmatpush3.bf16.msra.mxu0 %v11576_v38 }
 0x584   :  { %v7637_v44 = vpack.c.bf16 %v7517_v57, %v7513_v8  ;;  %v7363_v1 = vpop.f32.mrb[216].mxu1  ;;  %v10360_v24 = vadd.f32 %v6591_v5, %v13767_v18  ;;  %v6593_v62 = vpop.f32.mrb[185].mxu0  ;;  %10048 = vmatprep.subr.bf16.mxu0 %v11577_v60 }
 0x585   :  { %v10424_v46 = vadd.f32 %v7363_v1, %v13770_v50  ;;  %v7365_v52 = vpop.f32.mrb[217].mxu1  ;;  %v10361_v36 = vadd.f32 %v6593_v62, %v13773_v0  ;;  %v6595_v6 = vpop.f32.mrb[186].mxu0  ;;  %7997 = vmatprep.mubr.bf16.mxu0 %v7635_v49 }
 0x586   :  { %v10425_v28 = vadd.f32 %v7365_v52, %v13776_v14  ;;  %v7367_v19 = vpop.f32.mrb[218].mxu1  ;;  %8158 = vmatprep.mubr.bf16.mxu1 %v7637_v44  ;;  %v10362_v37 = vadd.f32 %v6595_v6, %v13767_v18  ;;  %v6597_v56 = vpop.f32.mrb[187].mxu0  ;;  %7998 = vmatmul.mubr.bf16.gmra.mrb[244].mxu0 %v7634_v16  ;;  %v7518_v26 = vmax.f32 %v10360_v24, 0.0 }
 0x587   :  { %v10426_v53 = vadd.f32 %v7367_v19, %v13770_v50  ;;  %v7369_v29 = vpop.f32.mrb[219].mxu1  ;;  %8159 = vmatmul.mubr.bf16.gmra.mrb[20].mxu1 %v7636_v58  ;;  %v10363_v54 = vadd.f32 %v6597_v56, %v13773_v0  ;;  %10049 = vmatpush3.bf16.msra.mxu0 %v11577_v60  ;;  %v7520_v10 = vmax.f32 %v10424_v46, 0.0  ;;  %v7519_v7 = vmax.f32 %v10361_v36, 0.0 }
 0x588   :  { %v10427_v33 = vadd.f32 %v7369_v29, %v13776_v14  ;;  %v7522_v35 = vmax.f32 %v10362_v37, 0.0  ;;  %10050 = vmatprep.subr.bf16.mxu0 %v11578_v4  ;;  %v7521_v39 = vmax.f32 %v10425_v28, 0.0 }
 0x589   :  { %v7524_v20 = vmax.f32 %v10426_v53, 0.0  ;;  %v7523_v17 = vmax.f32 %v10363_v54, 0.0 }
 0x58a   :  { %v7525_v45 = vmax.f32 %v10427_v33, 0.0  ;;  %v7638_v47 = vpack.c.bf16 %v7522_v35, %v7518_v26 }
 0x58b   :  { %v7640_v22 = vpack.c.bf16 %v7524_v20, %v7520_v10  ;;  %v7639_v25 = vpack.c.bf16 %v7523_v17, %v7519_v7  ;;  %v6601_v40 = vpop.f32.mrb[188].mxu0  ;;  %10051 = vmatpush3.bf16.msra.mxu0 %v11578_v4 }
 0x58c   :  { %v7641_v51 = vpack.c.bf16 %v7525_v45, %v7521_v39  ;;  %v7373_v30 = vpop.f32.mrb[220].mxu1  ;;  %v10364_v13 = vadd.f32 %v6601_v40, %v13767_v18  ;;  %v6603_v42 = vpop.f32.mrb[189].mxu0 }
 0x58d   :  { %v10428_v63 = vadd.f32 %v7373_v30, %v13770_v50  ;;  %v7375_v3 = vpop.f32.mrb[221].mxu1  ;;  %v10365_v41 = vadd.f32 %v6603_v42, %v13773_v0  ;;  %v6605_v32 = vpop.f32.mrb[190].mxu0  ;;  %8005 = vmatprep.mubr.bf16.mxu0 %v7639_v25 }
 0x58e   :  { %v10429_v38 = vadd.f32 %v7375_v3, %v13776_v14  ;;  %v7377_v55 = vpop.f32.mrb[222].mxu1  ;;  %8166 = vmatprep.mubr.bf16.mxu1 %v7641_v51  ;;  %v10366_v34 = vadd.f32 %v6605_v32, %v13767_v18  ;;  %v6607_v59 = vpop.f32.mrb[191].mxu0  ;;  %8006 = vmatmul.mubr.bf16.gmra.mrb[248].mxu0 %v7638_v47  ;;  %v7526_v43 = vmax.f32 %v10364_v13, 0.0 }
 0x58f   :  { %v10430_v9 = vadd.f32 %v7377_v55, %v13770_v50  ;;  %v7379_v48 = vpop.f32.mrb[223].mxu1  ;;  %8167 = vmatmul.mubr.bf16.gmra.mrb[24].mxu1 %v7640_v22  ;;  %v10367_v2 = vadd.f32 %v6607_v59, %v13773_v0  ;;  %v7528_v31 = vmax.f32 %v10428_v63, 0.0  ;;  %v7527_v61 = vmax.f32 %v10365_v41, 0.0 }
 0x590   :  { %v10431_v15 = vadd.f32 %v7379_v48, %v13776_v14  ;;  %v7530_v27 = vmax.f32 %v10366_v34, 0.0  ;;  %v7529_v23 = vmax.f32 %v10429_v38, 0.0 }
 0x591   :  { %v7532_v12 = vmax.f32 %v10430_v9, 0.0  ;;  %v7531_v60 = vmax.f32 %v10367_v2, 0.0 }
 0x592   :  { %v7533_v21 = vmax.f32 %v10431_v15, 0.0  ;;  %v7642_v8 = vpack.c.bf16 %v7530_v27, %v7526_v43 }
 0x593   :  { %v7644_v11 = vpack.c.bf16 %v7532_v12, %v7528_v31  ;;  %v7643_v57 = vpack.c.bf16 %v7531_v60, %v7527_v61  ;;  %v6611_v58 = vpop.f32.mrb[192].mxu0 }
 0x594   :  { %v7645_v16 = vpack.c.bf16 %v7533_v21, %v7529_v23  ;;  %v7383_v49 = vpop.f32.mrb[224].mxu1  ;;  %v10368_v44 = vadd.f32 %v6611_v58, %v13767_v18  ;;  %v6613_v1 = vpop.f32.mrb[193].mxu0 }
 0x595   :  { %v10432_v5 = vadd.f32 %v7383_v49, %v13770_v50  ;;  %v7385_v24 = vpop.f32.mrb[225].mxu1  ;;  %v10369_v46 = vadd.f32 %v6613_v1, %v13773_v0  ;;  %v6615_v52 = vpop.f32.mrb[194].mxu0  ;;  %8013 = vmatprep.mubr.bf16.mxu0 %v7643_v57 }
 0x596   :  { %v10433_v62 = vadd.f32 %v7385_v24, %v13776_v14  ;;  %v7387_v4 = vpop.f32.mrb[226].mxu1  ;;  %8174 = vmatprep.mubr.bf16.mxu1 %v7645_v16  ;;  %v10370_v36 = vadd.f32 %v6615_v52, %v13767_v18  ;;  %v6617_v6 = vpop.f32.mrb[195].mxu0  ;;  %8014 = vmatmul.mubr.bf16.gmra.mrb[252].mxu0 %v7642_v8  ;;  %v7534_v56 = vmax.f32 %v10368_v44, 0.0 }
 0x597   :  { %v10434_v28 = vadd.f32 %v7387_v4, %v13770_v50  ;;  %v7389_v19 = vpop.f32.mrb[227].mxu1  ;;  %8175 = vmatmul.mubr.bf16.gmra.mrb[28].mxu1 %v7644_v11  ;;  %v10371_v37 = vadd.f32 %v6617_v6, %v13773_v0  ;;  %v7536_v29 = vmax.f32 %v10432_v5, 0.0  ;;  %v7535_v26 = vmax.f32 %v10369_v46, 0.0 }
 0x598   :  { %v10435_v53 = vadd.f32 %v7389_v19, %v13776_v14  ;;  %v7538_v54 = vmax.f32 %v10370_v36, 0.0  ;;  %v7537_v10 = vmax.f32 %v10433_v62, 0.0 }
 0x599   :  { %v7540_v33 = vmax.f32 %v10434_v28, 0.0  ;;  %v7539_v35 = vmax.f32 %v10371_v37, 0.0 }
 0x59a   :  { %v7541_v20 = vmax.f32 %v10435_v53, 0.0  ;;  %v7646_v7 = vpack.c.bf16 %v7538_v54, %v7534_v56 }
 0x59b   :  { %v7648_v39 = vpack.c.bf16 %v7540_v33, %v7536_v29  ;;  %v7647_v17 = vpack.c.bf16 %v7539_v35, %v7535_v26  ;;  %v6621_v47 = vpop.f32.mrb[196].mxu0 }
 0x59c   :  { %v7649_v45 = vpack.c.bf16 %v7541_v20, %v7537_v10  ;;  %v7393_v22 = vpop.f32.mrb[228].mxu1  ;;  %v10372_v25 = vadd.f32 %v6621_v47, %v13767_v18  ;;  %v6623_v40 = vpop.f32.mrb[197].mxu0 }
 0x59d   :  { %v10436_v51 = vadd.f32 %v7393_v22, %v13770_v50  ;;  %v7395_v30 = vpop.f32.mrb[229].mxu1  ;;  %v10373_v13 = vadd.f32 %v6623_v40, %v13773_v0  ;;  %v6625_v42 = vpop.f32.mrb[198].mxu0  ;;  %8021 = vmatprep.mubr.bf16.mxu0 %v7647_v17 }
 0x59e   :  { %v10437_v63 = vadd.f32 %v7395_v30, %v13776_v14  ;;  %v7397_v3 = vpop.f32.mrb[230].mxu1  ;;  %8182 = vmatprep.mubr.bf16.mxu1 %v7649_v45  ;;  %v10374_v41 = vadd.f32 %v6625_v42, %v13767_v18  ;;  %v6627_v32 = vpop.f32.mrb[199].mxu0  ;;  %8022 = vmatmul.mubr.bf16.gmra.mrb[0].mxu0 %v7646_v7  ;;  %v7542_v59 = vmax.f32 %v10372_v25, 0.0 }
 0x59f   :  { %v10438_v38 = vadd.f32 %v7397_v3, %v13770_v50  ;;  %v7399_v55 = vpop.f32.mrb[231].mxu1  ;;  %8183 = vmatmul.mubr.bf16.gmra.mrb[32].mxu1 %v7648_v39  ;;  %v10375_v34 = vadd.f32 %v6627_v32, %v13773_v0  ;;  %v7544_v48 = vmax.f32 %v10436_v51, 0.0  ;;  %v7543_v43 = vmax.f32 %v10373_v13, 0.0 }
 0x5a0   :  { %v10439_v9 = vadd.f32 %v7399_v55, %v13776_v14  ;;  %v7546_v2 = vmax.f32 %v10374_v41, 0.0  ;;  %v7545_v31 = vmax.f32 %v10437_v63, 0.0 }
 0x5a1   :  { %v7548_v15 = vmax.f32 %v10438_v38, 0.0  ;;  %v7547_v27 = vmax.f32 %v10375_v34, 0.0 }
 0x5a2   :  { %v7549_v12 = vmax.f32 %v10439_v9, 0.0  ;;  %v7650_v61 = vpack.c.bf16 %v7546_v2, %v7542_v59 }
 0x5a3   :  { %v7652_v23 = vpack.c.bf16 %v7548_v15, %v7544_v48  ;;  %v7651_v60 = vpack.c.bf16 %v7547_v27, %v7543_v43  ;;  %v6631_v8 = vpop.f32.mrb[200].mxu0 }
 0x5a4   :  { %v7653_v21 = vpack.c.bf16 %v7549_v12, %v7545_v31  ;;  %v7403_v11 = vpop.f32.mrb[232].mxu1  ;;  %v10376_v57 = vadd.f32 %v6631_v8, %v13767_v18  ;;  %v6633_v58 = vpop.f32.mrb[201].mxu0 }
 0x5a5   :  { %v10440_v16 = vadd.f32 %v7403_v11, %v13770_v50  ;;  %v7405_v49 = vpop.f32.mrb[233].mxu1  ;;  %v10377_v44 = vadd.f32 %v6633_v58, %v13773_v0  ;;  %v6635_v1 = vpop.f32.mrb[202].mxu0  ;;  %8029 = vmatprep.mubr.bf16.mxu0 %v7651_v60 }
 0x5a6   :  { %v10441_v5 = vadd.f32 %v7405_v49, %v13776_v14  ;;  %v7407_v24 = vpop.f32.mrb[234].mxu1  ;;  %8190 = vmatprep.mubr.bf16.mxu1 %v7653_v21  ;;  %v10378_v46 = vadd.f32 %v6635_v1, %v13767_v18  ;;  %v6637_v52 = vpop.f32.mrb[203].mxu0  ;;  %8030 = vmatmul.mubr.bf16.gmra.mrb[4].mxu0 %v7650_v61  ;;  %v7550_v6 = vmax.f32 %v10376_v57, 0.0 }
 0x5a7   :  { %v10442_v62 = vadd.f32 %v7407_v24, %v13770_v50  ;;  %v7409_v4 = vpop.f32.mrb[235].mxu1  ;;  %8191 = vmatmul.mubr.bf16.gmra.mrb[36].mxu1 %v7652_v23  ;;  %v10379_v36 = vadd.f32 %v6637_v52, %v13773_v0  ;;  %v7552_v19 = vmax.f32 %v10440_v16, 0.0  ;;  %v7551_v56 = vmax.f32 %v10377_v44, 0.0 }
 0x5a8   :  { %v10443_v28 = vadd.f32 %v7409_v4, %v13776_v14  ;;  %v7554_v37 = vmax.f32 %v10378_v46, 0.0  ;;  %v7553_v29 = vmax.f32 %v10441_v5, 0.0 }
 0x5a9   :  { %v7556_v53 = vmax.f32 %v10442_v62, 0.0  ;;  %v7555_v54 = vmax.f32 %v10379_v36, 0.0 }
 0x5aa   :  { %v7557_v33 = vmax.f32 %v10443_v28, 0.0  ;;  %v7654_v26 = vpack.c.bf16 %v7554_v37, %v7550_v6 }
 0x5ab   :  { %v7656_v10 = vpack.c.bf16 %v7556_v53, %v7552_v19  ;;  %v7655_v35 = vpack.c.bf16 %v7555_v54, %v7551_v56  ;;  %v6641_v7 = vpop.f32.mrb[204].mxu0 }
 0x5ac   :  { %v7657_v20 = vpack.c.bf16 %v7557_v33, %v7553_v29  ;;  %v7413_v39 = vpop.f32.mrb[236].mxu1  ;;  %v10380_v17 = vadd.f32 %v6641_v7, %v13767_v18  ;;  %v6643_v47 = vpop.f32.mrb[205].mxu0 }
 0x5ad   :  { %v10444_v45 = vadd.f32 %v7413_v39, %v13770_v50  ;;  %v7415_v22 = vpop.f32.mrb[237].mxu1  ;;  %v10381_v25 = vadd.f32 %v6643_v47, %v13773_v0  ;;  %v6645_v40 = vpop.f32.mrb[206].mxu0  ;;  %8037 = vmatprep.mubr.bf16.mxu0 %v7655_v35 }
 0x5ae   :  { %v10445_v51 = vadd.f32 %v7415_v22, %v13776_v14  ;;  %v7417_v30 = vpop.f32.mrb[238].mxu1  ;;  %8198 = vmatprep.mubr.bf16.mxu1 %v7657_v20  ;;  %v10382_v13 = vadd.f32 %v6645_v40, %v13767_v18  ;;  %v6647_v42 = vpop.f32.mrb[207].mxu0  ;;  %8038 = vmatmul.mubr.bf16.gmra.mrb[8].mxu0 %v7654_v26  ;;  %v7558_v32 = vmax.f32 %v10380_v17, 0.0 }
 0x5af   :  { %v10446_v63 = vadd.f32 %v7417_v30, %v13770_v50  ;;  %v7419_v3 = vpop.f32.mrb[239].mxu1  ;;  %8199 = vmatmul.mubr.bf16.gmra.mrb[40].mxu1 %v7656_v10  ;;  %v10383_v41 = vadd.f32 %v6647_v42, %v13773_v0  ;;  %v7560_v55 = vmax.f32 %v10444_v45, 0.0  ;;  %v7559_v59 = vmax.f32 %v10381_v25, 0.0 }
 0x5b0   :  { %v10447_v38 = vadd.f32 %v7419_v3, %v13776_v14  ;;  %v7562_v34 = vmax.f32 %v10382_v13, 0.0  ;;  %v7561_v48 = vmax.f32 %v10445_v51, 0.0 }
 0x5b1   :  { %v7564_v9 = vmax.f32 %v10446_v63, 0.0  ;;  %v7563_v2 = vmax.f32 %v10383_v41, 0.0 }
 0x5b2   :  { %v7565_v15 = vmax.f32 %v10447_v38, 0.0  ;;  %v7658_v43 = vpack.c.bf16 %v7562_v34, %v7558_v32 }
 0x5b3   :  { %v7660_v31 = vpack.c.bf16 %v7564_v9, %v7560_v55  ;;  %v7659_v27 = vpack.c.bf16 %v7563_v2, %v7559_v59  ;;  %v6651_v61 = vpop.f32.mrb[208].mxu0 }
 0x5b4   :  { %v7661_v12 = vpack.c.bf16 %v7565_v15, %v7561_v48  ;;  %v7423_v23 = vpop.f32.mrb[240].mxu1  ;;  %v10384_v60 = vadd.f32 %v6651_v61, %v13767_v18  ;;  %v6653_v8 = vpop.f32.mrb[209].mxu0 }
 0x5b5   :  { %v10448_v21 = vadd.f32 %v7423_v23, %v13770_v50  ;;  %v7425_v11 = vpop.f32.mrb[241].mxu1  ;;  %v10385_v57 = vadd.f32 %v6653_v8, %v13773_v0  ;;  %v6655_v58 = vpop.f32.mrb[210].mxu0  ;;  %8045 = vmatprep.mubr.bf16.mxu0 %v7659_v27 }
 0x5b6   :  { %v10449_v16 = vadd.f32 %v7425_v11, %v13776_v14  ;;  %v7427_v49 = vpop.f32.mrb[242].mxu1  ;;  %8206 = vmatprep.mubr.bf16.mxu1 %v7661_v12  ;;  %v10386_v44 = vadd.f32 %v6655_v58, %v13767_v18  ;;  %v6657_v1 = vpop.f32.mrb[211].mxu0  ;;  %8046 = vmatmul.mubr.bf16.gmra.mrb[12].mxu0 %v7658_v43  ;;  %v7566_v52 = vmax.f32 %v10384_v60, 0.0 }
 0x5b7   :  { %v10450_v5 = vadd.f32 %v7427_v49, %v13770_v50  ;;  %v7429_v24 = vpop.f32.mrb[243].mxu1  ;;  %8207 = vmatmul.mubr.bf16.gmra.mrb[44].mxu1 %v7660_v31  ;;  %v10387_v46 = vadd.f32 %v6657_v1, %v13773_v0  ;;  %v7568_v4 = vmax.f32 %v10448_v21, 0.0  ;;  %v7567_v6 = vmax.f32 %v10385_v57, 0.0 }
 0x5b8   :  { %v10451_v62 = vadd.f32 %v7429_v24, %v13776_v14  ;;  %v7570_v36 = vmax.f32 %v10386_v44, 0.0  ;;  %v7569_v19 = vmax.f32 %v10449_v16, 0.0 }
 0x5b9   :  { %v7572_v28 = vmax.f32 %v10450_v5, 0.0  ;;  %v7571_v37 = vmax.f32 %v10387_v46, 0.0 }
 0x5ba   :  { %v7573_v53 = vmax.f32 %v10451_v62, 0.0  ;;  %v7662_v56 = vpack.c.bf16 %v7570_v36, %v7566_v52 }
 0x5bb   :  { %v7664_v29 = vpack.c.bf16 %v7572_v28, %v7568_v4  ;;  %v7663_v54 = vpack.c.bf16 %v7571_v37, %v7567_v6  ;;  %v6661_v26 = vpop.f32.mrb[212].mxu0 }
 0x5bc   :  { %v7665_v33 = vpack.c.bf16 %v7573_v53, %v7569_v19  ;;  %v7433_v10 = vpop.f32.mrb[244].mxu1  ;;  %v10388_v35 = vadd.f32 %v6661_v26, %v13767_v18  ;;  %v6663_v7 = vpop.f32.mrb[213].mxu0 }
 0x5bd   :  { %v10452_v20 = vadd.f32 %v7433_v10, %v13770_v50  ;;  %v7435_v39 = vpop.f32.mrb[245].mxu1  ;;  %v10389_v17 = vadd.f32 %v6663_v7, %v13773_v0  ;;  %v6665_v47 = vpop.f32.mrb[214].mxu0  ;;  %8053 = vmatprep.mubr.bf16.mxu0 %v7663_v54 }
 0x5be   :  { %v10453_v45 = vadd.f32 %v7435_v39, %v13776_v14  ;;  %v7437_v22 = vpop.f32.mrb[246].mxu1  ;;  %8214 = vmatprep.mubr.bf16.mxu1 %v7665_v33  ;;  %v10390_v25 = vadd.f32 %v6665_v47, %v13767_v18  ;;  %v6667_v40 = vpop.f32.mrb[215].mxu0  ;;  %8054 = vmatmul.mubr.bf16.gmra.mrb[16].mxu0 %v7662_v56  ;;  %v7574_v42 = vmax.f32 %v10388_v35, 0.0 }
 0x5bf   :  { %v10454_v51 = vadd.f32 %v7437_v22, %v13770_v50  ;;  %v7439_v30 = vpop.f32.mrb[247].mxu1  ;;  %8215 = vmatmul.mubr.bf16.gmra.mrb[48].mxu1 %v7664_v29  ;;  %v10391_v13 = vadd.f32 %v6667_v40, %v13773_v0  ;;  %v7576_v3 = vmax.f32 %v10452_v20, 0.0  ;;  %v7575_v32 = vmax.f32 %v10389_v17, 0.0 }
 0x5c0   :  { %v10455_v63 = vadd.f32 %v7439_v30, %v13776_v14  ;;  %v7578_v41 = vmax.f32 %v10390_v25, 0.0  ;;  %v7577_v55 = vmax.f32 %v10453_v45, 0.0 }
 0x5c1   :  { %v7580_v38 = vmax.f32 %v10454_v51, 0.0  ;;  %v7579_v34 = vmax.f32 %v10391_v13, 0.0 }
 0x5c2   :  { %v7581_v9 = vmax.f32 %v10455_v63, 0.0  ;;  %v7666_v59 = vpack.c.bf16 %v7578_v41, %v7574_v42 }
 0x5c3   :  { %v7668_v48 = vpack.c.bf16 %v7580_v38, %v7576_v3  ;;  %v7667_v2 = vpack.c.bf16 %v7579_v34, %v7575_v32  ;;  %v6671_v43 = vpop.f32.mrb[216].mxu0 }
 0x5c4   :  { %v7669_v15 = vpack.c.bf16 %v7581_v9, %v7577_v55  ;;  %v7443_v31 = vpop.f32.mrb[248].mxu1  ;;  %v10392_v27 = vadd.f32 %v6671_v43, %v13767_v18  ;;  %v6673_v61 = vpop.f32.mrb[217].mxu0 }
 0x5c5   :  { %v10456_v12 = vadd.f32 %v7443_v31, %v13770_v50  ;;  %v7445_v23 = vpop.f32.mrb[249].mxu1  ;;  %v10393_v60 = vadd.f32 %v6673_v61, %v13773_v0  ;;  %v6675_v8 = vpop.f32.mrb[218].mxu0  ;;  %8061 = vmatprep.mubr.bf16.mxu0 %v7667_v2 }
 0x5c6   :  { %v10457_v21 = vadd.f32 %v7445_v23, %v13776_v14  ;;  %v7447_v11 = vpop.f32.mrb[250].mxu1  ;;  %8222 = vmatprep.mubr.bf16.mxu1 %v7669_v15  ;;  %v10394_v57 = vadd.f32 %v6675_v8, %v13767_v18  ;;  %v6677_v58 = vpop.f32.mrb[219].mxu0  ;;  %8062 = vmatmul.mubr.bf16.gmra.mrb[20].mxu0 %v7666_v59  ;;  %v7582_v1 = vmax.f32 %v10392_v27, 0.0 }
 0x5c7   :  { %v10458_v16 = vadd.f32 %v7447_v11, %v13770_v50  ;;  %v7449_v49 = vpop.f32.mrb[251].mxu1  ;;  %8223 = vmatmul.mubr.bf16.gmra.mrb[52].mxu1 %v7668_v48  ;;  %v10395_v44 = vadd.f32 %v6677_v58, %v13773_v0  ;;  %v7584_v24 = vmax.f32 %v10456_v12, 0.0  ;;  %v7583_v52 = vmax.f32 %v10393_v60, 0.0  ;;  %v11579_v58 = vld [vmem:[%s14066_s10 + $0x20] sm:$0xff]  }
 0x5c8   :  { %v10459_v5 = vadd.f32 %v7449_v49, %v13776_v14  ;;  %v7586_v46 = vmax.f32 %v10394_v57, 0.0  ;;  %v7585_v4 = vmax.f32 %v10457_v21, 0.0  ;;  %10052 = vmatprep.subr.bf16.mxu0 %v11579_v58 }
 0x5c9   :  { %v7588_v62 = vmax.f32 %v10458_v16, 0.0  ;;  %v7587_v36 = vmax.f32 %v10395_v44, 0.0  ;;  %10053 = vmatpush3.bf16.msra.mxu0 %v11579_v58 }
 0x5ca   :  { %v7589_v28 = vmax.f32 %v10459_v5, 0.0  ;;  %v7670_v6 = vpack.c.bf16 %v7586_v46, %v7582_v1 }
 0x5cb   :  { %v7672_v19 = vpack.c.bf16 %v7588_v62, %v7584_v24  ;;  %v7671_v37 = vpack.c.bf16 %v7587_v36, %v7583_v52  ;;  %v6681_v56 = vpop.f32.mrb[220].mxu0 }
 0x5cc   :  { %v7673_v53 = vpack.c.bf16 %v7589_v28, %v7585_v4  ;;  %v7453_v29 = vpop.f32.mrb[252].mxu1  ;;  %v10396_v54 = vadd.f32 %v6681_v56, %v13767_v18  ;;  %v6683_v26 = vpop.f32.mrb[221].mxu0 }
 0x5cd   :  { %v10460_v33 = vadd.f32 %v7453_v29, %v13770_v50  ;;  %v7455_v10 = vpop.f32.mrb[253].mxu1  ;;  %v10397_v35 = vadd.f32 %v6683_v26, %v13773_v0  ;;  %v6685_v7 = vpop.f32.mrb[222].mxu0  ;;  %8069 = vmatprep.mubr.bf16.mxu0 %v7671_v37 }
 0x5ce   :  { %v10461_v20 = vadd.f32 %v7455_v10, %v13776_v14  ;;  %v7457_v39 = vpop.f32.mrb[254].mxu1  ;;  %8230 = vmatprep.mubr.bf16.mxu1 %v7673_v53  ;;  %v10398_v17 = vadd.f32 %v6685_v7, %v13767_v18  ;;  %v6687_v47 = vpop.f32.mrb[223].mxu0  ;;  %8070 = vmatmul.mubr.bf16.gmra.mrb[24].mxu0 %v7670_v6  ;;  %v7590_v40 = vmax.f32 %v10396_v54, 0.0  ;;  %v11580_v53 = vld [vmem:[%s14066_s10 + $0x28] sm:$0xff]  }
 0x5cf   :  { %v10462_v45 = vadd.f32 %v7457_v39, %v13770_v50  ;;  %v7459_v22 = vpop.f32.mrb[255].mxu1  ;;  %8231 = vmatmul.mubr.bf16.gmra.mrb[56].mxu1 %v7672_v19  ;;  %v10399_v25 = vadd.f32 %v6687_v47, %v13773_v0  ;;  %v7592_v30 = vmax.f32 %v10460_v33, 0.0  ;;  %v7591_v42 = vmax.f32 %v10397_v35, 0.0  ;;  %10054 = vmatprep.subr.bf16.mxu0 %v11580_v53 }
 0x5d0   :  { %v10463_v51 = vadd.f32 %v7459_v22, %v13776_v14  ;;  %v7594_v13 = vmax.f32 %v10398_v17, 0.0  ;;  %v7593_v3 = vmax.f32 %v10461_v20, 0.0  ;;  %10055 = vmatpush3.bf16.msra.mxu0 %v11580_v53 }
 0x5d1   :  { %v7596_v63 = vmax.f32 %v10462_v45, 0.0  ;;  %v7595_v41 = vmax.f32 %v10399_v25, 0.0  ;;  %v11581_v25 = vld [vmem:[%s14066_s10 + $0x30] sm:$0xff]  }
 0x5d2   :  { %v7597_v38 = vmax.f32 %v10463_v51, 0.0  ;;  %v7674_v32 = vpack.c.bf16 %v7594_v13, %v7590_v40  ;;  %10056 = vmatprep.subr.bf16.mxu0 %v11581_v25 }
 0x5d3   :  { %v7676_v55 = vpack.c.bf16 %v7596_v63, %v7592_v30  ;;  %v7675_v34 = vpack.c.bf16 %v7595_v41, %v7591_v42  ;;  %v6691_v59 = vpop.f32.mrb[224].mxu0 }
 0x5d4   :  { %v7677_v9 = vpack.c.bf16 %v7597_v38, %v7593_v3  ;;  %v7463_v48 = vpop.f32.mrb[0].mxu1  ;;  %v10400_v2 = vadd.f32 %v6691_v59, %v13767_v18  ;;  %v6693_v43 = vpop.f32.mrb[225].mxu0  ;;  %10057 = vmatpush3.bf16.msra.mxu0 %v11581_v25 }
 0x5d5   :  { %v10464_v15 = vadd.f32 %v7463_v48, %v13770_v50  ;;  %v7465_v31 = vpop.f32.mrb[1].mxu1  ;;  %v10401_v27 = vadd.f32 %v6693_v43, %v13773_v0  ;;  %v6695_v61 = vpop.f32.mrb[226].mxu0  ;;  %8077 = vmatprep.mubr.bf16.mxu0 %v7675_v34  ;;  %v11582_v48 = vld [vmem:[%s14066_s10 + $0x38] sm:$0xff]  }
 0x5d6   :  { %v10465_v12 = vadd.f32 %v7465_v31, %v13776_v14  ;;  %v7467_v23 = vpop.f32.mrb[2].mxu1  ;;  %8238 = vmatprep.mubr.bf16.mxu1 %v7677_v9  ;;  %v10402_v60 = vadd.f32 %v6695_v61, %v13767_v18  ;;  %v6697_v8 = vpop.f32.mrb[227].mxu0  ;;  %8078 = vmatmul.mubr.bf16.gmra.mrb[28].mxu0 %v7674_v32  ;;  %v7598_v49 = vmax.f32 %v10400_v2, 0.0 }
 0x5d7   :  { %v10466_v21 = vadd.f32 %v7467_v23, %v13770_v50  ;;  %v7469_v11 = vpop.f32.mrb[3].mxu1  ;;  %8239 = vmatmul.mubr.bf16.gmra.mrb[60].mxu1 %v7676_v55  ;;  %v10403_v57 = vadd.f32 %v6697_v8, %v13773_v0  ;;  %v7600_v44 = vmax.f32 %v10464_v15, 0.0  ;;  %v7599_v24 = vmax.f32 %v10401_v27, 0.0  ;;  %10058 = vmatprep.subr.bf16.mxu0 %v11582_v48 }
 0x5d8   :  { %v10467_v16 = vadd.f32 %v7469_v11, %v13776_v14  ;;  %v7602_v5 = vmax.f32 %v10402_v60, 0.0  ;;  %v7601_v46 = vmax.f32 %v10465_v12, 0.0  ;;  %10059 = vmatpush3.bf16.msra.mxu0 %v11582_v48 }
 0x5d9   :  { %v7604_v1 = vmax.f32 %v10466_v21, 0.0  ;;  %v7603_v62 = vmax.f32 %v10403_v57, 0.0 }
 0x5da   :  { %v7605_v52 = vmax.f32 %v10467_v16, 0.0  ;;  %v7678_v4 = vpack.c.bf16 %v7602_v5, %v7598_v49 }
 0x5db   :  { %v7680_v36 = vpack.c.bf16 %v7604_v1, %v7600_v44  ;;  %v7679_v28 = vpack.c.bf16 %v7603_v62, %v7599_v24  ;;  %v6701_v19 = vpop.f32.mrb[228].mxu0 }
 0x5dc   :  { %v7681_v6 = vpack.c.bf16 %v7605_v52, %v7601_v46  ;;  %v7473_v37 = vpop.f32.mrb[4].mxu1  ;;  %v10404_v56 = vadd.f32 %v6701_v19, %v13767_v18  ;;  %v6703_v54 = vpop.f32.mrb[229].mxu0 }
 0x5dd   :  { %v10468_v29 = vadd.f32 %v7473_v37, %v13770_v50  ;;  %v7475_v33 = vpop.f32.mrb[5].mxu1  ;;  %v10405_v26 = vadd.f32 %v6703_v54, %v13773_v0  ;;  %v6705_v35 = vpop.f32.mrb[230].mxu0  ;;  %8085 = vmatprep.mubr.bf16.mxu0 %v7679_v28 }
 0x5de   :  { %v10469_v10 = vadd.f32 %v7475_v33, %v13776_v14  ;;  %v7477_v20 = vpop.f32.mrb[6].mxu1  ;;  %8246 = vmatprep.mubr.bf16.mxu1 %v7681_v6  ;;  %v10406_v7 = vadd.f32 %v6705_v35, %v13767_v18  ;;  %v6707_v17 = vpop.f32.mrb[231].mxu0  ;;  %8086 = vmatmul.mubr.bf16.gmra.mrb[32].mxu0 %v7678_v4  ;;  %v7606_v51 = vmax.f32 %v10404_v56, 0.0 }
 0x5df   :  { %v10470_v39 = vadd.f32 %v7477_v20, %v13770_v50  ;;  %v7479_v45 = vpop.f32.mrb[7].mxu1  ;;  %8247 = vmatmul.mubr.bf16.gmra.mrb[64].mxu1 %v7680_v36  ;;  %v10407_v47 = vadd.f32 %v6707_v17, %v13773_v0  ;;  %v7608_v40 = vmax.f32 %v10468_v29, 0.0  ;;  %v7607_v63 = vmax.f32 %v10405_v26, 0.0 }
 0x5e0   :  { %v10471_v22 = vadd.f32 %v7479_v45, %v13776_v14  ;;  %v7610_v30 = vmax.f32 %v10406_v7, 0.0  ;;  %v7609_v42 = vmax.f32 %v10469_v10, 0.0 }
 0x5e1   :  { %v7612_v13 = vmax.f32 %v10470_v39, 0.0  ;;  %v7611_v3 = vmax.f32 %v10407_v47, 0.0 }
 0x5e2   :  { %v7613_v41 = vmax.f32 %v10471_v22, 0.0  ;;  %v7682_v38 = vpack.c.bf16 %v7610_v30, %v7606_v51 }
 0x5e3   :  { %v7684_v32 = vpack.c.bf16 %v7612_v13, %v7608_v40  ;;  %v7683_v55 = vpack.c.bf16 %v7611_v3, %v7607_v63  ;;  %v6711_v9 = vpop.f32.mrb[232].mxu0 }
 0x5e4   :  { %v7685_v34 = vpack.c.bf16 %v7613_v41, %v7609_v42  ;;  %v7483_v59 = vpop.f32.mrb[8].mxu1  ;;  %v10408_v2 = vadd.f32 %v6711_v9, %v13767_v18  ;;  %v6713_v43 = vpop.f32.mrb[233].mxu0 }
 0x5e5   :  { %v10472_v15 = vadd.f32 %v7483_v59, %v13770_v50  ;;  %v7485_v31 = vpop.f32.mrb[9].mxu1  ;;  %v10409_v27 = vadd.f32 %v6713_v43, %v13773_v0  ;;  %v6715_v61 = vpop.f32.mrb[234].mxu0  ;;  %8093 = vmatprep.mubr.bf16.mxu0 %v7683_v55 }
 0x5e6   :  { %v10473_v12 = vadd.f32 %v7485_v31, %v13776_v14  ;;  %v7487_v23 = vpop.f32.mrb[10].mxu1  ;;  %8254 = vmatprep.mubr.bf16.mxu1 %v7685_v34  ;;  %v10410_v60 = vadd.f32 %v6715_v61, %v13767_v18  ;;  %v6717_v8 = vpop.f32.mrb[235].mxu0  ;;  %8094 = vmatmul.mubr.bf16.gmra.mrb[36].mxu0 %v7682_v38  ;;  %v7614_v58 = vmax.f32 %v10408_v2, 0.0 }
 0x5e7   :  { %v10474_v21 = vadd.f32 %v7487_v23, %v13770_v50  ;;  %v7489_v11 = vpop.f32.mrb[11].mxu1  ;;  %8255 = vmatmul.mubr.bf16.gmra.mrb[68].mxu1 %v7684_v32  ;;  %v10411_v57 = vadd.f32 %v6717_v8, %v13773_v0  ;;  %v7616_v49 = vmax.f32 %v10472_v15, 0.0  ;;  %v7615_v1 = vmax.f32 %v10409_v27, 0.0 }
 0x5e8   :  { %v10475_v16 = vadd.f32 %v7489_v11, %v13776_v14  ;;  %v7618_v44 = vmax.f32 %v10410_v60, 0.0  ;;  %v7617_v24 = vmax.f32 %v10473_v12, 0.0  ;;  %v13939_v27 = vstv %s14065_s9 }
 0x5e9   :  { %v7620_v5 = vmax.f32 %v10474_v21, 0.0  ;;  %v7619_v46 = vmax.f32 %v10411_v57, 0.0 }
 0x5ea   :  { %v7621_v62 = vmax.f32 %v10475_v16, 0.0  ;;  %v7686_v52 = vpack.c.bf16 %v7618_v44, %v7614_v58 }
 0x5eb   :  { %v7688_v4 = vpack.c.bf16 %v7620_v5, %v7616_v49  ;;  %v7687_v36 = vpack.c.bf16 %v7619_v46, %v7615_v1  ;;  %v6721_v6 = vpop.f32.mrb[236].mxu0 }
 0x5ec   :  { %v7689_v28 = vpack.c.bf16 %v7621_v62, %v7617_v24  ;;  %v7493_v19 = vpop.f32.mrb[12].mxu1  ;;  %v10412_v37 = vadd.f32 %v6721_v6, %v13767_v18  ;;  %v6723_v56 = vpop.f32.mrb[237].mxu0 }
 0x5ed   :  { %v10476_v53 = vadd.f32 %v7493_v19, %v13770_v50  ;;  %v7495_v29 = vpop.f32.mrb[13].mxu1  ;;  %v10413_v54 = vadd.f32 %v6723_v56, %v13773_v0  ;;  %v6725_v26 = vpop.f32.mrb[238].mxu0  ;;  %8101 = vmatprep.mubr.bf16.mxu0 %v7687_v36 }
 0x5ee   :  { %v10477_v33 = vadd.f32 %v7495_v29, %v13776_v14  ;;  %v7497_v10 = vpop.f32.mrb[14].mxu1  ;;  %8262 = vmatprep.mubr.bf16.mxu1 %v7689_v28  ;;  %v10414_v35 = vadd.f32 %v6725_v26, %v13767_v18  ;;  %v6727_v7 = vpop.f32.mrb[239].mxu0  ;;  %8102 = vmatmul.mubr.bf16.gmra.mrb[40].mxu0 %v7686_v52  ;;  %v7622_v47 = vmax.f32 %v10412_v37, 0.0 }
 0x5ef   :  { %v10478_v20 = vadd.f32 %v7497_v10, %v13770_v50  ;;  %v7499_v39 = vpop.f32.mrb[15].mxu1  ;;  %8263 = vmatmul.mubr.bf16.gmra.mrb[72].mxu1 %v7688_v4  ;;  %v10415_v17 = vadd.f32 %v6727_v7, %v13773_v0  ;;  %v7624_v22 = vmax.f32 %v10476_v53, 0.0  ;;  %v7623_v40 = vmax.f32 %v10413_v54, 0.0 }
 0x5f0   :  { %v10479_v45 = vadd.f32 %v7499_v39, %v13776_v14  ;;  %v7626_v25 = vmax.f32 %v10414_v35, 0.0  ;;  %v7625_v30 = vmax.f32 %v10477_v33, 0.0  ;;  %v13933_v14 = vld [vmem:[%s14064_s8] ss:$0 sm:$0xff] }
 0x5f1   :  { %v7628_v51 = vmax.f32 %v10478_v20, 0.0  ;;  %v7627_v13 = vmax.f32 %v10415_v17, 0.0 }
 0x5f2   :  { %v7629_v63 = vmax.f32 %v10479_v45, 0.0  ;;  %v7690_v42 = vpack.c.bf16 %v7626_v25, %v7622_v47 }
 0x5f3   :  { %v7692_v18 = vpack.c.bf16 %v7628_v51, %v7624_v22  ;;  %v7691_v3 = vpack.c.bf16 %v7627_v13, %v7623_v40 }
 0x5f4   :  { %v7693_v50 = vpack.c.bf16 %v7629_v63, %v7625_v30 }
 0x5f5   :  { %8109 = vmatprep.mubr.bf16.mxu0 %v7691_v3 }
 0x5f6   :  { %8270 = vmatprep.mubr.bf16.mxu1 %v7693_v50  ;;  %8110 = vmatmul.mubr.bf16.gmra.mrb[44].mxu0 %v7690_v42 }
 0x5f7   :  { %8271 = vmatmul.mubr.bf16.gmra.mrb[76].mxu1 %v7692_v18 }
 0x651   :  { %v9812_v41 = vpop.f32.mrb[240].mxu0 }
 0x652   :  { %v9924_v0 = vpop.f32.mrb[16].mxu1  ;;  %v9813_v38 = vpop.f32.mrb[241].mxu0 }
 0x653   :  { %v9925_v32 = vpop.f32.mrb[17].mxu1  ;;  %v9814_v55 = vadd.f32 %v9813_v38, %v9812_v41  ;;  %v9815_v9 = vpop.f32.mrb[242].mxu0 }
 0x654   :  { %v9926_v34 = vadd.f32 %v9925_v32, %v9924_v0  ;;  %v9927_v59 = vpop.f32.mrb[18].mxu1  ;;  %v9816_v48 = vpop.f32.mrb[243].mxu0 }
 0x655   :  { %v9928_v2 = vpop.f32.mrb[19].mxu1  ;;  %v7992_v15 = vadd.f32 %v9814_v55, %v13933_v14  ;;  %v9817_v43 = vadd.f32 %v9816_v48, %v9815_v9 }
 0x656   :  { %v9929_v31 = vadd.f32 %v9928_v2, %v9927_v59 }
 0x657   :  { %v8153_v12 = vadd.f32 %v9926_v34, %v7992_v15  ;;  %v7995_v61 = vadd.f32 %v9817_v43, %v13933_v14 }
 0x659   :  { %vm8280_vm1 = vcmp.gt.f32.partialorder %v8153_v12, 0.0  ;;  %v8313_v23 = vmul.f32 %v13939_v27, %v8153_v12  ;;  %v8156_v60 = vadd.f32 %v9929_v31, %v7995_v61  ;;  %v9818_v21 = vpop.f32.mrb[244].mxu0 }
 0x65a   :  { %v9930_v8 = vpop.f32.mrb[20].mxu1  ;;  %v9819_v11 = vpop.f32.mrb[245].mxu0 }
 0x65b   :  { %v9931_v57 = vpop.f32.mrb[21].mxu1  ;;  %vm8281_vm2 = vcmp.gt.f32.partialorder %v8156_v60, 0.0  ;;  %v8314_v16 = vmul.f32 %v13939_v27, %v8156_v60  ;;  %v9820_v58 = vadd.f32 %v9819_v11, %v9818_v21  ;;  %v9821_v44 = vpop.f32.mrb[246].mxu0  ;;  %v8345_v46 = vsel %vm8280_vm1, %v8153_v12, %v8313_v23 }
 0x65c   :  { %v9932_v49 = vadd.f32 %v9931_v57, %v9930_v8  ;;  %v9933_v5 = vpop.f32.mrb[22].mxu1  ;;  %v9822_v1 = vpop.f32.mrb[247].mxu0 }
 0x65d   :  { %v9934_v24 = vpop.f32.mrb[23].mxu1  ;;  %v8000_v62 = vadd.f32 %v9820_v58, %v13933_v14  ;;  %v9823_v52 = vadd.f32 %v9822_v1, %v9821_v44  ;;  %v8346_v36 = vsel %vm8281_vm2, %v8156_v60, %v8314_v16 }
 0x65e   :  { %v9935_v4 = vadd.f32 %v9934_v24, %v9933_v5  ;;  %v8377_v28 = vpack.c.bf16 %v8346_v36, %v8345_v46 }
 0x65f   :  { %v8161_v6 = vadd.f32 %v9932_v49, %v8000_v62  ;;  %v8003_v19 = vadd.f32 %v9823_v52, %v13933_v14 }
 0x660   :  { %10060 = vmatprep.mubr.bf16.mxu0 %v8377_v28 }
 0x661   :  { %vm8282_vm3 = vcmp.gt.f32.partialorder %v8161_v6, 0.0  ;;  %v8315_v37 = vmul.f32 %v13939_v27, %v8161_v6  ;;  %v8164_v53 = vadd.f32 %v9935_v4, %v8003_v19  ;;  %v9824_v56 = vpop.f32.mrb[248].mxu0 }
 0x662   :  { %v9936_v29 = vpop.f32.mrb[24].mxu1  ;;  %v9825_v54 = vpop.f32.mrb[249].mxu0 }
 0x663   :  { %v9937_v33 = vpop.f32.mrb[25].mxu1  ;;  %vm8283_vm4 = vcmp.gt.f32.partialorder %v8164_v53, 0.0  ;;  %v8316_v26 = vmul.f32 %v13939_v27, %v8164_v53  ;;  %v9826_v10 = vadd.f32 %v9825_v54, %v9824_v56  ;;  %v9827_v35 = vpop.f32.mrb[250].mxu0  ;;  %v8347_v7 = vsel %vm8282_vm3, %v8161_v6, %v8315_v37 }
 0x664   :  { %v9939_v20 = vpop.f32.mrb[26].mxu1  ;;  %v9938_v39 = vadd.f32 %v9937_v33, %v9936_v29  ;;  %v9828_v17 = vpop.f32.mrb[251].mxu0 }
 0x665   :  { %v9940_v45 = vpop.f32.mrb[27].mxu1  ;;  %v8348_v47 = vsel %vm8283_vm4, %v8164_v53, %v8316_v26  ;;  %v8008_v22 = vadd.f32 %v9826_v10, %v13933_v14  ;;  %v9829_v25 = vadd.f32 %v9828_v17, %v9827_v35 }
 0x666   :  { %v9941_v51 = vadd.f32 %v9940_v45, %v9939_v20  ;;  %v8378_v40 = vpack.c.bf16 %v8348_v47, %v8347_v7 }
 0x667   :  { %v8169_v30 = vadd.f32 %v9938_v39, %v8008_v22  ;;  %v8011_v13 = vadd.f32 %v9829_v25, %v13933_v14 }
 0x668   :  { %10061 = vmatmul.mubr.bf16.vlgmr.msra.gmra.mrb[48].mxu0 %v8378_v40 }
 0x669   :  { %vm8284_vm5 = vcmp.gt.f32.partialorder %v8169_v30, 0.0  ;;  %v8317_v63 = vmul.f32 %v13939_v27, %v8169_v30  ;;  %v8172_v42 = vadd.f32 %v9941_v51, %v8011_v13  ;;  %v9830_v18 = vpop.f32.mrb[252].mxu0 }
 0x66a   :  { %v9942_v3 = vpop.f32.mrb[28].mxu1  ;;  %v9831_v50 = vpop.f32.mrb[253].mxu0 }
 0x66b   :  { %v9943_v41 = vpop.f32.mrb[29].mxu1  ;;  %vm8285_vm6 = vcmp.gt.f32.partialorder %v8172_v42, 0.0  ;;  %v8318_v0 = vmul.f32 %v13939_v27, %v8172_v42  ;;  %v9832_v38 = vadd.f32 %v9831_v50, %v9830_v18  ;;  %v9833_v55 = vpop.f32.mrb[254].mxu0  ;;  %v8349_v48 = vsel %vm8284_vm5, %v8169_v30, %v8317_v63 }
 0x66c   :  { %v9944_v32 = vadd.f32 %v9943_v41, %v9942_v3  ;;  %v9945_v34 = vpop.f32.mrb[30].mxu1  ;;  %v9834_v9 = vpop.f32.mrb[255].mxu0 }
 0x66d   :  { %v9946_v59 = vpop.f32.mrb[31].mxu1  ;;  %v8016_v2 = vadd.f32 %v9832_v38, %v13933_v14  ;;  %v9835_v15 = vadd.f32 %v9834_v9, %v9833_v55  ;;  %v8350_v31 = vsel %vm8285_vm6, %v8172_v42, %v8318_v0 }
 0x66e   :  { %v9947_v43 = vadd.f32 %v9946_v59, %v9945_v34  ;;  %v8379_v12 = vpack.c.bf16 %v8350_v31, %v8349_v48 }
 0x66f   :  { %v8177_v61 = vadd.f32 %v9944_v32, %v8016_v2  ;;  %v8019_v23 = vadd.f32 %v9835_v15, %v13933_v14 }
 0x670   :  { %10064 = vmatprep.mubr.bf16.mxu0 %v8379_v12 }
 0x671   :  { %vm8286_vm7 = vcmp.gt.f32.partialorder %v8177_v61, 0.0  ;;  %v8319_v60 = vmul.f32 %v13939_v27, %v8177_v61  ;;  %v8180_v21 = vadd.f32 %v9947_v43, %v8019_v23  ;;  %v9836_v8 = vpop.f32.mrb[0].mxu0 }
 0x672   :  { %v9948_v11 = vpop.f32.mrb[32].mxu1  ;;  %v9837_v57 = vpop.f32.mrb[1].mxu0 }
 0x673   :  { %v9949_v16 = vpop.f32.mrb[33].mxu1  ;;  %vm8287_vm8 = vcmp.gt.f32.partialorder %v8180_v21, 0.0  ;;  %v8320_v58 = vmul.f32 %v13939_v27, %v8180_v21  ;;  %v9838_v49 = vadd.f32 %v9837_v57, %v9836_v8  ;;  %v9839_v44 = vpop.f32.mrb[2].mxu0  ;;  %v8351_v1 = vsel %vm8286_vm7, %v8177_v61, %v8319_v60 }
 0x674   :  { %v9951_v5 = vpop.f32.mrb[34].mxu1  ;;  %v9950_v24 = vadd.f32 %v9949_v16, %v9948_v11  ;;  %v9840_v46 = vpop.f32.mrb[3].mxu0 }
 0x675   :  { %v9952_v62 = vpop.f32.mrb[35].mxu1  ;;  %v8352_v52 = vsel %vm8287_vm8, %v8180_v21, %v8320_v58  ;;  %v8024_v4 = vadd.f32 %v9838_v49, %v13933_v14  ;;  %v9841_v36 = vadd.f32 %v9840_v46, %v9839_v44 }
 0x676   :  { %v9953_v28 = vadd.f32 %v9952_v62, %v9951_v5  ;;  %v8380_v6 = vpack.c.bf16 %v8352_v52, %v8351_v1 }
 0x677   :  { %v8185_v19 = vadd.f32 %v9950_v24, %v8024_v4  ;;  %v8027_v37 = vadd.f32 %v9841_v36, %v13933_v14 }
 0x678   :  { %10065 = vmatmul.mubr.bf16.gmra.mrb[52].mxu0 %v8380_v6 }
 0x679   :  { %vm8288_vm9 = vcmp.gt.f32.partialorder %v8185_v19, 0.0  ;;  %v8321_v53 = vmul.f32 %v13939_v27, %v8185_v19  ;;  %v8188_v56 = vadd.f32 %v9953_v28, %v8027_v37  ;;  %v9842_v29 = vpop.f32.mrb[4].mxu0 }
 0x67a   :  { %v9954_v54 = vpop.f32.mrb[36].mxu1  ;;  %v9843_v33 = vpop.f32.mrb[5].mxu0 }
 0x67b   :  { %v9955_v26 = vpop.f32.mrb[37].mxu1  ;;  %vm8289_vm10 = vcmp.gt.f32.partialorder %v8188_v56, 0.0  ;;  %v8322_v10 = vmul.f32 %v13939_v27, %v8188_v56  ;;  %v9844_v35 = vadd.f32 %v9843_v33, %v9842_v29  ;;  %v9845_v7 = vpop.f32.mrb[6].mxu0  ;;  %v8353_v47 = vsel %vm8288_vm9, %v8185_v19, %v8321_v53 }
 0x67c   :  { %v9956_v20 = vadd.f32 %v9955_v26, %v9954_v54  ;;  %v9957_v39 = vpop.f32.mrb[38].mxu1  ;;  %v9846_v17 = vpop.f32.mrb[7].mxu0 }
 0x67d   :  { %v9958_v45 = vpop.f32.mrb[39].mxu1  ;;  %v8032_v22 = vadd.f32 %v9844_v35, %v13933_v14  ;;  %v9847_v25 = vadd.f32 %v9846_v17, %v9845_v7  ;;  %v8354_v40 = vsel %vm8289_vm10, %v8188_v56, %v8322_v10 }
 0x67e   :  { %v9959_v51 = vadd.f32 %v9958_v45, %v9957_v39  ;;  %v8381_v30 = vpack.c.bf16 %v8354_v40, %v8353_v47 }
 0x67f   :  { %v8193_v13 = vadd.f32 %v9956_v20, %v8032_v22  ;;  %v8035_v63 = vadd.f32 %v9847_v25, %v13933_v14 }
 0x680   :  { %10068 = vmatprep.mubr.bf16.mxu0 %v8381_v30 }
 0x681   :  { %vm8290_vm11 = vcmp.gt.f32.partialorder %v8193_v13, 0.0  ;;  %v8323_v42 = vmul.f32 %v13939_v27, %v8193_v13  ;;  %v8196_v18 = vadd.f32 %v9959_v51, %v8035_v63  ;;  %v9848_v3 = vpop.f32.mrb[8].mxu0 }
 0x682   :  { %v9960_v50 = vpop.f32.mrb[40].mxu1  ;;  %v9849_v41 = vpop.f32.mrb[9].mxu0 }
 0x683   :  { %v9961_v0 = vpop.f32.mrb[41].mxu1  ;;  %vm8291_vm12 = vcmp.gt.f32.partialorder %v8196_v18, 0.0  ;;  %v8324_v38 = vmul.f32 %v13939_v27, %v8196_v18  ;;  %v9850_v32 = vadd.f32 %v9849_v41, %v9848_v3  ;;  %v9851_v55 = vpop.f32.mrb[10].mxu0  ;;  %v8355_v9 = vsel %vm8290_vm11, %v8193_v13, %v8323_v42 }
 0x684   :  { %v9963_v34 = vpop.f32.mrb[42].mxu1  ;;  %v9962_v59 = vadd.f32 %v9961_v0, %v9960_v50  ;;  %v9852_v48 = vpop.f32.mrb[11].mxu0 }
 0x685   :  { %v9964_v2 = vpop.f32.mrb[43].mxu1  ;;  %v8356_v15 = vsel %vm8291_vm12, %v8196_v18, %v8324_v38  ;;  %v8040_v43 = vadd.f32 %v9850_v32, %v13933_v14  ;;  %v9853_v31 = vadd.f32 %v9852_v48, %v9851_v55 }
 0x686   :  { %v9965_v12 = vadd.f32 %v9964_v2, %v9963_v34  ;;  %v8382_v61 = vpack.c.bf16 %v8356_v15, %v8355_v9 }
 0x687   :  { %v8201_v23 = vadd.f32 %v9962_v59, %v8040_v43  ;;  %v8043_v60 = vadd.f32 %v9853_v31, %v13933_v14 }
 0x688   :  { %10069 = vmatmul.mubr.bf16.gmra.mrb[56].mxu0 %v8382_v61 }
 0x689   :  { %vm8292_vm13 = vcmp.gt.f32.partialorder %v8201_v23, 0.0  ;;  %v8325_v21 = vmul.f32 %v13939_v27, %v8201_v23  ;;  %v8204_v8 = vadd.f32 %v9965_v12, %v8043_v60  ;;  %v9854_v11 = vpop.f32.mrb[12].mxu0 }
 0x68a   :  { %v9966_v57 = vpop.f32.mrb[44].mxu1  ;;  %v9855_v16 = vpop.f32.mrb[13].mxu0 }
 0x68b   :  { %v9967_v58 = vpop.f32.mrb[45].mxu1  ;;  %vm8293_vm14 = vcmp.gt.f32.partialorder %v8204_v8, 0.0  ;;  %v8326_v49 = vmul.f32 %v13939_v27, %v8204_v8  ;;  %v9856_v44 = vadd.f32 %v9855_v16, %v9854_v11  ;;  %v9857_v1 = vpop.f32.mrb[14].mxu0  ;;  %v8357_v52 = vsel %vm8292_vm13, %v8201_v23, %v8325_v21 }
 0x68c   :  { %v9968_v5 = vadd.f32 %v9967_v58, %v9966_v57  ;;  %v9969_v24 = vpop.f32.mrb[46].mxu1  ;;  %v9858_v46 = vpop.f32.mrb[15].mxu0 }
 0x68d   :  { %v9970_v62 = vpop.f32.mrb[47].mxu1  ;;  %v8048_v4 = vadd.f32 %v9856_v44, %v13933_v14  ;;  %v9859_v36 = vadd.f32 %v9858_v46, %v9857_v1  ;;  %v8358_v6 = vsel %vm8293_vm14, %v8204_v8, %v8326_v49 }
 0x68e   :  { %v9971_v28 = vadd.f32 %v9970_v62, %v9969_v24  ;;  %v8383_v19 = vpack.c.bf16 %v8358_v6, %v8357_v52 }
 0x68f   :  { %v8209_v37 = vadd.f32 %v9968_v5, %v8048_v4  ;;  %v8051_v53 = vadd.f32 %v9859_v36, %v13933_v14 }
 0x690   :  { %10072 = vmatprep.mubr.bf16.mxu0 %v8383_v19 }
 0x691   :  { %vm8294_vm15 = vcmp.gt.f32.partialorder %v8209_v37, 0.0  ;;  %v8327_v56 = vmul.f32 %v13939_v27, %v8209_v37  ;;  %v8212_v29 = vadd.f32 %v9971_v28, %v8051_v53  ;;  %v9860_v54 = vpop.f32.mrb[16].mxu0 }
 0x692   :  { %v9972_v33 = vpop.f32.mrb[48].mxu1  ;;  %v9861_v26 = vpop.f32.mrb[17].mxu0 }
 0x693   :  { %v9973_v10 = vpop.f32.mrb[49].mxu1  ;;  %vm8295_vm0 = vcmp.gt.f32.partialorder %v8212_v29, 0.0  ;;  %v8328_v35 = vmul.f32 %v13939_v27, %v8212_v29  ;;  %v9862_v20 = vadd.f32 %v9861_v26, %v9860_v54  ;;  %v9863_v7 = vpop.f32.mrb[18].mxu0  ;;  %v8359_v17 = vsel %vm8294_vm15, %v8209_v37, %v8327_v56 }
 0x694   :  { %v9975_v39 = vpop.f32.mrb[50].mxu1  ;;  %v9974_v45 = vadd.f32 %v9973_v10, %v9972_v33  ;;  %v9864_v47 = vpop.f32.mrb[19].mxu0 }
 0x695   :  { %v9976_v22 = vpop.f32.mrb[51].mxu1  ;;  %v8360_v25 = vsel %vm8295_vm0, %v8212_v29, %v8328_v35  ;;  %v8056_v51 = vadd.f32 %v9862_v20, %v13933_v14  ;;  %v9865_v40 = vadd.f32 %v9864_v47, %v9863_v7 }
 0x696   :  { %v9977_v30 = vadd.f32 %v9976_v22, %v9975_v39  ;;  %v8384_v13 = vpack.c.bf16 %v8360_v25, %v8359_v17 }
 0x697   :  { %v8217_v63 = vadd.f32 %v9974_v45, %v8056_v51  ;;  %v8059_v42 = vadd.f32 %v9865_v40, %v13933_v14 }
 0x698   :  { %10073 = vmatmul.mubr.bf16.gmra.mrb[60].mxu0 %v8384_v13 }
 0x699   :  { %vm8296_vm1 = vcmp.gt.f32.partialorder %v8217_v63, 0.0  ;;  %v8329_v18 = vmul.f32 %v13939_v27, %v8217_v63  ;;  %v8220_v3 = vadd.f32 %v9977_v30, %v8059_v42  ;;  %v9866_v50 = vpop.f32.mrb[20].mxu0 }
 0x69a   :  { %v9978_v41 = vpop.f32.mrb[52].mxu1  ;;  %v9867_v0 = vpop.f32.mrb[21].mxu0 }
 0x69b   :  { %v9979_v38 = vpop.f32.mrb[53].mxu1  ;;  %vm8297_vm2 = vcmp.gt.f32.partialorder %v8220_v3, 0.0  ;;  %v8330_v32 = vmul.f32 %v13939_v27, %v8220_v3  ;;  %v9868_v55 = vadd.f32 %v9867_v0, %v9866_v50  ;;  %v9869_v9 = vpop.f32.mrb[22].mxu0  ;;  %v8361_v15 = vsel %vm8296_vm1, %v8217_v63, %v8329_v18 }
 0x69c   :  { %v9980_v34 = vadd.f32 %v9979_v38, %v9978_v41  ;;  %v9981_v59 = vpop.f32.mrb[54].mxu1  ;;  %v9870_v48 = vpop.f32.mrb[23].mxu0 }
 0x69d   :  { %v9982_v2 = vpop.f32.mrb[55].mxu1  ;;  %v8064_v43 = vadd.f32 %v9868_v55, %v13933_v14  ;;  %v9871_v31 = vadd.f32 %v9870_v48, %v9869_v9  ;;  %v8362_v61 = vsel %vm8297_vm2, %v8220_v3, %v8330_v32 }
 0x69e   :  { %v9983_v12 = vadd.f32 %v9982_v2, %v9981_v59  ;;  %v8385_v23 = vpack.c.bf16 %v8362_v61, %v8361_v15 }
 0x69f   :  { %v8225_v60 = vadd.f32 %v9980_v34, %v8064_v43  ;;  %v8067_v21 = vadd.f32 %v9871_v31, %v13933_v14 }
 0x6a0   :  { %10076 = vmatprep.mubr.bf16.mxu0 %v8385_v23 }
 0x6a1   :  { %vm8298_vm3 = vcmp.gt.f32.partialorder %v8225_v60, 0.0  ;;  %v8331_v8 = vmul.f32 %v13939_v27, %v8225_v60  ;;  %v8228_v11 = vadd.f32 %v9983_v12, %v8067_v21  ;;  %v9872_v57 = vpop.f32.mrb[24].mxu0 }
 0x6a2   :  { %v9984_v16 = vpop.f32.mrb[56].mxu1  ;;  %v9873_v58 = vpop.f32.mrb[25].mxu0 }
 0x6a3   :  { %v9985_v49 = vpop.f32.mrb[57].mxu1  ;;  %vm8299_vm4 = vcmp.gt.f32.partialorder %v8228_v11, 0.0  ;;  %v8332_v44 = vmul.f32 %v13939_v27, %v8228_v11  ;;  %v9874_v5 = vadd.f32 %v9873_v58, %v9872_v57  ;;  %v9875_v1 = vpop.f32.mrb[26].mxu0  ;;  %v8363_v46 = vsel %vm8298_vm3, %v8225_v60, %v8331_v8 }
 0x6a4   :  { %v9987_v24 = vpop.f32.mrb[58].mxu1  ;;  %v9986_v62 = vadd.f32 %v9985_v49, %v9984_v16  ;;  %v9876_v52 = vpop.f32.mrb[27].mxu0 }
 0x6a5   :  { %v9988_v4 = vpop.f32.mrb[59].mxu1  ;;  %v8364_v36 = vsel %vm8299_vm4, %v8228_v11, %v8332_v44  ;;  %v8072_v28 = vadd.f32 %v9874_v5, %v13933_v14  ;;  %v9877_v6 = vadd.f32 %v9876_v52, %v9875_v1 }
 0x6a6   :  { %v9989_v19 = vadd.f32 %v9988_v4, %v9987_v24  ;;  %v8386_v37 = vpack.c.bf16 %v8364_v36, %v8363_v46 }
 0x6a7   :  { %v8233_v53 = vadd.f32 %v9986_v62, %v8072_v28  ;;  %v8075_v56 = vadd.f32 %v9877_v6, %v13933_v14 }
 0x6a8   :  { %10077 = vmatmul.mubr.bf16.gmra.mrb[64].mxu0 %v8386_v37 }
 0x6a9   :  { %vm8300_vm5 = vcmp.gt.f32.partialorder %v8233_v53, 0.0  ;;  %v8333_v29 = vmul.f32 %v13939_v27, %v8233_v53  ;;  %v8236_v54 = vadd.f32 %v9989_v19, %v8075_v56  ;;  %v9878_v33 = vpop.f32.mrb[28].mxu0 }
 0x6aa   :  { %v9990_v26 = vpop.f32.mrb[60].mxu1  ;;  %v9879_v10 = vpop.f32.mrb[29].mxu0 }
 0x6ab   :  { %v9991_v35 = vpop.f32.mrb[61].mxu1  ;;  %vm8301_vm6 = vcmp.gt.f32.partialorder %v8236_v54, 0.0  ;;  %v8334_v20 = vmul.f32 %v13939_v27, %v8236_v54  ;;  %v9880_v7 = vadd.f32 %v9879_v10, %v9878_v33  ;;  %v9881_v17 = vpop.f32.mrb[30].mxu0  ;;  %v8365_v25 = vsel %vm8300_vm5, %v8233_v53, %v8333_v29 }
 0x6ac   :  { %v9992_v39 = vadd.f32 %v9991_v35, %v9990_v26  ;;  %v9993_v45 = vpop.f32.mrb[62].mxu1  ;;  %v9882_v47 = vpop.f32.mrb[31].mxu0 }
 0x6ad   :  { %v9994_v22 = vpop.f32.mrb[63].mxu1  ;;  %v8080_v51 = vadd.f32 %v9880_v7, %v13933_v14  ;;  %v9883_v40 = vadd.f32 %v9882_v47, %v9881_v17  ;;  %v8366_v13 = vsel %vm8301_vm6, %v8236_v54, %v8334_v20 }
 0x6ae   :  { %v9995_v30 = vadd.f32 %v9994_v22, %v9993_v45  ;;  %v8387_v63 = vpack.c.bf16 %v8366_v13, %v8365_v25 }
 0x6af   :  { %v8241_v42 = vadd.f32 %v9992_v39, %v8080_v51  ;;  %v8083_v18 = vadd.f32 %v9883_v40, %v13933_v14 }
 0x6b0   :  { %10080 = vmatprep.mubr.bf16.mxu0 %v8387_v63 }
 0x6b1   :  { %vm8302_vm7 = vcmp.gt.f32.partialorder %v8241_v42, 0.0  ;;  %v8335_v3 = vmul.f32 %v13939_v27, %v8241_v42  ;;  %v8244_v50 = vadd.f32 %v9995_v30, %v8083_v18  ;;  %v9884_v41 = vpop.f32.mrb[32].mxu0 }
 0x6b2   :  { %v9996_v0 = vpop.f32.mrb[64].mxu1  ;;  %v9885_v38 = vpop.f32.mrb[33].mxu0 }
 0x6b3   :  { %v9997_v32 = vpop.f32.mrb[65].mxu1  ;;  %vm8303_vm8 = vcmp.gt.f32.partialorder %v8244_v50, 0.0  ;;  %v8336_v55 = vmul.f32 %v13939_v27, %v8244_v50  ;;  %v9886_v34 = vadd.f32 %v9885_v38, %v9884_v41  ;;  %v9887_v9 = vpop.f32.mrb[34].mxu0  ;;  %v8367_v48 = vsel %vm8302_vm7, %v8241_v42, %v8335_v3 }
 0x6b4   :  { %v9999_v59 = vpop.f32.mrb[66].mxu1  ;;  %v9998_v2 = vadd.f32 %v9997_v32, %v9996_v0  ;;  %v9888_v15 = vpop.f32.mrb[35].mxu0 }
 0x6b5   :  { %v10000_v43 = vpop.f32.mrb[67].mxu1  ;;  %v8368_v31 = vsel %vm8303_vm8, %v8244_v50, %v8336_v55  ;;  %v8088_v12 = vadd.f32 %v9886_v34, %v13933_v14  ;;  %v9889_v61 = vadd.f32 %v9888_v15, %v9887_v9 }
 0x6b6   :  { %v10001_v23 = vadd.f32 %v10000_v43, %v9999_v59  ;;  %v8388_v60 = vpack.c.bf16 %v8368_v31, %v8367_v48 }
 0x6b7   :  { %v8249_v21 = vadd.f32 %v9998_v2, %v8088_v12  ;;  %v8091_v8 = vadd.f32 %v9889_v61, %v13933_v14 }
 0x6b8   :  { %10081 = vmatmul.mubr.bf16.gmra.mrb[68].mxu0 %v8388_v60 }
 0x6b9   :  { %vm8304_vm9 = vcmp.gt.f32.partialorder %v8249_v21, 0.0  ;;  %v8337_v11 = vmul.f32 %v13939_v27, %v8249_v21  ;;  %v8252_v57 = vadd.f32 %v10001_v23, %v8091_v8  ;;  %v9890_v16 = vpop.f32.mrb[36].mxu0 }
 0x6ba   :  { %v10002_v58 = vpop.f32.mrb[68].mxu1  ;;  %v9891_v49 = vpop.f32.mrb[37].mxu0 }
 0x6bb   :  { %v10003_v44 = vpop.f32.mrb[69].mxu1  ;;  %vm8305_vm10 = vcmp.gt.f32.partialorder %v8252_v57, 0.0  ;;  %v8338_v5 = vmul.f32 %v13939_v27, %v8252_v57  ;;  %v9892_v1 = vadd.f32 %v9891_v49, %v9890_v16  ;;  %v9893_v46 = vpop.f32.mrb[38].mxu0  ;;  %v8369_v36 = vsel %vm8304_vm9, %v8249_v21, %v8337_v11 }
 0x6bc   :  { %v10004_v24 = vadd.f32 %v10003_v44, %v10002_v58  ;;  %v10005_v62 = vpop.f32.mrb[70].mxu1  ;;  %v9894_v52 = vpop.f32.mrb[39].mxu0 }
 0x6bd   :  { %v10006_v4 = vpop.f32.mrb[71].mxu1  ;;  %v8096_v28 = vadd.f32 %v9892_v1, %v13933_v14  ;;  %v9895_v6 = vadd.f32 %v9894_v52, %v9893_v46  ;;  %v8370_v37 = vsel %vm8305_vm10, %v8252_v57, %v8338_v5  ;;  %v14007_v1 = vld [vmem:[%s14067_s11] ss:$0 sm:$0xff]  ;;  %s11820_s11 = smov [#allocation9]  }
 0x6be   :  { %v10007_v19 = vadd.f32 %v10006_v4, %v10005_v62  ;;  %v8389_v53 = vpack.c.bf16 %v8370_v37, %v8369_v36  ;;  %s8982_s2 = sshll.u32 %s11820_s11, 4  ;;  %s8983_s2 = int_to_ptr.vmem [resolvable:$true] %s8982_s2 }
 0x6bf   :  { %v8257_v56 = vadd.f32 %v10004_v24, %v8096_v28  ;;  %v8099_v29 = vadd.f32 %v9895_v6, %v13933_v14  ;;  %s11782_s25 = scalar_lea.vmem %s8983_s2, 2048  ;;  %p11787_p11 = scmp.lt.s32.totalorder %s8983_s2, %s8983_s2 }
 0x6c0   :  { %10084 = vmatprep.mubr.bf16.mxu0 %v8389_v53  ;;  %p11783_p10 = scmp.ne.s32.totalorder %s8983_s2, %s11782_s25  ;;  %p11788_p12 = scmp.lt.s32.totalorder %s11782_s25, %s11782_s25 }
 0x6c1   :  { %vm8306_vm11 = vcmp.gt.f32.partialorder %v8257_v56, 0.0  ;;  %v8339_v54 = vmul.f32 %v13939_v27, %v8257_v56  ;;  %v8260_v33 = vadd.f32 %v10007_v19, %v8099_v29  ;;  %v9896_v26 = vpop.f32.mrb[40].mxu0 }
 0x6c2   :  { %v10008_v10 = vpop.f32.mrb[72].mxu1  ;;  %v9897_v35 = vpop.f32.mrb[41].mxu0  ;;  %p11789_p13 = por %p11788_p12, %p11787_p11 }
 0x6c3   :  { %v10009_v20 = vpop.f32.mrb[73].mxu1  ;;  %vm8307_vm12 = vcmp.gt.f32.partialorder %v8260_v33, 0.0  ;;  %v8340_v7 = vmul.f32 %v13939_v27, %v8260_v33  ;;  %v9898_v39 = vadd.f32 %v9897_v35, %v9896_v26  ;;  %v9899_v17 = vpop.f32.mrb[42].mxu0  ;;  %v8371_v47 = vsel %vm8306_vm11, %v8257_v56, %v8339_v54 }
 0x6c4   :  { %v10011_v45 = vpop.f32.mrb[74].mxu1  ;;  %v10010_v22 = vadd.f32 %v10009_v20, %v10008_v10  ;;  %v9900_v25 = vpop.f32.mrb[43].mxu0  ;;  %p11790_p0 = pnand %p11789_p13, %p11783_p10 }
 0x6c5   :  { %v10012_v51 = vpop.f32.mrb[75].mxu1  ;;  %v8372_v40 = vsel %vm8307_vm12, %v8260_v33, %v8340_v7  ;;  %v8104_v30 = vadd.f32 %v9898_v39, %v13933_v14  ;;  %v9901_v13 = vadd.f32 %v9900_v25, %v9899_v17 }
 0x6c6   :  { %v10013_v63 = vadd.f32 %v10012_v51, %v10011_v45  ;;  %v8390_v42 = vpack.c.bf16 %v8372_v40, %v8371_v47 }
 0x6c7   :  { %v8265_v18 = vadd.f32 %v10010_v22, %v8104_v30  ;;  %v8107_v3 = vadd.f32 %v9901_v13, %v13933_v14 }
 0x6c8   :  { %10085 = vmatmul.mubr.bf16.gmra.mrb[72].mxu0 %v8390_v42 }
 0x6c9   :  { %vm8308_vm13 = vcmp.gt.f32.partialorder %v8265_v18, 0.0  ;;  %v8341_v50 = vmul.f32 %v13939_v27, %v8265_v18  ;;  %v8268_v41 = vadd.f32 %v10013_v63, %v8107_v3  ;;  %v9902_v0 = vpop.f32.mrb[44].mxu0 }
 0x6ca   :  { %v10014_v38 = vpop.f32.mrb[76].mxu1  ;;  %v9903_v32 = vpop.f32.mrb[45].mxu0 }
 0x6cb   :  { %v10015_v55 = vpop.f32.mrb[77].mxu1  ;;  %vm8309_vm14 = vcmp.gt.f32.partialorder %v8268_v41, 0.0  ;;  %v8342_v34 = vmul.f32 %v13939_v27, %v8268_v41  ;;  %v9904_v9 = vadd.f32 %v9903_v32, %v9902_v0  ;;  %v9905_v48 = vpop.f32.mrb[46].mxu0  ;;  %v8373_v31 = vsel %vm8308_vm13, %v8265_v18, %v8341_v50 }
 0x6cc   :  { %v10016_v59 = vadd.f32 %v10015_v55, %v10014_v38  ;;  %v10017_v2 = vpop.f32.mrb[78].mxu1  ;;  %v9906_v15 = vpop.f32.mrb[47].mxu0 }
 0x6cd   :  { %v10018_v43 = vpop.f32.mrb[79].mxu1  ;;  %v8112_v12 = vadd.f32 %v9904_v9, %v13933_v14  ;;  %v9907_v61 = vadd.f32 %v9906_v15, %v9905_v48  ;;  %v8374_v60 = vsel %vm8309_vm14, %v8268_v41, %v8342_v34 }
 0x6ce   :  { %v10019_v23 = vadd.f32 %v10018_v43, %v10017_v2  ;;  %v8391_v21 = vpack.c.bf16 %v8374_v60, %v8373_v31 }
 0x6cf   :  { %v8273_v8 = vadd.f32 %v10016_v59, %v8112_v12  ;;  %v8115_v11 = vadd.f32 %v9907_v61, %v13933_v14 }
 0x6d0   :  { %10088 = vmatprep.mubr.bf16.mxu0 %v8391_v21 }
 0x6d1   :  { %v8343_v57 = vmul.f32 %v13939_v27, %v8273_v8  ;;  %v8276_v16 = vadd.f32 %v10019_v23, %v8115_v11  ;;  %vm8310_vm15 = vcmp.gt.f32.partialorder %v8273_v8, 0.0 }
 0x6d3   :  { %vm8311_vm0 = vcmp.gt.f32.partialorder %v8276_v16, 0.0  ;;  %v8344_v58 = vmul.f32 %v13939_v27, %v8276_v16  ;;  %v8375_v49 = vsel %vm8310_vm15, %v8273_v8, %v8343_v57 }
 0x6d5   :  { %v8376_v44 = vsel %vm8311_vm0, %v8276_v16, %v8344_v58 }
 0x6d6   :  { %v8392_v5 = vpack.c.bf16 %v8376_v44, %v8375_v49 }
 0x6d8   :  { %10089 = vmatmul.mubr.bf16.gmra.mrb[76].mxu0 %v8392_v5 }
 0x73b   :  { %v10062_v24 = vpop.f32.mrb[48].mxu0 }
 0x73c   :  { %v8507_v14 = vadd.f32 %v10062_v24, %v14007_v1  ;;  %v8498_v46 = vpop.f32.mrb[49].mxu0 }
 0x73d   :  { %v8499_v62 = vadd.f32 %v14007_v1, %v8498_v46  ;;  %v10063_v52 = vpop.f32.mrb[50].mxu0 }
 0x73e   :  { %v9607_v4 = vmul.f32 -1.442695, %v8507_v14  ;;  %v8510_v36 = vadd.f32 %v10063_v52, %v14007_v1  ;;  %v8501_v27 = vpop.f32.mrb[51].mxu0 }
 0x73f   :  { %v9605_v28 = vmul.f32 -1.442695, %v8499_v62  ;;  %v8502_v6 = vadd.f32 %v14007_v1, %v8501_v27 }
 0x740   :  { %11583 = vpow2.f32 %v9607_v4  ;;  %v9608_v19 = vmul.f32 -1.442695, %v8510_v36 }
 0x741   :  { %11585 = vpow2.f32 %v9605_v28  ;;  %v9606_v37 = vmul.f32 -1.442695, %v8502_v6 }
 0x742   :  { %11587 = vpow2.f32 %v9608_v19 }
 0x743   :  { %11589 = vpow2.f32 %v9606_v37 }
 0x74a   :  { %v11584_v53 = vpop.eup %11583 }
 0x74b   :  { %v11586_v56 = vpop.eup %11585  ;;  %v8723_v29 = vadd.f32 1.0, %v11584_v53  ;;  %v10066_v54 = vpop.f32.mrb[52].mxu0 }
 0x74c   :  { %v11588_v33 = vpop.eup %11587  ;;  %v8721_v26 = vadd.f32 1.0, %v11586_v56  ;;  %v8523_v10 = vadd.f32 %v10066_v54, %v14007_v1  ;;  %v8514_v35 = vpop.f32.mrb[53].mxu0 }
 0x74d   :  { %v11590_v20 = vpop.eup %11589  ;;  %11591 = vrcp.f32 %v8723_v29  ;;  %v8724_v7 = vadd.f32 1.0, %v11588_v33  ;;  %v8515_v39 = vadd.f32 %v14007_v1, %v8514_v35  ;;  %v10067_v17 = vpop.f32.mrb[54].mxu0 }
 0x74e   :  { %11593 = vrcp.f32 %v8721_v26  ;;  %v8722_v45 = vadd.f32 1.0, %v11590_v20  ;;  %v9611_v47 = vmul.f32 -1.442695, %v8523_v10  ;;  %v8526_v22 = vadd.f32 %v10067_v17, %v14007_v1  ;;  %v8517_v25 = vpop.f32.mrb[55].mxu0 }
 0x74f   :  { %11595 = vrcp.f32 %v8724_v7  ;;  %v9609_v51 = vmul.f32 -1.442695, %v8515_v39  ;;  %v8518_v40 = vadd.f32 %v14007_v1, %v8517_v25 }
 0x750   :  { %11597 = vrcp.f32 %v8722_v45  ;;  %v9612_v30 = vmul.f32 -1.442695, %v8526_v22 }
 0x751   :  { %11599 = vpow2.f32 %v9611_v47  ;;  %v9610_v13 = vmul.f32 -1.442695, %v8518_v40 }
 0x752   :  { %11601 = vpow2.f32 %v9609_v51 }
 0x753   :  { %11603 = vpow2.f32 %v9612_v30 }
 0x754   :  { %11605 = vpow2.f32 %v9610_v13 }
 0x757   :  { %v11592_v63 = vpop.eup %11591 }
 0x758   :  { %v11594_v42 = vpop.eup %11593 }
 0x759   :  { %v11596_v18 = vpop.eup %11595 }
 0x75a   :  { %v11598_v3 = vpop.eup %11597  ;;  %v9709_v50 = vpack.c.bf16 %v11596_v18, %v11592_v63 }
 0x75b   :  { %v11600_v41 = vpop.eup %11599  ;;  %v9704_v0 = vpack.c.bf16 %v11598_v3, %v11594_v42  ;;  %v10070_v38 = vpop.f32.mrb[56].mxu0 }
 0x75c   :  { %v11602_v32 = vpop.eup %11601  ;;  %9781 = vst [vmem:[#allocation9 + $0x8] sm:$0xff] %v9709_v50   ;;  %v8727_v55 = vadd.f32 1.0, %v11600_v41  ;;  %v8539_v34 = vadd.f32 %v10070_v38, %v14007_v1  ;;  %v8530_v9 = vpop.f32.mrb[57].mxu0 }
 0x75d   :  { %v11604_v59 = vpop.eup %11603  ;;  %9705 = vst [vmem:[#allocation9] sm:$0xff] %v9704_v0   ;;  %v8725_v48 = vadd.f32 1.0, %v11602_v32  ;;  %v8531_v2 = vadd.f32 %v14007_v1, %v8530_v9  ;;  %v10071_v15 = vpop.f32.mrb[58].mxu0 }
 0x75e   :  { %v11606_v43 = vpop.eup %11605  ;;  %11607 = vrcp.f32 %v8727_v55  ;;  %v8728_v31 = vadd.f32 1.0, %v11604_v59  ;;  %v9615_v12 = vmul.f32 -1.442695, %v8539_v34  ;;  %v8542_v61 = vadd.f32 %v10071_v15, %v14007_v1  ;;  %v8533_v23 = vpop.f32.mrb[59].mxu0 }
 0x75f   :  { %11609 = vrcp.f32 %v8725_v48  ;;  %v8726_v60 = vadd.f32 1.0, %v11606_v43  ;;  %v9613_v21 = vmul.f32 -1.442695, %v8531_v2  ;;  %v8534_v8 = vadd.f32 %v14007_v1, %v8533_v23 }
 0x760   :  { %11611 = vrcp.f32 %v8728_v31  ;;  %v9616_v11 = vmul.f32 -1.442695, %v8542_v61 }
 0x761   :  { %11613 = vrcp.f32 %v8726_v60  ;;  %v9614_v57 = vmul.f32 -1.442695, %v8534_v8 }
 0x762   :  { %11615 = vpow2.f32 %v9615_v12 }
 0x763   :  { %11617 = vpow2.f32 %v9613_v21 }
 0x764   :  { %11619 = vpow2.f32 %v9616_v11 }
 0x765   :  { %11621 = vpow2.f32 %v9614_v57 }
 0x768   :  { %v11608_v16 = vpop.eup %11607 }
 0x769   :  { %v11610_v58 = vpop.eup %11609 }
 0x76a   :  { %v11612_v49 = vpop.eup %11611 }
 0x76b   :  { %v11614_v44 = vpop.eup %11613  ;;  %v9719_v5 = vpack.c.bf16 %v11612_v49, %v11608_v16  ;;  %v10074_v24 = vpop.f32.mrb[60].mxu0 }
 0x76c   :  { %v11616_v14 = vpop.eup %11615  ;;  %v9714_v46 = vpack.c.bf16 %v11614_v44, %v11610_v58  ;;  %v8555_v62 = vadd.f32 %v10074_v24, %v14007_v1  ;;  %v8546_v52 = vpop.f32.mrb[61].mxu0 }
 0x76d   :  { %v11618_v4 = vpop.eup %11617  ;;  %9783 = vst [vmem:[#allocation9 + $0x18] sm:$0xff] %v9719_v5   ;;  %v8731_v36 = vadd.f32 1.0, %v11616_v14  ;;  %v8547_v27 = vadd.f32 %v14007_v1, %v8546_v52  ;;  %v10075_v28 = vpop.f32.mrb[62].mxu0 }
 0x76e   :  { %v11620_v6 = vpop.eup %11619  ;;  %9782 = vst [vmem:[#allocation9 + $0x10] sm:$0xff] %v9714_v46   ;;  %v8729_v19 = vadd.f32 1.0, %v11618_v4  ;;  %v8558_v37 = vadd.f32 %v10075_v28, %v14007_v1  ;;  %v8549_v53 = vpop.f32.mrb[63].mxu0  ;;  %v9619_v54 = vmul.f32 -1.442695, %v8555_v62 }
 0x76f   :  { %v11622_v56 = vpop.eup %11621  ;;  %11623 = vrcp.f32 %v8731_v36  ;;  %v8732_v29 = vadd.f32 1.0, %v11620_v6  ;;  %v8550_v33 = vadd.f32 %v14007_v1, %v8549_v53  ;;  %v9617_v10 = vmul.f32 -1.442695, %v8547_v27 }
 0x770   :  { %11625 = vrcp.f32 %v8729_v19  ;;  %v8730_v26 = vadd.f32 1.0, %v11622_v56  ;;  %v9620_v35 = vmul.f32 -1.442695, %v8558_v37 }
 0x771   :  { %11627 = vrcp.f32 %v8732_v29  ;;  %v9618_v20 = vmul.f32 -1.442695, %v8550_v33 }
 0x772   :  { %11629 = vrcp.f32 %v8730_v26 }
 0x773   :  { %11631 = vpow2.f32 %v9619_v54 }
 0x774   :  { %11633 = vpow2.f32 %v9617_v10 }
 0x775   :  { %11635 = vpow2.f32 %v9620_v35 }
 0x776   :  { %11637 = vpow2.f32 %v9618_v20 }
 0x779   :  { %v11624_v7 = vpop.eup %11623 }
 0x77a   :  { %v11626_v39 = vpop.eup %11625 }
 0x77b   :  { %v11628_v17 = vpop.eup %11627  ;;  %v10078_v45 = vpop.f32.mrb[64].mxu0 }
 0x77c   :  { %v11630_v47 = vpop.eup %11629  ;;  %v9729_v22 = vpack.c.bf16 %v11628_v17, %v11624_v7  ;;  %v8571_v25 = vadd.f32 %v10078_v45, %v14007_v1  ;;  %v8562_v51 = vpop.f32.mrb[65].mxu0 }
 0x77d   :  { %v11632_v40 = vpop.eup %11631  ;;  %v9724_v30 = vpack.c.bf16 %v11630_v47, %v11626_v39  ;;  %v8563_v13 = vadd.f32 %v14007_v1, %v8562_v51  ;;  %v10079_v63 = vpop.f32.mrb[66].mxu0 }
 0x77e   :  { %v11634_v42 = vpop.eup %11633  ;;  %9785 = vst [vmem:[#allocation9 + $0x28] sm:$0xff] %v9729_v22   ;;  %v8735_v18 = vadd.f32 1.0, %v11632_v40  ;;  %v8574_v3 = vadd.f32 %v10079_v63, %v14007_v1  ;;  %v8565_v50 = vpop.f32.mrb[67].mxu0  ;;  %v9623_v34 = vmul.f32 -1.442695, %v8571_v25 }
 0x77f   :  { %v11636_v41 = vpop.eup %11635  ;;  %9784 = vst [vmem:[#allocation9 + $0x20] sm:$0xff] %v9724_v30   ;;  %v8733_v0 = vadd.f32 1.0, %v11634_v42  ;;  %v8566_v38 = vadd.f32 %v14007_v1, %v8565_v50  ;;  %v9621_v59 = vmul.f32 -1.442695, %v8563_v13 }
 0x780   :  { %v11638_v32 = vpop.eup %11637  ;;  %11639 = vrcp.f32 %v8735_v18  ;;  %v8736_v55 = vadd.f32 1.0, %v11636_v41  ;;  %v9624_v48 = vmul.f32 -1.442695, %v8574_v3 }
 0x781   :  { %11641 = vrcp.f32 %v8733_v0  ;;  %v8734_v9 = vadd.f32 1.0, %v11638_v32  ;;  %v9622_v2 = vmul.f32 -1.442695, %v8566_v38 }
 0x782   :  { %11643 = vrcp.f32 %v8736_v55 }
 0x783   :  { %11645 = vrcp.f32 %v8734_v9 }
 0x784   :  { %11647 = vpow2.f32 %v9623_v34 }
 0x785   :  { %11649 = vpow2.f32 %v9621_v59 }
 0x786   :  { %11651 = vpow2.f32 %v9624_v48 }
 0x787   :  { %11653 = vpow2.f32 %v9622_v2 }
 0x78a   :  { %v11640_v15 = vpop.eup %11639 }
 0x78b   :  { %v11642_v43 = vpop.eup %11641  ;;  %v10082_v31 = vpop.f32.mrb[68].mxu0 }
 0x78c   :  { %v11644_v12 = vpop.eup %11643  ;;  %v8587_v61 = vadd.f32 %v10082_v31, %v14007_v1  ;;  %v8578_v23 = vpop.f32.mrb[69].mxu0 }
 0x78d   :  { %v11646_v60 = vpop.eup %11645  ;;  %v9739_v21 = vpack.c.bf16 %v11644_v12, %v11640_v15  ;;  %v8579_v8 = vadd.f32 %v14007_v1, %v8578_v23  ;;  %v10083_v11 = vpop.f32.mrb[70].mxu0 }
 0x78e   :  { %v11648_v57 = vpop.eup %11647  ;;  %v9734_v16 = vpack.c.bf16 %v11646_v60, %v11642_v43  ;;  %v9627_v58 = vmul.f32 -1.442695, %v8587_v61  ;;  %v8590_v49 = vadd.f32 %v10083_v11, %v14007_v1  ;;  %v8581_v44 = vpop.f32.mrb[71].mxu0 }
 0x78f   :  { %v11650_v5 = vpop.eup %11649  ;;  %9787 = vst [vmem:[#allocation9 + $0x38] sm:$0xff] %v9739_v21   ;;  %v8739_v24 = vadd.f32 1.0, %v11648_v57  ;;  %v8582_v14 = vadd.f32 %v14007_v1, %v8581_v44  ;;  %v9625_v36 = vmul.f32 -1.442695, %v8579_v8 }
 0x790   :  { %v11652_v46 = vpop.eup %11651  ;;  %9786 = vst [vmem:[#allocation9 + $0x30] sm:$0xff] %v9734_v16   ;;  %v8737_v62 = vadd.f32 1.0, %v11650_v5  ;;  %11655 = vpow2.f32 %v9627_v58  ;;  %v9628_v28 = vmul.f32 -1.442695, %v8590_v49 }
 0x791   :  { %v11654_v52 = vpop.eup %11653  ;;  %11657 = vrcp.f32 %v8739_v24  ;;  %v8740_v4 = vadd.f32 1.0, %v11652_v46  ;;  %v9626_v6 = vmul.f32 -1.442695, %v8582_v14 }
 0x792   :  { %11659 = vrcp.f32 %v8737_v62  ;;  %v8738_v27 = vadd.f32 1.0, %v11654_v52 }
 0x793   :  { %11661 = vrcp.f32 %v8740_v4 }
 0x794   :  { %11663 = vrcp.f32 %v8738_v27 }
 0x795   :  { %11665 = vpow2.f32 %v9625_v36 }
 0x796   :  { %11667 = vpow2.f32 %v9628_v28 }
 0x797   :  { %11669 = vpow2.f32 %v9626_v6 }
 0x79a   :  { %v11656_v19 = vpop.eup %11655 }
 0x79b   :  { %v11658_v37 = vpop.eup %11657  ;;  %v8743_v53 = vadd.f32 1.0, %v11656_v19  ;;  %v10086_v56 = vpop.f32.mrb[72].mxu0 }
 0x79c   :  { %v11660_v29 = vpop.eup %11659  ;;  %v8603_v54 = vadd.f32 %v10086_v56, %v14007_v1  ;;  %v8594_v33 = vpop.f32.mrb[73].mxu0 }
 0x79d   :  { %v11662_v26 = vpop.eup %11661  ;;  %v8595_v10 = vadd.f32 %v14007_v1, %v8594_v33  ;;  %v10087_v35 = vpop.f32.mrb[74].mxu0  ;;  %11671 = vrcp.f32 %v8743_v53 }
 0x79e   :  { %v11664_v20 = vpop.eup %11663  ;;  %v9749_v7 = vpack.c.bf16 %v11662_v26, %v11658_v37  ;;  %v9631_v39 = vmul.f32 -1.442695, %v8603_v54  ;;  %v8606_v17 = vadd.f32 %v10087_v35, %v14007_v1  ;;  %v8597_v45 = vpop.f32.mrb[75].mxu0 }
 0x79f   :  { %v11666_v47 = vpop.eup %11665  ;;  %v9744_v22 = vpack.c.bf16 %v11664_v20, %v11660_v29  ;;  %v9629_v25 = vmul.f32 -1.442695, %v8595_v10  ;;  %v8598_v51 = vadd.f32 %v14007_v1, %v8597_v45 }
 0x7a0   :  { %v11668_v40 = vpop.eup %11667  ;;  %9789 = vst [vmem:[#allocation9 + $0x48] sm:$0xff] %v9749_v7   ;;  %v8741_v30 = vadd.f32 1.0, %v11666_v47  ;;  %11673 = vpow2.f32 %v9631_v39  ;;  %v9632_v42 = vmul.f32 -1.442695, %v8606_v17 }
 0x7a1   :  { %v11670_v13 = vpop.eup %11669  ;;  %9788 = vst [vmem:[#allocation9 + $0x40] sm:$0xff] %v9744_v22   ;;  %v8744_v63 = vadd.f32 1.0, %v11668_v40  ;;  %11675 = vpow2.f32 %v9629_v25  ;;  %v9630_v3 = vmul.f32 -1.442695, %v8598_v51 }
 0x7a2   :  { %11677 = vrcp.f32 %v8741_v30  ;;  %v8742_v18 = vadd.f32 1.0, %v11670_v13 }
 0x7a3   :  { %11679 = vrcp.f32 %v8744_v63 }
 0x7a4   :  { %11681 = vrcp.f32 %v8742_v18 }
 0x7a5   :  { %11683 = vpow2.f32 %v9632_v42 }
 0x7a6   :  { %11685 = vpow2.f32 %v9630_v3 }
 0x7a7   :  { %v11672_v50 = vpop.eup %11671 }
 0x7aa   :  { %v11674_v41 = vpop.eup %11673 }
 0x7ab   :  { %v11676_v0 = vpop.eup %11675  ;;  %v8747_v38 = vadd.f32 1.0, %v11674_v41  ;;  %v10090_v32 = vpop.f32.mrb[76].mxu0 }
 0x7ac   :  { %v11678_v55 = vpop.eup %11677  ;;  %v8745_v34 = vadd.f32 1.0, %v11676_v0  ;;  %v8619_v9 = vadd.f32 %v10090_v32, %v14007_v1  ;;  %v8610_v59 = vpop.f32.mrb[77].mxu0 }
 0x7ad   :  { %v11680_v48 = vpop.eup %11679  ;;  %v8611_v2 = vadd.f32 %v14007_v1, %v8610_v59  ;;  %v10091_v15 = vpop.f32.mrb[78].mxu0  ;;  %11687 = vrcp.f32 %v8747_v38 }
 0x7ae   :  { %v11682_v43 = vpop.eup %11681  ;;  %v9759_v31 = vpack.c.bf16 %v11680_v48, %v11672_v50  ;;  %v9635_v12 = vmul.f32 -1.442695, %v8619_v9  ;;  %v8622_v61 = vadd.f32 %v10091_v15, %v14007_v1  ;;  %v8613_v23 = vpop.f32.mrb[79].mxu0  ;;  %11689 = vrcp.f32 %v8745_v34 }
 0x7af   :  { %v11684_v60 = vpop.eup %11683  ;;  %v9754_v21 = vpack.c.bf16 %v11682_v43, %v11678_v55  ;;  %v9633_v8 = vmul.f32 -1.442695, %v8611_v2  ;;  %v8614_v11 = vadd.f32 %v14007_v1, %v8613_v23 }
 0x7b0   :  { %v11686_v57 = vpop.eup %11685  ;;  %9791 = vst [vmem:[#allocation9 + $0x58] sm:$0xff] %v9759_v31   ;;  %v8748_v16 = vadd.f32 1.0, %v11684_v60  ;;  %11691 = vpow2.f32 %v9635_v12  ;;  %v9636_v58 = vmul.f32 -1.442695, %v8622_v61 }
 0x7b1   :  { %9790 = vst [vmem:[#allocation9 + $0x50] sm:$0xff] %v9754_v21   ;;  %v8746_v49 = vadd.f32 1.0, %v11686_v57  ;;  %11693 = vpow2.f32 %v9633_v8  ;;  %v9634_v44 = vmul.f32 -1.442695, %v8614_v11 }
 0x7b2   :  { %11695 = vrcp.f32 %v8748_v16 }
 0x7b3   :  { %11697 = vrcp.f32 %v8746_v49 }
 0x7b4   :  { %11699 = vpow2.f32 %v9636_v58 }
 0x7b5   :  { %11701 = vpow2.f32 %v9634_v44 }
 0x7b7   :  { %v11688_v5 = vpop.eup %11687 }
 0x7b8   :  { %v11690_v24 = vpop.eup %11689 }
 0x7ba   :  { %v11692_v14 = vpop.eup %11691 }
 0x7bb   :  { %v11694_v46 = vpop.eup %11693  ;;  %v8751_v62 = vadd.f32 1.0, %v11692_v14 }
 0x7bc   :  { %v11696_v52 = vpop.eup %11695  ;;  %v8749_v1 = vadd.f32 1.0, %v11694_v46 }
 0x7bd   :  { %v11698_v4 = vpop.eup %11697  ;;  %v9769_v36 = vpack.c.bf16 %v11696_v52, %v11688_v5  ;;  %11703 = vrcp.f32 %v8751_v62 }
 0x7be   :  { %v11700_v27 = vpop.eup %11699  ;;  %v9764_v28 = vpack.c.bf16 %v11698_v4, %v11690_v24  ;;  %11705 = vrcp.f32 %v8749_v1 }
 0x7bf   :  { %v11702_v6 = vpop.eup %11701  ;;  %9793 = vst [vmem:[#allocation9 + $0x68] sm:$0xff] %v9769_v36   ;;  %v8752_v19 = vadd.f32 1.0, %v11700_v27 }
 0x7c0   :  { %9792 = vst [vmem:[#allocation9 + $0x60] sm:$0xff] %v9764_v28   ;;  %v8750_v37 = vadd.f32 1.0, %v11702_v6 }
 0x7c1   :  { %11707 = vrcp.f32 %v8752_v19 }
 0x7c2   :  { %11709 = vrcp.f32 %v8750_v37 }
 0x7c7   :  { %v11704_v53 = vpop.eup %11703 }
 0x7c8   :  { %v11706_v56 = vpop.eup %11705 }
 0x7cb   :  { %v11708_v29 = vpop.eup %11707 }
 0x7cc   :  { %v11710_v54 = vpop.eup %11709  ;;  %v9779_v33 = vpack.c.bf16 %v11708_v29, %v11704_v53 }
 0x7cd   :  { %v9774_v26 = vpack.c.bf16 %v11710_v54, %v11706_v56 }
 0x7ce   :  { %9795 = vst [vmem:[#allocation9 + $0x78] sm:$0xff] %v9779_v33  }
 0x7cf   :  { %9794 = vst [vmem:[#allocation9 + $0x70] sm:$0xff] %v9774_v26  }
 0x7d0   :  { %11793 = shalt.err (!%p11790_p0)
}
 0x7d1   :  { %s11794_s27 = scalar_lea.hbm %s14068_s12, 2048 }
 0x7d2   :  { %p11795_p1 = scmp.ne.s32.totalorder %s14068_s12, %s11794_s27  ;;  %p11798_p2 = scmp.lt.u32.totalorder %s11794_s27, %s14068_s12 }
 0x7d4   :  { %p11800_p3 = pnand %p11798_p2, %p11795_p1 }
 0x7d6   :  { %11803 = shalt.err (!%p11800_p3)
}
 0x7d7   :  { %8988 = dma.vmem_to_hbm [thread:$0]  %s8983_s2, 2048, %s14068_s12, [#allocation5], %s11817_s3, %s11817_s3, %s11818_s18  }
 0x7d8   :  { %11808 = dma.done.wait [#allocation5], 2048  }
 0x7d9   :  { %11809 = vsyncadd [#allocation5], 4294965248 }
 0x7da   :  { %8992 = vsyncpa [#allocation4], 1 }
 0x7db   :  { %8993 = vsyncpa [#allocation7], 1 }
 0x7dc   :  { %8994 = vsyncpa [#allocation5], 1 }

</bundles_post_ra>
